<compile_context>
chip_gen: v6e
topology: v6e:2x2x1
jax: 0.10.0
libtpu: 0.0.40
codegen_flags: <defaults>
</compile_context>

<pallas_src>
import jax
import jax.numpy as jnp
from jax.experimental import pallas as pl
from jax.experimental.pallas import tpu as pltpu


_VMEM_LIMIT = 32 * 1024 * 1024   # safe on v5e/v6e (128 MiB) and v7x (64 MiB)
_TM_MAX = 512                    # max M-tile rows
_CS0_CIN_PAD = 5                 # pad RGB 3 -> 8 input channels for layer 0


def _round_up(x, m):
    return (x + m - 1) // m * m


# ----------------------------------------------------------------------------
# Pallas kernels: bf16 MXU matmul, f32 accumulation, bf16 store
# ----------------------------------------------------------------------------
def _conv_matmul_kernel(a_ref, w_ref, o_ref):
    # a: (TM, K) bf16 activated im2col patches; w: (K, N) bf16; o: (TM, N) bf16
    acc = jnp.dot(a_ref[...], w_ref[...], preferred_element_type=jnp.float32)
    o_ref[...] = acc.astype(o_ref.dtype)


def _dual_conv_matmul_kernel(a_ref, r_ref, wa_ref, wr_ref, o_ref):
    # Conv over channel-concat([x, rem]) without materializing the concat:
    #   out = patches_x @ Wx + patches_rem @ Wr   (both branches pre-activated)
    acc = jnp.dot(a_ref[...], wa_ref[...], preferred_element_type=jnp.float32)
    acc = acc + jnp.dot(r_ref[...], wr_ref[...],
                        preferred_element_type=jnp.float32)
    o_ref[...] = acc.astype(o_ref.dtype)


# ----------------------------------------------------------------------------
# M tiling: >=2 "parallel" grid steps when M >= 256 (v7x megacore), tiles a
# multiple of 128 rows (v5e 4x128^2 MXU), capped at 512 rows.
# ----------------------------------------------------------------------------
def _m_tiling(m):
    if m < 256:
        tm = _round_up(max(m, 16), 16)          # single tile == padded extent
    else:
        ntiles = max(2, pl.cdiv(m, _TM_MAX))    # >=2 steps for two TCs
        tm = _round_up(pl.cdiv(m, ntiles), 128)
    mp = _round_up(m, tm)
    return tm, mp


# ----------------------------------------------------------------------------
# pallas_call wrappers (M-tiled, weight resident, parallel grid, bf16 I/O)
# ----------------------------------------------------------------------------
def conv_matmul(a, w):
    m, k = a.shape
    n = w.shape[1]
    tm, mp = _m_tiling(m)
    if mp != m:
        a = jnp.pad(a, ((0, mp - m), (0, 0)))
    out = pl.pallas_call(
        _conv_matmul_kernel,
        out_shape=jax.ShapeDtypeStruct((mp, n), jnp.bfloat16),
        grid=(mp // tm,),
        in_specs=[pl.BlockSpec((tm, k), lambda i: (i, 0)),
                  pl.BlockSpec((k, n), lambda i: (0, 0))],
        out_specs=pl.BlockSpec((tm, n), lambda i: (i, 0)),
        compiler_params=pltpu.CompilerParams(
            dimension_semantics=("parallel",),
            vmem_limit_bytes=_VMEM_LIMIT),
        cost_estimate=pl.CostEstimate(
            flops=2 * mp * k * n, transcendentals=0,
            bytes_accessed=2 * (mp * k + k * n + mp * n)),
    )(a, w)
    return out[:m] if mp != m else out


def dual_conv_matmul(a, r, wa, wr):
    m, ka = a.shape
    kr = r.shape[1]
    n = wa.shape[1]
    tm, mp = _m_tiling(m)
    if mp != m:
        a = jnp.pad(a, ((0, mp - m), (0, 0)))
        r = jnp.pad(r, ((0, mp - m), (0, 0)))
    out = pl.pallas_call(
        _dual_conv_matmul_kernel,
        out_shape=jax.ShapeDtypeStruct((mp, n), jnp.bfloat16),
        grid=(mp // tm,),
        in_specs=[pl.BlockSpec((tm, ka), lambda i: (i, 0)),
                  pl.BlockSpec((tm, kr), lambda i: (i, 0)),
                  pl.BlockSpec((ka, n), lambda i: (0, 0)),
                  pl.BlockSpec((kr, n), lambda i: (0, 0))],
        out_specs=pl.BlockSpec((tm, n), lambda i: (i, 0)),
        compiler_params=pltpu.CompilerParams(
            dimension_semantics=("parallel",),
            vmem_limit_bytes=_VMEM_LIMIT),
        cost_estimate=pl.CostEstimate(
            flops=2 * mp * (ka + kr) * n, transcendentals=0,
            bytes_accessed=2 * (mp * (ka + kr) + (ka + kr) * n + mp * n)),
    )(a, r, wa, wr)
    return out[:m] if mp != m else out


# ----------------------------------------------------------------------------
# Prologue (review option (a)): per-channel BN affine + ReLU once per element
# in f32, cast to bf16; literal-zero spatial pad; bf16 im2col.  These are pure
# layout/elementwise ops that XLA fuses into one prologue fusion per layer.
# ----------------------------------------------------------------------------
def _bn_relu_bf16(x, scale, bias):
    y = x.astype(jnp.float32) * scale + bias
    return jnp.maximum(y, 0.0).astype(jnp.bfloat16)


def _pad_zeros(x, pads):
    (t, b), (l, r) = pads
    if t == 0 and b == 0 and l == 0 and r == 0:
        return x
    return jnp.pad(x, ((0, 0), (t, b), (l, r), (0, 0)))


def _im2col(xp, k, stride, ho, wo):
    """(N,Hp,Wp,C) -> (N,Ho,Wo,k*k*C) with K-order (kh, kw, c)."""
    cols = []
    for kh in range(k):
        for kw in range(k):
            cols.append(xp[:, kh:kh + stride * (ho - 1) + 1:stride,
                           kw:kw + stride * (wo - 1) + 1:stride, :])
    return jnp.concatenate(cols, axis=-1)


# ----------------------------------------------------------------------------
# Modules
# ----------------------------------------------------------------------------
def basic_conv(x, p, *, k, stride, pad):
    """BasicConv: BN -> ReLU -> Conv2d(k, stride, pad, bias=False)."""
    n, h, w, _ = x.shape
    ho = (h + 2 * pad - k) // stride + 1
    wo = (w + 2 * pad - k) // stride + 1
    y = _bn_relu_bf16(x, p["scale"], p["bias"])
    yp = _pad_zeros(y, ((pad, pad), (pad, pad)))
    patches = _im2col(yp, k, stride, ho, wo).reshape(n * ho * wo, -1)
    out = conv_matmul(patches, p["w"])
    return out.reshape(n, ho, wo, -1)


def subpixel_deconv(x, p):
    """BasicConv with ConvTranspose2d(k=3, s=2, p=1, output_padding=1), as the
    4-phase sub-pixel decomposition (one matmul over 2x2 taps, no zero-insert).
    Output N = 4*cout >= 128 -> lane-dense unmasked stores."""
    n, h, w, c = x.shape
    y = _bn_relu_bf16(x, p["scale"], p["bias"])
    yp = _pad_zeros(y, ((0, 1), (0, 1)))
    cols = [yp[:, di:di + h, dj:dj + w, :] for di in (0, 1) for dj in (0, 1)]
    patches = jnp.concatenate(cols, axis=-1).reshape(n * h * w, 4 * c)
    out = conv_matmul(patches, p["w"])
    cout = out.shape[-1] // 4
    out = out.reshape(n, h, w, 2, 2, cout)            # (.., phase_i, phase_j, c)
    # Phase interleave: bf16 transpose+reshape fused by XLA into the
    # consumer's (conv2) prologue fusion -> no separate f32 HBM round trip.
    out = out.transpose(0, 1, 3, 2, 4, 5).reshape(n, 2 * h, 2 * w, cout)
    return out


def conv2_concat(x, rem, p):
    """BasicConv(2*cout -> cout, 3x3, s=1, p=1) over channel-concat([x, rem]),
    computed as two K-segments in one kernel (concat never materialized)."""
    n, h, w, _ = x.shape
    yx = _pad_zeros(_bn_relu_bf16(x, p["scale_x"], p["bias_x"]), ((1, 1), (1, 1)))
    yr = _pad_zeros(_bn_relu_bf16(rem, p["scale_r"], p["bias_r"]), ((1, 1), (1, 1)))
    px = _im2col(yx, 3, 1, h, w).reshape(n * h * w, -1)
    pr = _im2col(yr, 3, 1, h, w).reshape(n * h * w, -1)
    out = dual_conv_matmul(px, pr, p["w_x"], p["w_r"])
    return out.reshape(n, h, w, -1)


def conv2x(x, rem, p, *, deconv):
    """Conv2x: conv1 (down/up by 2) -> concat(rem) -> conv2(3x3)."""
    if deconv:
        x = subpixel_deconv(x, p["conv1"])
    else:
        x = basic_conv(x, p["conv1"], k=3, stride=2, pad=1)
    assert x.shape == rem.shape, (x.shape, rem.shape)
    return conv2_concat(x, rem, p["conv2"])


# ----------------------------------------------------------------------------
# Parameter init (deterministic, synthetic).  Eval-mode BN folded to affine.
# ----------------------------------------------------------------------------
def _bn_params(key, c):
    k1, k2 = jax.random.split(key)
    scale = 1.0 + 0.1 * jax.random.normal(k1, (c,), jnp.float32)
    bias = 0.1 * jax.random.normal(k2, (c,), jnp.float32)
    return scale, bias


def init_basic_conv(key, cin, cout, k, cin_pad=0):
    kb, kw = jax.random.split(key)
    scale, bias = _bn_params(kb, cin)
    # K-order (kh, kw, c) matches _im2col.  Real PyTorch Conv2d weights
    # (cout, cin, kh, kw) would be transposed to (kh, kw, cin, cout) first.
    w = jax.random.normal(kw, (k, k, cin, cout), jnp.float32)
    w = w * (1.0 / (k * k * cin) ** 0.5)
    if cin_pad:
        # Padded channels: identity BN (scale=1, bias=0) on zero inputs ->
        # stays exactly 0 after ReLU; weight rows zero -> no contribution.
        scale = jnp.concatenate([scale, jnp.ones((cin_pad,), jnp.float32)])
        bias = jnp.concatenate([bias, jnp.zeros((cin_pad,), jnp.float32)])
        w = jnp.concatenate(
            [w, jnp.zeros((k, k, cin_pad, cout), jnp.float32)], axis=2)
    return {"scale": scale, "bias": bias,
            "w": w.reshape(k * k * (cin + cin_pad), cout).astype(jnp.bfloat16)}


def init_subpixel_deconv(key, cin, cout):
    kb, kw = jax.random.split(key)
    scale, bias = _bn_params(kb, cin)
    # wk = equivalent stride-1 3x3 forward-conv weight over the zero-inserted
    # grid.  Real ConvTranspose2d weights (cin, cout, kh, kw) map as
    # wk[kh, kw, ci, co] = Wt[ci, co, 2-kh, 2-kw].
    wk = jax.random.normal(kw, (3, 3, cin, cout), jnp.float32)
    wk = wk * (1.0 / (9 * cin) ** 0.5)
    # sub-pixel weight: rows = (tap di,dj ; cin), cols = (phase pi,pj ; cout)
    wd = jnp.zeros((4, cin, 4, cout), jnp.float32)
    wd = wd.at[0, :, 0, :].set(wk[1, 1])        # out (2i,   2j  ) <- in(i,  j  )
    wd = wd.at[0, :, 1, :].set(wk[1, 0])        # out (2i,   2j+1) <- in(i,  j  )
    wd = wd.at[1, :, 1, :].set(wk[1, 2])        #                  <- in(i,  j+1)
    wd = wd.at[0, :, 2, :].set(wk[0, 1])        # out (2i+1, 2j  ) <- in(i,  j  )
    wd = wd.at[2, :, 2, :].set(wk[2, 1])        #                  <- in(i+1,j  )
    wd = wd.at[0, :, 3, :].set(wk[0, 0])        # out (2i+1, 2j+1) <- in(i,  j  )
    wd = wd.at[1, :, 3, :].set(wk[0, 2])        #                  <- in(i,  j+1)
    wd = wd.at[2, :, 3, :].set(wk[2, 0])        #                  <- in(i+1,j  )
    wd = wd.at[3, :, 3, :].set(wk[2, 2])        #                  <- in(i+1,j+1)
    return {"scale": scale, "bias": bias,
            "w": wd.reshape(4 * cin, 4 * cout).astype(jnp.bfloat16)}


def init_conv2_concat(key, cout):
    kb, kw = jax.random.split(key)
    cin = 2 * cout
    scale, bias = _bn_params(kb, cin)       # BN over concat([x, rem]) channels
    wfull = jax.random.normal(kw, (3, 3, cin, cout), jnp.float32)
    wfull = wfull * (1.0 / (9 * cin) ** 0.5)
    return {
        "scale_x": scale[:cout], "bias_x": bias[:cout],
        "scale_r": scale[cout:], "bias_r": bias[cout:],
        "w_x": wfull[:, :, :cout, :].reshape(9 * cout, cout).astype(jnp.bfloat16),
        "w_r": wfull[:, :, cout:, :].reshape(9 * cout, cout).astype(jnp.bfloat16),
    }


def init_conv2x(key, cin, cout, *, deconv):
    k1, k2 = jax.random.split(key)
    conv1 = (init_subpixel_deconv(k1, cin, cout) if deconv
             else init_basic_conv(k1, cin, cout, 3))
    return {"conv1": conv1, "conv2": init_conv2_concat(k2, cout)}


def init_hgfeature(key):
    keys = jax.random.split(key, 19)
    p = {}
    p["cs0"] = init_basic_conv(keys[0], 3, 32, 3, cin_pad=_CS0_CIN_PAD)
    p["cs1"] = init_basic_conv(keys[1], 32, 32, 5)
    p["cs2"] = init_basic_conv(keys[2], 32, 32, 3)
    p["conv1a"] = init_basic_conv(keys[3], 32, 48, 3)
    p["conv2a"] = init_basic_conv(keys[4], 48, 64, 3)
    p["conv3a"] = init_basic_conv(keys[5], 64, 96, 3)
    p["conv4a"] = init_basic_conv(keys[6], 96, 128, 3)
    p["deconv4a"] = init_conv2x(keys[7], 128, 96, deconv=True)
    p["deconv3a"] = init_conv2x(keys[8], 96, 64, deconv=True)
    p["deconv2a"] = init_conv2x(keys[9], 64, 48, deconv=True)
    p["deconv1a"] = init_conv2x(keys[10], 48, 32, deconv=True)
    p["conv1b"] = init_conv2x(keys[11], 32, 48, deconv=False)
    p["conv2b"] = init_conv2x(keys[12], 48, 64, deconv=False)
    p["conv3b"] = init_conv2x(keys[13], 64, 96, deconv=False)
    p["conv4b"] = init_conv2x(keys[14], 96, 128, deconv=False)
    p["deconv4b"] = init_conv2x(keys[15], 128, 96, deconv=True)
    p["deconv3b"] = init_conv2x(keys[16], 96, 64, deconv=True)
    p["deconv2b"] = init_conv2x(keys[17], 64, 48, deconv=True)
    p["deconv1b"] = init_conv2x(keys[18], 48, 32, deconv=True)
    return p


# ----------------------------------------------------------------------------
# HGFeature forward (NCHW in/out, NHWC internally so channels map to lanes;
# intermediates are bf16, final output f32)
# ----------------------------------------------------------------------------
def hgfeature_forward(params, x_nchw):
    x = jnp.transpose(x_nchw, (0, 2, 3, 1))  # NCHW -> NHWC
    # Pad RGB 3 -> 8 zero channels (identity BN, zero weight rows) so the
    # first layer's K lane dim is not a 27-wide masked fringe.
    x = jnp.pad(x, ((0, 0), (0, 0), (0, 0), (0, _CS0_CIN_PAD)))
    # conv_start
    x = basic_conv(x, params["cs0"], k=3, stride=1, pad=1)
    x = basic_conv(x, params["cs1"], k=5, stride=3, pad=2)
    x = basic_conv(x, params["cs2"], k=3, stride=1, pad=1)
    rem0 = x
    x = basic_conv(x, params["conv1a"], k=3, stride=2, pad=1); rem1 = x
    x = basic_conv(x, params["conv2a"], k=3, stride=2, pad=1); rem2 = x
    x = basic_conv(x, params["conv3a"], k=3, stride=2, pad=1); rem3 = x
    x = basic_conv(x, params["conv4a"], k=3, stride=2, pad=1); rem4 = x

    x = conv2x(x, rem3, params["deconv4a"], deconv=True); rem3 = x
    x = conv2x(x, rem2, params["deconv3a"], deconv=True); rem2 = x
    x = conv2x(x, rem1, params["deconv2a"], deconv=True); rem1 = x
    x = conv2x(x, rem0, params["deconv1a"], deconv=True); rem0 = x

    x = conv2x(x, rem1, params["conv1b"], deconv=False); rem1 = x
    x = conv2x(x, rem2, params["conv2b"], deconv=False); rem2 = x
    x = conv2x(x, rem3, params["conv3b"], deconv=False); rem3 = x
    x = conv2x(x, rem4, params["conv4b"], deconv=False)

    x = conv2x(x, rem3, params["deconv4b"], deconv=True)
    x = conv2x(x, rem2, params["deconv3b"], deconv=True)
    x = conv2x(x, rem1, params["deconv2b"], deconv=True)
    x = conv2x(x, rem0, params["deconv1b"], deconv=True)
    x = x.astype(jnp.float32)
    return jnp.transpose(x, (0, 3, 1, 2))  # NHWC -> NCHW


if __name__ == "__main__":
    key = jax.random.PRNGKey(0)
    pkey, xkey = jax.random.split(key)
    params = init_hgfeature(pkey)
    # Spatial size must give an even multiple of 16 after the stride-3 layer so
    # all U-Net skip shapes line up: 48 -> 16 -> 8/4/2/1.
    x = jax.random.normal(xkey, (2, 3, 48, 48), jnp.float32)  # NCHW

    fwd = jax.jit(hgfeature_forward)
    out = fwd(params, x)
    jax.block_until_ready(out)
    assert out.shape == (2, 32, 16, 16), out.shape
    assert out.dtype == jnp.float32
    print("KERNEL_OK")
</pallas_src>

<mosaic_0001>
module attributes {stable_mosaic.version = 11 : i64} {
  func.func @_conv_matmul_kernel(%arg0: i32, %arg1: memref<512x72xbf16, #tpu.memory_space<vmem>>, %arg2: memref<72x32xbf16, #tpu.memory_space<vmem>>, %arg3: memref<512x32xbf16, #tpu.memory_space<vmem>>) attributes {dimension_semantics = [#tpu.dimension_semantics<parallel>], iteration_bounds = array<i64: 9>, scalar_prefetch = 0 : i64, scratch_operands = 0 : i64, tpu.core_type = #tpu.core_type<tc>, window_params = [{transform_indices = @transform_0, window_bounds = array<i64: 512, 72>}, {pipeline_mode = #tpu.pipeline_mode<synchronous>, transform_indices = @transform_1, window_bounds = array<i64: 72, 32>}, {transform_indices = @transform_2, window_bounds = array<i64: 512, 32>}]} {
    %c0 = arith.constant 0 : index
    %c0_0 = arith.constant 0 : index
    %0 = vector.load %arg1[%c0, %c0_0] : memref<512x72xbf16, #tpu.memory_space<vmem>>, vector<512x72xbf16>
    %c0_1 = arith.constant 0 : index
    %c0_2 = arith.constant 0 : index
    %1 = vector.load %arg2[%c0_1, %c0_2] : memref<72x32xbf16, #tpu.memory_space<vmem>>, vector<72x32xbf16>
    %cst = arith.constant dense<0.000000e+00> : vector<512x32xf32>
    %2 = tpu.matmul %0, %1, %cst {dimension_numbers = #tpu.dot_dimension_numbers<[1], [0], [0], [1], [0, 0, 1, 1], [], []>} : vector<512x72xbf16>, vector<72x32xbf16>, vector<512x32xf32> -> vector<512x32xf32>
    %3 = arith.truncf %2 : vector<512x32xf32> to vector<512x32xbf16>
    %c0_3 = arith.constant 0 : index
    %c0_4 = arith.constant 0 : index
    %4 = vector.load %arg3[%c0_3, %c0_4] : memref<512x32xbf16, #tpu.memory_space<vmem>>, vector<512x32xbf16>
    tpu.vector_store %arg3[%c0_3, %c0_4], %3 {strides = array<i32>} : memref<512x32xbf16, #tpu.memory_space<vmem>>, vector<512x32xbf16>,
    return
  }
  func.func @transform_0(%arg0: i32) -> (i32, i32) {
    %c0_i32 = arith.constant 0 : i32
    %c0_i32_0 = arith.constant 0 : i32
    return %arg0, %c0_i32 : i32, i32
  }
  func.func @transform_1(%arg0: i32) -> (i32, i32) {
    %c0_i32 = arith.constant 0 : i32
    %c0_i32_0 = arith.constant 0 : i32
    %c0_i32_1 = arith.constant 0 : i32
    return %c0_i32, %c0_i32_0 : i32, i32
  }
  func.func @transform_2(%arg0: i32) -> (i32, i32) {
    %c0_i32 = arith.constant 0 : i32
    %c0_i32_0 = arith.constant 0 : i32
    return %arg0, %c0_i32 : i32, i32
  }
}

module attributes {stable_mosaic.version = 11 : i64} {
  func.func @_conv_matmul_kernel(%arg0: i32, %arg1: memref<256x800xbf16, #tpu.memory_space<vmem>>, %arg2: memref<800x32xbf16, #tpu.memory_space<vmem>>, %arg3: memref<256x32xbf16, #tpu.memory_space<vmem>>) attributes {dimension_semantics = [#tpu.dimension_semantics<parallel>], iteration_bounds = array<i64: 2>, scalar_prefetch = 0 : i64, scratch_operands = 0 : i64, tpu.core_type = #tpu.core_type<tc>, window_params = [{transform_indices = @transform_0, window_bounds = array<i64: 256, 800>}, {pipeline_mode = #tpu.pipeline_mode<synchronous>, transform_indices = @transform_1, window_bounds = array<i64: 800, 32>}, {transform_indices = @transform_2, window_bounds = array<i64: 256, 32>}]} {
    %c0 = arith.constant 0 : index
    %c0_0 = arith.constant 0 : index
    %0 = vector.load %arg1[%c0, %c0_0] : memref<256x800xbf16, #tpu.memory_space<vmem>>, vector<256x800xbf16>
    %c0_1 = arith.constant 0 : index
    %c0_2 = arith.constant 0 : index
    %1 = vector.load %arg2[%c0_1, %c0_2] : memref<800x32xbf16, #tpu.memory_space<vmem>>, vector<800x32xbf16>
    %cst = arith.constant dense<0.000000e+00> : vector<256x32xf32>
    %2 = tpu.matmul %0, %1, %cst {dimension_numbers = #tpu.dot_dimension_numbers<[1], [0], [0], [1], [0, 0, 1, 1], [], []>} : vector<256x800xbf16>, vector<800x32xbf16>, vector<256x32xf32> -> vector<256x32xf32>
    %3 = arith.truncf %2 : vector<256x32xf32> to vector<256x32xbf16>
    %c0_3 = arith.constant 0 : index
    %c0_4 = arith.constant 0 : index
    %4 = vector.load %arg3[%c0_3, %c0_4] : memref<256x32xbf16, #tpu.memory_space<vmem>>, vector<256x32xbf16>
    tpu.vector_store %arg3[%c0_3, %c0_4], %3 {strides = array<i32>} : memref<256x32xbf16, #tpu.memory_space<vmem>>, vector<256x32xbf16>,
    return
  }
  func.func @transform_0(%arg0: i32) -> (i32, i32) {
    %c0_i32 = arith.constant 0 : i32
    %c0_i32_0 = arith.constant 0 : i32
    return %arg0, %c0_i32 : i32, i32
  }
  func.func @transform_1(%arg0: i32) -> (i32, i32) {
    %c0_i32 = arith.constant 0 : i32
    %c0_i32_0 = arith.constant 0 : i32
    %c0_i32_1 = arith.constant 0 : i32
    return %c0_i32, %c0_i32_0 : i32, i32
  }
  func.func @transform_2(%arg0: i32) -> (i32, i32) {
    %c0_i32 = arith.constant 0 : i32
    %c0_i32_0 = arith.constant 0 : i32
    return %arg0, %c0_i32 : i32, i32
  }
}

module attributes {stable_mosaic.version = 11 : i64} {
  func.func @_conv_matmul_kernel(%arg0: i32, %arg1: memref<256x288xbf16, #tpu.memory_space<vmem>>, %arg2: memref<288x32xbf16, #tpu.memory_space<vmem>>, %arg3: memref<256x32xbf16, #tpu.memory_space<vmem>>) attributes {dimension_semantics = [#tpu.dimension_semantics<parallel>], iteration_bounds = array<i64: 2>, scalar_prefetch = 0 : i64, scratch_operands = 0 : i64, tpu.core_type = #tpu.core_type<tc>, window_params = [{transform_indices = @transform_0, window_bounds = array<i64: 256, 288>}, {pipeline_mode = #tpu.pipeline_mode<synchronous>, transform_indices = @transform_1, window_bounds = array<i64: 288, 32>}, {transform_indices = @transform_2, window_bounds = array<i64: 256, 32>}]} {
    %c0 = arith.constant 0 : index
    %c0_0 = arith.constant 0 : index
    %0 = vector.load %arg1[%c0, %c0_0] : memref<256x288xbf16, #tpu.memory_space<vmem>>, vector<256x288xbf16>
    %c0_1 = arith.constant 0 : index
    %c0_2 = arith.constant 0 : index
    %1 = vector.load %arg2[%c0_1, %c0_2] : memref<288x32xbf16, #tpu.memory_space<vmem>>, vector<288x32xbf16>
    %cst = arith.constant dense<0.000000e+00> : vector<256x32xf32>
    %2 = tpu.matmul %0, %1, %cst {dimension_numbers = #tpu.dot_dimension_numbers<[1], [0], [0], [1], [0, 0, 1, 1], [], []>} : vector<256x288xbf16>, vector<288x32xbf16>, vector<256x32xf32> -> vector<256x32xf32>
    %3 = arith.truncf %2 : vector<256x32xf32> to vector<256x32xbf16>
    %c0_3 = arith.constant 0 : index
    %c0_4 = arith.constant 0 : index
    %4 = vector.load %arg3[%c0_3, %c0_4] : memref<256x32xbf16, #tpu.memory_space<vmem>>, vector<256x32xbf16>
    tpu.vector_store %arg3[%c0_3, %c0_4], %3 {strides = array<i32>} : memref<256x32xbf16, #tpu.memory_space<vmem>>, vector<256x32xbf16>,
    return
  }
  func.func @transform_0(%arg0: i32) -> (i32, i32) {
    %c0_i32 = arith.constant 0 : i32
    %c0_i32_0 = arith.constant 0 : i32
    return %arg0, %c0_i32 : i32, i32
  }
  func.func @transform_1(%arg0: i32) -> (i32, i32) {
    %c0_i32 = arith.constant 0 : i32
    %c0_i32_0 = arith.constant 0 : i32
    %c0_i32_1 = arith.constant 0 : i32
    return %c0_i32, %c0_i32_0 : i32, i32
  }
  func.func @transform_2(%arg0: i32) -> (i32, i32) {
    %c0_i32 = arith.constant 0 : i32
    %c0_i32_0 = arith.constant 0 : i32
    return %arg0, %c0_i32 : i32, i32
  }
}

module attributes {stable_mosaic.version = 11 : i64} {
  func.func @_conv_matmul_kernel(%arg0: i32, %arg1: memref<128x288xbf16, #tpu.memory_space<vmem>>, %arg2: memref<288x48xbf16, #tpu.memory_space<vmem>>, %arg3: memref<128x48xbf16, #tpu.memory_space<vmem>>) attributes {dimension_semantics = [#tpu.dimension_semantics<parallel>], iteration_bounds = array<i64: 1>, scalar_prefetch = 0 : i64, scratch_operands = 0 : i64, tpu.core_type = #tpu.core_type<tc>, window_params = [{transform_indices = @transform_0, window_bounds = array<i64: 128, 288>}, {pipeline_mode = #tpu.pipeline_mode<synchronous>, transform_indices = @transform_1, window_bounds = array<i64: 288, 48>}, {transform_indices = @transform_2, window_bounds = array<i64: 128, 48>}]} {
    %c0 = arith.constant 0 : index
    %c0_0 = arith.constant 0 : index
    %0 = vector.load %arg1[%c0, %c0_0] : memref<128x288xbf16, #tpu.memory_space<vmem>>, vector<128x288xbf16>
    %c0_1 = arith.constant 0 : index
    %c0_2 = arith.constant 0 : index
    %1 = vector.load %arg2[%c0_1, %c0_2] : memref<288x48xbf16, #tpu.memory_space<vmem>>, vector<288x48xbf16>
    %cst = arith.constant dense<0.000000e+00> : vector<128x48xf32>
    %2 = tpu.matmul %0, %1, %cst {dimension_numbers = #tpu.dot_dimension_numbers<[1], [0], [0], [1], [0, 0, 1, 1], [], []>} : vector<128x288xbf16>, vector<288x48xbf16>, vector<128x48xf32> -> vector<128x48xf32>
    %3 = arith.truncf %2 : vector<128x48xf32> to vector<128x48xbf16>
    %c0_3 = arith.constant 0 : index
    %c0_4 = arith.constant 0 : index
    %4 = vector.load %arg3[%c0_3, %c0_4] : memref<128x48xbf16, #tpu.memory_space<vmem>>, vector<128x48xbf16>
    tpu.vector_store %arg3[%c0_3, %c0_4], %3 {strides = array<i32>} : memref<128x48xbf16, #tpu.memory_space<vmem>>, vector<128x48xbf16>,
    return
  }
  func.func @transform_0(%arg0: i32) -> (i32, i32) {
    %c0_i32 = arith.constant 0 : i32
    %c0_i32_0 = arith.constant 0 : i32
    return %arg0, %c0_i32 : i32, i32
  }
  func.func @transform_1(%arg0: i32) -> (i32, i32) {
    %c0_i32 = arith.constant 0 : i32
    %c0_i32_0 = arith.constant 0 : i32
    %c0_i32_1 = arith.constant 0 : i32
    return %c0_i32, %c0_i32_0 : i32, i32
  }
  func.func @transform_2(%arg0: i32) -> (i32, i32) {
    %c0_i32 = arith.constant 0 : i32
    %c0_i32_0 = arith.constant 0 : i32
    return %arg0, %c0_i32 : i32, i32
  }
}

module attributes {stable_mosaic.version = 11 : i64} {
  func.func @_conv_matmul_kernel(%arg0: i32, %arg1: memref<32x432xbf16, #tpu.memory_space<vmem>>, %arg2: memref<432x64xbf16, #tpu.memory_space<vmem>>, %arg3: memref<32x64xbf16, #tpu.memory_space<vmem>>) attributes {dimension_semantics = [#tpu.dimension_semantics<parallel>], iteration_bounds = array<i64: 1>, scalar_prefetch = 0 : i64, scratch_operands = 0 : i64, tpu.core_type = #tpu.core_type<tc>, window_params = [{transform_indices = @transform_0, window_bounds = array<i64: 32, 432>}, {pipeline_mode = #tpu.pipeline_mode<synchronous>, transform_indices = @transform_1, window_bounds = array<i64: 432, 64>}, {transform_indices = @transform_2, window_bounds = array<i64: 32, 64>}]} {
    %c0 = arith.constant 0 : index
    %c0_0 = arith.constant 0 : index
    %0 = vector.load %arg1[%c0, %c0_0] : memref<32x432xbf16, #tpu.memory_space<vmem>>, vector<32x432xbf16>
    %c0_1 = arith.constant 0 : index
    %c0_2 = arith.constant 0 : index
    %1 = vector.load %arg2[%c0_1, %c0_2] : memref<432x64xbf16, #tpu.memory_space<vmem>>, vector<432x64xbf16>
    %cst = arith.constant dense<0.000000e+00> : vector<32x64xf32>
    %2 = tpu.matmul %0, %1, %cst {dimension_numbers = #tpu.dot_dimension_numbers<[1], [0], [0], [1], [0, 0, 1, 1], [], []>} : vector<32x432xbf16>, vector<432x64xbf16>, vector<32x64xf32> -> vector<32x64xf32>
    %3 = arith.truncf %2 : vector<32x64xf32> to vector<32x64xbf16>
    %c0_3 = arith.constant 0 : index
    %c0_4 = arith.constant 0 : index
    %4 = vector.load %arg3[%c0_3, %c0_4] : memref<32x64xbf16, #tpu.memory_space<vmem>>, vector<32x64xbf16>
    tpu.vector_store %arg3[%c0_3, %c0_4], %3 {strides = array<i32>} : memref<32x64xbf16, #tpu.memory_space<vmem>>, vector<32x64xbf16>,
    return
  }
  func.func @transform_0(%arg0: i32) -> (i32, i32) {
    %c0_i32 = arith.constant 0 : i32
    %c0_i32_0 = arith.constant 0 : i32
    return %arg0, %c0_i32 : i32, i32
  }
  func.func @transform_1(%arg0: i32) -> (i32, i32) {
    %c0_i32 = arith.constant 0 : i32
    %c0_i32_0 = arith.constant 0 : i32
    %c0_i32_1 = arith.constant 0 : i32
    return %c0_i32, %c0_i32_0 : i32, i32
  }
  func.func @transform_2(%arg0: i32) -> (i32, i32) {
    %c0_i32 = arith.constant 0 : i32
    %c0_i32_0 = arith.constant 0 : i32
    return %arg0, %c0_i32 : i32, i32
  }
}

module attributes {stable_mosaic.version = 11 : i64} {
  func.func @_conv_matmul_kernel(%arg0: i32, %arg1: memref<16x576xbf16, #tpu.memory_space<vmem>>, %arg2: memref<576x96xbf16, #tpu.memory_space<vmem>>, %arg3: memref<16x96xbf16, #tpu.memory_space<vmem>>) attributes {dimension_semantics = [#tpu.dimension_semantics<parallel>], iteration_bounds = array<i64: 1>, scalar_prefetch = 0 : i64, scratch_operands = 0 : i64, tpu.core_type = #tpu.core_type<tc>, window_params = [{transform_indices = @transform_0, window_bounds = array<i64: 16, 576>}, {pipeline_mode = #tpu.pipeline_mode<synchronous>, transform_indices = @transform_1, window_bounds = array<i64: 576, 96>}, {transform_indices = @transform_2, window_bounds = array<i64: 16, 96>}]} {
    %c0 = arith.constant 0 : index
    %c0_0 = arith.constant 0 : index
    %0 = vector.load %arg1[%c0, %c0_0] : memref<16x576xbf16, #tpu.memory_space<vmem>>, vector<16x576xbf16>
    %c0_1 = arith.constant 0 : index
    %c0_2 = arith.constant 0 : index
    %1 = vector.load %arg2[%c0_1, %c0_2] : memref<576x96xbf16, #tpu.memory_space<vmem>>, vector<576x96xbf16>
    %cst = arith.constant dense<0.000000e+00> : vector<16x96xf32>
    %2 = tpu.matmul %0, %1, %cst {dimension_numbers = #tpu.dot_dimension_numbers<[1], [0], [0], [1], [0, 0, 1, 1], [], []>} : vector<16x576xbf16>, vector<576x96xbf16>, vector<16x96xf32> -> vector<16x96xf32>
    %3 = arith.truncf %2 : vector<16x96xf32> to vector<16x96xbf16>
    %c0_3 = arith.constant 0 : index
    %c0_4 = arith.constant 0 : index
    %4 = vector.load %arg3[%c0_3, %c0_4] : memref<16x96xbf16, #tpu.memory_space<vmem>>, vector<16x96xbf16>
    tpu.vector_store %arg3[%c0_3, %c0_4], %3 {strides = array<i32>} : memref<16x96xbf16, #tpu.memory_space<vmem>>, vector<16x96xbf16>,
    return
  }
  func.func @transform_0(%arg0: i32) -> (i32, i32) {
    %c0_i32 = arith.constant 0 : i32
    %c0_i32_0 = arith.constant 0 : i32
    return %arg0, %c0_i32 : i32, i32
  }
  func.func @transform_1(%arg0: i32) -> (i32, i32) {
    %c0_i32 = arith.constant 0 : i32
    %c0_i32_0 = arith.constant 0 : i32
    %c0_i32_1 = arith.constant 0 : i32
    return %c0_i32, %c0_i32_0 : i32, i32
  }
  func.func @transform_2(%arg0: i32) -> (i32, i32) {
    %c0_i32 = arith.constant 0 : i32
    %c0_i32_0 = arith.constant 0 : i32
    return %arg0, %c0_i32 : i32, i32
  }
}

module attributes {stable_mosaic.version = 11 : i64} {
  func.func @_conv_matmul_kernel(%arg0: i32, %arg1: memref<16x512xbf16, #tpu.memory_space<vmem>>, %arg2: memref<512x384xbf16, #tpu.memory_space<vmem>>, %arg3: memref<16x384xbf16, #tpu.memory_space<vmem>>) attributes {dimension_semantics = [#tpu.dimension_semantics<parallel>], iteration_bounds = array<i64: 1>, scalar_prefetch = 0 : i64, scratch_operands = 0 : i64, tpu.core_type = #tpu.core_type<tc>, window_params = [{transform_indices = @transform_0, window_bounds = array<i64: 16, 512>}, {pipeline_mode = #tpu.pipeline_mode<synchronous>, transform_indices = @transform_1, window_bounds = array<i64: 512, 384>}, {transform_indices = @transform_2, window_bounds = array<i64: 16, 384>}]} {
    %c0 = arith.constant 0 : index
    %c0_0 = arith.constant 0 : index
    %0 = vector.load %arg1[%c0, %c0_0] : memref<16x512xbf16, #tpu.memory_space<vmem>>, vector<16x512xbf16>
    %c0_1 = arith.constant 0 : index
    %c0_2 = arith.constant 0 : index
    %1 = vector.load %arg2[%c0_1, %c0_2] : memref<512x384xbf16, #tpu.memory_space<vmem>>, vector<512x384xbf16>
    %cst = arith.constant dense<0.000000e+00> : vector<16x384xf32>
    %2 = tpu.matmul %0, %1, %cst {dimension_numbers = #tpu.dot_dimension_numbers<[1], [0], [0], [1], [0, 0, 1, 1], [], []>} : vector<16x512xbf16>, vector<512x384xbf16>, vector<16x384xf32> -> vector<16x384xf32>
    %3 = arith.truncf %2 : vector<16x384xf32> to vector<16x384xbf16>
    %c0_3 = arith.constant 0 : index
    %c0_4 = arith.constant 0 : index
    %4 = vector.load %arg3[%c0_3, %c0_4] : memref<16x384xbf16, #tpu.memory_space<vmem>>, vector<16x384xbf16>
    tpu.vector_store %arg3[%c0_3, %c0_4], %3 {strides = array<i32>} : memref<16x384xbf16, #tpu.memory_space<vmem>>, vector<16x384xbf16>,
    return
  }
  func.func @transform_0(%arg0: i32) -> (i32, i32) {
    %c0_i32 = arith.constant 0 : i32
    %c0_i32_0 = arith.constant 0 : i32
    return %arg0, %c0_i32 : i32, i32
  }
  func.func @transform_1(%arg0: i32) -> (i32, i32) {
    %c0_i32 = arith.constant 0 : i32
    %c0_i32_0 = arith.constant 0 : i32
    %c0_i32_1 = arith.constant 0 : i32
    return %c0_i32, %c0_i32_0 : i32, i32
  }
  func.func @transform_2(%arg0: i32) -> (i32, i32) {
    %c0_i32 = arith.constant 0 : i32
    %c0_i32_0 = arith.constant 0 : i32
    return %arg0, %c0_i32 : i32, i32
  }
}

module attributes {stable_mosaic.version = 11 : i64} {
  func.func @_conv_matmul_kernel(%arg0: i32, %arg1: memref<16x864xbf16, #tpu.memory_space<vmem>>, %arg2: memref<864x128xbf16, #tpu.memory_space<vmem>>, %arg3: memref<16x128xbf16, #tpu.memory_space<vmem>>) attributes {dimension_semantics = [#tpu.dimension_semantics<parallel>], iteration_bounds = array<i64: 1>, scalar_prefetch = 0 : i64, scratch_operands = 0 : i64, tpu.core_type = #tpu.core_type<tc>, window_params = [{transform_indices = @transform_0, window_bounds = array<i64: 16, 864>}, {pipeline_mode = #tpu.pipeline_mode<synchronous>, transform_indices = @transform_1, window_bounds = array<i64: 864, 128>}, {transform_indices = @transform_2, window_bounds = array<i64: 16, 128>}]} {
    %c0 = arith.constant 0 : index
    %c0_0 = arith.constant 0 : index
    %0 = vector.load %arg1[%c0, %c0_0] : memref<16x864xbf16, #tpu.memory_space<vmem>>, vector<16x864xbf16>
    %c0_1 = arith.constant 0 : index
    %c0_2 = arith.constant 0 : index
    %1 = vector.load %arg2[%c0_1, %c0_2] : memref<864x128xbf16, #tpu.memory_space<vmem>>, vector<864x128xbf16>
    %cst = arith.constant dense<0.000000e+00> : vector<16x128xf32>
    %2 = tpu.matmul %0, %1, %cst {dimension_numbers = #tpu.dot_dimension_numbers<[1], [0], [0], [1], [0, 0, 1, 1], [], []>} : vector<16x864xbf16>, vector<864x128xbf16>, vector<16x128xf32> -> vector<16x128xf32>
    %3 = arith.truncf %2 : vector<16x128xf32> to vector<16x128xbf16>
    %c0_3 = arith.constant 0 : index
    %c0_4 = arith.constant 0 : index
    %4 = vector.load %arg3[%c0_3, %c0_4] : memref<16x128xbf16, #tpu.memory_space<vmem>>, vector<16x128xbf16>
    tpu.vector_store %arg3[%c0_3, %c0_4], %3 {strides = array<i32>} : memref<16x128xbf16, #tpu.memory_space<vmem>>, vector<16x128xbf16>,
    return
  }
  func.func @transform_0(%arg0: i32) -> (i32, i32) {
    %c0_i32 = arith.constant 0 : i32
    %c0_i32_0 = arith.constant 0 : i32
    return %arg0, %c0_i32 : i32, i32
  }
  func.func @transform_1(%arg0: i32) -> (i32, i32) {
    %c0_i32 = arith.constant 0 : i32
    %c0_i32_0 = arith.constant 0 : i32
    %c0_i32_1 = arith.constant 0 : i32
    return %c0_i32, %c0_i32_0 : i32, i32
  }
  func.func @transform_2(%arg0: i32) -> (i32, i32) {
    %c0_i32 = arith.constant 0 : i32
    %c0_i32_0 = arith.constant 0 : i32
    return %arg0, %c0_i32 : i32, i32
  }
}

module attributes {stable_mosaic.version = 11 : i64} {
  func.func @_dual_conv_matmul_kernel(%arg0: i32, %arg1: memref<16x864xbf16, #tpu.memory_space<vmem>>, %arg2: memref<16x864xbf16, #tpu.memory_space<vmem>>, %arg3: memref<864x96xbf16, #tpu.memory_space<vmem>>, %arg4: memref<864x96xbf16, #tpu.memory_space<vmem>>, %arg5: memref<16x96xbf16, #tpu.memory_space<vmem>>) attributes {dimension_semantics = [#tpu.dimension_semantics<parallel>], iteration_bounds = array<i64: 1>, scalar_prefetch = 0 : i64, scratch_operands = 0 : i64, tpu.core_type = #tpu.core_type<tc>, window_params = [{transform_indices = @transform_0, window_bounds = array<i64: 16, 864>}, {transform_indices = @transform_1, window_bounds = array<i64: 16, 864>}, {pipeline_mode = #tpu.pipeline_mode<synchronous>, transform_indices = @transform_2, window_bounds = array<i64: 864, 96>}, {pipeline_mode = #tpu.pipeline_mode<synchronous>, transform_indices = @transform_3, window_bounds = array<i64: 864, 96>}, {transform_indices = @transform_4, window_bounds = array<i64: 16, 96>}]} {
    %c0 = arith.constant 0 : index
    %c0_0 = arith.constant 0 : index
    %0 = vector.load %arg1[%c0, %c0_0] : memref<16x864xbf16, #tpu.memory_space<vmem>>, vector<16x864xbf16>
    %c0_1 = arith.constant 0 : index
    %c0_2 = arith.constant 0 : index
    %1 = vector.load %arg3[%c0_1, %c0_2] : memref<864x96xbf16, #tpu.memory_space<vmem>>, vector<864x96xbf16>
    %cst = arith.constant dense<0.000000e+00> : vector<16x96xf32>
    %2 = tpu.matmul %0, %1, %cst {dimension_numbers = #tpu.dot_dimension_numbers<[1], [0], [0], [1], [0, 0, 1, 1], [], []>} : vector<16x864xbf16>, vector<864x96xbf16>, vector<16x96xf32> -> vector<16x96xf32>
    %c0_3 = arith.constant 0 : index
    %c0_4 = arith.constant 0 : index
    %3 = vector.load %arg2[%c0_3, %c0_4] : memref<16x864xbf16, #tpu.memory_space<vmem>>, vector<16x864xbf16>
    %c0_5 = arith.constant 0 : index
    %c0_6 = arith.constant 0 : index
    %4 = vector.load %arg4[%c0_5, %c0_6] : memref<864x96xbf16, #tpu.memory_space<vmem>>, vector<864x96xbf16>
    %cst_7 = arith.constant dense<0.000000e+00> : vector<16x96xf32>
    %5 = tpu.matmul %3, %4, %cst_7 {dimension_numbers = #tpu.dot_dimension_numbers<[1], [0], [0], [1], [0, 0, 1, 1], [], []>} : vector<16x864xbf16>, vector<864x96xbf16>, vector<16x96xf32> -> vector<16x96xf32>
    %6 = arith.addf %2, %5 : vector<16x96xf32>
    %7 = arith.truncf %6 : vector<16x96xf32> to vector<16x96xbf16>
    %c0_8 = arith.constant 0 : index
    %c0_9 = arith.constant 0 : index
    %8 = vector.load %arg5[%c0_8, %c0_9] : memref<16x96xbf16, #tpu.memory_space<vmem>>, vector<16x96xbf16>
    tpu.vector_store %arg5[%c0_8, %c0_9], %7 {strides = array<i32>} : memref<16x96xbf16, #tpu.memory_space<vmem>>, vector<16x96xbf16>,
    return
  }
  func.func @transform_0(%arg0: i32) -> (i32, i32) {
    %c0_i32 = arith.constant 0 : i32
    %c0_i32_0 = arith.constant 0 : i32
    return %arg0, %c0_i32 : i32, i32
  }
  func.func @transform_1(%arg0: i32) -> (i32, i32) {
    %c0_i32 = arith.constant 0 : i32
    %c0_i32_0 = arith.constant 0 : i32
    return %arg0, %c0_i32 : i32, i32
  }
  func.func @transform_2(%arg0: i32) -> (i32, i32) {
    %c0_i32 = arith.constant 0 : i32
    %c0_i32_0 = arith.constant 0 : i32
    %c0_i32_1 = arith.constant 0 : i32
    return %c0_i32, %c0_i32_0 : i32, i32
  }
  func.func @transform_3(%arg0: i32) -> (i32, i32) {
    %c0_i32 = arith.constant 0 : i32
    %c0_i32_0 = arith.constant 0 : i32
    %c0_i32_1 = arith.constant 0 : i32
    return %c0_i32, %c0_i32_0 : i32, i32
  }
  func.func @transform_4(%arg0: i32) -> (i32, i32) {
    %c0_i32 = arith.constant 0 : i32
    %c0_i32_0 = arith.constant 0 : i32
    return %arg0, %c0_i32 : i32, i32
  }
}

module attributes {stable_mosaic.version = 11 : i64} {
  func.func @_conv_matmul_kernel(%arg0: i32, %arg1: memref<16x384xbf16, #tpu.memory_space<vmem>>, %arg2: memref<384x256xbf16, #tpu.memory_space<vmem>>, %arg3: memref<16x256xbf16, #tpu.memory_space<vmem>>) attributes {dimension_semantics = [#tpu.dimension_semantics<parallel>], iteration_bounds = array<i64: 1>, scalar_prefetch = 0 : i64, scratch_operands = 0 : i64, tpu.core_type = #tpu.core_type<tc>, window_params = [{transform_indices = @transform_0, window_bounds = array<i64: 16, 384>}, {pipeline_mode = #tpu.pipeline_mode<synchronous>, transform_indices = @transform_1, window_bounds = array<i64: 384, 256>}, {transform_indices = @transform_2, window_bounds = array<i64: 16, 256>}]} {
    %c0 = arith.constant 0 : index
    %c0_0 = arith.constant 0 : index
    %0 = vector.load %arg1[%c0, %c0_0] : memref<16x384xbf16, #tpu.memory_space<vmem>>, vector<16x384xbf16>
    %c0_1 = arith.constant 0 : index
    %c0_2 = arith.constant 0 : index
    %1 = vector.load %arg2[%c0_1, %c0_2] : memref<384x256xbf16, #tpu.memory_space<vmem>>, vector<384x256xbf16>
    %cst = arith.constant dense<0.000000e+00> : vector<16x256xf32>
    %2 = tpu.matmul %0, %1, %cst {dimension_numbers = #tpu.dot_dimension_numbers<[1], [0], [0], [1], [0, 0, 1, 1], [], []>} : vector<16x384xbf16>, vector<384x256xbf16>, vector<16x256xf32> -> vector<16x256xf32>
    %3 = arith.truncf %2 : vector<16x256xf32> to vector<16x256xbf16>
    %c0_3 = arith.constant 0 : index
    %c0_4 = arith.constant 0 : index
    %4 = vector.load %arg3[%c0_3, %c0_4] : memref<16x256xbf16, #tpu.memory_space<vmem>>, vector<16x256xbf16>
    tpu.vector_store %arg3[%c0_3, %c0_4], %3 {strides = array<i32>} : memref<16x256xbf16, #tpu.memory_space<vmem>>, vector<16x256xbf16>,
    return
  }
  func.func @transform_0(%arg0: i32) -> (i32, i32) {
    %c0_i32 = arith.constant 0 : i32
    %c0_i32_0 = arith.constant 0 : i32
    return %arg0, %c0_i32 : i32, i32
  }
  func.func @transform_1(%arg0: i32) -> (i32, i32) {
    %c0_i32 = arith.constant 0 : i32
    %c0_i32_0 = arith.constant 0 : i32
    %c0_i32_1 = arith.constant 0 : i32
    return %c0_i32, %c0_i32_0 : i32, i32
  }
  func.func @transform_2(%arg0: i32) -> (i32, i32) {
    %c0_i32 = arith.constant 0 : i32
    %c0_i32_0 = arith.constant 0 : i32
    return %arg0, %c0_i32 : i32, i32
  }
}

module attributes {stable_mosaic.version = 11 : i64} {
  func.func @_dual_conv_matmul_kernel(%arg0: i32, %arg1: memref<32x576xbf16, #tpu.memory_space<vmem>>, %arg2: memref<32x576xbf16, #tpu.memory_space<vmem>>, %arg3: memref<576x64xbf16, #tpu.memory_space<vmem>>, %arg4: memref<576x64xbf16, #tpu.memory_space<vmem>>, %arg5: memref<32x64xbf16, #tpu.memory_space<vmem>>) attributes {dimension_semantics = [#tpu.dimension_semantics<parallel>], iteration_bounds = array<i64: 1>, scalar_prefetch = 0 : i64, scratch_operands = 0 : i64, tpu.core_type = #tpu.core_type<tc>, window_params = [{transform_indices = @transform_0, window_bounds = array<i64: 32, 576>}, {transform_indices = @transform_1, window_bounds = array<i64: 32, 576>}, {pipeline_mode = #tpu.pipeline_mode<synchronous>, transform_indices = @transform_2, window_bounds = array<i64: 576, 64>}, {pipeline_mode = #tpu.pipeline_mode<synchronous>, transform_indices = @transform_3, window_bounds = array<i64: 576, 64>}, {transform_indices = @transform_4, window_bounds = array<i64: 32, 64>}]} {
    %c0 = arith.constant 0 : index
    %c0_0 = arith.constant 0 : index
    %0 = vector.load %arg1[%c0, %c0_0] : memref<32x576xbf16, #tpu.memory_space<vmem>>, vector<32x576xbf16>
    %c0_1 = arith.constant 0 : index
    %c0_2 = arith.constant 0 : index
    %1 = vector.load %arg3[%c0_1, %c0_2] : memref<576x64xbf16, #tpu.memory_space<vmem>>, vector<576x64xbf16>
    %cst = arith.constant dense<0.000000e+00> : vector<32x64xf32>
    %2 = tpu.matmul %0, %1, %cst {dimension_numbers = #tpu.dot_dimension_numbers<[1], [0], [0], [1], [0, 0, 1, 1], [], []>} : vector<32x576xbf16>, vector<576x64xbf16>, vector<32x64xf32> -> vector<32x64xf32>
    %c0_3 = arith.constant 0 : index
    %c0_4 = arith.constant 0 : index
    %3 = vector.load %arg2[%c0_3, %c0_4] : memref<32x576xbf16, #tpu.memory_space<vmem>>, vector<32x576xbf16>
    %c0_5 = arith.constant 0 : index
    %c0_6 = arith.constant 0 : index
    %4 = vector.load %arg4[%c0_5, %c0_6] : memref<576x64xbf16, #tpu.memory_space<vmem>>, vector<576x64xbf16>
    %cst_7 = arith.constant dense<0.000000e+00> : vector<32x64xf32>
    %5 = tpu.matmul %3, %4, %cst_7 {dimension_numbers = #tpu.dot_dimension_numbers<[1], [0], [0], [1], [0, 0, 1, 1], [], []>} : vector<32x576xbf16>, vector<576x64xbf16>, vector<32x64xf32> -> vector<32x64xf32>
    %6 = arith.addf %2, %5 : vector<32x64xf32>
    %7 = arith.truncf %6 : vector<32x64xf32> to vector<32x64xbf16>
    %c0_8 = arith.constant 0 : index
    %c0_9 = arith.constant 0 : index
    %8 = vector.load %arg5[%c0_8, %c0_9] : memref<32x64xbf16, #tpu.memory_space<vmem>>, vector<32x64xbf16>
    tpu.vector_store %arg5[%c0_8, %c0_9], %7 {strides = array<i32>} : memref<32x64xbf16, #tpu.memory_space<vmem>>, vector<32x64xbf16>,
    return
  }
  func.func @transform_0(%arg0: i32) -> (i32, i32) {
    %c0_i32 = arith.constant 0 : i32
    %c0_i32_0 = arith.constant 0 : i32
    return %arg0, %c0_i32 : i32, i32
  }
  func.func @transform_1(%arg0: i32) -> (i32, i32) {
    %c0_i32 = arith.constant 0 : i32
    %c0_i32_0 = arith.constant 0 : i32
    return %arg0, %c0_i32 : i32, i32
  }
  func.func @transform_2(%arg0: i32) -> (i32, i32) {
    %c0_i32 = arith.constant 0 : i32
    %c0_i32_0 = arith.constant 0 : i32
    %c0_i32_1 = arith.constant 0 : i32
    return %c0_i32, %c0_i32_0 : i32, i32
  }
  func.func @transform_3(%arg0: i32) -> (i32, i32) {
    %c0_i32 = arith.constant 0 : i32
    %c0_i32_0 = arith.constant 0 : i32
    %c0_i32_1 = arith.constant 0 : i32
    return %c0_i32, %c0_i32_0 : i32, i32
  }
  func.func @transform_4(%arg0: i32) -> (i32, i32) {
    %c0_i32 = arith.constant 0 : i32
    %c0_i32_0 = arith.constant 0 : i32
    return %arg0, %c0_i32 : i32, i32
  }
}

module attributes {stable_mosaic.version = 11 : i64} {
  func.func @_conv_matmul_kernel(%arg0: i32, %arg1: memref<32x256xbf16, #tpu.memory_space<vmem>>, %arg2: memref<256x192xbf16, #tpu.memory_space<vmem>>, %arg3: memref<32x192xbf16, #tpu.memory_space<vmem>>) attributes {dimension_semantics = [#tpu.dimension_semantics<parallel>], iteration_bounds = array<i64: 1>, scalar_prefetch = 0 : i64, scratch_operands = 0 : i64, tpu.core_type = #tpu.core_type<tc>, window_params = [{transform_indices = @transform_0, window_bounds = array<i64: 32, 256>}, {pipeline_mode = #tpu.pipeline_mode<synchronous>, transform_indices = @transform_1, window_bounds = array<i64: 256, 192>}, {transform_indices = @transform_2, window_bounds = array<i64: 32, 192>}]} {
    %c0 = arith.constant 0 : index
    %c0_0 = arith.constant 0 : index
    %0 = vector.load %arg1[%c0, %c0_0] : memref<32x256xbf16, #tpu.memory_space<vmem>>, vector<32x256xbf16>
    %c0_1 = arith.constant 0 : index
    %c0_2 = arith.constant 0 : index
    %1 = vector.load %arg2[%c0_1, %c0_2] : memref<256x192xbf16, #tpu.memory_space<vmem>>, vector<256x192xbf16>
    %cst = arith.constant dense<0.000000e+00> : vector<32x192xf32>
    %2 = tpu.matmul %0, %1, %cst {dimension_numbers = #tpu.dot_dimension_numbers<[1], [0], [0], [1], [0, 0, 1, 1], [], []>} : vector<32x256xbf16>, vector<256x192xbf16>, vector<32x192xf32> -> vector<32x192xf32>
    %3 = arith.truncf %2 : vector<32x192xf32> to vector<32x192xbf16>
    %c0_3 = arith.constant 0 : index
    %c0_4 = arith.constant 0 : index
    %4 = vector.load %arg3[%c0_3, %c0_4] : memref<32x192xbf16, #tpu.memory_space<vmem>>, vector<32x192xbf16>
    tpu.vector_store %arg3[%c0_3, %c0_4], %3 {strides = array<i32>} : memref<32x192xbf16, #tpu.memory_space<vmem>>, vector<32x192xbf16>,
    return
  }
  func.func @transform_0(%arg0: i32) -> (i32, i32) {
    %c0_i32 = arith.constant 0 : i32
    %c0_i32_0 = arith.constant 0 : i32
    return %arg0, %c0_i32 : i32, i32
  }
  func.func @transform_1(%arg0: i32) -> (i32, i32) {
    %c0_i32 = arith.constant 0 : i32
    %c0_i32_0 = arith.constant 0 : i32
    %c0_i32_1 = arith.constant 0 : i32
    return %c0_i32, %c0_i32_0 : i32, i32
  }
  func.func @transform_2(%arg0: i32) -> (i32, i32) {
    %c0_i32 = arith.constant 0 : i32
    %c0_i32_0 = arith.constant 0 : i32
    return %arg0, %c0_i32 : i32, i32
  }
}

module attributes {stable_mosaic.version = 11 : i64} {
  func.func @_dual_conv_matmul_kernel(%arg0: i32, %arg1: memref<128x432xbf16, #tpu.memory_space<vmem>>, %arg2: memref<128x432xbf16, #tpu.memory_space<vmem>>, %arg3: memref<432x48xbf16, #tpu.memory_space<vmem>>, %arg4: memref<432x48xbf16, #tpu.memory_space<vmem>>, %arg5: memref<128x48xbf16, #tpu.memory_space<vmem>>) attributes {dimension_semantics = [#tpu.dimension_semantics<parallel>], iteration_bounds = array<i64: 1>, scalar_prefetch = 0 : i64, scratch_operands = 0 : i64, tpu.core_type = #tpu.core_type<tc>, window_params = [{transform_indices = @transform_0, window_bounds = array<i64: 128, 432>}, {transform_indices = @transform_1, window_bounds = array<i64: 128, 432>}, {pipeline_mode = #tpu.pipeline_mode<synchronous>, transform_indices = @transform_2, window_bounds = array<i64: 432, 48>}, {pipeline_mode = #tpu.pipeline_mode<synchronous>, transform_indices = @transform_3, window_bounds = array<i64: 432, 48>}, {transform_indices = @transform_4, window_bounds = array<i64: 128, 48>}]} {
    %c0 = arith.constant 0 : index
    %c0_0 = arith.constant 0 : index
    %0 = vector.load %arg1[%c0, %c0_0] : memref<128x432xbf16, #tpu.memory_space<vmem>>, vector<128x432xbf16>
    %c0_1 = arith.constant 0 : index
    %c0_2 = arith.constant 0 : index
    %1 = vector.load %arg3[%c0_1, %c0_2] : memref<432x48xbf16, #tpu.memory_space<vmem>>, vector<432x48xbf16>
    %cst = arith.constant dense<0.000000e+00> : vector<128x48xf32>
    %2 = tpu.matmul %0, %1, %cst {dimension_numbers = #tpu.dot_dimension_numbers<[1], [0], [0], [1], [0, 0, 1, 1], [], []>} : vector<128x432xbf16>, vector<432x48xbf16>, vector<128x48xf32> -> vector<128x48xf32>
    %c0_3 = arith.constant 0 : index
    %c0_4 = arith.constant 0 : index
    %3 = vector.load %arg2[%c0_3, %c0_4] : memref<128x432xbf16, #tpu.memory_space<vmem>>, vector<128x432xbf16>
    %c0_5 = arith.constant 0 : index
    %c0_6 = arith.constant 0 : index
    %4 = vector.load %arg4[%c0_5, %c0_6] : memref<432x48xbf16, #tpu.memory_space<vmem>>, vector<432x48xbf16>
    %cst_7 = arith.constant dense<0.000000e+00> : vector<128x48xf32>
    %5 = tpu.matmul %3, %4, %cst_7 {dimension_numbers = #tpu.dot_dimension_numbers<[1], [0], [0], [1], [0, 0, 1, 1], [], []>} : vector<128x432xbf16>, vector<432x48xbf16>, vector<128x48xf32> -> vector<128x48xf32>
    %6 = arith.addf %2, %5 : vector<128x48xf32>
    %7 = arith.truncf %6 : vector<128x48xf32> to vector<128x48xbf16>
    %c0_8 = arith.constant 0 : index
    %c0_9 = arith.constant 0 : index
    %8 = vector.load %arg5[%c0_8, %c0_9] : memref<128x48xbf16, #tpu.memory_space<vmem>>, vector<128x48xbf16>
    tpu.vector_store %arg5[%c0_8, %c0_9], %7 {strides = array<i32>} : memref<128x48xbf16, #tpu.memory_space<vmem>>, vector<128x48xbf16>,
    return
  }
  func.func @transform_0(%arg0: i32) -> (i32, i32) {
    %c0_i32 = arith.constant 0 : i32
    %c0_i32_0 = arith.constant 0 : i32
    return %arg0, %c0_i32 : i32, i32
  }
  func.func @transform_1(%arg0: i32) -> (i32, i32) {
    %c0_i32 = arith.constant 0 : i32
    %c0_i32_0 = arith.constant 0 : i32
    return %arg0, %c0_i32 : i32, i32
  }
  func.func @transform_2(%arg0: i32) -> (i32, i32) {
    %c0_i32 = arith.constant 0 : i32
    %c0_i32_0 = arith.constant 0 : i32
    %c0_i32_1 = arith.constant 0 : i32
    return %c0_i32, %c0_i32_0 : i32, i32
  }
  func.func @transform_3(%arg0: i32) -> (i32, i32) {
    %c0_i32 = arith.constant 0 : i32
    %c0_i32_0 = arith.constant 0 : i32
    %c0_i32_1 = arith.constant 0 : i32
    return %c0_i32, %c0_i32_0 : i32, i32
  }
  func.func @transform_4(%arg0: i32) -> (i32, i32) {
    %c0_i32 = arith.constant 0 : i32
    %c0_i32_0 = arith.constant 0 : i32
    return %arg0, %c0_i32 : i32, i32
  }
}

module attributes {stable_mosaic.version = 11 : i64} {
  func.func @_conv_matmul_kernel(%arg0: i32, %arg1: memref<128x192xbf16, #tpu.memory_space<vmem>>, %arg2: memref<192x128xbf16, #tpu.memory_space<vmem>>, %arg3: memref<128x128xbf16, #tpu.memory_space<vmem>>) attributes {dimension_semantics = [#tpu.dimension_semantics<parallel>], iteration_bounds = array<i64: 1>, scalar_prefetch = 0 : i64, scratch_operands = 0 : i64, tpu.core_type = #tpu.core_type<tc>, window_params = [{transform_indices = @transform_0, window_bounds = array<i64: 128, 192>}, {pipeline_mode = #tpu.pipeline_mode<synchronous>, transform_indices = @transform_1, window_bounds = array<i64: 192, 128>}, {transform_indices = @transform_2, window_bounds = array<i64: 128, 128>}]} {
    %c0 = arith.constant 0 : index
    %c0_0 = arith.constant 0 : index
    %0 = vector.load %arg1[%c0, %c0_0] : memref<128x192xbf16, #tpu.memory_space<vmem>>, vector<128x192xbf16>
    %c0_1 = arith.constant 0 : index
    %c0_2 = arith.constant 0 : index
    %1 = vector.load %arg2[%c0_1, %c0_2] : memref<192x128xbf16, #tpu.memory_space<vmem>>, vector<192x128xbf16>
    %cst = arith.constant dense<0.000000e+00> : vector<128x128xf32>
    %2 = tpu.matmul %0, %1, %cst {dimension_numbers = #tpu.dot_dimension_numbers<[1], [0], [0], [1], [0, 0, 1, 1], [], []>} : vector<128x192xbf16>, vector<192x128xbf16>, vector<128x128xf32> -> vector<128x128xf32>
    %3 = arith.truncf %2 : vector<128x128xf32> to vector<128x128xbf16>
    %c0_3 = arith.constant 0 : index
    %c0_4 = arith.constant 0 : index
    %4 = vector.load %arg3[%c0_3, %c0_4] : memref<128x128xbf16, #tpu.memory_space<vmem>>, vector<128x128xbf16>
    tpu.vector_store %arg3[%c0_3, %c0_4], %3 {strides = array<i32>} : memref<128x128xbf16, #tpu.memory_space<vmem>>, vector<128x128xbf16>,
    return
  }
  func.func @transform_0(%arg0: i32) -> (i32, i32) {
    %c0_i32 = arith.constant 0 : i32
    %c0_i32_0 = arith.constant 0 : i32
    return %arg0, %c0_i32 : i32, i32
  }
  func.func @transform_1(%arg0: i32) -> (i32, i32) {
    %c0_i32 = arith.constant 0 : i32
    %c0_i32_0 = arith.constant 0 : i32
    %c0_i32_1 = arith.constant 0 : i32
    return %c0_i32, %c0_i32_0 : i32, i32
  }
  func.func @transform_2(%arg0: i32) -> (i32, i32) {
    %c0_i32 = arith.constant 0 : i32
    %c0_i32_0 = arith.constant 0 : i32
    return %arg0, %c0_i32 : i32, i32
  }
}

module attributes {stable_mosaic.version = 11 : i64} {
  func.func @_dual_conv_matmul_kernel(%arg0: i32, %arg1: memref<256x288xbf16, #tpu.memory_space<vmem>>, %arg2: memref<256x288xbf16, #tpu.memory_space<vmem>>, %arg3: memref<288x32xbf16, #tpu.memory_space<vmem>>, %arg4: memref<288x32xbf16, #tpu.memory_space<vmem>>, %arg5: memref<256x32xbf16, #tpu.memory_space<vmem>>) attributes {dimension_semantics = [#tpu.dimension_semantics<parallel>], iteration_bounds = array<i64: 2>, scalar_prefetch = 0 : i64, scratch_operands = 0 : i64, tpu.core_type = #tpu.core_type<tc>, window_params = [{transform_indices = @transform_0, window_bounds = array<i64: 256, 288>}, {transform_indices = @transform_1, window_bounds = array<i64: 256, 288>}, {pipeline_mode = #tpu.pipeline_mode<synchronous>, transform_indices = @transform_2, window_bounds = array<i64: 288, 32>}, {pipeline_mode = #tpu.pipeline_mode<synchronous>, transform_indices = @transform_3, window_bounds = array<i64: 288, 32>}, {transform_indices = @transform_4, window_bounds = array<i64: 256, 32>}]} {
    %c0 = arith.constant 0 : index
    %c0_0 = arith.constant 0 : index
    %0 = vector.load %arg1[%c0, %c0_0] : memref<256x288xbf16, #tpu.memory_space<vmem>>, vector<256x288xbf16>
    %c0_1 = arith.constant 0 : index
    %c0_2 = arith.constant 0 : index
    %1 = vector.load %arg3[%c0_1, %c0_2] : memref<288x32xbf16, #tpu.memory_space<vmem>>, vector<288x32xbf16>
    %cst = arith.constant dense<0.000000e+00> : vector<256x32xf32>
    %2 = tpu.matmul %0, %1, %cst {dimension_numbers = #tpu.dot_dimension_numbers<[1], [0], [0], [1], [0, 0, 1, 1], [], []>} : vector<256x288xbf16>, vector<288x32xbf16>, vector<256x32xf32> -> vector<256x32xf32>
    %c0_3 = arith.constant 0 : index
    %c0_4 = arith.constant 0 : index
    %3 = vector.load %arg2[%c0_3, %c0_4] : memref<256x288xbf16, #tpu.memory_space<vmem>>, vector<256x288xbf16>
    %c0_5 = arith.constant 0 : index
    %c0_6 = arith.constant 0 : index
    %4 = vector.load %arg4[%c0_5, %c0_6] : memref<288x32xbf16, #tpu.memory_space<vmem>>, vector<288x32xbf16>
    %cst_7 = arith.constant dense<0.000000e+00> : vector<256x32xf32>
    %5 = tpu.matmul %3, %4, %cst_7 {dimension_numbers = #tpu.dot_dimension_numbers<[1], [0], [0], [1], [0, 0, 1, 1], [], []>} : vector<256x288xbf16>, vector<288x32xbf16>, vector<256x32xf32> -> vector<256x32xf32>
    %6 = arith.addf %2, %5 : vector<256x32xf32>
    %7 = arith.truncf %6 : vector<256x32xf32> to vector<256x32xbf16>
    %c0_8 = arith.constant 0 : index
    %c0_9 = arith.constant 0 : index
    %8 = vector.load %arg5[%c0_8, %c0_9] : memref<256x32xbf16, #tpu.memory_space<vmem>>, vector<256x32xbf16>
    tpu.vector_store %arg5[%c0_8, %c0_9], %7 {strides = array<i32>} : memref<256x32xbf16, #tpu.memory_space<vmem>>, vector<256x32xbf16>,
    return
  }
  func.func @transform_0(%arg0: i32) -> (i32, i32) {
    %c0_i32 = arith.constant 0 : i32
    %c0_i32_0 = arith.constant 0 : i32
    return %arg0, %c0_i32 : i32, i32
  }
  func.func @transform_1(%arg0: i32) -> (i32, i32) {
    %c0_i32 = arith.constant 0 : i32
    %c0_i32_0 = arith.constant 0 : i32
    return %arg0, %c0_i32 : i32, i32
  }
  func.func @transform_2(%arg0: i32) -> (i32, i32) {
    %c0_i32 = arith.constant 0 : i32
    %c0_i32_0 = arith.constant 0 : i32
    %c0_i32_1 = arith.constant 0 : i32
    return %c0_i32, %c0_i32_0 : i32, i32
  }
  func.func @transform_3(%arg0: i32) -> (i32, i32) {
    %c0_i32 = arith.constant 0 : i32
    %c0_i32_0 = arith.constant 0 : i32
    %c0_i32_1 = arith.constant 0 : i32
    return %c0_i32, %c0_i32_0 : i32, i32
  }
  func.func @transform_4(%arg0: i32) -> (i32, i32) {
    %c0_i32 = arith.constant 0 : i32
    %c0_i32_0 = arith.constant 0 : i32
    return %arg0, %c0_i32 : i32, i32
  }
}

module attributes {stable_mosaic.version = 11 : i64} {
  func.func @_dual_conv_matmul_kernel(%arg0: i32, %arg1: memref<16x1152xbf16, #tpu.memory_space<vmem>>, %arg2: memref<16x1152xbf16, #tpu.memory_space<vmem>>, %arg3: memref<1152x128xbf16, #tpu.memory_space<vmem>>, %arg4: memref<1152x128xbf16, #tpu.memory_space<vmem>>, %arg5: memref<16x128xbf16, #tpu.memory_space<vmem>>) attributes {dimension_semantics = [#tpu.dimension_semantics<parallel>], iteration_bounds = array<i64: 1>, scalar_prefetch = 0 : i64, scratch_operands = 0 : i64, tpu.core_type = #tpu.core_type<tc>, window_params = [{transform_indices = @transform_0, window_bounds = array<i64: 16, 1152>}, {transform_indices = @transform_1, window_bounds = array<i64: 16, 1152>}, {pipeline_mode = #tpu.pipeline_mode<synchronous>, transform_indices = @transform_2, window_bounds = array<i64: 1152, 128>}, {pipeline_mode = #tpu.pipeline_mode<synchronous>, transform_indices = @transform_3, window_bounds = array<i64: 1152, 128>}, {transform_indices = @transform_4, window_bounds = array<i64: 16, 128>}]} {
    %c0 = arith.constant 0 : index
    %c0_0 = arith.constant 0 : index
    %0 = vector.load %arg1[%c0, %c0_0] : memref<16x1152xbf16, #tpu.memory_space<vmem>>, vector<16x1152xbf16>
    %c0_1 = arith.constant 0 : index
    %c0_2 = arith.constant 0 : index
    %1 = vector.load %arg3[%c0_1, %c0_2] : memref<1152x128xbf16, #tpu.memory_space<vmem>>, vector<1152x128xbf16>
    %cst = arith.constant dense<0.000000e+00> : vector<16x128xf32>
    %2 = tpu.matmul %0, %1, %cst {dimension_numbers = #tpu.dot_dimension_numbers<[1], [0], [0], [1], [0, 0, 1, 1], [], []>} : vector<16x1152xbf16>, vector<1152x128xbf16>, vector<16x128xf32> -> vector<16x128xf32>
    %c0_3 = arith.constant 0 : index
    %c0_4 = arith.constant 0 : index
    %3 = vector.load %arg2[%c0_3, %c0_4] : memref<16x1152xbf16, #tpu.memory_space<vmem>>, vector<16x1152xbf16>
    %c0_5 = arith.constant 0 : index
    %c0_6 = arith.constant 0 : index
    %4 = vector.load %arg4[%c0_5, %c0_6] : memref<1152x128xbf16, #tpu.memory_space<vmem>>, vector<1152x128xbf16>
    %cst_7 = arith.constant dense<0.000000e+00> : vector<16x128xf32>
    %5 = tpu.matmul %3, %4, %cst_7 {dimension_numbers = #tpu.dot_dimension_numbers<[1], [0], [0], [1], [0, 0, 1, 1], [], []>} : vector<16x1152xbf16>, vector<1152x128xbf16>, vector<16x128xf32> -> vector<16x128xf32>
    %6 = arith.addf %2, %5 : vector<16x128xf32>
    %7 = arith.truncf %6 : vector<16x128xf32> to vector<16x128xbf16>
    %c0_8 = arith.constant 0 : index
    %c0_9 = arith.constant 0 : index
    %8 = vector.load %arg5[%c0_8, %c0_9] : memref<16x128xbf16, #tpu.memory_space<vmem>>, vector<16x128xbf16>
    tpu.vector_store %arg5[%c0_8, %c0_9], %7 {strides = array<i32>} : memref<16x128xbf16, #tpu.memory_space<vmem>>, vector<16x128xbf16>,
    return
  }
  func.func @transform_0(%arg0: i32) -> (i32, i32) {
    %c0_i32 = arith.constant 0 : i32
    %c0_i32_0 = arith.constant 0 : i32
    return %arg0, %c0_i32 : i32, i32
  }
  func.func @transform_1(%arg0: i32) -> (i32, i32) {
    %c0_i32 = arith.constant 0 : i32
    %c0_i32_0 = arith.constant 0 : i32
    return %arg0, %c0_i32 : i32, i32
  }
  func.func @transform_2(%arg0: i32) -> (i32, i32) {
    %c0_i32 = arith.constant 0 : i32
    %c0_i32_0 = arith.constant 0 : i32
    %c0_i32_1 = arith.constant 0 : i32
    return %c0_i32, %c0_i32_0 : i32, i32
  }
  func.func @transform_3(%arg0: i32) -> (i32, i32) {
    %c0_i32 = arith.constant 0 : i32
    %c0_i32_0 = arith.constant 0 : i32
    %c0_i32_1 = arith.constant 0 : i32
    return %c0_i32, %c0_i32_0 : i32, i32
  }
  func.func @transform_4(%arg0: i32) -> (i32, i32) {
    %c0_i32 = arith.constant 0 : i32
    %c0_i32_0 = arith.constant 0 : i32
    return %arg0, %c0_i32 : i32, i32
  }
}

</mosaic_0001>

<bundles_post_ra>
// kernel: hgfeature_forward.31
= control target key start
LH: loop header
LB: loop body
LE: loop exit
PB: predicated region body
PF: predicated region fallthrough
CT: control target
= control target key end

     0   :  { %s1574_s9 = smov 0   ;;  %s1809_s0 = inlined_call_operand.vmem [shape: bf16[4608,72], index: 0, kind: input, shape index: {}]   ;;  %s1810_s1 = inlined_call_operand.vmem [shape: bf16[72,32], index: 1, kind: input, shape index: {}]   ;;  %s1811_s2 = inlined_call_operand.vmem [shape: bf16[4608,32], index: 2, kind: output, shape index: {}]  }
   0x1 LB: > { %s1175_s10 = sadd.s32 4294967295, %s1557_s9   ;;  %p1179_p0 = scmp.ge.s32.totalorder %s1557_s9, 1  ;;  %s1557_s9 = sphi %s1574_s9, %s12_s9  }
   0x2   : > { %p113_p1 = scmp.lt.s32.totalorder %s1557_s9, 10 }
   0x4   : > { %p114_p2 = pnand %p1179_p0, %p113_p1 }
   0x5   : > { %s1180_s15 = sshll.u32 (!%p114_p2), %s1175_s10, 6 }
   0x6   : > { %117 = sbr.rel (%p114_p2) target bundleno = 290 (0x122), region = 28  ;;  %p136_p3 = scmp.lt.s32.totalorder (!%p114_p2), %s1180_s15, 575 }
   0xb   : > { %v1514_v0 = vld [vmem:[%s1810_s1 + $0x20] ss:$0 sps:$4 sm:$0xff]   ;;  %vm505_vm0 = vcmask 1043456   ;;  %v1515_v1 = vld [vmem:[%s1810_s1 + $0x18] sm:$0xff]   ;;  %v1516_v3 = vld [vmem:[%s1810_s1 + $0x10] sm:$0xff]   ;;  %s1813_s15 = smov (!%p136_p3, %s1180_s15), 575 }
   0xc   : > { %1504 = vmatprep.subr.msk.bf16.mxu0 %vm505_vm0, %v1514_v0  ;;  %1505 = vmatprep.subr.msk.bf16.mxu1 %vm505_vm0, %v1514_v0  ;;  %v507_v2 = vsel %vm505_vm0, %v1514_v0, 0  ;;  %v1517_v4 = vld [vmem:[%s1810_s1 + $0x8] sm:$0xff]   ;;  %s1181_s20 = sshll.u32 %s1813_s15, 2  ;;  %vm408_vm1 = vcmask 588800   ;;  %v1518_v7 = vld [vmem:[%s1810_s1] sm:$0xff]   ;;  %vm1054_vm2 = vcmask 257024  }
   0xd   : > { %1421 = vmatpush3.bf16.msra.mxu0 %v507_v2  ;;  %1499 = vmatpush3.bf16.msra.mxu1 %v507_v2  ;;  %s1602_s23 = scalar_lea.vmem %s1809_s0, %s1181_s20  ;;  %s1676_s28 = scalar_lea.vmem %s1811_s2, %s1181_s20 }
   0xe   : > { %1422 = vmatprep.subr.bf16.mxu0 %v1515_v1  ;;  %1495 = vmatprep.subr.bf16.mxu1 %v1515_v1  ;;  %v1519_v5 = vld [vmem:[%s1602_s23] sm:$0xff]   ;;  %v1521_v8 = vld [vmem:[%s1602_s23 + $0x8] sm:$0xff]   ;;  %v1523_v10 = vld [vmem:[%s1602_s23 + $0x10] sm:$0xff]  }
   0xf   : > { %v1520_v6 = vld [vmem:[%s1602_s23 + $0x80] sm:$0xff]   ;;  %1430 = vmatprep.mubr.msk.bf16.mxu0 %vm408_vm1, %v1519_v5  ;;  %v1522_v9 = vld [vmem:[%s1602_s23 + $0x88] sm:$0xff]   ;;  %v1524_v11 = vld [vmem:[%s1602_s23 + $0x90] sm:$0xff]  }
  0x10   : > { %1462 = vmatprep.mubr.msk.bf16.mxu1 %vm408_vm1, %v1520_v6  ;;  %v1525_v12 = vld [vmem:[%s1602_s23 + $0x18] sm:$0xff]   ;;  %v1527_v14 = vld [vmem:[%s1602_s23 + $0x20] sm:$0xff]   ;;  %v1529_v16 = vld [vmem:[%s1602_s23 + $0x28] sm:$0xff]  }
  0x11   : > { %1423 = vmatpush3.bf16.msra.mxu0 %v1515_v1  ;;  %1500 = vmatpush3.bf16.msra.mxu1 %v1515_v1  ;;  %v1526_v13 = vld [vmem:[%s1602_s23 + $0x98] sm:$0xff]   ;;  %v1528_v15 = vld [vmem:[%s1602_s23 + $0xa0] sm:$0xff]   ;;  %v1530_v17 = vld [vmem:[%s1602_s23 + $0xa8] sm:$0xff]  }
  0x12   : > { %1424 = vmatprep.subr.bf16.mxu0 %v1516_v3  ;;  %1496 = vmatprep.subr.bf16.mxu1 %v1516_v3  ;;  %v1531_v18 = vld [vmem:[%s1602_s23 + $0x30] sm:$0xff]   ;;  %v1533_v20 = vld [vmem:[%s1602_s23 + $0x38] sm:$0xff]   ;;  %v1535_v22 = vld [vmem:[%s1602_s23 + $0x40] sm:$0xff]  }
  0x13   : > { %v1532_v19 = vld [vmem:[%s1602_s23 + $0xb0] sm:$0xff]   ;;  %v1534_v21 = vld [vmem:[%s1602_s23 + $0xb8] sm:$0xff]   ;;  %v1536_v23 = vld [vmem:[%s1602_s23 + $0xc0] sm:$0xff]  }
  0x14   : > { %v1537_v24 = vld [vmem:[%s1602_s23 + $0x48] sm:$0xff]   ;;  %v1539_v26 = vld [vmem:[%s1602_s23 + $0x50] sm:$0xff]   ;;  %v1541_v28 = vld [vmem:[%s1602_s23 + $0x58] sm:$0xff]  }
  0x15   : > { %1425 = vmatpush3.bf16.msra.mxu0 %v1516_v3  ;;  %1501 = vmatpush3.bf16.msra.mxu1 %v1516_v3  ;;  %v1538_v25 = vld [vmem:[%s1602_s23 + $0xc8] sm:$0xff]   ;;  %v1540_v27 = vld [vmem:[%s1602_s23 + $0xd0] sm:$0xff]   ;;  %v1542_v29 = vld [vmem:[%s1602_s23 + $0xd8] sm:$0xff]  }
  0x16   : > { %1426 = vmatprep.subr.bf16.mxu0 %v1517_v4  ;;  %1497 = vmatprep.subr.bf16.mxu1 %v1517_v4  ;;  %v1543_v30 = vld [vmem:[%s1602_s23 + $0x60] sm:$0xff]   ;;  %v1545_v32 = vld [vmem:[%s1602_s23 + $0x68] sm:$0xff]   ;;  %v1547_v34 = vld [vmem:[%s1602_s23 + $0x70] sm:$0xff]  }
  0x17   : > { %v1544_v31 = vld [vmem:[%s1602_s23 + $0xe0] sm:$0xff]   ;;  %v1546_v33 = vld [vmem:[%s1602_s23 + $0xe8] sm:$0xff]   ;;  %v1548_v35 = vld [vmem:[%s1602_s23 + $0xf0] sm:$0xff]  }
  0x18   : > { %v1549_v36 = vld [vmem:[%s1602_s23 + $0x78] sm:$0xff]  }
  0x19   : > { %1427 = vmatpush3.bf16.msra.mxu0 %v1517_v4  ;;  %1502 = vmatpush3.bf16.msra.mxu1 %v1517_v4  ;;  %v1550_v37 = vld [vmem:[%s1602_s23 + $0xf8] sm:$0xff]  }
  0x1a   : > { %1428 = vmatprep.subr.bf16.mxu0 %v1518_v7  ;;  %1498 = vmatprep.subr.bf16.mxu1 %v1518_v7 }
  0x1d   : > { %1429 = vmatpush3.bf16.msra.mxu0 %v1518_v7  ;;  %1503 = vmatpush3.bf16.msra.mxu1 %v1518_v7 }
  0x20   : > { %1431 = vmatmul.mubr.msk.bf16.vlgmr.msra.gmra.mxu0 %vm408_vm1, %v1521_v8  ;;  %1463 = vmatmul.mubr.msk.bf16.vlgmr.msra.gmra.mxu1 %vm408_vm1, %v1522_v9 }
  0x21   : > { %1434 = vmatprep.mubr.msk.bf16.mxu0 %vm408_vm1, %v1523_v10  ;;  %1466 = vmatprep.mubr.msk.bf16.mxu1 %vm408_vm1, %v1524_v11 }
  0x28   : > { %1435 = vmatmul.mubr.msk.bf16.gmra.mxu0 %vm408_vm1, %v1525_v12  ;;  %1467 = vmatmul.mubr.msk.bf16.gmra.mxu1 %vm408_vm1, %v1526_v13 }
  0x29   : > { %1438 = vmatprep.mubr.msk.bf16.mxu0 %vm408_vm1, %v1527_v14  ;;  %1470 = vmatprep.mubr.msk.bf16.mxu1 %vm408_vm1, %v1528_v15 }
  0x30   : > { %1439 = vmatmul.mubr.msk.bf16.gmra.mxu0 %vm408_vm1, %v1529_v16  ;;  %1471 = vmatmul.mubr.msk.bf16.gmra.mxu1 %vm408_vm1, %v1530_v17 }
  0x31   : > { %1442 = vmatprep.mubr.msk.bf16.mxu0 %vm408_vm1, %v1531_v18  ;;  %1474 = vmatprep.mubr.msk.bf16.mxu1 %vm408_vm1, %v1532_v19 }
  0x38   : > { %1443 = vmatmul.mubr.msk.bf16.gmra.mxu0 %vm408_vm1, %v1533_v20  ;;  %1475 = vmatmul.mubr.msk.bf16.gmra.mxu1 %vm408_vm1, %v1534_v21 }
  0x39   : > { %1446 = vmatprep.mubr.msk.bf16.mxu0 %vm408_vm1, %v1535_v22  ;;  %1478 = vmatprep.mubr.msk.bf16.mxu1 %vm408_vm1, %v1536_v23 }
  0x40   : > { %1447 = vmatmul.mubr.msk.bf16.gmra.mxu0 %vm408_vm1, %v1537_v24  ;;  %1479 = vmatmul.mubr.msk.bf16.gmra.mxu1 %vm408_vm1, %v1538_v25 }
  0x41   : > { %1450 = vmatprep.mubr.msk.bf16.mxu0 %vm408_vm1, %v1539_v26  ;;  %1482 = vmatprep.mubr.msk.bf16.mxu1 %vm408_vm1, %v1540_v27 }
  0x48   : > { %1451 = vmatmul.mubr.msk.bf16.gmra.mxu0 %vm408_vm1, %v1541_v28  ;;  %1483 = vmatmul.mubr.msk.bf16.gmra.mxu1 %vm408_vm1, %v1542_v29 }
  0x49   : > { %1454 = vmatprep.mubr.msk.bf16.mxu0 %vm408_vm1, %v1543_v30  ;;  %1486 = vmatprep.mubr.msk.bf16.mxu1 %vm408_vm1, %v1544_v31 }
  0x50   : > { %1455 = vmatmul.mubr.msk.bf16.gmra.mxu0 %vm408_vm1, %v1545_v32  ;;  %1487 = vmatmul.mubr.msk.bf16.gmra.mxu1 %vm408_vm1, %v1546_v33 }
  0x51   : > { %1458 = vmatprep.mubr.msk.bf16.mxu0 %vm408_vm1, %v1547_v34  ;;  %1490 = vmatprep.mubr.msk.bf16.mxu1 %vm408_vm1, %v1548_v35 }
  0x58   : > { %1459 = vmatmul.mubr.msk.bf16.gmra.mxu0 %vm408_vm1, %v1549_v36  ;;  %1491 = vmatmul.mubr.msk.bf16.gmra.mxu1 %vm408_vm1, %v1550_v37 }
  0xe0   : > { %v1432_v38 = vpop.f32.mrf.mxu0  ;;  %v1464_v39 = vpop.f32.mrf.mxu1 }
  0xe1   : > { %v1321_v40 = vpack.c.bf16 %v1432_v38, %v1432_v38  ;;  %v1353_v41 = vpack.c.bf16 %v1464_v39, %v1464_v39 }
  0xe2   : > { %v543_v42 = vpop.f32.mrf.mxu0  ;;  %v671_v43 = vpop.f32.mrf.mxu1 }
  0xe3   : > { %1057 = vst.msk [vmem:[%s1676_s28 + $0x8] sm:$0xf] %vm1054_vm2, %v1321_v40  ;;  %1089 = vst.msk [vmem:[%s1676_s28 + $0x88] sm:$0xf] %vm1054_vm2, %v1353_v41  ;;  %v1319_v44 = vpack.c.bf16 %v543_v42, %v543_v42  ;;  %v1351_v45 = vpack.c.bf16 %v671_v43, %v671_v43 }
  0xe4   : > { %v1433_v46 = vpop.f32.mrf.mxu0  ;;  %v1465_v47 = vpop.f32.mrf.mxu1 }
  0xe5   : > { %1055 = vst.msk [vmem:[%s1676_s28] sm:$0xf] %vm1054_vm2, %v1319_v44  ;;  %1087 = vst.msk [vmem:[%s1676_s28 + $0x80] sm:$0xf] %vm1054_vm2, %v1351_v45  ;;  %v1322_v48 = vpack.c.bf16 %v1433_v46, %v1433_v46  ;;  %v1354_v49 = vpack.c.bf16 %v1465_v47, %v1465_v47 }
  0xe6   : > { %v546_v50 = vpop.f32.mrf.mxu0  ;;  %v674_v51 = vpop.f32.mrf.mxu1 }
  0xe7   : > { %1058 = vst.msk [vmem:[%s1676_s28 + $0xc] sm:$0xf] %vm1054_vm2, %v1322_v48  ;;  %1090 = vst.msk [vmem:[%s1676_s28 + $0x8c] sm:$0xf] %vm1054_vm2, %v1354_v49  ;;  %v1320_v52 = vpack.c.bf16 %v546_v50, %v546_v50  ;;  %v1352_v53 = vpack.c.bf16 %v674_v51, %v674_v51 }
  0xe8   : > { %v1436_v54 = vpop.f32.mrf.mxu0  ;;  %v1468_v55 = vpop.f32.mrf.mxu1 }
  0xe9   : > { %1056 = vst.msk [vmem:[%s1676_s28 + $0x4] sm:$0xf] %vm1054_vm2, %v1320_v52  ;;  %1088 = vst.msk [vmem:[%s1676_s28 + $0x84] sm:$0xf] %vm1054_vm2, %v1352_v53  ;;  %v1325_v56 = vpack.c.bf16 %v1436_v54, %v1436_v54  ;;  %v1357_v57 = vpack.c.bf16 %v1468_v55, %v1468_v55 }
  0xea   : > { %v559_v58 = vpop.f32.mrf.mxu0  ;;  %v687_v59 = vpop.f32.mrf.mxu1 }
  0xeb   : > { %1061 = vst.msk [vmem:[%s1676_s28 + $0x18] sm:$0xf] %vm1054_vm2, %v1325_v56  ;;  %1093 = vst.msk [vmem:[%s1676_s28 + $0x98] sm:$0xf] %vm1054_vm2, %v1357_v57  ;;  %v1323_v60 = vpack.c.bf16 %v559_v58, %v559_v58  ;;  %v1355_v61 = vpack.c.bf16 %v687_v59, %v687_v59 }
  0xec   : > { %v1437_v62 = vpop.f32.mrf.mxu0  ;;  %v1469_v63 = vpop.f32.mrf.mxu1 }
  0xed   : > { %1059 = vst.msk [vmem:[%s1676_s28 + $0x10] sm:$0xf] %vm1054_vm2, %v1323_v60  ;;  %1091 = vst.msk [vmem:[%s1676_s28 + $0x90] sm:$0xf] %vm1054_vm2, %v1355_v61  ;;  %v1326_v0 = vpack.c.bf16 %v1437_v62, %v1437_v62  ;;  %v1358_v1 = vpack.c.bf16 %v1469_v63, %v1469_v63 }
  0xee   : > { %v562_v2 = vpop.f32.mrf.mxu0  ;;  %v690_v3 = vpop.f32.mrf.mxu1 }
  0xef   : > { %1062 = vst.msk [vmem:[%s1676_s28 + $0x1c] sm:$0xf] %vm1054_vm2, %v1326_v0  ;;  %1094 = vst.msk [vmem:[%s1676_s28 + $0x9c] sm:$0xf] %vm1054_vm2, %v1358_v1  ;;  %v1324_v4 = vpack.c.bf16 %v562_v2, %v562_v2  ;;  %v1356_v5 = vpack.c.bf16 %v690_v3, %v690_v3 }
  0xf0   : > { %v1440_v6 = vpop.f32.mrf.mxu0  ;;  %v1472_v7 = vpop.f32.mrf.mxu1 }
  0xf1   : > { %1060 = vst.msk [vmem:[%s1676_s28 + $0x14] sm:$0xf] %vm1054_vm2, %v1324_v4  ;;  %1092 = vst.msk [vmem:[%s1676_s28 + $0x94] sm:$0xf] %vm1054_vm2, %v1356_v5  ;;  %v1329_v8 = vpack.c.bf16 %v1440_v6, %v1440_v6  ;;  %v1361_v9 = vpack.c.bf16 %v1472_v7, %v1472_v7 }
  0xf2   : > { %v575_v10 = vpop.f32.mrf.mxu0  ;;  %v703_v11 = vpop.f32.mrf.mxu1 }
  0xf3   : > { %1065 = vst.msk [vmem:[%s1676_s28 + $0x28] sm:$0xf] %vm1054_vm2, %v1329_v8  ;;  %1097 = vst.msk [vmem:[%s1676_s28 + $0xa8] sm:$0xf] %vm1054_vm2, %v1361_v9  ;;  %v1327_v12 = vpack.c.bf16 %v575_v10, %v575_v10  ;;  %v1359_v13 = vpack.c.bf16 %v703_v11, %v703_v11 }
  0xf4   : > { %v1441_v14 = vpop.f32.mrf.mxu0  ;;  %v1473_v15 = vpop.f32.mrf.mxu1 }
  0xf5   : > { %1063 = vst.msk [vmem:[%s1676_s28 + $0x20] sm:$0xf] %vm1054_vm2, %v1327_v12  ;;  %1095 = vst.msk [vmem:[%s1676_s28 + $0xa0] sm:$0xf] %vm1054_vm2, %v1359_v13  ;;  %v1330_v16 = vpack.c.bf16 %v1441_v14, %v1441_v14  ;;  %v1362_v17 = vpack.c.bf16 %v1473_v15, %v1473_v15 }
  0xf6   : > { %v578_v18 = vpop.f32.mrf.mxu0  ;;  %v706_v19 = vpop.f32.mrf.mxu1 }
  0xf7   : > { %1066 = vst.msk [vmem:[%s1676_s28 + $0x2c] sm:$0xf] %vm1054_vm2, %v1330_v16  ;;  %1098 = vst.msk [vmem:[%s1676_s28 + $0xac] sm:$0xf] %vm1054_vm2, %v1362_v17  ;;  %v1328_v20 = vpack.c.bf16 %v578_v18, %v578_v18  ;;  %v1360_v21 = vpack.c.bf16 %v706_v19, %v706_v19 }
  0xf8   : > { %v1444_v22 = vpop.f32.mrf.mxu0  ;;  %v1476_v23 = vpop.f32.mrf.mxu1 }
  0xf9   : > { %1064 = vst.msk [vmem:[%s1676_s28 + $0x24] sm:$0xf] %vm1054_vm2, %v1328_v20  ;;  %1096 = vst.msk [vmem:[%s1676_s28 + $0xa4] sm:$0xf] %vm1054_vm2, %v1360_v21  ;;  %v1333_v24 = vpack.c.bf16 %v1444_v22, %v1444_v22  ;;  %v1365_v25 = vpack.c.bf16 %v1476_v23, %v1476_v23 }
  0xfa   : > { %v591_v26 = vpop.f32.mrf.mxu0  ;;  %v719_v27 = vpop.f32.mrf.mxu1 }
  0xfb   : > { %1069 = vst.msk [vmem:[%s1676_s28 + $0x38] sm:$0xf] %vm1054_vm2, %v1333_v24  ;;  %1101 = vst.msk [vmem:[%s1676_s28 + $0xb8] sm:$0xf] %vm1054_vm2, %v1365_v25  ;;  %v1331_v28 = vpack.c.bf16 %v591_v26, %v591_v26  ;;  %v1363_v29 = vpack.c.bf16 %v719_v27, %v719_v27 }
  0xfc   : > { %v1445_v30 = vpop.f32.mrf.mxu0  ;;  %v1477_v31 = vpop.f32.mrf.mxu1 }
  0xfd   : > { %1067 = vst.msk [vmem:[%s1676_s28 + $0x30] sm:$0xf] %vm1054_vm2, %v1331_v28  ;;  %1099 = vst.msk [vmem:[%s1676_s28 + $0xb0] sm:$0xf] %vm1054_vm2, %v1363_v29  ;;  %v1334_v32 = vpack.c.bf16 %v1445_v30, %v1445_v30  ;;  %v1366_v33 = vpack.c.bf16 %v1477_v31, %v1477_v31 }
  0xfe   : > { %v594_v34 = vpop.f32.mrf.mxu0  ;;  %v722_v35 = vpop.f32.mrf.mxu1 }
  0xff   : > { %1070 = vst.msk [vmem:[%s1676_s28 + $0x3c] sm:$0xf] %vm1054_vm2, %v1334_v32  ;;  %1102 = vst.msk [vmem:[%s1676_s28 + $0xbc] sm:$0xf] %vm1054_vm2, %v1366_v33  ;;  %v1332_v36 = vpack.c.bf16 %v594_v34, %v594_v34  ;;  %v1364_v37 = vpack.c.bf16 %v722_v35, %v722_v35 }
 0x100   : > { %v1448_v38 = vpop.f32.mrf.mxu0  ;;  %v1480_v39 = vpop.f32.mrf.mxu1 }
 0x101   : > { %1068 = vst.msk [vmem:[%s1676_s28 + $0x34] sm:$0xf] %vm1054_vm2, %v1332_v36  ;;  %1100 = vst.msk [vmem:[%s1676_s28 + $0xb4] sm:$0xf] %vm1054_vm2, %v1364_v37  ;;  %v1337_v40 = vpack.c.bf16 %v1448_v38, %v1448_v38  ;;  %v1369_v41 = vpack.c.bf16 %v1480_v39, %v1480_v39 }
 0x102   : > { %v607_v42 = vpop.f32.mrf.mxu0  ;;  %v735_v43 = vpop.f32.mrf.mxu1 }
 0x103   : > { %1073 = vst.msk [vmem:[%s1676_s28 + $0x48] sm:$0xf] %vm1054_vm2, %v1337_v40  ;;  %1105 = vst.msk [vmem:[%s1676_s28 + $0xc8] sm:$0xf] %vm1054_vm2, %v1369_v41  ;;  %v1335_v44 = vpack.c.bf16 %v607_v42, %v607_v42  ;;  %v1367_v45 = vpack.c.bf16 %v735_v43, %v735_v43 }
 0x104   : > { %v1449_v46 = vpop.f32.mrf.mxu0  ;;  %v1481_v47 = vpop.f32.mrf.mxu1 }
 0x105   : > { %1071 = vst.msk [vmem:[%s1676_s28 + $0x40] sm:$0xf] %vm1054_vm2, %v1335_v44  ;;  %1103 = vst.msk [vmem:[%s1676_s28 + $0xc0] sm:$0xf] %vm1054_vm2, %v1367_v45  ;;  %v1338_v48 = vpack.c.bf16 %v1449_v46, %v1449_v46  ;;  %v1370_v49 = vpack.c.bf16 %v1481_v47, %v1481_v47 }
 0x106   : > { %v610_v50 = vpop.f32.mrf.mxu0  ;;  %v738_v51 = vpop.f32.mrf.mxu1 }
 0x107   : > { %1074 = vst.msk [vmem:[%s1676_s28 + $0x4c] sm:$0xf] %vm1054_vm2, %v1338_v48  ;;  %1106 = vst.msk [vmem:[%s1676_s28 + $0xcc] sm:$0xf] %vm1054_vm2, %v1370_v49  ;;  %v1336_v52 = vpack.c.bf16 %v610_v50, %v610_v50  ;;  %v1368_v53 = vpack.c.bf16 %v738_v51, %v738_v51 }
 0x108   : > { %v1452_v54 = vpop.f32.mrf.mxu0  ;;  %v1484_v55 = vpop.f32.mrf.mxu1 }
 0x109   : > { %1072 = vst.msk [vmem:[%s1676_s28 + $0x44] sm:$0xf] %vm1054_vm2, %v1336_v52  ;;  %1104 = vst.msk [vmem:[%s1676_s28 + $0xc4] sm:$0xf] %vm1054_vm2, %v1368_v53  ;;  %v1341_v56 = vpack.c.bf16 %v1452_v54, %v1452_v54  ;;  %v1373_v57 = vpack.c.bf16 %v1484_v55, %v1484_v55 }
 0x10a   : > { %v623_v58 = vpop.f32.mrf.mxu0  ;;  %v751_v59 = vpop.f32.mrf.mxu1 }
 0x10b   : > { %1077 = vst.msk [vmem:[%s1676_s28 + $0x58] sm:$0xf] %vm1054_vm2, %v1341_v56  ;;  %1109 = vst.msk [vmem:[%s1676_s28 + $0xd8] sm:$0xf] %vm1054_vm2, %v1373_v57  ;;  %v1339_v60 = vpack.c.bf16 %v623_v58, %v623_v58  ;;  %v1371_v61 = vpack.c.bf16 %v751_v59, %v751_v59 }
 0x10c   : > { %v1453_v62 = vpop.f32.mrf.mxu0  ;;  %v1485_v63 = vpop.f32.mrf.mxu1 }
 0x10d   : > { %1075 = vst.msk [vmem:[%s1676_s28 + $0x50] sm:$0xf] %vm1054_vm2, %v1339_v60  ;;  %1107 = vst.msk [vmem:[%s1676_s28 + $0xd0] sm:$0xf] %vm1054_vm2, %v1371_v61  ;;  %v1342_v0 = vpack.c.bf16 %v1453_v62, %v1453_v62  ;;  %v1374_v1 = vpack.c.bf16 %v1485_v63, %v1485_v63 }
 0x10e   : > { %v626_v2 = vpop.f32.mrf.mxu0  ;;  %v754_v3 = vpop.f32.mrf.mxu1 }
 0x10f   : > { %1078 = vst.msk [vmem:[%s1676_s28 + $0x5c] sm:$0xf] %vm1054_vm2, %v1342_v0  ;;  %1110 = vst.msk [vmem:[%s1676_s28 + $0xdc] sm:$0xf] %vm1054_vm2, %v1374_v1  ;;  %v1340_v4 = vpack.c.bf16 %v626_v2, %v626_v2  ;;  %v1372_v5 = vpack.c.bf16 %v754_v3, %v754_v3 }
 0x110   : > { %v1456_v6 = vpop.f32.mrf.mxu0  ;;  %v1488_v7 = vpop.f32.mrf.mxu1 }
 0x111   : > { %1076 = vst.msk [vmem:[%s1676_s28 + $0x54] sm:$0xf] %vm1054_vm2, %v1340_v4  ;;  %1108 = vst.msk [vmem:[%s1676_s28 + $0xd4] sm:$0xf] %vm1054_vm2, %v1372_v5  ;;  %v1345_v8 = vpack.c.bf16 %v1456_v6, %v1456_v6  ;;  %v1377_v9 = vpack.c.bf16 %v1488_v7, %v1488_v7 }
 0x112   : > { %v639_v10 = vpop.f32.mrf.mxu0  ;;  %v767_v11 = vpop.f32.mrf.mxu1 }
 0x113   : > { %1081 = vst.msk [vmem:[%s1676_s28 + $0x68] sm:$0xf] %vm1054_vm2, %v1345_v8  ;;  %1113 = vst.msk [vmem:[%s1676_s28 + $0xe8] sm:$0xf] %vm1054_vm2, %v1377_v9  ;;  %v1343_v12 = vpack.c.bf16 %v639_v10, %v639_v10  ;;  %v1375_v13 = vpack.c.bf16 %v767_v11, %v767_v11 }
 0x114   : > { %v1457_v14 = vpop.f32.mrf.mxu0  ;;  %v1489_v15 = vpop.f32.mrf.mxu1 }
 0x115   : > { %1079 = vst.msk [vmem:[%s1676_s28 + $0x60] sm:$0xf] %vm1054_vm2, %v1343_v12  ;;  %1111 = vst.msk [vmem:[%s1676_s28 + $0xe0] sm:$0xf] %vm1054_vm2, %v1375_v13  ;;  %v1346_v16 = vpack.c.bf16 %v1457_v14, %v1457_v14  ;;  %v1378_v17 = vpack.c.bf16 %v1489_v15, %v1489_v15 }
 0x116   : > { %v642_v18 = vpop.f32.mrf.mxu0  ;;  %v770_v19 = vpop.f32.mrf.mxu1 }
 0x117   : > { %1082 = vst.msk [vmem:[%s1676_s28 + $0x6c] sm:$0xf] %vm1054_vm2, %v1346_v16  ;;  %1114 = vst.msk [vmem:[%s1676_s28 + $0xec] sm:$0xf] %vm1054_vm2, %v1378_v17  ;;  %v1344_v20 = vpack.c.bf16 %v642_v18, %v642_v18  ;;  %v1376_v21 = vpack.c.bf16 %v770_v19, %v770_v19 }
 0x118   : > { %v1460_v22 = vpop.f32.mrf.mxu0  ;;  %v1492_v23 = vpop.f32.mrf.mxu1 }
 0x119   : > { %1080 = vst.msk [vmem:[%s1676_s28 + $0x64] sm:$0xf] %vm1054_vm2, %v1344_v20  ;;  %1112 = vst.msk [vmem:[%s1676_s28 + $0xe4] sm:$0xf] %vm1054_vm2, %v1376_v21  ;;  %v1349_v24 = vpack.c.bf16 %v1460_v22, %v1460_v22  ;;  %v1381_v25 = vpack.c.bf16 %v1492_v23, %v1492_v23 }
 0x11a   : > { %v655_v26 = vpop.f32.mrf.mxu0  ;;  %v783_v27 = vpop.f32.mrf.mxu1 }
 0x11b   : > { %1085 = vst.msk [vmem:[%s1676_s28 + $0x78] sm:$0xf] %vm1054_vm2, %v1349_v24  ;;  %1117 = vst.msk [vmem:[%s1676_s28 + $0xf8] sm:$0xf] %vm1054_vm2, %v1381_v25  ;;  %v1347_v28 = vpack.c.bf16 %v655_v26, %v655_v26  ;;  %v1379_v29 = vpack.c.bf16 %v783_v27, %v783_v27 }
 0x11c   : > { %v1461_v30 = vpop.f32.mrf.mxu0  ;;  %v1493_v31 = vpop.f32.mrf.mxu1 }
 0x11d   : > { %1083 = vst.msk [vmem:[%s1676_s28 + $0x70] sm:$0xf] %vm1054_vm2, %v1347_v28  ;;  %1115 = vst.msk [vmem:[%s1676_s28 + $0xf0] sm:$0xf] %vm1054_vm2, %v1379_v29  ;;  %v1350_v32 = vpack.c.bf16 %v1461_v30, %v1461_v30  ;;  %v1382_v33 = vpack.c.bf16 %v1493_v31, %v1493_v31 }
 0x11e   : > { %v658_v34 = vpop.f32.mrf.mxu0  ;;  %v786_v35 = vpop.f32.mrf.mxu1 }
 0x11f   : > { %1086 = vst.msk [vmem:[%s1676_s28 + $0x7c] sm:$0xf] %vm1054_vm2, %v1350_v32  ;;  %1118 = vst.msk [vmem:[%s1676_s28 + $0xfc] sm:$0xf] %vm1054_vm2, %v1382_v33  ;;  %v1348_v36 = vpack.c.bf16 %v658_v34, %v658_v34  ;;  %v1380_v37 = vpack.c.bf16 %v786_v35, %v786_v35 }
 0x121   : > { %1084 = vst.msk [vmem:[%s1676_s28 + $0x74] sm:$0xf] %vm1054_vm2, %v1348_v36  ;;  %1116 = vst.msk [vmem:[%s1676_s28 + $0xf4] sm:$0xf] %vm1054_vm2, %v1380_v37 }
 0x122 PF: > { %s12_s9 = sadd.s32 1, %s1557_s9  }
 0x123   : > { %p9_p4 = scmp.ge.s32.totalorder %s12_s9, 11  }
 0x125   :  { %11 = sbr.rel (!%p9_p4) target bundleno = 1 (0x1), region = 58 }

// kernel: hgfeature_forward.32
= control target key start
LH: loop header
LB: loop body
LE: loop exit
PB: predicated region body
PF: predicated region fallthrough
CT: control target
= control target key end

     0   :  { %s3050_s9 = smov 0   ;;  %s3675_s0 = inlined_call_operand.vmem [shape: bf16[512,800], index: 0, kind: input, shape index: {}]   ;;  %s3676_s1 = inlined_call_operand.vmem [shape: bf16[800,32], index: 1, kind: input, shape index: {}]   ;;  %s3677_s2 = inlined_call_operand.vmem [shape: bf16[512,32], index: 2, kind: output, shape index: {}]  }
   0x1 LB: > { %s2149_s10 = sadd.s32 4294967295, %s3033_s9   ;;  %p2153_p0 = scmp.ge.s32.totalorder %s3033_s9, 1  ;;  %s3033_s9 = sphi %s3050_s9, %s12_s9  }
   0x2   : > { %p114_p1 = scmp.lt.s32.totalorder %s3033_s9, 3 }
   0x4   : > { %p115_p2 = pnand %p2153_p0, %p114_p1 }
   0x6   : > { %118 = sbr.rel (%p115_p2) target bundleno = 468 (0x1d4), region = 28 }
   0xb   : > { %v2817_v0 = vld [vmem:[%s3676_s1 + $0x78] sm:$0xff]   ;;  %s2154_s13 = sshll.u32 %s2149_s10, 5  ;;  %v2819_v2 = vld [vmem:[%s3676_s1 + $0x70] sm:$0xff]   ;;  %v2821_v4 = vld [vmem:[%s3676_s1 + $0x68] sm:$0xff]   ;;  %vm1239_vm0 = vcmask 261120   ;;  %vm2060_vm1 = vcmask 257024  }
   0xc   : > { %v2818_v1 = vld [vmem:[%s3676_s1 + $0x38] sm:$0xff]   ;;  %2402 = vmatprep.subr.bf16.mxu0 %v2817_v0  ;;  %2792 = vmatprep.subr.bf16.mxu1 %v2817_v0  ;;  %p138_p3 = scmp.lt.s32.totalorder %s2154_s13, 63  ;;  %v2820_v3 = vld [vmem:[%s3676_s1 + $0x30] sm:$0xff]   ;;  %v2822_v5 = vld [vmem:[%s3676_s1 + $0x28] sm:$0xff]  }
   0xd   : > { %2403 = vmatpush3.bf16.msra.mxu0 %v2818_v1  ;;  %2800 = vmatpush3.bf16.msra.mxu1 %v2818_v1  ;;  %v2823_v6 = vld [vmem:[%s3676_s1 + $0x60] sm:$0xff]   ;;  %v2825_v8 = vld [vmem:[%s3676_s1 + $0x58] sm:$0xff]   ;;  %v2827_v10 = vld [vmem:[%s3676_s1 + $0x50] sm:$0xff]  }
   0xe   : > { %2404 = vmatprep.subr.bf16.mxu0 %v2819_v2  ;;  %2793 = vmatprep.subr.bf16.mxu1 %v2819_v2  ;;  %s3699_s13 = smov (!%p138_p3, %s2154_s13), 63  ;;  %v2824_v7 = vld [vmem:[%s3676_s1 + $0x20] sm:$0xff]   ;;  %v2826_v9 = vld [vmem:[%s3676_s1 + $0x18] sm:$0xff]   ;;  %v2828_v13 = vld [vmem:[%s3676_s1 + $0x10] sm:$0xff]  }
   0xf   : > { %s2808_s26 = smul.u32 28, %s3699_s13  ;;  %v2829_v14 = vld [vmem:[%s3676_s1 + $0x48] sm:$0xff]   ;;  %v2831_v16 = vld [vmem:[%s3676_s1 + $0x40] sm:$0xff]   ;;  %v2839_v18 = vld [vmem:[%s3676_s1 + $0xf8] sm:$0xff]  }
  0x10   : > { %v2830_v15 = vld [vmem:[%s3676_s1 + $0x8] sm:$0xff]   ;;  %v2832_v17 = vld [vmem:[%s3676_s1] sm:$0xff]   ;;  %v2840_v21 = vld [vmem:[%s3676_s1 + $0x178] sm:$0xff]  }
  0x11   : > { %2405 = vmatpush3.bf16.msra.mxu0 %v2820_v3  ;;  %2801 = vmatpush3.bf16.msra.mxu1 %v2820_v3  ;;  %s3091_s5 = scalar_lea.vmem %s3675_s0, %s2808_s26  ;;  %v2841_v22 = vld [vmem:[%s3676_s1 + $0xb8] sm:$0xff]   ;;  %v2843_v24 = vld [vmem:[%s3676_s1 + $0xf0] sm:$0xff]   ;;  %v2851_v32 = vld [vmem:[%s3676_s1 + $0xe8] sm:$0xff]  }
  0x12   : > { %2406 = vmatprep.subr.bf16.mxu0 %v2821_v4  ;;  %2794 = vmatprep.subr.bf16.mxu1 %v2821_v4  ;;  %v2835_v11 = vld [vmem:[%s3091_s5 + $0x4] ss:$28 sps:$4 sm:$0xff]   ;;  %v2842_v23 = vld [vmem:[%s3676_s1 + $0x138] sm:$0xff]   ;;  %v2854_v27 = vld [vmem:[%s3676_s1 + $0x170] sm:$0xff]  }
  0x13   : > { %v2838_v12 = vld [vmem:[%s3091_s5 + $0x2a4] ss:$28 sps:$4 sm:$0xff]   ;;  %1320 = vmatprep.mubr.bf16.mxu0 %v2835_v11  ;;  %v2845_v25 = vld [vmem:[%s3091_s5 + $0x3c] ss:$28 sps:$4 sm:$0xff]   ;;  %v2844_v28 = vld [vmem:[%s3676_s1 + $0xb0] sm:$0xff]  }
  0x14   : > { %1416 = vmatprep.mubr.bf16.mxu1 %v2838_v12  ;;  %v2833_v19 = vld [vmem:[%s3091_s5] ss:$28 sps:$4 sm:$0xff]   ;;  %v2856_v29 = vld [vmem:[%s3676_s1 + $0x130] sm:$0xff]   ;;  %v2852_v33 = vld [vmem:[%s3676_s1 + $0xa8] sm:$0xff]  }
  0x15   : > { %2407 = vmatpush3.bf16.msra.mxu0 %v2822_v5  ;;  %2802 = vmatpush3.bf16.msra.mxu1 %v2822_v5  ;;  %v2836_v20 = vld [vmem:[%s3091_s5 + $0x2a0] ss:$28 sps:$4 sm:$0xff]   ;;  %v2849_v30 = vld [vmem:[%s3091_s5 + $0x38] ss:$28 sps:$4 sm:$0xff]   ;;  %v2861_v39 = vld [vmem:[%s3091_s5 + $0x70] ss:$28 sps:$4 sm:$0xff]  }
  0x16   : > { %2408 = vmatprep.subr.bf16.mxu0 %v2823_v6  ;;  %2795 = vmatprep.subr.bf16.mxu1 %v2823_v6  ;;  %v2847_v26 = vld [vmem:[%s3091_s5 + $0x2dc] ss:$28 sps:$4 sm:$0xff]   ;;  %v2853_v34 = vld [vmem:[%s3676_s1 + $0xe0] sm:$0xff]   ;;  %v2857_v35 = vld [vmem:[%s3091_s5 + $0x74] ss:$28 sps:$4 sm:$0xff]  }
  0x17   : > { %v2850_v31 = vld [vmem:[%s3091_s5 + $0x2d8] ss:$28 sps:$4 sm:$0xff]   ;;  %v2855_v37 = vld [vmem:[%s3676_s1 + $0xa0] sm:$0xff]   ;;  %v2862_v40 = vld [vmem:[%s3091_s5 + $0x310] ss:$28 sps:$4 sm:$0xff]  }
  0x18   : > { %v2859_v36 = vld [vmem:[%s3091_s5 + $0x314] ss:$28 sps:$4 sm:$0xff]   ;;  %v2863_v38 = vld [vmem:[%s3676_s1 + $0xd8] sm:$0xff]   ;;  %v2874_v41 = vld [vmem:[%s3676_s1 + $0x168] sm:$0xff]  }
  0x19   : > { %2409 = vmatpush3.bf16.msra.mxu0 %v2824_v7  ;;  %2803 = vmatpush3.bf16.msra.mxu1 %v2824_v7  ;;  %v2864_v42 = vld [vmem:[%s3676_s1 + $0x98] sm:$0xff]   ;;  %v2865_v43 = vld [vmem:[%s3676_s1 + $0xd0] sm:$0xff]   ;;  %v2876_v44 = vld [vmem:[%s3676_s1 + $0x128] sm:$0xff]  }
  0x1a   : > { %2410 = vmatprep.subr.bf16.mxu0 %v2825_v8  ;;  %2796 = vmatprep.subr.bf16.mxu1 %v2825_v8  ;;  %v2867_v45 = vld [vmem:[%s3091_s5 + $0xac] ss:$28 sps:$4 sm:$0xff]   ;;  %v2866_v47 = vld [vmem:[%s3676_s1 + $0x90] sm:$0xff]   ;;  %v2885_v51 = vld [vmem:[%s3676_s1 + $0x160] sm:$0xff]  }
  0x1b   : > { %v2869_v46 = vld [vmem:[%s3091_s5 + $0x34c] ss:$28 sps:$4 sm:$0xff]   ;;  %v2887_v53 = vld [vmem:[%s3676_s1 + $0x120] sm:$0xff]   ;;  %v2900_v60 = vld [vmem:[%s3676_s1 + $0x158] sm:$0xff]  }
  0x1c   : > { %v2873_v48 = vld [vmem:[%s3676_s1 + $0xc8] sm:$0xff]   ;;  %v2879_v54 = vld [vmem:[%s3091_s5 + $0xe4] ss:$28 sps:$4 sm:$0xff]   ;;  %v2901_v61 = vld [vmem:[%s3676_s1 + $0x118] sm:$0xff]  }
  0x1d   : > { %2411 = vmatpush3.bf16.msra.mxu0 %v2826_v9  ;;  %2804 = vmatpush3.bf16.msra.mxu1 %v2826_v9  ;;  %v2871_v49 = vld [vmem:[%s3091_s5 + $0xa8] ss:$28 sps:$4 sm:$0xff]   ;;  %v2884_v62 = vld [vmem:[%s3091_s5 + $0xe0] ss:$28 sps:$4 sm:$0xff]   ;;  %v2908_v1 = vld [vmem:[%s3676_s1 + $0x150] sm:$0xff]  }
  0x1e   : > { %2412 = vmatprep.subr.bf16.mxu0 %v2827_v10  ;;  %2797 = vmatprep.subr.bf16.mxu1 %v2827_v10  ;;  %v2872_v50 = vld [vmem:[%s3091_s5 + $0x348] ss:$28 sps:$4 sm:$0xff]   ;;  %v2888_v63 = vld [vmem:[%s3091_s5 + $0x11c] ss:$28 sps:$4 sm:$0xff]   ;;  %v2909_v2 = vld [vmem:[%s3676_s1 + $0x110] sm:$0xff]  }
  0x1f   : > { %v2875_v52 = vld [vmem:[%s3676_s1 + $0x88] sm:$0xff]   ;;  %v2877_v55 = vld [vmem:[%s3676_s1 + $0xc0] sm:$0xff]   ;;  %v2892_v3 = vld [vmem:[%s3091_s5 + $0x118] ss:$28 sps:$4 sm:$0xff]  }
  0x20   : > { %v2883_v56 = vld [vmem:[%s3091_s5 + $0xc] ss:$28 sps:$4 sm:$0xff]   ;;  %v2878_v57 = vld [vmem:[%s3676_s1 + $0x80] sm:$0xff]   ;;  %v2894_v5 = vld [vmem:[%s3091_s5 + $0x154] ss:$28 sps:$4 sm:$0xff]  }
  0x21   : > { %2413 = vmatpush3.bf16.msra.mxu0 %v2828_v13  ;;  %2805 = vmatpush3.bf16.msra.mxu1 %v2828_v13  ;;  %v2886_v58 = vld [vmem:[%s3676_s1 + $0x188] sm:$0xff]   ;;  %v2890_v0 = vld [vmem:[%s3091_s5 + $0x44] ss:$28 sps:$4 sm:$0xff]   ;;  %v2896_v6 = vld [vmem:[%s3091_s5 + $0x7c] ss:$28 sps:$4 sm:$0xff]  }
  0x22   : > { %2414 = vmatprep.subr.bf16.mxu0 %v2829_v14  ;;  %2798 = vmatprep.subr.bf16.mxu1 %v2829_v14  ;;  %v2881_v59 = vld [vmem:[%s3091_s5 + $0x8] ss:$28 sps:$4 sm:$0xff]   ;;  %v2893_v4 = vld [vmem:[%s3091_s5 + $0x40] ss:$28 sps:$4 sm:$0xff]   ;;  %v2898_v9 = vld [vmem:[%s3091_s5 + $0x150] ss:$28 sps:$4 sm:$0xff]  }
  0x23   : > { %v2922_v7 = vld [vmem:[%s3676_s1 + $0x148] sm:$0xff]   ;;  %v2899_v10 = vld [vmem:[%s3091_s5 + $0x78] ss:$28 sps:$4 sm:$0xff]   ;;  %v2930_v12 = vld [vmem:[%s3676_s1 + $0x140] sm:$0xff]  }
  0x24   : > { %v2923_v8 = vld [vmem:[%s3676_s1 + $0x108] sm:$0xff]   ;;  %v2931_v13 = vld [vmem:[%s3676_s1 + $0x100] sm:$0xff]   ;;  %v2904_v14 = vld [vmem:[%s3091_s5 + $0xb4] ss:$28 sps:$4 sm:$0xff]  }
  0x25   : > { %2415 = vmatpush3.bf16.msra.mxu0 %v2830_v15  ;;  %2806 = vmatpush3.bf16.msra.mxu1 %v2830_v15  ;;  %v2902_v11 = vld [vmem:[%s3091_s5 + $0x18c] ss:$28 sps:$4 sm:$0xff]   ;;  %v2944_v15 = vld [vmem:[%s3676_s1 + $0x180] sm:$0xff]  }
  0x26   : > { %2416 = vmatprep.subr.bf16.mxu0 %v2831_v16  ;;  %2799 = vmatprep.subr.bf16.mxu1 %v2831_v16  ;;  %v2906_v16 = vld [vmem:[%s3091_s5 + $0x188] ss:$28 sps:$4 sm:$0xff]  }
  0x29   : > { %2417 = vmatpush3.bf16.msra.mxu0 %v2832_v17  ;;  %2807 = vmatpush3.bf16.msra.mxu1 %v2832_v17  ;;  %v2907_v17 = vld [vmem:[%s3091_s5 + $0xb0] ss:$28 sps:$4 sm:$0xff]  }
  0x2a   : > { %2514 = vmatprep.subr.bf16.mxu1 %v2839_v18  ;;  %2626 = vmatprep.subr.bf16.mxu0 %v2840_v21  ;;  %v2910_v18 = vld [vmem:[%s3091_s5 + $0x1c4] ss:$28 sps:$4 sm:$0xff]  }
  0x2b   : > { %v2915_v21 = vld [vmem:[%s3091_s5 + $0xe8] ss:$28 sps:$4 sm:$0xff]  }
  0x2c   : > { %1321 = vmatmul.mubr.bf16.vlgmr.msra.gmra.mxu0 %v2833_v19  ;;  %1417 = vmatmul.mubr.bf16.vlgmr.msra.gmra.mxu1 %v2836_v20  ;;  %v2912_v19 = vld [vmem:[%s3091_s5 + $0xec] ss:$28 sps:$4 sm:$0xff]   ;;  %v2914_v20 = vld [vmem:[%s3091_s5 + $0x1c0] ss:$28 sps:$4 sm:$0xff]  }
  0x2d   : > { %2515 = vmatpush3.bf16.msra.mxu1 %v2841_v22  ;;  %2627 = vmatpush3.bf16.msra.mxu0 %v2842_v23  ;;  %v2916_v22 = vld [vmem:[%s3091_s5 + $0x1fc] ss:$28 sps:$4 sm:$0xff]   ;;  %v2918_v23 = vld [vmem:[%s3091_s5 + $0x124] ss:$28 sps:$4 sm:$0xff]  }
  0x2e   : > { %2516 = vmatprep.subr.bf16.mxu1 %v2843_v24  ;;  %1328 = vmatprep.mubr.bf16.mxu0 %v2845_v25  ;;  %v2920_v24 = vld [vmem:[%s3091_s5 + $0x1f8] ss:$28 sps:$4 sm:$0xff]   ;;  %v2921_v25 = vld [vmem:[%s3091_s5 + $0x120] ss:$28 sps:$4 sm:$0xff]  }
  0x2f   : > { %1424 = vmatprep.mubr.bf16.mxu1 %v2847_v26  ;;  %2628 = vmatprep.subr.bf16.mxu0 %v2854_v27  ;;  %v2924_v26 = vld [vmem:[%s3091_s5 + $0x234] ss:$28 sps:$4 sm:$0xff]   ;;  %v2926_v27 = vld [vmem:[%s3091_s5 + $0x15c] ss:$28 sps:$4 sm:$0xff]  }
  0x31   : > { %2517 = vmatpush3.bf16.msra.mxu1 %v2844_v28  ;;  %2629 = vmatpush3.bf16.msra.mxu0 %v2856_v29  ;;  %v2928_v28 = vld [vmem:[%s3091_s5 + $0x230] ss:$28 sps:$4 sm:$0xff]   ;;  %v2929_v29 = vld [vmem:[%s3091_s5 + $0x158] ss:$28 sps:$4 sm:$0xff]  }
  0x32   : > { %2518 = vmatprep.subr.bf16.mxu1 %v2851_v32  ;;  %2630 = vmatprep.subr.bf16.mxu0 %v2874_v41  ;;  %v2936_v32 = vld [vmem:[%s3091_s5 + $0x268] ss:$28 sps:$4 sm:$0xff]  }
  0x33   : > { %v2950_v41 = vld [vmem:[%s3091_s5 + $0x48] ss:$28 sps:$4 sm:$0xff]  }
  0x34   : > { %1329 = vmatmul.mubr.bf16.gmra.mxu0 %v2849_v30  ;;  %1425 = vmatmul.mubr.bf16.gmra.mxu1 %v2850_v31  ;;  %v2932_v30 = vld [vmem:[%s3091_s5 + $0x26c] ss:$28 sps:$4 sm:$0xff]   ;;  %v2934_v31 = vld [vmem:[%s3091_s5 + $0x194] ss:$28 sps:$4 sm:$0xff]  }
  0x35   : > { %2519 = vmatpush3.bf16.msra.mxu1 %v2852_v33  ;;  %1336 = vmatprep.mubr.bf16.mxu0 %v2857_v35  ;;  %v2937_v33 = vld [vmem:[%s3091_s5 + $0x190] ss:$28 sps:$4 sm:$0xff]  }
  0x36   : > { %2520 = vmatprep.subr.bf16.mxu1 %v2853_v34  ;;  %1432 = vmatprep.mubr.bf16.mxu1 %v2859_v36  ;;  %v2938_v34 = vld [vmem:[%s3091_s5 + $0x1cc] ss:$28 sps:$4 sm:$0xff]   ;;  %v2942_v35 = vld [vmem:[%s3091_s5 + $0x14] ss:$28 sps:$4 sm:$0xff]  }
  0x37   : > { %2631 = vmatpush3.bf16.msra.mxu0 %v2876_v44  ;;  %v2940_v36 = vld [vmem:[%s3091_s5 + $0x10] ss:$28 sps:$4 sm:$0xff]   ;;  %v2955_v44 = vld [vmem:[%s3091_s5 + $0x238] ss:$28 sps:$4 sm:$0xff]  }
  0x38   : > { %2632 = vmatprep.subr.bf16.mxu0 %v2885_v51  ;;  %v2965_v51 = vld [vmem:[%s3091_s5 + $0xf4] ss:$28 sps:$4 sm:$0xff]  }
  0x39   : > { %2521 = vmatpush3.bf16.msra.mxu1 %v2855_v37  ;;  %v2943_v37 = vld [vmem:[%s3091_s5 + $0x1c8] ss:$28 sps:$4 sm:$0xff]  }
  0x3a   : > { %2522 = vmatprep.subr.bf16.mxu1 %v2863_v38  ;;  %v2945_v38 = vld [vmem:[%s3091_s5 + $0x204] ss:$28 sps:$4 sm:$0xff]  }
  0x3b   : > { %2633 = vmatpush3.bf16.msra.mxu0 %v2887_v53  ;;  %v2968_v53 = vld [vmem:[%s3091_s5 + $0xf0] ss:$28 sps:$4 sm:$0xff]  }
  0x3c   : > { %1337 = vmatmul.mubr.bf16.gmra.mxu0 %v2861_v39  ;;  %1433 = vmatmul.mubr.bf16.gmra.mxu1 %v2862_v40  ;;  %v2947_v39 = vld [vmem:[%s3091_s5 + $0x4c] ss:$28 sps:$4 sm:$0xff]   ;;  %v2949_v40 = vld [vmem:[%s3091_s5 + $0x200] ss:$28 sps:$4 sm:$0xff]  }
  0x3d   : > { %2523 = vmatpush3.bf16.msra.mxu1 %v2864_v42  ;;  %1344 = vmatprep.mubr.bf16.mxu0 %v2867_v45  ;;  %v2951_v42 = vld [vmem:[%s3091_s5 + $0x23c] ss:$28 sps:$4 sm:$0xff]  }
  0x3e   : > { %2524 = vmatprep.subr.bf16.mxu1 %v2865_v43  ;;  %1440 = vmatprep.mubr.bf16.mxu1 %v2869_v46  ;;  %v2953_v43 = vld [vmem:[%s3091_s5 + $0x84] ss:$28 sps:$4 sm:$0xff]   ;;  %v2957_v46 = vld [vmem:[%s3091_s5 + $0x274] ss:$28 sps:$4 sm:$0xff]  }
  0x3f   : > { %2634 = vmatprep.subr.bf16.mxu0 %v2900_v60  ;;  %v2956_v45 = vld [vmem:[%s3091_s5 + $0x80] ss:$28 sps:$4 sm:$0xff]   ;;  %v2979_v60 = vld [vmem:[%s3091_s5 + $0x318] ss:$28 sps:$4 sm:$0xff]  }
  0x40   : > { %2635 = vmatpush3.bf16.msra.mxu0 %v2901_v61  ;;  %v2980_v61 = vld [vmem:[%s3091_s5 + $0x160] ss:$28 sps:$4 sm:$0xff]  }
  0x41   : > { %2525 = vmatpush3.bf16.msra.mxu1 %v2866_v47  ;;  %2636 = vmatprep.subr.bf16.mxu0 %v2908_v1  ;;  %v2959_v47 = vld [vmem:[%s3091_s5 + $0xbc] ss:$28 sps:$4 sm:$0xff]  }
  0x42   : > { %2526 = vmatprep.subr.bf16.mxu1 %v2873_v48  ;;  %v2961_v48 = vld [vmem:[%s3091_s5 + $0x270] ss:$28 sps:$4 sm:$0xff]   ;;  %v2986_v1 = vld [vmem:[%s3091_s5 + $0x198] ss:$28 sps:$4 sm:$0xff]  }
  0x44   : > { %1345 = vmatmul.mubr.bf16.gmra.mxu0 %v2871_v49  ;;  %1441 = vmatmul.mubr.bf16.gmra.mxu1 %v2872_v50  ;;  %v2962_v49 = vld [vmem:[%s3091_s5 + $0xb8] ss:$28 sps:$4 sm:$0xff]   ;;  %v2963_v50 = vld [vmem:[%s3091_s5 + $0x2ac] ss:$28 sps:$4 sm:$0xff]  }
  0x45   : > { %2527 = vmatpush3.bf16.msra.mxu1 %v2875_v52  ;;  %1352 = vmatprep.mubr.bf16.mxu0 %v2879_v54  ;;  %v2967_v52 = vld [vmem:[%s3091_s5 + $0x2a8] ss:$28 sps:$4 sm:$0xff]  }
  0x46   : > { %2528 = vmatprep.subr.bf16.mxu1 %v2877_v55  ;;  %1481 = vmatprep.mubr.bf16.mxu1 %v2883_v56  ;;  %v2969_v54 = vld [vmem:[%s3091_s5 + $0x2e4] ss:$28 sps:$4 sm:$0xff]   ;;  %v2971_v55 = vld [vmem:[%s3091_s5 + $0x12c] ss:$28 sps:$4 sm:$0xff]  }
  0x47   : > { %2637 = vmatpush3.bf16.msra.mxu0 %v2909_v2  ;;  %v2973_v56 = vld [vmem:[%s3091_s5 + $0x2e0] ss:$28 sps:$4 sm:$0xff]   ;;  %v2987_v2 = vld [vmem:[%s3091_s5 + $0x1d4] ss:$28 sps:$4 sm:$0xff]  }
  0x48   : > { %2638 = vmatprep.subr.bf16.mxu0 %v2922_v7  ;;  %v2994_v7 = vld [vmem:[%s3091_s5 + $0x88] ss:$28 sps:$4 sm:$0xff]  }
  0x49   : > { %2529 = vmatpush3.bf16.msra.mxu1 %v2878_v57  ;;  %v2974_v57 = vld [vmem:[%s3091_s5 + $0x128] ss:$28 sps:$4 sm:$0xff]  }
  0x4a   : > { %2756 = vmatprep.subr.bf16.mxu1 %v2886_v58 }
  0x4b   : > { %2639 = vmatpush3.bf16.msra.mxu0 %v2923_v8  ;;  %v2995_v8 = vld [vmem:[%s3091_s5 + $0x208] ss:$28 sps:$4 sm:$0xff]  }
  0x4c   : > { %1353 = vmatmul.mubr.bf16.gmra.mxu0 %v2884_v62  ;;  %1482 = vmatmul.mubr.bf16.vlgmr.msra.gmra.mxu1 %v2881_v59  ;;  %v2977_v59 = vld [vmem:[%s3091_s5 + $0x164] ss:$28 sps:$4 sm:$0xff]   ;;  %v2981_v62 = vld [vmem:[%s3091_s5 + $0x354] ss:$28 sps:$4 sm:$0xff]  }
  0x4d   : > { %2757 = vmatpush3.bf16.msra.mxu1 %v2886_v58  ;;  %1360 = vmatprep.mubr.bf16.mxu0 %v2888_v63  ;;  %v2975_v58 = vld [vmem:[%s3091_s5 + $0x31c] ss:$28 sps:$4 sm:$0xff]  }
  0x4e   : > { %1489 = vmatprep.mubr.bf16.mxu1 %v2890_v0  ;;  %2640 = vmatprep.subr.bf16.mxu0 %v2930_v12  ;;  %v2983_v63 = vld [vmem:[%s3091_s5 + $0x19c] ss:$28 sps:$4 sm:$0xff]   ;;  %v2985_v0 = vld [vmem:[%s3091_s5 + $0x350] ss:$28 sps:$4 sm:$0xff]  }
  0x4f   : > { %2641 = vmatpush3.bf16.msra.mxu0 %v2931_v13  ;;  %2758 = vmatprep.subr.bf16.mxu1 %v2944_v15  ;;  %v3000_v12 = vld [vmem:[%s3091_s5 + $0x240] ss:$28 sps:$4 sm:$0xff]   ;;  %v3001_v13 = vld [vmem:[%s3091_s5 + $0x130] ss:$28 sps:$4 sm:$0xff]  }
  0x51   : > { %2759 = vmatpush3.bf16.msra.mxu1 %v2944_v15  ;;  %v3004_v15 = vld [vmem:[%s3091_s5 + $0x168] ss:$28 sps:$4 sm:$0xff]  }
  0x54   : > { %1361 = vmatmul.mubr.bf16.gmra.mxu0 %v2892_v3  ;;  %1490 = vmatmul.mubr.bf16.gmra.mxu1 %v2893_v4  ;;  %v2989_v3 = vld [vmem:[%s3091_s5 + $0x18] ss:$28 sps:$4 sm:$0xff]   ;;  %v2990_v4 = vld [vmem:[%s3091_s5 + $0x1d0] ss:$28 sps:$4 sm:$0xff]  }
  0x55   : > { %1368 = vmatprep.mubr.bf16.mxu0 %v2894_v5  ;;  %1497 = vmatprep.mubr.bf16.mxu1 %v2896_v6  ;;  %v2991_v5 = vld [vmem:[%s3091_s5 + $0x50] ss:$28 sps:$4 sm:$0xff]  }
  0x56   : > { %v2992_v6 = vld [vmem:[%s3091_s5 + $0x20c] ss:$28 sps:$4 sm:$0xff]  }
  0x5c   : > { %1369 = vmatmul.mubr.bf16.gmra.mxu0 %v2898_v9  ;;  %1498 = vmatmul.mubr.bf16.gmra.mxu1 %v2899_v10  ;;  %v2996_v9 = vld [vmem:[%s3091_s5 + $0xc0] ss:$28 sps:$4 sm:$0xff]  }
  0x5d   : > { %1376 = vmatprep.mubr.bf16.mxu0 %v2902_v11  ;;  %1505 = vmatprep.mubr.bf16.mxu1 %v2904_v14  ;;  %v2997_v10 = vld [vmem:[%s3091_s5 + $0x244] ss:$28 sps:$4 sm:$0xff]   ;;  %v2999_v11 = vld [vmem:[%s3091_s5 + $0xf8] ss:$28 sps:$4 sm:$0xff]  }
  0x5e   : > { %v3002_v14 = vld [vmem:[%s3091_s5 + $0x27c] ss:$28 sps:$4 sm:$0xff]  }
  0x64   : > { %1377 = vmatmul.mubr.bf16.gmra.mxu0 %v2906_v16  ;;  %1506 = vmatmul.mubr.bf16.gmra.mxu1 %v2907_v17  ;;  %v3005_v16 = vld [vmem:[%s3091_s5 + $0x278] ss:$28 sps:$4 sm:$0xff]   ;;  %v3006_v17 = vld [vmem:[%s3091_s5 + $0x1a0] ss:$28 sps:$4 sm:$0xff]  }
  0x65   : > { %1384 = vmatprep.mubr.bf16.mxu0 %v2910_v18  ;;  %1513 = vmatprep.mubr.bf16.mxu1 %v2912_v19  ;;  %v3007_v18 = vld [vmem:[%s3091_s5 + $0x2b4] ss:$28 sps:$4 sm:$0xff]  }
  0x66   : > { %v3009_v19 = vld [vmem:[%s3091_s5 + $0x1d8] ss:$28 sps:$4 sm:$0xff]  }
  0x6c   : > { %1385 = vmatmul.mubr.bf16.gmra.mxu0 %v2914_v20  ;;  %1514 = vmatmul.mubr.bf16.gmra.mxu1 %v2915_v21  ;;  %v3010_v20 = vld [vmem:[%s3091_s5 + $0x2b0] ss:$28 sps:$4 sm:$0xff]  }
  0x6d   : > { %1392 = vmatprep.mubr.bf16.mxu0 %v2916_v22  ;;  %1521 = vmatprep.mubr.bf16.mxu1 %v2918_v23  ;;  %v3011_v21 = vld [vmem:[%s3091_s5 + $0x210] ss:$28 sps:$4 sm:$0xff]   ;;  %v3014_v23 = vld [vmem:[%s3091_s5 + $0x248] ss:$28 sps:$4 sm:$0xff]  }
  0x6e   : > { %v3012_v22 = vld [vmem:[%s3091_s5 + $0x2ec] ss:$28 sps:$4 sm:$0xff]  }
  0x74   : > { %1393 = vmatmul.mubr.bf16.gmra.mxu0 %v2920_v24  ;;  %1522 = vmatmul.mubr.bf16.gmra.mxu1 %v2921_v25 }
  0x75   : > { %1400 = vmatprep.mubr.bf16.mxu0 %v2924_v26  ;;  %1529 = vmatprep.mubr.bf16.mxu1 %v2926_v27 }
  0x7c   : > { %1401 = vmatmul.mubr.bf16.gmra.mxu0 %v2928_v28  ;;  %1530 = vmatmul.mubr.bf16.gmra.mxu1 %v2929_v29 }
  0x7d   : > { %1408 = vmatprep.mubr.bf16.mxu0 %v2932_v30  ;;  %1537 = vmatprep.mubr.bf16.mxu1 %v2934_v31 }
  0x84   : > { %1409 = vmatmul.mubr.bf16.gmra.mxu0 %v2936_v32  ;;  %1538 = vmatmul.mubr.bf16.gmra.mxu1 %v2937_v33  ;;  %v3015_v32 = vld [vmem:[%s3091_s5 + $0x2e8] ss:$28 sps:$4 sm:$0xff]   ;;  %v3016_v33 = vld [vmem:[%s3091_s5 + $0x280] ss:$28 sps:$4 sm:$0xff]  }
  0x85   : > { %1545 = vmatprep.mubr.bf16.mxu1 %v2938_v34  ;;  %1642 = vmatprep.mubr.bf16.mxu0 %v2942_v35  ;;  %v3017_v34 = vld [vmem:[%s3091_s5 + $0x324] ss:$28 sps:$4 sm:$0xff]   ;;  %v3019_v35 = vld [vmem:[%s3091_s5 + $0x2b8] ss:$28 sps:$4 sm:$0xff]  }
  0x8c   : > { %1546 = vmatmul.mubr.bf16.gmra.mxu1 %v2943_v37  ;;  %1643 = vmatmul.mubr.bf16.vlgmr.msra.gmra.mxu0 %v2940_v36 }
  0x8d   : > { %1553 = vmatprep.mubr.bf16.mxu1 %v2945_v38  ;;  %1650 = vmatprep.mubr.bf16.mxu0 %v2947_v39 }
  0x94   : > { %1554 = vmatmul.mubr.bf16.gmra.mxu1 %v2949_v40  ;;  %1651 = vmatmul.mubr.bf16.gmra.mxu0 %v2950_v41 }
  0x95   : > { %1561 = vmatprep.mubr.bf16.mxu1 %v2951_v42  ;;  %1658 = vmatprep.mubr.bf16.mxu0 %v2953_v43 }
  0x9c   : > { %1562 = vmatmul.mubr.bf16.gmra.mxu1 %v2955_v44  ;;  %1659 = vmatmul.mubr.bf16.gmra.mxu0 %v2956_v45 }
  0x9d   : > { %1569 = vmatprep.mubr.bf16.mxu1 %v2957_v46  ;;  %1666 = vmatprep.mubr.bf16.mxu0 %v2959_v47 }
  0xa4   : > { %1570 = vmatmul.mubr.bf16.gmra.mxu1 %v2961_v48  ;;  %1667 = vmatmul.mubr.bf16.gmra.mxu0 %v2962_v49  ;;  %v3020_v48 = vld [vmem:[%s3091_s5 + $0x320] ss:$28 sps:$4 sm:$0xff]   ;;  %v3021_v49 = vld [vmem:[%s3091_s5 + $0x2f0] ss:$28 sps:$4 sm:$0xff]  }
  0xa5   : > { %1577 = vmatprep.mubr.bf16.mxu1 %v2963_v50  ;;  %1674 = vmatprep.mubr.bf16.mxu0 %v2965_v51  ;;  %v3022_v50 = vld [vmem:[%s3091_s5 + $0x35c] ss:$28 sps:$4 sm:$0xff]   ;;  %v3024_v51 = vld [vmem:[%s3091_s5 + $0x328] ss:$28 sps:$4 sm:$0xff]  }
  0xac   : > { %1578 = vmatmul.mubr.bf16.gmra.mxu1 %v2967_v52  ;;  %1675 = vmatmul.mubr.bf16.gmra.mxu0 %v2968_v53 }
  0xad   : > { %1585 = vmatprep.mubr.bf16.mxu1 %v2969_v54  ;;  %1682 = vmatprep.mubr.bf16.mxu0 %v2971_v55 }
  0xb4   : > { %1586 = vmatmul.mubr.bf16.gmra.mxu1 %v2973_v56  ;;  %1683 = vmatmul.mubr.bf16.gmra.mxu0 %v2974_v57 }
  0xb5   : > { %1593 = vmatprep.mubr.bf16.mxu1 %v2975_v58  ;;  %1690 = vmatprep.mubr.bf16.mxu0 %v2977_v59 }
  0xbc   : > { %1594 = vmatmul.mubr.bf16.gmra.mxu1 %v2979_v60  ;;  %1691 = vmatmul.mubr.bf16.gmra.mxu0 %v2980_v61 }
  0xbd   : > { %1601 = vmatprep.mubr.bf16.mxu1 %v2981_v62  ;;  %1698 = vmatprep.mubr.bf16.mxu0 %v2983_v63 }
  0xc4   : > { %1602 = vmatmul.mubr.bf16.gmra.mxu1 %v2985_v0  ;;  %1699 = vmatmul.mubr.bf16.gmra.mxu0 %v2986_v1  ;;  %v3025_v0 = vld [vmem:[%s3091_s5 + $0x358] ss:$28 sps:$4 sm:$0xff]   ;;  %v3026_v1 = vld [vmem:[%s3091_s5 + $0x360] ss:$28 sps:$4 sm:$0xff]   ;;  %s2157_s5 = sshll.u32 %s3699_s13, 2 }
  0xc5   : > { %1706 = vmatprep.mubr.bf16.mxu0 %v2987_v2  ;;  %2760 = vmatprep.mubr.msk.bf16.mxu1 %vm1239_vm0, %v2989_v3  ;;  %s3524_s17 = scalar_lea.vmem %s3677_s2, %s2157_s5 }
  0xcc   : > { %1707 = vmatmul.mubr.bf16.gmra.mxu0 %v2990_v4  ;;  %2761 = vmatmul.mubr.msk.bf16.vlgmr.msra.gmra.mxu1 %vm1239_vm0, %v2991_v5 }
  0xcd   : > { %1714 = vmatprep.mubr.bf16.mxu0 %v2992_v6  ;;  %2764 = vmatprep.mubr.msk.bf16.mxu1 %vm1239_vm0, %v2994_v7 }
  0xd4   : > { %1715 = vmatmul.mubr.bf16.gmra.mxu0 %v2995_v8  ;;  %2765 = vmatmul.mubr.msk.bf16.gmra.mxu1 %vm1239_vm0, %v2996_v9 }
  0xd5   : > { %1722 = vmatprep.mubr.bf16.mxu0 %v2997_v10  ;;  %2768 = vmatprep.mubr.msk.bf16.mxu1 %vm1239_vm0, %v2999_v11 }
  0xdc   : > { %1723 = vmatmul.mubr.bf16.gmra.mxu0 %v3000_v12  ;;  %2769 = vmatmul.mubr.msk.bf16.gmra.mxu1 %vm1239_vm0, %v3001_v13 }
  0xdd   : > { %1730 = vmatprep.mubr.bf16.mxu0 %v3002_v14  ;;  %2772 = vmatprep.mubr.msk.bf16.mxu1 %vm1239_vm0, %v3004_v15 }
  0xe4   : > { %1731 = vmatmul.mubr.bf16.gmra.mxu0 %v3005_v16  ;;  %2773 = vmatmul.mubr.msk.bf16.gmra.mxu1 %vm1239_vm0, %v3006_v17 }
  0xe5   : > { %1738 = vmatprep.mubr.bf16.mxu0 %v3007_v18  ;;  %2776 = vmatprep.mubr.msk.bf16.mxu1 %vm1239_vm0, %v3009_v19 }
  0xec   : > { %v2418_v24 = vpop.f32.mrf.mxu0  ;;  %v2490_v25 = vpop.f32.mrf.mxu1  ;;  %1739 = vmatmul.mubr.bf16.gmra.mxu0 %v3010_v20  ;;  %2777 = vmatmul.mubr.msk.bf16.gmra.mxu1 %vm1239_vm0, %v3011_v21 }
  0xed   : > { %1746 = vmatprep.mubr.bf16.mxu0 %v3012_v22  ;;  %2780 = vmatprep.mubr.msk.bf16.mxu1 %vm1239_vm0, %v3014_v23 }
  0xee   : > { %v2419_v26 = vpop.f32.mrf.mxu0  ;;  %v2491_v27 = vpop.f32.mrf.mxu1 }
  0xef   : > { %v3329_v28 = vadd.f32 %v2419_v26, %v2418_v24  ;;  %v3331_v29 = vadd.f32 %v2491_v27, %v2490_v25 }
  0xf0   : > { %v2421_v30 = vpop.f32.mrf.mxu0  ;;  %v2493_v31 = vpop.f32.mrf.mxu1 }
  0xf2   : > { %v2422_v36 = vpop.f32.mrf.mxu0  ;;  %v2494_v37 = vpop.f32.mrf.mxu1 }
  0xf3   : > { %v3337_v38 = vadd.f32 %v2422_v36, %v2421_v30  ;;  %v3339_v39 = vadd.f32 %v2494_v37, %v2493_v31 }
  0xf4   : > { %v2424_v40 = vpop.f32.mrf.mxu0  ;;  %v2496_v41 = vpop.f32.mrf.mxu1  ;;  %1747 = vmatmul.mubr.bf16.gmra.mxu0 %v3015_v32  ;;  %2781 = vmatmul.mubr.msk.bf16.gmra.mxu1 %vm1239_vm0, %v3016_v33 }
  0xf5   : > { %1754 = vmatprep.mubr.bf16.mxu0 %v3017_v34  ;;  %2784 = vmatprep.mubr.msk.bf16.mxu1 %vm1239_vm0, %v3019_v35 }
  0xf6   : > { %v2425_v42 = vpop.f32.mrf.mxu0  ;;  %v2497_v43 = vpop.f32.mrf.mxu1 }
  0xf7   : > { %v3343_v44 = vadd.f32 %v2425_v42, %v2424_v40  ;;  %v3345_v45 = vadd.f32 %v2497_v43, %v2496_v41 }
  0xf8   : > { %v2427_v46 = vpop.f32.mrf.mxu0  ;;  %v2499_v47 = vpop.f32.mrf.mxu1 }
  0xfa   : > { %v2428_v52 = vpop.f32.mrf.mxu0  ;;  %v2500_v53 = vpop.f32.mrf.mxu1 }
  0xfb   : > { %v3351_v54 = vadd.f32 %v2428_v52, %v2427_v46  ;;  %v3353_v55 = vadd.f32 %v2500_v53, %v2499_v47 }
  0xfc   : > { %v2430_v56 = vpop.f32.mrf.mxu0  ;;  %v2502_v57 = vpop.f32.mrf.mxu1  ;;  %1755 = vmatmul.mubr.bf16.gmra.mxu0 %v3020_v48  ;;  %2785 = vmatmul.mubr.msk.bf16.gmra.mxu1 %vm1239_vm0, %v3021_v49 }
  0xfd   : > { %1762 = vmatprep.mubr.bf16.mxu0 %v3022_v50  ;;  %2788 = vmatprep.mubr.msk.bf16.mxu1 %vm1239_vm0, %v3024_v51 }
  0xfe   : > { %v2431_v58 = vpop.f32.mrf.mxu0  ;;  %v2503_v59 = vpop.f32.mrf.mxu1 }
  0xff   : > { %v2432_v60 = vadd.f32 %v2431_v58, %v2430_v56  ;;  %v3357_v61 = vadd.f32 %v2503_v59, %v2502_v57 }
 0x100   : > { %v2433_v62 = vpop.f32.mrf.mxu0  ;;  %v2505_v63 = vpop.f32.mrf.mxu1 }
 0x102   : > { %v2434_v2 = vpop.f32.mrf.mxu0  ;;  %v2506_v3 = vpop.f32.mrf.mxu1 }
 0x103   : > { %v2435_v4 = vadd.f32 %v2434_v2, %v2433_v62  ;;  %v3361_v5 = vadd.f32 %v2506_v3, %v2505_v63 }
 0x104   : > { %v2436_v6 = vpop.f32.mrf.mxu0  ;;  %v2508_v7 = vpop.f32.mrf.mxu1  ;;  %1763 = vmatmul.mubr.bf16.gmra.mxu0 %v3025_v0  ;;  %2789 = vmatmul.mubr.msk.bf16.gmra.mxu1 %vm1239_vm0, %v3026_v1 }
 0x106   : > { %v2437_v8 = vpop.f32.mrf.mxu0  ;;  %v2509_v9 = vpop.f32.mrf.mxu1 }
 0x107   : > { %v2438_v10 = vadd.f32 %v2437_v8, %v2436_v6  ;;  %v3364_v11 = vadd.f32 %v2509_v9, %v2508_v7 }
 0x108   : > { %v2439_v12 = vpop.f32.mrf.mxu0  ;;  %v2511_v13 = vpop.f32.mrf.mxu1 }
 0x10a   : > { %v2440_v14 = vpop.f32.mrf.mxu0  ;;  %v2512_v15 = vpop.f32.mrf.mxu1 }
 0x10b   : > { %v2441_v16 = vadd.f32 %v2440_v14, %v2439_v12  ;;  %v3366_v17 = vadd.f32 %v2512_v15, %v2511_v13 }
 0x10c   : > { %v2442_v18 = vpop.f32.mrf.mxu0  ;;  %v2530_v19 = vpop.f32.mrf.mxu1 }
 0x10e   : > { %v2443_v20 = vpop.f32.mrf.mxu0  ;;  %v2531_v21 = vpop.f32.mrf.mxu1 }
 0x10f   : > { %v2444_v22 = vadd.f32 %v2443_v20, %v2442_v18  ;;  %v2532_v23 = vadd.f32 %v2531_v21, %v2530_v19 }
 0x110   : > { %v2445_v24 = vpop.f32.mrf.mxu0  ;;  %v2533_v25 = vpop.f32.mrf.mxu1 }
 0x111   : > { %v3369_v26 = vadd.f32 %v2532_v23, %v3329_v28 }
 0x112   : > { %v2446_v27 = vpop.f32.mrf.mxu0  ;;  %v2534_v30 = vpop.f32.mrf.mxu1 }
 0x113   : > { %v2447_v31 = vadd.f32 %v2446_v27, %v2445_v24  ;;  %v2535_v32 = vadd.f32 %v2534_v30, %v2533_v25 }
 0x114   : > { %v2448_v33 = vpop.f32.mrf.mxu0  ;;  %v2536_v34 = vpop.f32.mrf.mxu1 }
 0x115   : > { %v3372_v35 = vadd.f32 %v2535_v32, %v3337_v38 }
 0x116   : > { %v2449_v36 = vpop.f32.mrf.mxu0  ;;  %v2537_v37 = vpop.f32.mrf.mxu1 }
 0x117   : > { %v2450_v40 = vadd.f32 %v2449_v36, %v2448_v33  ;;  %v2538_v41 = vadd.f32 %v2537_v37, %v2536_v34 }
 0x118   : > { %v2451_v42 = vpop.f32.mrf.mxu0  ;;  %v2539_v43 = vpop.f32.mrf.mxu1 }
 0x119   : > { %v3375_v46 = vadd.f32 %v2538_v41, %v3343_v44 }
 0x11a   : > { %v2452_v28 = vpop.f32.mrf.mxu0  ;;  %v2540_v47 = vpop.f32.mrf.mxu1 }
 0x11b   : > { %v2453_v48 = vadd.f32 %v2452_v28, %v2451_v42  ;;  %v2541_v49 = vadd.f32 %v2540_v47, %v2539_v43 }
 0x11c   : > { %v2454_v50 = vpop.f32.mrf.mxu0  ;;  %v2542_v51 = vpop.f32.mrf.mxu1 }
 0x11d   : > { %v3378_v52 = vadd.f32 %v2541_v49, %v3351_v54 }
 0x11e   : > { %v2455_v38 = vpop.f32.mrf.mxu0  ;;  %v2543_v53 = vpop.f32.mrf.mxu1 }
 0x11f   : > { %v2456_v56 = vadd.f32 %v2455_v38, %v2454_v50  ;;  %v2544_v57 = vadd.f32 %v2543_v53, %v2542_v51 }
 0x120   : > { %v2457_v58 = vpop.f32.mrf.mxu0  ;;  %v2545_v59 = vpop.f32.mrf.mxu1 }
 0x121   : > { %v3380_v62 = vadd.f32 %v2544_v57, %v2432_v60 }
 0x122   : > { %v2458_v63 = vpop.f32.mrf.mxu0  ;;  %v2546_v44 = vpop.f32.mrf.mxu1 }
 0x123   : > { %v2459_v0 = vadd.f32 %v2458_v63, %v2457_v58  ;;  %v2547_v1 = vadd.f32 %v2546_v44, %v2545_v59 }
 0x124   : > { %v2460_v2 = vpop.f32.mrf.mxu0  ;;  %v2548_v3 = vpop.f32.mrf.mxu1 }
 0x125   : > { %v3382_v6 = vadd.f32 %v2547_v1, %v2435_v4 }
 0x126   : > { %v2461_v7 = vpop.f32.mrf.mxu0  ;;  %v2549_v8 = vpop.f32.mrf.mxu1 }
 0x127   : > { %v2462_v54 = vadd.f32 %v2461_v7, %v2460_v2  ;;  %v2550_v9 = vadd.f32 %v2549_v8, %v2548_v3 }
 0x128   : > { %v2463_v12 = vpop.f32.mrf.mxu0  ;;  %v2551_v13 = vpop.f32.mrf.mxu1 }
 0x129   : > { %v3384_v14 = vadd.f32 %v2550_v9, %v2438_v10 }
 0x12a   : > { %v2464_v15 = vpop.f32.mrf.mxu0  ;;  %v2552_v18 = vpop.f32.mrf.mxu1 }
 0x12b   : > { %v2465_v60 = vadd.f32 %v2464_v15, %v2463_v12  ;;  %v2553_v19 = vadd.f32 %v2552_v18, %v2551_v13 }
 0x12c   : > { %v2466_v20 = vpop.f32.mrf.mxu0  ;;  %v2554_v21 = vpop.f32.mrf.mxu1 }
 0x12d   : > { %v3386_v23 = vadd.f32 %v2553_v19, %v2441_v16 }
 0x12e   : > { %v2467_v24 = vpop.f32.mrf.mxu0  ;;  %v2555_v25 = vpop.f32.mrf.mxu1 }
 0x12f   : > { %v2468_v4 = vadd.f32 %v2467_v24, %v2466_v20  ;;  %v2556_v27 = vadd.f32 %v2555_v25, %v2554_v21 }
 0x130   : > { %v2469_v30 = vpop.f32.mrf.mxu0  ;;  %v2557_v32 = vpop.f32.mrf.mxu1 }
 0x131   : > { %v3388_v33 = vadd.f32 %v2556_v27, %v2444_v22 }
 0x132   : > { %v2470_v34 = vpop.f32.mrf.mxu0  ;;  %v2558_v36 = vpop.f32.mrf.mxu1 }
 0x133   : > { %v2471_v10 = vadd.f32 %v2470_v34, %v2469_v30  ;;  %v2559_v37 = vadd.f32 %v2558_v36, %v2557_v32 }
 0x134   : > { %v2472_v41 = vpop.f32.mrf.mxu0  ;;  %v2560_v42 = vpop.f32.mrf.mxu1 }
 0x135   : > { %v3390_v43 = vadd.f32 %v2559_v37, %v2447_v31 }
 0x136   : > { %v2473_v28 = vpop.f32.mrf.mxu0  ;;  %v2561_v47 = vpop.f32.mrf.mxu1 }
 0x137   : > { %v2474_v16 = vadd.f32 %v2473_v28, %v2472_v41  ;;  %v2562_v49 = vadd.f32 %v2561_v47, %v2560_v42 }
 0x138   : > { %v2475_v50 = vpop.f32.mrf.mxu0  ;;  %v2563_v51 = vpop.f32.mrf.mxu1 }
 0x139   : > { %v3392_v38 = vadd.f32 %v2562_v49, %v2450_v40 }
 0x13a   : > { %v2476_v53 = vpop.f32.mrf.mxu0  ;;  %v2564_v57 = vpop.f32.mrf.mxu1 }
 0x13b   : > { %v2477_v22 = vadd.f32 %v2476_v53, %v2475_v50  ;;  %v2565_v58 = vadd.f32 %v2564_v57, %v2563_v51 }
 0x13c   : > { %v2478_v59 = vpop.f32.mrf.mxu0  ;;  %v2566_v63 = vpop.f32.mrf.mxu1 }
 0x13d   : > { %v3394_v44 = vadd.f32 %v2565_v58, %v2453_v48 }
 0x13e   : > { %v2479_v1 = vpop.f32.mrf.mxu0  ;;  %v2567_v2 = vpop.f32.mrf.mxu1 }
 0x13f   : > { %v2480_v31 = vadd.f32 %v2479_v1, %v2478_v59  ;;  %v2568_v3 = vadd.f32 %v2567_v2, %v2566_v63 }
 0x140   : > { %v2481_v7 = vpop.f32.mrf.mxu0  ;;  %v2569_v8 = vpop.f32.mrf.mxu1 }
 0x141   : > { %v3396_v9 = vadd.f32 %v2568_v3, %v2456_v56 }
 0x142   : > { %v2482_v12 = vpop.f32.mrf.mxu0  ;;  %v2570_v13 = vpop.f32.mrf.mxu1 }
 0x143   : > { %v2483_v40 = vadd.f32 %v2482_v12, %v2481_v7  ;;  %v2571_v15 = vadd.f32 %v2570_v13, %v2569_v8 }
 0x144   : > { %v2484_v18 = vpop.f32.mrf.mxu0  ;;  %v2572_v19 = vpop.f32.mrf.mxu1 }
 0x145   : > { %v3398_v20 = vadd.f32 %v2571_v15, %v2459_v0 }
 0x146   : > { %v2485_v21 = vpop.f32.mrf.mxu0  ;;  %v2573_v24 = vpop.f32.mrf.mxu1 }
 0x147   : > { %v2486_v48 = vadd.f32 %v2485_v21, %v2484_v18  ;;  %v2574_v25 = vadd.f32 %v2573_v24, %v2572_v19 }
 0x148   : > { %v2487_v27 = vpop.f32.mrf.mxu0  ;;  %v2575_v30 = vpop.f32.mrf.mxu1 }
 0x149   : > { %v3400_v32 = vadd.f32 %v2574_v25, %v2462_v54 }
 0x14a   : > { %v2488_v34 = vpop.f32.mrf.mxu0  ;;  %v2576_v36 = vpop.f32.mrf.mxu1 }
 0x14b   : > { %v2489_v56 = vadd.f32 %v2488_v34, %v2487_v27  ;;  %v2577_v37 = vadd.f32 %v2576_v36, %v2575_v30 }
 0x14c   : > { %v2578_v41 = vpop.f32.mrf.mxu1  ;;  %v3402_v42 = vpop.f32.mrf.mxu0 }
 0x14d   : > { %v3404_v28 = vadd.f32 %v2577_v37, %v2465_v60 }
 0x14e   : > { %v2579_v47 = vpop.f32.mrf.mxu1  ;;  %v3406_v0 = vpop.f32.mrf.mxu0 }
 0x14f   : > { %v2580_v49 = vadd.f32 %v2579_v47, %v2578_v41 }
 0x150   : > { %v2581_v50 = vpop.f32.mrf.mxu1  ;;  %v3408_v51 = vpop.f32.mrf.mxu0 }
 0x151   : > { %v3410_v53 = vadd.f32 %v2580_v49, %v2468_v4 }
 0x152   : > { %v2582_v54 = vpop.f32.mrf.mxu1  ;;  %v3412_v57 = vpop.f32.mrf.mxu0 }
 0x153   : > { %v2583_v58 = vadd.f32 %v2582_v54, %v2581_v50 }
 0x154   : > { %v2584_v59 = vpop.f32.mrf.mxu1  ;;  %v3414_v63 = vpop.f32.mrf.mxu0 }
 0x155   : > { %v3416_v1 = vadd.f32 %v2583_v58, %v2471_v10 }
 0x156   : > { %v2585_v60 = vpop.f32.mrf.mxu1  ;;  %v3418_v2 = vpop.f32.mrf.mxu0 }
 0x157   : > { %3678 = vst [vmem:[#allocation2_spill] sm:$0xff] %v3416_v1  ;;  %v2586_v3 = vadd.f32 %v2585_v60, %v2584_v59 }
 0x158   : > { %v2587_v7 = vpop.f32.mrf.mxu1  ;;  %v3420_v8 = vpop.f32.mrf.mxu0 }
 0x159   : > { %v3422_v12 = vadd.f32 %v2586_v3, %v2474_v16 }
 0x15a   : > { %v2588_v4 = vpop.f32.mrf.mxu1  ;;  %v3424_v13 = vpop.f32.mrf.mxu0 }
 0x15b   : > { %v2589_v15 = vadd.f32 %v2588_v4, %v2587_v7 }
 0x15c   : > { %v2590_v18 = vpop.f32.mrf.mxu1  ;;  %v3426_v19 = vpop.f32.mrf.mxu0 }
 0x15d   : > { %v3428_v21 = vadd.f32 %v2589_v15, %v2477_v22 }
 0x15e   : > { %v2591_v10 = vpop.f32.mrf.mxu1  ;;  %v3430_v24 = vpop.f32.mrf.mxu0 }
 0x15f   : > { %v2592_v25 = vadd.f32 %v2591_v10, %v2590_v18 }
 0x160   : > { %v2593_v27 = vpop.f32.mrf.mxu1  ;;  %v3432_v30 = vpop.f32.mrf.mxu0 }
 0x161   : > { %v3434_v34 = vadd.f32 %v2592_v25, %v2480_v31 }
 0x162   : > { %v2594_v16 = vpop.f32.mrf.mxu1  ;;  %v3436_v36 = vpop.f32.mrf.mxu0 }
 0x163   : > { %3679 = vst [vmem:[#allocation3_spill] sm:$0xff] %v3434_v34  ;;  %v2595_v37 = vadd.f32 %v2594_v16, %v2593_v27 }
 0x164   : > { %v2596_v41 = vpop.f32.mrf.mxu1  ;;  %v3438_v47 = vpop.f32.mrf.mxu0 }
 0x165   : > { %v3440_v49 = vadd.f32 %v2595_v37, %v2483_v40 }
 0x166   : > { %v2597_v22 = vpop.f32.mrf.mxu1  ;;  %v3442_v50 = vpop.f32.mrf.mxu0 }
 0x167   : > { %3680 = vst [vmem:[#allocation4_spill] sm:$0xff] %v3440_v49  ;;  %v2598_v54 = vadd.f32 %v2597_v22, %v2596_v41 }
 0x168   : > { %v2599_v58 = vpop.f32.mrf.mxu1  ;;  %v3444_v59 = vpop.f32.mrf.mxu0 }
 0x169   : > { %v3446_v60 = vadd.f32 %v2598_v54, %v2486_v48 }
 0x16a   : > { %v2600_v31 = vpop.f32.mrf.mxu1  ;;  %v3448_v3 = vpop.f32.mrf.mxu0 }
 0x16b   : > { %3681 = vst [vmem:[#allocation5_spill] sm:$0xff] %v3446_v60  ;;  %v2601_v7 = vadd.f32 %v2600_v31, %v2599_v58 }
 0x16c   : > { %v2602_v4 = vpop.f32.mrf.mxu1  ;;  %v3450_v15 = vpop.f32.mrf.mxu0 }
 0x16d   : > { %v3452_v18 = vadd.f32 %v2601_v7, %v2489_v56 }
 0x16e   : > { %v2603_v40 = vpop.f32.mrf.mxu1  ;;  %v3454_v10 = vpop.f32.mrf.mxu0 }
 0x16f   : > { %3682 = vst [vmem:[#allocation6_spill] sm:$0xff] %v3452_v18  ;;  %v2604_v25 = vadd.f32 %v2603_v40, %v2602_v4 }
 0x170   : > { %v2605_v27 = vpop.f32.mrf.mxu1  ;;  %v3456_v16 = vpop.f32.mrf.mxu0 }
 0x171   : > { %v3459_v37 = vadd.f32 %v2604_v25, %v3331_v29 }
 0x172   : > { %v2606_v48 = vpop.f32.mrf.mxu1  ;;  %v3461_v41 = vpop.f32.mrf.mxu0 }
 0x173   : > { %3683 = vst [vmem:[#allocation7_spill] sm:$0xff] %v3459_v37  ;;  %v2607_v22 = vadd.f32 %v2606_v48, %v2605_v27 }
 0x174   : > { %v2608_v54 = vpop.f32.mrf.mxu1  ;;  %v3463_v58 = vpop.f32.mrf.mxu0 }
 0x175   : > { %v3466_v56 = vadd.f32 %v2607_v22, %v3339_v39 }
 0x176   : > { %v2609_v31 = vpop.f32.mrf.mxu1  ;;  %v3468_v7 = vpop.f32.mrf.mxu0 }
 0x177   : > { %3684 = vst [vmem:[#allocation8_spill] sm:$0xff] %v3466_v56  ;;  %v2610_v4 = vadd.f32 %v2609_v31, %v2608_v54 }
 0x178   : > { %v2611_v40 = vpop.f32.mrf.mxu1  ;;  %v3470_v49 = vpop.f32.mrf.mxu0 }
 0x179   : > { %v3473_v29 = vadd.f32 %v2610_v4, %v3345_v45 }
 0x17a   : > { %v2612_v25 = vpop.f32.mrf.mxu1  ;;  %v3475_v37 = vpop.f32.mrf.mxu0 }
 0x17b   : > { %3685 = vst [vmem:[#allocation9_spill] sm:$0xff] %v3473_v29  ;;  %v2613_v27 = vadd.f32 %v2612_v25, %v2611_v40 }
 0x17c   : > { %v2614_v48 = vpop.f32.mrf.mxu1  ;;  %v3477_v18 = vpop.f32.mrf.mxu0 }
 0x17d   : > { %v3480_v39 = vadd.f32 %v2613_v27, %v3353_v55 }
 0x17e   : > { %v2615_v22 = vpop.f32.mrf.mxu1  ;;  %v3482_v56 = vpop.f32.mrf.mxu0 }
 0x17f   : > { %3686 = vst [vmem:[#allocation10_spill] sm:$0xff] %v3480_v39  ;;  %v2616_v54 = vadd.f32 %v2615_v22, %v2614_v48  ;;  %v2650_v48 = vadd.f32 %v3418_v2, %v3414_v63 }
 0x180   : > { %v2617_v31 = vpop.f32.mrf.mxu1  ;;  %v3484_v34 = vpop.f32.mrf.mxu0 }
 0x181   : > { %v3487_v45 = vadd.f32 %v2616_v54, %v3357_v61  ;;  %v1653_v63 = vadd.f32 %v2650_v48, %v3375_v46  ;;  %v2656_v48 = vadd.f32 %v3430_v24, %v3426_v19 }
 0x182   : > { %v2618_v4 = vpop.f32.mrf.mxu1  ;;  %v3489_v29 = vpop.f32.mrf.mxu0 }
 0x183   : > { %3687 = vst [vmem:[#allocation11_spill] sm:$0xff] %v3487_v45  ;;  %v2619_v40 = vadd.f32 %v2618_v4, %v2617_v31  ;;  %v2644_v31 = vadd.f32 %v3406_v0, %v3402_v42 }
 0x184   : > { %v2620_v25 = vpop.f32.mrf.mxu1  ;;  %v3491_v60 = vpop.f32.mrf.mxu0 }
 0x185   : > { %v3494_v55 = vadd.f32 %v2619_v40, %v3361_v5  ;;  %v2653_v5 = vadd.f32 %v3424_v13, %v3420_v8  ;;  %v1645_v0 = vadd.f32 %v2644_v31, %v3369_v26 }
 0x186   : > { %v2621_v27 = vpop.f32.mrf.mxu1  ;;  %v3496_v39 = vpop.f32.mrf.mxu0 }
 0x187   : > { %v2622_v22 = vadd.f32 %v2621_v27, %v2620_v25  ;;  %v2647_v27 = vadd.f32 %v3412_v57, %v3408_v51  ;;  %v2662_v51 = vadd.f32 %v3442_v50, %v3438_v47  ;;  %v1656_v13 = vadd.f32 %v2653_v5, %v3378_v52 }
 0x188   : > { %v2623_v61 = vpop.f32.mrf.mxu1  ;;  %v3500_v54 = vpop.f32.mrf.mxu0  ;;  %v2665_v52 = vadd.f32 %v3448_v3, %v3444_v59 }
 0x189   : > { %v3505_v4 = vadd.f32 %v2622_v22, %v3364_v11  ;;  %v1648_v31 = vadd.f32 %v2647_v27, %v3372_v35  ;;  %v2659_v35 = vadd.f32 %v3436_v36, %v3432_v30  ;;  %v2668_v36 = vadd.f32 %v3454_v10, %v3450_v15 }
 0x18a   : > { %v2624_v45 = vpop.f32.mrf.mxu1  ;;  %v3507_v1 = vpop.f32.mrf.mxu0  ;;  %v2671_v10 = vadd.f32 %v3461_v41, %v3456_v16 }
 0x18b   : > { %v2625_v40 = vadd.f32 %v2624_v45, %v2623_v61 }
 0x18c   : > { %v3513_v2 = vpop.f32.mrf.mxu0  ;;  %v2762_v25 = vpop.f32.mrf.mxu1 }
 0x18d   : > { %v3518_v42 = vadd.f32 %v2625_v40, %v3366_v17  ;;  %v1814_v11 = vadd.f32 %v2762_v25, %v1653_v63  ;;  %v1669_v63 = vadd.f32 %v2662_v51, %v3384_v14  ;;  %v1672_v51 = vadd.f32 %v2665_v52, %v3386_v23 }
 0x18e   : > { %v3526_v46 = vpop.f32.mrf.mxu0  ;;  %v1805_v8 = vpop.f32.mrf.mxu1 }
 0x18f   : > { %v2372_v57 = vpack.c.bf16 %v1814_v11, %v1814_v11  ;;  %v1806_v17 = vadd.f32 %v1805_v8, %v1645_v0  ;;  %v1661_v11 = vadd.f32 %v2656_v48, %v3380_v62  ;;  %v2674_v0 = vadd.f32 %v3468_v7, %v3463_v58 }
 0x190   : > { %v3531_v45 = vpop.f32.mrf.mxu0  ;;  %v2763_v26 = vpop.f32.mrf.mxu1 }
 0x191   : > { %2063 = vst.msk [vmem:[%s3524_s17 + $0x8] sm:$0xf] %vm2060_vm1, %v2372_v57  ;;  %v2370_v22 = vpack.c.bf16 %v1806_v17, %v1806_v17  ;;  %v1817_v61 = vadd.f32 %v2763_v26, %v1656_v13  ;;  %v1664_v13 = vadd.f32 %v2659_v35, %v3382_v6  ;;  %v2677_v26 = vadd.f32 %v3475_v37, %v3470_v49 }
 0x192   : > { %v3538_v40 = vpop.f32.mrf.mxu0  ;;  %v1808_v47 = vpop.f32.mrf.mxu1  ;;  %v1680_v35 = vadd.f32 %v2671_v10, %v3390_v43 }
 0x193   : > { %2061 = vst.msk [vmem:[%s3524_s17] sm:$0xf] %vm2060_vm1, %v2370_v22  ;;  %v2373_v50 = vpack.c.bf16 %v1817_v61, %v1817_v61  ;;  %v1809_v5 = vadd.f32 %v1808_v47, %v1648_v31  ;;  %v1685_v22 = vadd.f32 %v2674_v0, %v3392_v38  ;;  %v1677_v47 = vadd.f32 %v2668_v36, %v3388_v33 }
 0x194   : > { %v3545_v19 = vpop.f32.mrf.mxu0  ;;  %v2766_v24 = vpop.f32.mrf.mxu1  ;;  %v2686_v38 = vadd.f32 %v3496_v39, %v3491_v60  ;;  %v2680_v33 = vadd.f32 %v3482_v56, %v3477_v18 }
 0x195   : > { %2064 = vst.msk [vmem:[%s3524_s17 + $0xc] sm:$0xf] %vm2060_vm1, %v2373_v50  ;;  %v2371_v25 = vpack.c.bf16 %v1809_v5, %v1809_v5  ;;  %v1830_v27 = vadd.f32 %v2766_v24, %v1669_v63  ;;  %v1688_v5 = vadd.f32 %v2677_v26, %v3394_v44  ;;  %v2689_v44 = vadd.f32 %v3507_v1, %v3500_v54 }
 0x196   : > { %v2697_v59 = vpop.f32.mrf.mxu0  ;;  %v1821_v3 = vpop.f32.mrf.mxu1 }
 0x197   : > { %2062 = vst.msk [vmem:[%s3524_s17 + $0x4] sm:$0xf] %vm2060_vm1, %v2371_v25  ;;  %v2376_v14 = vpack.c.bf16 %v1830_v27, %v1830_v27  ;;  %v1822_v8 = vadd.f32 %v1821_v3, %v1661_v11  ;;  %v1701_v11 = vadd.f32 %v2686_v38, %v3400_v32  ;;  %v2683_v3 = vadd.f32 %v3489_v29, %v3484_v34 }
 0x198   : > { %v3557_v57 = vpop.f32.mrf.mxu0  ;;  %v2767_v30 = vpop.f32.mrf.mxu1  ;;  %v2698_v54 = vadd.f32 %v2697_v59, %v3545_v19  ;;  %v2692_v34 = vadd.f32 %v3526_v46, %v3513_v2  ;;  %v2695_v2 = vadd.f32 %v3538_v40, %v3531_v45 }
 0x199   : > { %2067 = vst.msk [vmem:[%s3524_s17 + $0x18] sm:$0xf] %vm2060_vm1, %v2376_v14  ;;  %v2374_v62 = vpack.c.bf16 %v1822_v8, %v1822_v8  ;;  %v1833_v17 = vadd.f32 %v2767_v30, %v1672_v51  ;;  %v1693_v14 = vadd.f32 %v2680_v33, %v3396_v9  ;;  %v1704_v30 = vadd.f32 %v2689_v44, %v3404_v28  ;;  %v3689_v33 = vld [vmem:[#allocation5_spill] sm:$0xff]  ;;  %v3690_v44 = vld [vmem:[#allocation3_spill] sm:$0xff] }
 0x19a   : > { %v2700_v58 = vpop.f32.mrf.mxu0  ;;  %v1824_v7 = vpop.f32.mrf.mxu1  ;;  %v1717_v26 = vadd.f32 %v2698_v54, %v3422_v12  ;;  %v3692_v54 = vld [vmem:[#allocation4_spill] sm:$0xff] }
 0x19b   : > { %2065 = vst.msk [vmem:[%s3524_s17 + $0x10] sm:$0xf] %vm2060_vm1, %v2374_v62  ;;  %v2377_v23 = vpack.c.bf16 %v1833_v17, %v1833_v17  ;;  %v1825_v48 = vadd.f32 %v1824_v7, %v1664_v13  ;;  %v1696_v17 = vadd.f32 %v2683_v3, %v3398_v20  ;;  %v2701_v59 = vadd.f32 %v2700_v58, %v3557_v57 }
 0x19c   : > { %v3569_v61 = vpop.f32.mrf.mxu0  ;;  %v2770_v15 = vpop.f32.mrf.mxu1 }
 0x19d   : > { %2068 = vst.msk [vmem:[%s3524_s17 + $0x1c] sm:$0xf] %vm2060_vm1, %v2377_v23  ;;  %v2375_v6 = vpack.c.bf16 %v1825_v48, %v1825_v48  ;;  %v1846_v31 = vadd.f32 %v2770_v15, %v1685_v22  ;;  %v1709_v22 = vadd.f32 %v2692_v34, %v3410_v53 }
 0x19e   : > { %v3576_v49 = vpop.f32.mrf.mxu0  ;;  %v1837_v37 = vpop.f32.mrf.mxu1 }
 0x19f   : > { %2066 = vst.msk [vmem:[%s3524_s17 + $0x14] sm:$0xf] %vm2060_vm1, %v2375_v6  ;;  %v2380_v52 = vpack.c.bf16 %v1846_v31, %v1846_v31  ;;  %v1838_v50 = vadd.f32 %v1837_v37, %v1677_v47  ;;  %v1720_v6 = vadd.f32 %v2701_v59, %v3428_v21  ;;  %v2704_v45 = vadd.f32 %v3576_v49, %v3569_v61  ;;  %v3688_v37 = vld [vmem:[#allocation2_spill] sm:$0xff] }
 0x1a0   : > { %v3583_v16 = vpop.f32.mrf.mxu0  ;;  %v2771_v41 = vpop.f32.mrf.mxu1  ;;  %v1712_v38 = vadd.f32 %v2695_v2, %v3688_v37 }
 0x1a1   : > { %2071 = vst.msk [vmem:[%s3524_s17 + $0x28] sm:$0xf] %vm2060_vm1, %v2380_v52  ;;  %v2378_v63 = vpack.c.bf16 %v1838_v50, %v1838_v50  ;;  %v1849_v24 = vadd.f32 %v2771_v41, %v1688_v5 }
 0x1a2   : > { %v3590_v60 = vpop.f32.mrf.mxu0  ;;  %v1840_v39 = vpop.f32.mrf.mxu1 }
 0x1a3   : > { %2069 = vst.msk [vmem:[%s3524_s17 + $0x20] sm:$0xf] %vm2060_vm1, %v2378_v63  ;;  %v2381_v25 = vpack.c.bf16 %v1849_v24, %v1849_v24  ;;  %v1841_v27 = vadd.f32 %v1840_v39, %v1680_v35  ;;  %v2707_v61 = vadd.f32 %v3590_v60, %v3583_v16 }
 0x1a4   : > { %v2708_v18 = vpop.f32.mrf.mxu0  ;;  %v2774_v56 = vpop.f32.mrf.mxu1 }
 0x1a5   : > { %2072 = vst.msk [vmem:[%s3524_s17 + $0x2c] sm:$0xf] %vm2060_vm1, %v2381_v25  ;;  %v2379_v43 = vpack.c.bf16 %v1841_v27, %v1841_v27  ;;  %v1862_v0 = vadd.f32 %v2774_v56, %v1701_v11  ;;  %v1725_v25 = vadd.f32 %v2704_v45, %v3690_v44 }
 0x1a6   : > { %v2709_v8 = vpop.f32.mrf.mxu0  ;;  %v1853_v1 = vpop.f32.mrf.mxu1 }
 0x1a7   : > { %2070 = vst.msk [vmem:[%s3524_s17 + $0x24] sm:$0xf] %vm2060_vm1, %v2379_v43  ;;  %v2384_v32 = vpack.c.bf16 %v1862_v0, %v1862_v0  ;;  %v1854_v51 = vadd.f32 %v1853_v1, %v1693_v14  ;;  %v2710_v58 = vadd.f32 %v2709_v8, %v2708_v18  ;;  %v3691_v43 = vld [vmem:[#allocation6_spill] sm:$0xff] }
 0x1a8   : > { %v2711_v36 = vpop.f32.mrf.mxu0  ;;  %v2775_v62 = vpop.f32.mrf.mxu1 }
 0x1a9   : > { %2075 = vst.msk [vmem:[%s3524_s17 + $0x38] sm:$0xf] %vm2060_vm1, %v2384_v32  ;;  %v2382_v9 = vpack.c.bf16 %v1854_v51, %v1854_v51  ;;  %v1865_v29 = vadd.f32 %v2775_v62, %v1704_v30  ;;  %v1733_v63 = vadd.f32 %v2710_v58, %v3689_v33  ;;  %v1728_v32 = vadd.f32 %v2707_v61, %v3692_v54 }
 0x1aa   : > { %v2712_v13 = vpop.f32.mrf.mxu0  ;;  %v1856_v19 = vpop.f32.mrf.mxu1 }
 0x1ab   : > { %2073 = vst.msk [vmem:[%s3524_s17 + $0x30] sm:$0xf] %vm2060_vm1, %v2382_v9  ;;  %v2385_v28 = vpack.c.bf16 %v1865_v29, %v1865_v29  ;;  %v1857_v7 = vadd.f32 %v1856_v19, %v1696_v17  ;;  %v2713_v5 = vadd.f32 %v2712_v13, %v2711_v36  ;;  %v3693_v9 = vld [vmem:[#allocation9_spill] sm:$0xff] }
 0x1ac   : > { %v2714_v23 = vpop.f32.mrf.mxu0  ;;  %v2778_v48 = vpop.f32.mrf.mxu1 }
 0x1ad   : > { %2076 = vst.msk [vmem:[%s3524_s17 + $0x3c] sm:$0xf] %vm2060_vm1, %v2385_v28  ;;  %v2383_v20 = vpack.c.bf16 %v1857_v7, %v1857_v7  ;;  %v1878_v46 = vadd.f32 %v2778_v48, %v1717_v26  ;;  %v1736_v0 = vadd.f32 %v2713_v5, %v3691_v43  ;;  %v3694_v7 = vld [vmem:[#allocation7_spill] sm:$0xff] }
 0x1ae   : > { %v2715_v15 = vpop.f32.mrf.mxu0  ;;  %v1869_v57 = vpop.f32.mrf.mxu1  ;;  %v3697_v5 = vld [vmem:[#allocation11_spill] sm:$0xff] }
 0x1af   : > { %2074 = vst.msk [vmem:[%s3524_s17 + $0x34] sm:$0xf] %vm2060_vm1, %v2383_v20  ;;  %v2388_v10 = vpack.c.bf16 %v1878_v46, %v1878_v46  ;;  %v1870_v12 = vadd.f32 %v1869_v57, %v1709_v22  ;;  %v2716_v16 = vadd.f32 %v2715_v15, %v2714_v23  ;;  %v3695_v46 = vld [vmem:[#allocation10_spill] sm:$0xff] }
 0x1b0   : > { %v2717_v31 = vpop.f32.mrf.mxu0  ;;  %v2779_v47 = vpop.f32.mrf.mxu1 }
 0x1b1   : > { %2079 = vst.msk [vmem:[%s3524_s17 + $0x48] sm:$0xf] %vm2060_vm1, %v2388_v10  ;;  %v2386_v40 = vpack.c.bf16 %v1870_v12, %v1870_v12  ;;  %v1881_v53 = vadd.f32 %v2779_v47, %v1720_v6  ;;  %v1741_v26 = vadd.f32 %v2716_v16, %v3694_v7  ;;  %v3696_v6 = vld [vmem:[#allocation8_spill] sm:$0xff] }
 0x1b2   : > { %v2718_v52 = vpop.f32.mrf.mxu0  ;;  %v1872_v50 = vpop.f32.mrf.mxu1 }
 0x1b3   : > { %2077 = vst.msk [vmem:[%s3524_s17 + $0x40] sm:$0xf] %vm2060_vm1, %v2386_v40  ;;  %v2389_v41 = vpack.c.bf16 %v1881_v53, %v1881_v53  ;;  %v1873_v21 = vadd.f32 %v1872_v50, %v1712_v38  ;;  %v2719_v19 = vadd.f32 %v2718_v52, %v2717_v31 }
 0x1b4   : > { %v2720_v24 = vpop.f32.mrf.mxu0  ;;  %v2782_v35 = vpop.f32.mrf.mxu1 }
 0x1b5   : > { %2080 = vst.msk [vmem:[%s3524_s17 + $0x4c] sm:$0xf] %vm2060_vm1, %v2389_v41  ;;  %v2387_v49 = vpack.c.bf16 %v1873_v21, %v1873_v21  ;;  %v1894_v39 = vadd.f32 %v2782_v35, %v1733_v63  ;;  %v1744_v31 = vadd.f32 %v2719_v19, %v3696_v6 }
 0x1b6   : > { %v2721_v27 = vpop.f32.mrf.mxu0  ;;  %v1885_v11 = vpop.f32.mrf.mxu1 }
 0x1b7   : > { %2078 = vst.msk [vmem:[%s3524_s17 + $0x44] sm:$0xf] %vm2060_vm1, %v2387_v49  ;;  %v2392_v18 = vpack.c.bf16 %v1894_v39, %v1894_v39  ;;  %v2722_v56 = vadd.f32 %v2721_v27, %v2720_v24  ;;  %v1886_v3 = vadd.f32 %v1885_v11, %v1725_v25 }
 0x1b8   : > { %v2723_v14 = vpop.f32.mrf.mxu0  ;;  %v2783_v8 = vpop.f32.mrf.mxu1 }
 0x1b9   : > { %2083 = vst.msk [vmem:[%s3524_s17 + $0x58] sm:$0xf] %vm2060_vm1, %v2392_v18  ;;  %v2390_v60 = vpack.c.bf16 %v1886_v3, %v1886_v3  ;;  %v1897_v1 = vadd.f32 %v2783_v8, %v1736_v0  ;;  %v1749_v29 = vadd.f32 %v2722_v56, %v3693_v9 }
 0x1ba   : > { %v2724_v51 = vpop.f32.mrf.mxu0  ;;  %v1888_v30 = vpop.f32.mrf.mxu1 }
 0x1bb   : > { %2081 = vst.msk [vmem:[%s3524_s17 + $0x50] sm:$0xf] %vm2060_vm1, %v2390_v60  ;;  %v2393_v36 = vpack.c.bf16 %v1897_v1, %v1897_v1  ;;  %v2725_v62 = vadd.f32 %v2724_v51, %v2723_v14  ;;  %v1889_v34 = vadd.f32 %v1888_v30, %v1728_v32 }
 0x1bc   : > { %v2726_v17 = vpop.f32.mrf.mxu0  ;;  %v2786_v13 = vpop.f32.mrf.mxu1 }
 0x1bd   : > { %2084 = vst.msk [vmem:[%s3524_s17 + $0x5c] sm:$0xf] %vm2060_vm1, %v2393_v36  ;;  %v2391_v59 = vpack.c.bf16 %v1889_v34, %v1889_v34  ;;  %v1910_v28 = vadd.f32 %v2786_v13, %v1749_v29  ;;  %v1752_v22 = vadd.f32 %v2725_v62, %v3695_v46 }
 0x1be   : > { %v2727_v23 = vpop.f32.mrf.mxu0  ;;  %v1901_v48 = vpop.f32.mrf.mxu1 }
 0x1bf   : > { %2082 = vst.msk [vmem:[%s3524_s17 + $0x54] sm:$0xf] %vm2060_vm1, %v2391_v59  ;;  %v2396_v2 = vpack.c.bf16 %v1910_v28, %v1910_v28  ;;  %v1902_v20 = vadd.f32 %v1901_v48, %v1741_v26  ;;  %v2728_v58 = vadd.f32 %v2727_v23, %v2726_v17 }
 0x1c0   : > { %v2729_v15 = vpop.f32.mrf.mxu0  ;;  %v2787_v57 = vpop.f32.mrf.mxu1 }
 0x1c1   : > { %2087 = vst.msk [vmem:[%s3524_s17 + $0x68] sm:$0xf] %vm2060_vm1, %v2396_v2  ;;  %v2394_v10 = vpack.c.bf16 %v1902_v20, %v1902_v20  ;;  %v1913_v12 = vadd.f32 %v2787_v57, %v1752_v22  ;;  %v1757_v41 = vadd.f32 %v2728_v58, %v3697_v5 }
 0x1c2   : > { %v2730_v47 = vpop.f32.mrf.mxu0  ;;  %v1904_v45 = vpop.f32.mrf.mxu1 }
 0x1c3   : > { %2085 = vst.msk [vmem:[%s3524_s17 + $0x60] sm:$0xf] %vm2060_vm1, %v2394_v10  ;;  %v2397_v40 = vpack.c.bf16 %v1913_v12, %v1913_v12  ;;  %v1905_v53 = vadd.f32 %v1904_v45, %v1744_v31  ;;  %v2731_v52 = vadd.f32 %v2730_v47, %v2729_v15 }
 0x1c4   : > { %v2732_v37 = vpop.f32.mrf.mxu0  ;;  %v2790_v38 = vpop.f32.mrf.mxu1 }
 0x1c5   : > { %2088 = vst.msk [vmem:[%s3524_s17 + $0x6c] sm:$0xf] %vm2060_vm1, %v2397_v40  ;;  %v2395_v50 = vpack.c.bf16 %v1905_v53, %v1905_v53  ;;  %v1760_v44 = vadd.f32 %v2731_v52, %v3494_v55 }
 0x1c6   : > { %v2733_v21 = vpop.f32.mrf.mxu0  ;;  %v1917_v33 = vpop.f32.mrf.mxu1 }
 0x1c7   : > { %2086 = vst.msk [vmem:[%s3524_s17 + $0x64] sm:$0xf] %vm2060_vm1, %v2395_v50  ;;  %v2734_v63 = vadd.f32 %v2733_v21, %v2732_v37  ;;  %v1918_v24 = vadd.f32 %v1917_v33, %v1757_v41 }
 0x1c8   : > { %v2735_v35 = vpop.f32.mrf.mxu0  ;;  %v2791_v61 = vpop.f32.mrf.mxu1 }
 0x1c9   : > { %v1765_v49 = vadd.f32 %v2734_v63, %v3505_v4  ;;  %v2398_v39 = vpack.c.bf16 %v1918_v24, %v1918_v24 }
 0x1ca   : > { %v2736_v25 = vpop.f32.mrf.mxu0  ;;  %v1920_v27 = vpop.f32.mrf.mxu1 }
 0x1cb   : > { %v1926_v11 = vadd.f32 %v2790_v38, %v1765_v49  ;;  %2089 = vst.msk [vmem:[%s3524_s17 + $0x70] sm:$0xf] %vm2060_vm1, %v2398_v39  ;;  %v2737_v18 = vadd.f32 %v2736_v25, %v2735_v35  ;;  %v1921_v56 = vadd.f32 %v1920_v27, %v1760_v44 }
 0x1cd   : > { %v2400_v3 = vpack.c.bf16 %v1926_v11, %v1926_v11  ;;  %v1768_v43 = vadd.f32 %v2737_v18, %v3518_v42  ;;  %v2399_v0 = vpack.c.bf16 %v1921_v56, %v1921_v56 }
 0x1cf   : > { %2091 = vst.msk [vmem:[%s3524_s17 + $0x78] sm:$0xf] %vm2060_vm1, %v2400_v3  ;;  %v1929_v14 = vadd.f32 %v2791_v61, %v1768_v43  ;;  %2090 = vst.msk [vmem:[%s3524_s17 + $0x74] sm:$0xf] %vm2060_vm1, %v2399_v0 }
 0x1d1   : > { %v2401_v4 = vpack.c.bf16 %v1929_v14, %v1929_v14 }
 0x1d3   : > { %2092 = vst.msk [vmem:[%s3524_s17 + $0x7c] sm:$0xf] %vm2060_vm1, %v2401_v4 }
 0x1d4 PF: > { %s12_s9 = sadd.s32 1, %s3033_s9  }
 0x1d5   : > { %p9_p4 = scmp.ge.s32.totalorder %s12_s9, 4  }
 0x1d7   :  { %11 = sbr.rel (!%p9_p4) target bundleno = 1 (0x1), region = 58 }

// kernel: hgfeature_forward.33
= control target key start
LH: loop header
LB: loop body
LE: loop exit
PB: predicated region body
PF: predicated region fallthrough
CT: control target
= control target key end

     0   :  { %s1640_s9 = smov 0   ;;  %s1880_s0 = inlined_call_operand.vmem [shape: bf16[512,288], index: 0, kind: input, shape index: {}]   ;;  %s1881_s1 = inlined_call_operand.vmem [shape: bf16[288,32], index: 1, kind: input, shape index: {}]   ;;  %s1882_s2 = inlined_call_operand.vmem [shape: bf16[512,32], index: 2, kind: output, shape index: {}]  }
   0x1 LB: > { %s1187_s10 = sadd.s32 4294967295, %s1623_s9   ;;  %p1191_p0 = scmp.ge.s32.totalorder %s1623_s9, 1  ;;  %s1623_s9 = sphi %s1640_s9, %s12_s9  }
   0x2   : > { %p114_p1 = scmp.lt.s32.totalorder %s1623_s9, 3 }
   0x4   : > { %p115_p2 = pnand %p1191_p0, %p114_p1 }
   0x5   : > { %s1192_s13 = sshll.u32 (!%p115_p2), %s1187_s10, 5 }
   0x6   : > { %118 = sbr.rel (%p115_p2) target bundleno = 338 (0x152), region = 28  ;;  %p138_p3 = scmp.lt.s32.totalorder (!%p115_p2), %s1192_s13, 63 }
   0xb   : > { %v1535_v0 = vld [vmem:[%s1881_s1 + $0x78] sm:$0xff]   ;;  %v1537_v2 = vld [vmem:[%s1881_s1 + $0x70] sm:$0xff]   ;;  %v1539_v4 = vld [vmem:[%s1881_s1 + $0x68] sm:$0xff]   ;;  %s1884_s13 = smov (!%p138_p3, %s1192_s13), 63  ;;  %vm599_vm0 = vcmask 261120   ;;  %vm1098_vm1 = vcmask 257024  }
   0xc   : > { %v1536_v1 = vld [vmem:[%s1881_s1 + $0x38] sm:$0xff]   ;;  %1344 = vmatprep.subr.bf16.mxu0 %v1535_v0  ;;  %1510 = vmatprep.subr.bf16.mxu1 %v1535_v0  ;;  %v1538_v3 = vld [vmem:[%s1881_s1 + $0x30] sm:$0xff]   ;;  %v1540_v5 = vld [vmem:[%s1881_s1 + $0x28] sm:$0xff]   ;;  %s1526_s26 = smul.u32 12, %s1884_s13 }
   0xd   : > { %1345 = vmatpush3.bf16.msra.mxu0 %v1536_v1  ;;  %1518 = vmatpush3.bf16.msra.mxu1 %v1536_v1  ;;  %v1541_v6 = vld [vmem:[%s1881_s1 + $0x60] sm:$0xff]   ;;  %v1543_v8 = vld [vmem:[%s1881_s1 + $0x58] sm:$0xff]   ;;  %v1545_v10 = vld [vmem:[%s1881_s1 + $0x50] sm:$0xff]  }
   0xe   : > { %1346 = vmatprep.subr.bf16.mxu0 %v1537_v2  ;;  %1511 = vmatprep.subr.bf16.mxu1 %v1537_v2  ;;  %v1542_v7 = vld [vmem:[%s1881_s1 + $0x20] sm:$0xff]   ;;  %s1681_s5 = scalar_lea.vmem %s1880_s0, %s1526_s26  ;;  %v1544_v9 = vld [vmem:[%s1881_s1 + $0x18] sm:$0xff]   ;;  %v1546_v13 = vld [vmem:[%s1881_s1 + $0x10] sm:$0xff]   ;;  %s1195_s26 = sshll.u32 %s1884_s13, 2 }
   0xf   : > { %v1553_v11 = vld [vmem:[%s1681_s5 + $0x4] ss:$12 sps:$4 sm:$0xff]   ;;  %v1547_v14 = vld [vmem:[%s1881_s1 + $0x48] sm:$0xff]   ;;  %v1564_v26 = vld [vmem:[%s1681_s5 + $0x34] ss:$12 sps:$4 sm:$0xff]   ;;  %s1798_s29 = scalar_lea.vmem %s1882_s2, %s1195_s26 }
  0x10   : > { %v1556_v12 = vld [vmem:[%s1681_s5 + $0x124] ss:$12 sps:$4 sm:$0xff]   ;;  %680 = vmatprep.mubr.bf16.mxu0 %v1553_v11  ;;  %v1548_v15 = vld [vmem:[%s1881_s1 + $0x8] sm:$0xff]   ;;  %v1566_v27 = vld [vmem:[%s1681_s5 + $0x154] ss:$12 sps:$4 sm:$0xff]  }
  0x11   : > { %1347 = vmatpush3.bf16.msra.mxu0 %v1538_v3  ;;  %1519 = vmatpush3.bf16.msra.mxu1 %v1538_v3  ;;  %v1549_v16 = vld [vmem:[%s1881_s1 + $0x40] sm:$0xff]   ;;  %v1557_v18 = vld [vmem:[%s1881_s1 + $0x88] sm:$0xff]   ;;  %v1568_v28 = vld [vmem:[%s1681_s5 + $0x30] ss:$12 sps:$4 sm:$0xff]  }
  0x12   : > { %1348 = vmatprep.subr.bf16.mxu0 %v1539_v4  ;;  %1512 = vmatprep.subr.bf16.mxu1 %v1539_v4  ;;  %v1550_v17 = vld [vmem:[%s1881_s1] sm:$0xff]   ;;  %v1558_v21 = vld [vmem:[%s1681_s5 + $0x1c] ss:$12 sps:$4 sm:$0xff]   ;;  %v1571_v30 = vld [vmem:[%s1681_s5 + $0x4c] ss:$12 sps:$4 sm:$0xff]  }
  0x13   : > { %776 = vmatprep.mubr.bf16.mxu1 %v1556_v12  ;;  %v1551_v19 = vld [vmem:[%s1681_s5] ss:$12 sps:$4 sm:$0xff]   ;;  %v1560_v22 = vld [vmem:[%s1681_s5 + $0x13c] ss:$12 sps:$4 sm:$0xff]   ;;  %v1562_v24 = vld [vmem:[%s1681_s5 + $0x18] ss:$12 sps:$4 sm:$0xff]  }
  0x14   : > { %v1554_v20 = vld [vmem:[%s1681_s5 + $0x120] ss:$12 sps:$4 sm:$0xff]   ;;  %v1563_v25 = vld [vmem:[%s1681_s5 + $0x138] ss:$12 sps:$4 sm:$0xff]   ;;  %v1569_v29 = vld [vmem:[%s1681_s5 + $0x150] ss:$12 sps:$4 sm:$0xff]  }
  0x15   : > { %1349 = vmatpush3.bf16.msra.mxu0 %v1540_v5  ;;  %1520 = vmatpush3.bf16.msra.mxu1 %v1540_v5  ;;  %v1570_v23 = vld [vmem:[%s1881_s1 + $0x80] sm:$0xff]   ;;  %v1573_v31 = vld [vmem:[%s1681_s5 + $0x16c] ss:$12 sps:$4 sm:$0xff]   ;;  %v1575_v32 = vld [vmem:[%s1681_s5 + $0x48] ss:$12 sps:$4 sm:$0xff]  }
  0x16   : > { %1350 = vmatprep.subr.bf16.mxu0 %v1541_v6  ;;  %1513 = vmatprep.subr.bf16.mxu1 %v1541_v6  ;;  %v1576_v33 = vld [vmem:[%s1681_s5 + $0x168] ss:$12 sps:$4 sm:$0xff]   ;;  %v1577_v34 = vld [vmem:[%s1681_s5 + $0x64] ss:$12 sps:$4 sm:$0xff]   ;;  %v1580_v36 = vld [vmem:[%s1681_s5 + $0x60] ss:$12 sps:$4 sm:$0xff]  }
  0x17   : > { %v1579_v35 = vld [vmem:[%s1681_s5 + $0x8] ss:$12 sps:$4 sm:$0xff]   ;;  %v1581_v37 = vld [vmem:[%s1681_s5 + $0x20] ss:$12 sps:$4 sm:$0xff]   ;;  %v1584_v39 = vld [vmem:[%s1681_s5 + $0x38] ss:$12 sps:$4 sm:$0xff]  }
  0x18   : > { %v1582_v38 = vld [vmem:[%s1681_s5 + $0x7c] ss:$12 sps:$4 sm:$0xff]   ;;  %v1585_v40 = vld [vmem:[%s1681_s5 + $0x78] ss:$12 sps:$4 sm:$0xff]   ;;  %v1587_v42 = vld [vmem:[%s1681_s5 + $0x94] ss:$12 sps:$4 sm:$0xff]  }
  0x19   : > { %1351 = vmatpush3.bf16.msra.mxu0 %v1542_v7  ;;  %1521 = vmatpush3.bf16.msra.mxu1 %v1542_v7  ;;  %v1586_v41 = vld [vmem:[%s1681_s5 + $0x50] ss:$12 sps:$4 sm:$0xff]   ;;  %v1589_v43 = vld [vmem:[%s1681_s5 + $0x68] ss:$12 sps:$4 sm:$0xff]   ;;  %v1591_v45 = vld [vmem:[%s1681_s5 + $0x80] ss:$12 sps:$4 sm:$0xff]  }
  0x1a   : > { %1352 = vmatprep.subr.bf16.mxu0 %v1543_v8  ;;  %1514 = vmatprep.subr.bf16.mxu1 %v1543_v8  ;;  %v1590_v44 = vld [vmem:[%s1681_s5 + $0x90] ss:$12 sps:$4 sm:$0xff]   ;;  %v1592_v46 = vld [vmem:[%s1681_s5 + $0xac] ss:$12 sps:$4 sm:$0xff]   ;;  %v1595_v48 = vld [vmem:[%s1681_s5 + $0xa8] ss:$12 sps:$4 sm:$0xff]  }
  0x1b   : > { %v1594_v47 = vld [vmem:[%s1681_s5 + $0x98] ss:$12 sps:$4 sm:$0xff]   ;;  %v1596_v49 = vld [vmem:[%s1681_s5 + $0xb0] ss:$12 sps:$4 sm:$0xff]   ;;  %v1599_v51 = vld [vmem:[%s1681_s5 + $0xc8] ss:$12 sps:$4 sm:$0xff]  }
  0x1c   : > { %v1597_v50 = vld [vmem:[%s1681_s5 + $0xc4] ss:$12 sps:$4 sm:$0xff]   ;;  %v1600_v52 = vld [vmem:[%s1681_s5 + $0xc0] ss:$12 sps:$4 sm:$0xff]   ;;  %v1602_v54 = vld [vmem:[%s1681_s5 + $0xdc] ss:$12 sps:$4 sm:$0xff]  }
  0x1d   : > { %1353 = vmatpush3.bf16.msra.mxu0 %v1544_v9  ;;  %1522 = vmatpush3.bf16.msra.mxu1 %v1544_v9  ;;  %v1601_v53 = vld [vmem:[%s1681_s5 + $0xe0] ss:$12 sps:$4 sm:$0xff]   ;;  %v1604_v55 = vld [vmem:[%s1681_s5 + $0xf8] ss:$12 sps:$4 sm:$0xff]   ;;  %v1606_v57 = vld [vmem:[%s1681_s5 + $0x110] ss:$12 sps:$4 sm:$0xff]  }
  0x1e   : > { %1354 = vmatprep.subr.bf16.mxu0 %v1545_v10  ;;  %1515 = vmatprep.subr.bf16.mxu1 %v1545_v10  ;;  %v1605_v56 = vld [vmem:[%s1681_s5 + $0xd8] ss:$12 sps:$4 sm:$0xff]   ;;  %v1607_v58 = vld [vmem:[%s1681_s5 + $0xf4] ss:$12 sps:$4 sm:$0xff]   ;;  %v1610_v60 = vld [vmem:[%s1681_s5 + $0xf0] ss:$12 sps:$4 sm:$0xff]  }
  0x1f   : > { %v1609_v59 = vld [vmem:[%s1681_s5 + $0x128] ss:$12 sps:$4 sm:$0xff]   ;;  %v1611_v61 = vld [vmem:[%s1681_s5 + $0x140] ss:$12 sps:$4 sm:$0xff]   ;;  %v1614_v63 = vld [vmem:[%s1681_s5 + $0x158] ss:$12 sps:$4 sm:$0xff]  }
  0x20   : > { %v1612_v62 = vld [vmem:[%s1681_s5 + $0x10c] ss:$12 sps:$4 sm:$0xff]   ;;  %v1615_v0 = vld [vmem:[%s1681_s5 + $0x108] ss:$12 sps:$4 sm:$0xff]   ;;  %v1616_v1 = vld [vmem:[%s1681_s5 + $0x170] ss:$12 sps:$4 sm:$0xff]  }
  0x21   : > { %1355 = vmatpush3.bf16.msra.mxu0 %v1546_v13  ;;  %1523 = vmatpush3.bf16.msra.mxu1 %v1546_v13 }
  0x22   : > { %1356 = vmatprep.subr.bf16.mxu0 %v1547_v14  ;;  %1516 = vmatprep.subr.bf16.mxu1 %v1547_v14 }
  0x25   : > { %1357 = vmatpush3.bf16.msra.mxu0 %v1548_v15  ;;  %1524 = vmatpush3.bf16.msra.mxu1 %v1548_v15 }
  0x26   : > { %1358 = vmatprep.subr.bf16.mxu0 %v1549_v16  ;;  %1517 = vmatprep.subr.bf16.mxu1 %v1549_v16 }
  0x29   : > { %1359 = vmatpush3.bf16.msra.mxu0 %v1550_v17  ;;  %1525 = vmatpush3.bf16.msra.mxu1 %v1550_v17 }
  0x2a   : > { %1474 = vmatprep.subr.bf16.mxu1 %v1557_v18 }
  0x2c   : > { %681 = vmatmul.mubr.bf16.vlgmr.msra.gmra.mxu0 %v1551_v19  ;;  %777 = vmatmul.mubr.bf16.vlgmr.msra.gmra.mxu1 %v1554_v20 }
  0x2d   : > { %1475 = vmatpush3.bf16.msra.mxu1 %v1557_v18  ;;  %688 = vmatprep.mubr.bf16.mxu0 %v1558_v21 }
  0x2e   : > { %784 = vmatprep.mubr.bf16.mxu1 %v1560_v22  ;;  %1476 = vmatprep.subr.bf16.mxu1 %v1570_v23 }
  0x31   : > { %1477 = vmatpush3.bf16.msra.mxu1 %v1570_v23 }
  0x34   : > { %689 = vmatmul.mubr.bf16.gmra.mxu0 %v1562_v24  ;;  %785 = vmatmul.mubr.bf16.gmra.mxu1 %v1563_v25 }
  0x35   : > { %696 = vmatprep.mubr.bf16.mxu0 %v1564_v26  ;;  %792 = vmatprep.mubr.bf16.mxu1 %v1566_v27 }
  0x3c   : > { %697 = vmatmul.mubr.bf16.gmra.mxu0 %v1568_v28  ;;  %793 = vmatmul.mubr.bf16.gmra.mxu1 %v1569_v29 }
  0x3d   : > { %704 = vmatprep.mubr.bf16.mxu0 %v1571_v30  ;;  %800 = vmatprep.mubr.bf16.mxu1 %v1573_v31 }
  0x44   : > { %705 = vmatmul.mubr.bf16.gmra.mxu0 %v1575_v32  ;;  %801 = vmatmul.mubr.bf16.gmra.mxu1 %v1576_v33 }
  0x45   : > { %712 = vmatprep.mubr.bf16.mxu0 %v1577_v34  ;;  %1478 = vmatprep.mubr.msk.bf16.mxu1 %vm599_vm0, %v1579_v35 }
  0x4c   : > { %713 = vmatmul.mubr.bf16.gmra.mxu0 %v1580_v36  ;;  %1479 = vmatmul.mubr.msk.bf16.vlgmr.msra.gmra.mxu1 %vm599_vm0, %v1581_v37 }
  0x4d   : > { %720 = vmatprep.mubr.bf16.mxu0 %v1582_v38  ;;  %1482 = vmatprep.mubr.msk.bf16.mxu1 %vm599_vm0, %v1584_v39 }
  0x54   : > { %721 = vmatmul.mubr.bf16.gmra.mxu0 %v1585_v40  ;;  %1483 = vmatmul.mubr.msk.bf16.gmra.mxu1 %vm599_vm0, %v1586_v41 }
  0x55   : > { %728 = vmatprep.mubr.bf16.mxu0 %v1587_v42  ;;  %1486 = vmatprep.mubr.msk.bf16.mxu1 %vm599_vm0, %v1589_v43 }
  0x5c   : > { %729 = vmatmul.mubr.bf16.gmra.mxu0 %v1590_v44  ;;  %1487 = vmatmul.mubr.msk.bf16.gmra.mxu1 %vm599_vm0, %v1591_v45 }
  0x5d   : > { %736 = vmatprep.mubr.bf16.mxu0 %v1592_v46  ;;  %1490 = vmatprep.mubr.msk.bf16.mxu1 %vm599_vm0, %v1594_v47 }
  0x64   : > { %737 = vmatmul.mubr.bf16.gmra.mxu0 %v1595_v48  ;;  %1491 = vmatmul.mubr.msk.bf16.gmra.mxu1 %vm599_vm0, %v1596_v49 }
  0x65   : > { %744 = vmatprep.mubr.bf16.mxu0 %v1597_v50  ;;  %1494 = vmatprep.mubr.msk.bf16.mxu1 %vm599_vm0, %v1599_v51 }
  0x6c   : > { %745 = vmatmul.mubr.bf16.gmra.mxu0 %v1600_v52  ;;  %1495 = vmatmul.mubr.msk.bf16.gmra.mxu1 %vm599_vm0, %v1601_v53 }
  0x6d   : > { %752 = vmatprep.mubr.bf16.mxu0 %v1602_v54  ;;  %1498 = vmatprep.mubr.msk.bf16.mxu1 %vm599_vm0, %v1604_v55 }
  0x74   : > { %753 = vmatmul.mubr.bf16.gmra.mxu0 %v1605_v56  ;;  %1499 = vmatmul.mubr.msk.bf16.gmra.mxu1 %vm599_vm0, %v1606_v57 }
  0x75   : > { %760 = vmatprep.mubr.bf16.mxu0 %v1607_v58  ;;  %1502 = vmatprep.mubr.msk.bf16.mxu1 %vm599_vm0, %v1609_v59 }
  0x7c   : > { %761 = vmatmul.mubr.bf16.gmra.mxu0 %v1610_v60  ;;  %1503 = vmatmul.mubr.msk.bf16.gmra.mxu1 %vm599_vm0, %v1611_v61 }
  0x7d   : > { %768 = vmatprep.mubr.bf16.mxu0 %v1612_v62  ;;  %1506 = vmatprep.mubr.msk.bf16.mxu1 %vm599_vm0, %v1614_v63 }
  0x84   : > { %769 = vmatmul.mubr.bf16.gmra.mxu0 %v1615_v0  ;;  %1507 = vmatmul.mubr.msk.bf16.gmra.mxu1 %vm599_vm0, %v1616_v1 }
  0xec   : > { %v1360_v2 = vpop.f32.mrf.mxu0  ;;  %v1432_v3 = vpop.f32.mrf.mxu1 }
  0xee   : > { %v1361_v4 = vpop.f32.mrf.mxu0  ;;  %v1433_v5 = vpop.f32.mrf.mxu1 }
  0xef   : > { %v1774_v6 = vadd.f32 %v1433_v5, %v1432_v3  ;;  %v1362_v43 = vadd.f32 %v1361_v4, %v1360_v2 }
  0xf0   : > { %v1363_v7 = vpop.f32.mrf.mxu0  ;;  %v1435_v8 = vpop.f32.mrf.mxu1 }
  0xf2   : > { %v1364_v9 = vpop.f32.mrf.mxu0  ;;  %v1436_v10 = vpop.f32.mrf.mxu1 }
  0xf3   : > { %v1776_v11 = vadd.f32 %v1436_v10, %v1435_v8  ;;  %v1365_v52 = vadd.f32 %v1364_v9, %v1363_v7 }
  0xf4   : > { %v1366_v12 = vpop.f32.mrf.mxu0  ;;  %v1438_v13 = vpop.f32.mrf.mxu1 }
  0xf6   : > { %v1367_v14 = vpop.f32.mrf.mxu0  ;;  %v1439_v15 = vpop.f32.mrf.mxu1 }
  0xf7   : > { %v1778_v16 = vadd.f32 %v1439_v15, %v1438_v13  ;;  %v1368_v40 = vadd.f32 %v1367_v14, %v1366_v12 }
  0xf8   : > { %v1369_v17 = vpop.f32.mrf.mxu0  ;;  %v1441_v18 = vpop.f32.mrf.mxu1 }
  0xfa   : > { %v1370_v19 = vpop.f32.mrf.mxu0  ;;  %v1442_v20 = vpop.f32.mrf.mxu1 }
  0xfb   : > { %v1780_v21 = vadd.f32 %v1442_v20, %v1441_v18  ;;  %v1371_v47 = vadd.f32 %v1370_v19, %v1369_v17 }
  0xfc   : > { %v1372_v22 = vpop.f32.mrf.mxu0  ;;  %v1444_v23 = vpop.f32.mrf.mxu1 }
  0xfe   : > { %v1373_v24 = vpop.f32.mrf.mxu0  ;;  %v1445_v25 = vpop.f32.mrf.mxu1 }
  0xff   : > { %v1782_v26 = vadd.f32 %v1445_v25, %v1444_v23  ;;  %v1374_v62 = vadd.f32 %v1373_v24, %v1372_v22 }
 0x100   : > { %v1375_v27 = vpop.f32.mrf.mxu0  ;;  %v1447_v28 = vpop.f32.mrf.mxu1 }
 0x102   : > { %v1376_v29 = vpop.f32.mrf.mxu0  ;;  %v1448_v30 = vpop.f32.mrf.mxu1 }
 0x103   : > { %v1784_v31 = vadd.f32 %v1448_v30, %v1447_v28  ;;  %v1377_v9 = vadd.f32 %v1376_v29, %v1375_v27 }
 0x104   : > { %v1378_v32 = vpop.f32.mrf.mxu0  ;;  %v1786_v33 = vpop.f32.mrf.mxu1 }
 0x106   : > { %v1379_v34 = vpop.f32.mrf.mxu0  ;;  %v1788_v35 = vpop.f32.mrf.mxu1 }
 0x107   : > { %v1380_v57 = vadd.f32 %v1379_v34, %v1378_v32 }
 0x108   : > { %v1381_v36 = vpop.f32.mrf.mxu0  ;;  %v1790_v37 = vpop.f32.mrf.mxu1 }
 0x10a   : > { %v1382_v38 = vpop.f32.mrf.mxu0  ;;  %v1792_v39 = vpop.f32.mrf.mxu1 }
 0x10b   : > { %v1383_v3 = vadd.f32 %v1382_v38, %v1381_v36 }
 0x10c   : > { %v1384_v41 = vpop.f32.mrf.mxu0  ;;  %v1480_v42 = vpop.f32.mrf.mxu1 }
 0x10d   : > { %v852_v44 = vadd.f32 %v1480_v42, %v1368_v40 }
 0x10e   : > { %v1385_v45 = vpop.f32.mrf.mxu0  ;;  %v843_v46 = vpop.f32.mrf.mxu1 }
 0x10f   : > { %v1314_v48 = vpack.c.bf16 %v852_v44, %v852_v44  ;;  %v844_v49 = vadd.f32 %v1362_v43, %v843_v46  ;;  %v1386_v22 = vadd.f32 %v1385_v45, %v1384_v41 }
 0x110   : > { %v1387_v50 = vpop.f32.mrf.mxu0  ;;  %v1481_v51 = vpop.f32.mrf.mxu1 }
 0x111   : > { %1101 = vst.msk [vmem:[%s1798_s29 + $0x8] sm:$0xf] %vm1098_vm1, %v1314_v48  ;;  %v1312_v53 = vpack.c.bf16 %v844_v49, %v844_v49  ;;  %v855_v54 = vadd.f32 %v1481_v51, %v1371_v47 }
 0x112   : > { %v1388_v55 = vpop.f32.mrf.mxu0  ;;  %v846_v56 = vpop.f32.mrf.mxu1 }
 0x113   : > { %1099 = vst.msk [vmem:[%s1798_s29] sm:$0xf] %vm1098_vm1, %v1312_v53  ;;  %v1315_v58 = vpack.c.bf16 %v855_v54, %v855_v54  ;;  %v847_v59 = vadd.f32 %v1365_v52, %v846_v56  ;;  %v1389_v36 = vadd.f32 %v1388_v55, %v1387_v50 }
 0x114   : > { %v1390_v60 = vpop.f32.mrf.mxu0  ;;  %v1484_v61 = vpop.f32.mrf.mxu1 }
 0x115   : > { %1102 = vst.msk [vmem:[%s1798_s29 + $0xc] sm:$0xf] %vm1098_vm1, %v1315_v58  ;;  %v1313_v63 = vpack.c.bf16 %v847_v59, %v847_v59  ;;  %v868_v0 = vadd.f32 %v1484_v61, %v1380_v57 }
 0x116   : > { %v1391_v1 = vpop.f32.mrf.mxu0  ;;  %v859_v2 = vpop.f32.mrf.mxu1 }
 0x117   : > { %1100 = vst.msk [vmem:[%s1798_s29 + $0x4] sm:$0xf] %vm1098_vm1, %v1313_v63  ;;  %v1318_v4 = vpack.c.bf16 %v868_v0, %v868_v0  ;;  %v860_v5 = vadd.f32 %v1374_v62, %v859_v2  ;;  %v1392_v15 = vadd.f32 %v1391_v1, %v1390_v60 }
 0x118   : > { %v1393_v7 = vpop.f32.mrf.mxu0  ;;  %v1485_v8 = vpop.f32.mrf.mxu1 }
 0x119   : > { %1105 = vst.msk [vmem:[%s1798_s29 + $0x18] sm:$0xf] %vm1098_vm1, %v1318_v4  ;;  %v1316_v10 = vpack.c.bf16 %v860_v5, %v860_v5  ;;  %v871_v12 = vadd.f32 %v1485_v8, %v1383_v3 }
 0x11a   : > { %v1394_v13 = vpop.f32.mrf.mxu0  ;;  %v862_v14 = vpop.f32.mrf.mxu1 }
 0x11b   : > { %1103 = vst.msk [vmem:[%s1798_s29 + $0x10] sm:$0xf] %vm1098_vm1, %v1316_v10  ;;  %v1319_v17 = vpack.c.bf16 %v871_v12, %v871_v12  ;;  %v863_v18 = vadd.f32 %v1377_v9, %v862_v14  ;;  %v1395_v28 = vadd.f32 %v1394_v13, %v1393_v7 }
 0x11c   : > { %v1396_v19 = vpop.f32.mrf.mxu0  ;;  %v1488_v20 = vpop.f32.mrf.mxu1 }
 0x11d   : > { %1106 = vst.msk [vmem:[%s1798_s29 + $0x1c] sm:$0xf] %vm1098_vm1, %v1319_v17  ;;  %v1317_v23 = vpack.c.bf16 %v863_v18, %v863_v18  ;;  %v884_v24 = vadd.f32 %v1488_v20, %v1392_v15 }
 0x11e   : > { %v1397_v25 = vpop.f32.mrf.mxu0  ;;  %v875_v27 = vpop.f32.mrf.mxu1 }
 0x11f   : > { %1104 = vst.msk [vmem:[%s1798_s29 + $0x14] sm:$0xf] %vm1098_vm1, %v1317_v23  ;;  %v1322_v29 = vpack.c.bf16 %v884_v24, %v884_v24  ;;  %v876_v30 = vadd.f32 %v1386_v22, %v875_v27  ;;  %v1398_v47 = vadd.f32 %v1397_v25, %v1396_v19 }
 0x120   : > { %v1399_v32 = vpop.f32.mrf.mxu0  ;;  %v1489_v34 = vpop.f32.mrf.mxu1 }
 0x121   : > { %1109 = vst.msk [vmem:[%s1798_s29 + $0x28] sm:$0xf] %vm1098_vm1, %v1322_v29  ;;  %v1320_v38 = vpack.c.bf16 %v876_v30, %v876_v30  ;;  %v887_v40 = vadd.f32 %v1489_v34, %v1395_v28 }
 0x122   : > { %v1400_v41 = vpop.f32.mrf.mxu0  ;;  %v878_v42 = vpop.f32.mrf.mxu1 }
 0x123   : > { %1107 = vst.msk [vmem:[%s1798_s29 + $0x20] sm:$0xf] %vm1098_vm1, %v1320_v38  ;;  %v1323_v43 = vpack.c.bf16 %v887_v40, %v887_v40  ;;  %v879_v44 = vadd.f32 %v1389_v36, %v878_v42  ;;  %v1401_v55 = vadd.f32 %v1400_v41, %v1399_v32 }
 0x124   : > { %v1402_v45 = vpop.f32.mrf.mxu0  ;;  %v1492_v46 = vpop.f32.mrf.mxu1 }
 0x125   : > { %1110 = vst.msk [vmem:[%s1798_s29 + $0x2c] sm:$0xf] %vm1098_vm1, %v1323_v43  ;;  %v1321_v48 = vpack.c.bf16 %v879_v44, %v879_v44 }
 0x126   : > { %v1403_v49 = vpop.f32.mrf.mxu0  ;;  %v891_v50 = vpop.f32.mrf.mxu1 }
 0x127   : > { %1108 = vst.msk [vmem:[%s1798_s29 + $0x24] sm:$0xf] %vm1098_vm1, %v1321_v48  ;;  %v1404_v51 = vadd.f32 %v1403_v49, %v1402_v45  ;;  %v892_v52 = vadd.f32 %v1398_v47, %v891_v50 }
 0x128   : > { %v1405_v53 = vpop.f32.mrf.mxu0  ;;  %v1493_v54 = vpop.f32.mrf.mxu1 }
 0x129   : > { %v900_v56 = vadd.f32 %v1492_v46, %v1404_v51  ;;  %v1324_v57 = vpack.c.bf16 %v892_v52, %v892_v52  ;;  %v1452_v52 = vadd.f32 %v1788_v35, %v1786_v33 }
 0x12a   : > { %v1406_v58 = vpop.f32.mrf.mxu0  ;;  %v894_v59 = vpop.f32.mrf.mxu1 }
 0x12b   : > { %v1326_v60 = vpack.c.bf16 %v900_v56, %v900_v56  ;;  %1111 = vst.msk [vmem:[%s1798_s29 + $0x30] sm:$0xf] %vm1098_vm1, %v1324_v57  ;;  %v1407_v61 = vadd.f32 %v1406_v58, %v1405_v53  ;;  %v895_v62 = vadd.f32 %v1401_v55, %v894_v59 }
 0x12c   : > { %v1408_v63 = vpop.f32.mrf.mxu0  ;;  %v1496_v0 = vpop.f32.mrf.mxu1 }
 0x12d   : > { %1113 = vst.msk [vmem:[%s1798_s29 + $0x38] sm:$0xf] %vm1098_vm1, %v1326_v60  ;;  %v903_v1 = vadd.f32 %v1493_v54, %v1407_v61  ;;  %v1325_v2 = vpack.c.bf16 %v895_v62, %v895_v62  ;;  %v1455_v60 = vadd.f32 %v1792_v39, %v1790_v37 }
 0x12e   : > { %v1409_v3 = vpop.f32.mrf.mxu0  ;;  %v907_v4 = vpop.f32.mrf.mxu1 }
 0x12f   : > { %v1327_v5 = vpack.c.bf16 %v903_v1, %v903_v1  ;;  %1112 = vst.msk [vmem:[%s1798_s29 + $0x34] sm:$0xf] %vm1098_vm1, %v1325_v2  ;;  %v1410_v7 = vadd.f32 %v1409_v3, %v1408_v63 }
 0x130   : > { %v1411_v8 = vpop.f32.mrf.mxu0  ;;  %v1497_v9 = vpop.f32.mrf.mxu1 }
 0x131   : > { %1114 = vst.msk [vmem:[%s1798_s29 + $0x3c] sm:$0xf] %vm1098_vm1, %v1327_v5  ;;  %v908_v10 = vadd.f32 %v1410_v7, %v907_v4 }
 0x132   : > { %v1412_v12 = vpop.f32.mrf.mxu0  ;;  %v910_v13 = vpop.f32.mrf.mxu1 }
 0x133   : > { %v1328_v14 = vpack.c.bf16 %v908_v10, %v908_v10  ;;  %v1413_v15 = vadd.f32 %v1412_v12, %v1411_v8 }
 0x134   : > { %v1414_v17 = vpop.f32.mrf.mxu0  ;;  %v1500_v18 = vpop.f32.mrf.mxu1 }
 0x135   : > { %1115 = vst.msk [vmem:[%s1798_s29 + $0x40] sm:$0xf] %vm1098_vm1, %v1328_v14  ;;  %v911_v19 = vadd.f32 %v1413_v15, %v910_v13 }
 0x136   : > { %v1415_v20 = vpop.f32.mrf.mxu0  ;;  %v923_v22 = vpop.f32.mrf.mxu1 }
 0x137   : > { %v1329_v23 = vpack.c.bf16 %v911_v19, %v911_v19  ;;  %v1416_v24 = vadd.f32 %v1415_v20, %v1414_v17 }
 0x138   : > { %v1417_v25 = vpop.f32.mrf.mxu0  ;;  %v1834_v27 = vpop.f32.mrf.mxu1 }
 0x139   : > { %1116 = vst.msk [vmem:[%s1798_s29 + $0x44] sm:$0xf] %vm1098_vm1, %v1329_v23  ;;  %v916_v28 = vadd.f32 %v1496_v0, %v1416_v24 }
 0x13a   : > { %v1418_v29 = vpop.f32.mrf.mxu0  ;;  %v926_v30 = vpop.f32.mrf.mxu1 }
 0x13b   : > { %v1330_v32 = vpack.c.bf16 %v916_v28, %v916_v28  ;;  %v1419_v34 = vadd.f32 %v1418_v29, %v1417_v25 }
 0x13c   : > { %v1420_v36 = vpop.f32.mrf.mxu0  ;;  %v1504_v38 = vpop.f32.mrf.mxu1 }
 0x13d   : > { %1117 = vst.msk [vmem:[%s1798_s29 + $0x48] sm:$0xf] %vm1098_vm1, %v1330_v32  ;;  %v919_v40 = vadd.f32 %v1497_v9, %v1419_v34  ;;  %v948_v41 = vadd.f32 %v1504_v38, %v1778_v16 }
 0x13e   : > { %v1421_v42 = vpop.f32.mrf.mxu0  ;;  %v939_v43 = vpop.f32.mrf.mxu1 }
 0x13f   : > { %v1331_v44 = vpack.c.bf16 %v919_v40, %v919_v40  ;;  %v1338_v45 = vpack.c.bf16 %v948_v41, %v948_v41  ;;  %v1422_v46 = vadd.f32 %v1421_v42, %v1420_v36  ;;  %v940_v47 = vadd.f32 %v1774_v6, %v939_v43 }
 0x140   : > { %v1423_v48 = vpop.f32.mrf.mxu0  ;;  %v1505_v49 = vpop.f32.mrf.mxu1 }
 0x141   : > { %1118 = vst.msk [vmem:[%s1798_s29 + $0x4c] sm:$0xf] %vm1098_vm1, %v1331_v44  ;;  %1125 = vst.msk [vmem:[%s1798_s29 + $0x68] sm:$0xf] %vm1098_vm1, %v1338_v45  ;;  %v924_v50 = vadd.f32 %v1422_v46, %v923_v22  ;;  %v1336_v51 = vpack.c.bf16 %v940_v47, %v940_v47  ;;  %v951_v16 = vadd.f32 %v1505_v49, %v1780_v21 }
 0x142   : > { %v1424_v53 = vpop.f32.mrf.mxu0  ;;  %v942_v54 = vpop.f32.mrf.mxu1 }
 0x143   : > { %v1332_v55 = vpack.c.bf16 %v924_v50, %v924_v50  ;;  %1123 = vst.msk [vmem:[%s1798_s29 + $0x60] sm:$0xf] %vm1098_vm1, %v1336_v51  ;;  %v1339_v6 = vpack.c.bf16 %v951_v16, %v951_v16  ;;  %v1425_v56 = vadd.f32 %v1424_v53, %v1423_v48  ;;  %v943_v57 = vadd.f32 %v1776_v11, %v942_v54 }
 0x144   : > { %v1426_v58 = vpop.f32.mrf.mxu0  ;;  %v1508_v59 = vpop.f32.mrf.mxu1 }
 0x145   : > { %1119 = vst.msk [vmem:[%s1798_s29 + $0x50] sm:$0xf] %vm1098_vm1, %v1332_v55  ;;  %1126 = vst.msk [vmem:[%s1798_s29 + $0x6c] sm:$0xf] %vm1098_vm1, %v1339_v6  ;;  %v927_v21 = vadd.f32 %v1425_v56, %v926_v30  ;;  %v1337_v33 = vpack.c.bf16 %v943_v57, %v943_v57  ;;  %v964_v35 = vadd.f32 %v1508_v59, %v1452_v52 }
 0x146   : > { %v1427_v61 = vpop.f32.mrf.mxu0  ;;  %v955_v62 = vpop.f32.mrf.mxu1 }
 0x147   : > { %v1333_v63 = vpack.c.bf16 %v927_v21, %v927_v21  ;;  %1124 = vst.msk [vmem:[%s1798_s29 + $0x64] sm:$0xf] %vm1098_vm1, %v1337_v33  ;;  %v1342_v11 = vpack.c.bf16 %v964_v35, %v964_v35  ;;  %v1428_v0 = vadd.f32 %v1427_v61, %v1426_v58  ;;  %v956_v1 = vadd.f32 %v1782_v26, %v955_v62 }
 0x148   : > { %v1429_v2 = vpop.f32.mrf.mxu0  ;;  %v1509_v3 = vpop.f32.mrf.mxu1 }
 0x149   : > { %1120 = vst.msk [vmem:[%s1798_s29 + $0x54] sm:$0xf] %vm1098_vm1, %v1333_v63  ;;  %1129 = vst.msk [vmem:[%s1798_s29 + $0x78] sm:$0xf] %vm1098_vm1, %v1342_v11  ;;  %v932_v37 = vadd.f32 %v1500_v18, %v1428_v0  ;;  %v1340_v39 = vpack.c.bf16 %v956_v1, %v956_v1  ;;  %v967_v4 = vadd.f32 %v1509_v3, %v1455_v60 }
 0x14a   : > { %v1430_v5 = vpop.f32.mrf.mxu0  ;;  %v958_v7 = vpop.f32.mrf.mxu1 }
 0x14b   : > { %v1334_v8 = vpack.c.bf16 %v932_v37, %v932_v37  ;;  %1127 = vst.msk [vmem:[%s1798_s29 + $0x70] sm:$0xf] %vm1098_vm1, %v1340_v39  ;;  %v1343_v9 = vpack.c.bf16 %v967_v4, %v967_v4  ;;  %v1431_v10 = vadd.f32 %v1430_v5, %v1429_v2  ;;  %v959_v26 = vadd.f32 %v1784_v31, %v958_v7 }
 0x14d   : > { %1121 = vst.msk [vmem:[%s1798_s29 + $0x58] sm:$0xf] %vm1098_vm1, %v1334_v8  ;;  %1130 = vst.msk [vmem:[%s1798_s29 + $0x7c] sm:$0xf] %vm1098_vm1, %v1343_v9  ;;  %v935_v12 = vadd.f32 %v1834_v27, %v1431_v10  ;;  %v1341_v13 = vpack.c.bf16 %v959_v26, %v959_v26 }
 0x14f   : > { %v1335_v14 = vpack.c.bf16 %v935_v12, %v935_v12  ;;  %1128 = vst.msk [vmem:[%s1798_s29 + $0x74] sm:$0xf] %vm1098_vm1, %v1341_v13 }
 0x151   : > { %1122 = vst.msk [vmem:[%s1798_s29 + $0x5c] sm:$0xf] %vm1098_vm1, %v1335_v14 }
 0x152 PF: > { %s12_s9 = sadd.s32 1, %s1623_s9  }
 0x153   : > { %p9_p4 = scmp.ge.s32.totalorder %s12_s9, 4  }
 0x155   :  { %11 = sbr.rel (!%p9_p4) target bundleno = 1 (0x1), region = 58 }

// kernel: hgfeature_forward.34
= control target key start
LH: loop header
LB: loop body
LE: loop exit
PB: predicated region body
PF: predicated region fallthrough
CT: control target
= control target key end

     0   :  { %vm308_vm0 = vcmask 261120   ;;  %vm591_vm1 = vcmask 388096   ;;  %s1091_s1 = inlined_call_operand.vmem [shape: bf16[288,48], index: 1, kind: input, shape index: {}]   ;;  %s1092_s0 = inlined_call_operand.vmem [shape: bf16[128,288], index: 0, kind: input, shape index: {}]   ;;  %s1093_s2 = inlined_call_operand.vmem [shape: bf16[128,48], index: 2, kind: output, shape index: {}]  }
   0x1   :  { %v804_v0 = vld [vmem:[%s1091_s1 + $0x78] sm:$0xff]   ;;  %v806_v2 = vld [vmem:[%s1091_s1 + $0x70] sm:$0xff]   ;;  %v808_v4 = vld [vmem:[%s1091_s1 + $0x68] sm:$0xff]  }
   0x2   :  { %v805_v1 = vld [vmem:[%s1091_s1 + $0x38] sm:$0xff]   ;;  %694 = vmatprep.subr.bf16.mxu0 %v804_v0  ;;  %788 = vmatprep.subr.bf16.mxu1 %v804_v0  ;;  %v807_v3 = vld [vmem:[%s1091_s1 + $0x30] sm:$0xff]   ;;  %v809_v5 = vld [vmem:[%s1091_s1 + $0x28] sm:$0xff]  }
   0x3   :  { %695 = vmatpush3.bf16.msra.mxu0 %v805_v1  ;;  %796 = vmatpush3.bf16.msra.mxu1 %v805_v1  ;;  %v810_v6 = vld [vmem:[%s1091_s1 + $0x60] sm:$0xff]   ;;  %v812_v8 = vld [vmem:[%s1091_s1 + $0x58] sm:$0xff]   ;;  %v814_v10 = vld [vmem:[%s1091_s1 + $0x50] sm:$0xff]  }
   0x4   :  { %696 = vmatprep.subr.bf16.mxu0 %v806_v2  ;;  %789 = vmatprep.subr.bf16.mxu1 %v806_v2  ;;  %v811_v7 = vld [vmem:[%s1091_s1 + $0x20] sm:$0xff]   ;;  %v813_v9 = vld [vmem:[%s1091_s1 + $0x18] sm:$0xff]   ;;  %v815_v13 = vld [vmem:[%s1091_s1 + $0x10] sm:$0xff]  }
   0x5   :  { %v822_v11 = vld [vmem:[%s1092_s0 + $0x4] ss:$12 sps:$4 sm:$0xff]   ;;  %v825_v12 = vld [vmem:[%s1092_s0 + $0x94] ss:$12 sps:$4 sm:$0xff]   ;;  %v816_v14 = vld [vmem:[%s1091_s1 + $0x48] sm:$0xff]  }
   0x6   :  { %365 = vmatprep.mubr.bf16.mxu0 %v822_v11  ;;  %413 = vmatprep.mubr.bf16.mxu1 %v825_v12  ;;  %v817_v15 = vld [vmem:[%s1091_s1 + $0x8] sm:$0xff]   ;;  %v818_v16 = vld [vmem:[%s1091_s1 + $0x40] sm:$0xff]   ;;  %v823_v20 = vld [vmem:[%s1092_s0 + $0x90] ss:$12 sps:$4 sm:$0xff]  }
   0x7   :  { %697 = vmatpush3.bf16.msra.mxu0 %v807_v3  ;;  %797 = vmatpush3.bf16.msra.mxu1 %v807_v3  ;;  %v819_v17 = vld [vmem:[%s1091_s1] sm:$0xff]   ;;  %v826_v19 = vld [vmem:[%s1091_s1 + $0x88] sm:$0xff]   ;;  %v837_v28 = vld [vmem:[%s1092_s0 + $0x30] ss:$12 sps:$4 sm:$0xff]  }
   0x8   :  { %698 = vmatprep.subr.bf16.mxu0 %v808_v4  ;;  %790 = vmatprep.subr.bf16.mxu1 %v808_v4  ;;  %v820_v18 = vld [vmem:[%s1092_s0] ss:$12 sps:$4 sm:$0xff]   ;;  %v827_v21 = vld [vmem:[%s1092_s0 + $0x1c] ss:$12 sps:$4 sm:$0xff]   ;;  %v831_v24 = vld [vmem:[%s1092_s0 + $0x18] ss:$12 sps:$4 sm:$0xff]  }
   0x9   :  { %v829_v22 = vld [vmem:[%s1092_s0 + $0xac] ss:$12 sps:$4 sm:$0xff]   ;;  %v833_v23 = vld [vmem:[%s1091_s1 + $0x80] sm:$0xff]   ;;  %v832_v25 = vld [vmem:[%s1092_s0 + $0xa8] ss:$12 sps:$4 sm:$0xff]  }
   0xa   :  { %v834_v26 = vld [vmem:[%s1092_s0 + $0x34] ss:$12 sps:$4 sm:$0xff]   ;;  %v839_v30 = vld [vmem:[%s1092_s0 + $0x4c] ss:$12 sps:$4 sm:$0xff]   ;;  %v843_v33 = vld [vmem:[%s1092_s0 + $0x50] ss:$12 sps:$4 sm:$0xff]  }
   0xb   :  { %699 = vmatpush3.bf16.msra.mxu0 %v809_v5  ;;  %798 = vmatpush3.bf16.msra.mxu1 %v809_v5  ;;  %v836_v27 = vld [vmem:[%s1092_s0 + $0x8] ss:$12 sps:$4 sm:$0xff]   ;;  %v838_v29 = vld [vmem:[%s1092_s0 + $0x20] ss:$12 sps:$4 sm:$0xff]   ;;  %v841_v31 = vld [vmem:[%s1092_s0 + $0x38] ss:$12 sps:$4 sm:$0xff]  }
   0xc   :  { %700 = vmatprep.subr.bf16.mxu0 %v810_v6  ;;  %791 = vmatprep.subr.bf16.mxu1 %v810_v6  ;;  %v842_v32 = vld [vmem:[%s1092_s0 + $0x48] ss:$12 sps:$4 sm:$0xff]   ;;  %v844_v34 = vld [vmem:[%s1092_s0 + $0x64] ss:$12 sps:$4 sm:$0xff]   ;;  %v847_v36 = vld [vmem:[%s1092_s0 + $0x60] ss:$12 sps:$4 sm:$0xff]  }
   0xd   :  { %v846_v35 = vld [vmem:[%s1092_s0 + $0x68] ss:$12 sps:$4 sm:$0xff]   ;;  %v848_v37 = vld [vmem:[%s1092_s0 + $0x80] ss:$12 sps:$4 sm:$0xff]   ;;  %v851_v39 = vld [vmem:[%s1092_s0 + $0x98] ss:$12 sps:$4 sm:$0xff]  }
   0xe   :  { %v849_v38 = vld [vmem:[%s1092_s0 + $0x7c] ss:$12 sps:$4 sm:$0xff]   ;;  %v852_v40 = vld [vmem:[%s1092_s0 + $0x78] ss:$12 sps:$4 sm:$0xff]  }
   0xf   :  { %701 = vmatpush3.bf16.msra.mxu0 %v811_v7  ;;  %799 = vmatpush3.bf16.msra.mxu1 %v811_v7  ;;  %v853_v41 = vld [vmem:[%s1092_s0 + $0xb0] ss:$12 sps:$4 sm:$0xff]  }
  0x10   :  { %702 = vmatprep.subr.bf16.mxu0 %v812_v8  ;;  %792 = vmatprep.subr.bf16.mxu1 %v812_v8 }
  0x13   :  { %703 = vmatpush3.bf16.msra.mxu0 %v813_v9  ;;  %800 = vmatpush3.bf16.msra.mxu1 %v813_v9 }
  0x14   :  { %704 = vmatprep.subr.bf16.mxu0 %v814_v10  ;;  %793 = vmatprep.subr.bf16.mxu1 %v814_v10 }
  0x17   :  { %705 = vmatpush3.bf16.msra.mxu0 %v815_v13  ;;  %801 = vmatpush3.bf16.msra.mxu1 %v815_v13 }
  0x18   :  { %706 = vmatprep.subr.bf16.mxu0 %v816_v14  ;;  %794 = vmatprep.subr.bf16.mxu1 %v816_v14 }
  0x1b   :  { %707 = vmatpush3.bf16.msra.mxu0 %v817_v15  ;;  %802 = vmatpush3.bf16.msra.mxu1 %v817_v15 }
  0x1c   :  { %708 = vmatprep.subr.bf16.mxu0 %v818_v16  ;;  %795 = vmatprep.subr.bf16.mxu1 %v818_v16 }
  0x1f   :  { %709 = vmatpush3.bf16.msra.mxu0 %v819_v17  ;;  %803 = vmatpush3.bf16.msra.mxu1 %v819_v17 }
  0x20   :  { %768 = vmatprep.subr.bf16.mxu1 %v826_v19 }
  0x22   :  { %366 = vmatmul.mubr.bf16.vlgmr.msra.gmra.mxu0 %v820_v18  ;;  %414 = vmatmul.mubr.bf16.vlgmr.msra.gmra.mxu1 %v823_v20 }
  0x23   :  { %769 = vmatpush3.bf16.msra.mxu1 %v826_v19  ;;  %373 = vmatprep.mubr.bf16.mxu0 %v827_v21 }
  0x24   :  { %421 = vmatprep.mubr.bf16.mxu1 %v829_v22  ;;  %770 = vmatprep.subr.bf16.mxu1 %v833_v23 }
  0x27   :  { %771 = vmatpush3.bf16.msra.mxu1 %v833_v23 }
  0x2a   :  { %374 = vmatmul.mubr.bf16.gmra.mxu0 %v831_v24  ;;  %422 = vmatmul.mubr.bf16.gmra.mxu1 %v832_v25 }
  0x2b   :  { %381 = vmatprep.mubr.bf16.mxu0 %v834_v26  ;;  %772 = vmatprep.mubr.msk.bf16.mxu1 %vm308_vm0, %v836_v27 }
  0x32   :  { %382 = vmatmul.mubr.bf16.gmra.mxu0 %v837_v28  ;;  %773 = vmatmul.mubr.msk.bf16.vlgmr.msra.gmra.mxu1 %vm308_vm0, %v838_v29 }
  0x33   :  { %389 = vmatprep.mubr.bf16.mxu0 %v839_v30  ;;  %776 = vmatprep.mubr.msk.bf16.mxu1 %vm308_vm0, %v841_v31 }
  0x3a   :  { %390 = vmatmul.mubr.bf16.gmra.mxu0 %v842_v32  ;;  %777 = vmatmul.mubr.msk.bf16.gmra.mxu1 %vm308_vm0, %v843_v33 }
  0x3b   :  { %397 = vmatprep.mubr.bf16.mxu0 %v844_v34  ;;  %780 = vmatprep.mubr.msk.bf16.mxu1 %vm308_vm0, %v846_v35 }
  0x42   :  { %398 = vmatmul.mubr.bf16.gmra.mxu0 %v847_v36  ;;  %781 = vmatmul.mubr.msk.bf16.gmra.mxu1 %vm308_vm0, %v848_v37 }
  0x43   :  { %405 = vmatprep.mubr.bf16.mxu0 %v849_v38  ;;  %784 = vmatprep.mubr.msk.bf16.mxu1 %vm308_vm0, %v851_v39 }
  0x4a   :  { %406 = vmatmul.mubr.bf16.gmra.mxu0 %v852_v40  ;;  %785 = vmatmul.mubr.msk.bf16.gmra.mxu1 %vm308_vm0, %v853_v41 }
  0xe2   :  { %v710_v42 = vpop.f32.mrf.mxu0  ;;  %v1003_v43 = vpop.f32.mrf.mxu1 }
  0xe4   :  { %v711_v44 = vpop.f32.mrf.mxu0  ;;  %v1005_v45 = vpop.f32.mrf.mxu1 }
  0xe5   :  { %v712_v61 = vadd.f32 %v711_v44, %v710_v42 }
  0xe6   :  { %v713_v46 = vpop.f32.mrf.mxu0  ;;  %v1007_v47 = vpop.f32.mrf.mxu1 }
  0xe8   :  { %v714_v48 = vpop.f32.mrf.mxu0  ;;  %v1009_v49 = vpop.f32.mrf.mxu1 }
  0xe9   :  { %v715_v6 = vadd.f32 %v714_v48, %v713_v46 }
  0xea   :  { %v716_v50 = vpop.f32.mrf.mxu0  ;;  %v1011_v51 = vpop.f32.mrf.mxu1 }
  0xec   :  { %v717_v52 = vpop.f32.mrf.mxu0  ;;  %v1013_v53 = vpop.f32.mrf.mxu1 }
  0xed   :  { %v718_v58 = vadd.f32 %v717_v52, %v716_v50  ;;  %v754_v46 = vadd.f32 %v1013_v53, %v1011_v51 }
  0xee   :  { %v719_v54 = vpop.f32.mrf.mxu0  ;;  %v1015_v55 = vpop.f32.mrf.mxu1 }
  0xf0   :  { %v720_v56 = vpop.f32.mrf.mxu0  ;;  %v1017_v57 = vpop.f32.mrf.mxu1 }
  0xf1   :  { %v721_v1 = vadd.f32 %v720_v56, %v719_v54  ;;  %v748_v56 = vadd.f32 %v1005_v45, %v1003_v43  ;;  %v751_v43 = vadd.f32 %v1009_v49, %v1007_v47 }
  0xf2   :  { %v722_v59 = vpop.f32.mrf.mxu0  ;;  %v774_v60 = vpop.f32.mrf.mxu1 }
  0xf3   :  { %v473_v62 = vadd.f32 %v774_v60, %v718_v58  ;;  %v757_v60 = vadd.f32 %v1017_v57, %v1015_v55 }
  0xf4   :  { %v723_v63 = vpop.f32.mrf.mxu0  ;;  %v464_v0 = vpop.f32.mrf.mxu1 }
  0xf5   :  { %v680_v2 = vpack.c.bf16 %v473_v62, %v473_v62  ;;  %v465_v3 = vadd.f32 %v712_v61, %v464_v0  ;;  %v724_v15 = vadd.f32 %v723_v63, %v722_v59 }
  0xf6   :  { %v725_v4 = vpop.f32.mrf.mxu0  ;;  %v775_v5 = vpop.f32.mrf.mxu1 }
  0xf7   :  { %594 = vst.msk [vmem:[%s1093_s2 + $0x8] sm:$0xf] %vm591_vm1, %v680_v2  ;;  %v678_v7 = vpack.c.bf16 %v465_v3, %v465_v3  ;;  %v476_v8 = vadd.f32 %v775_v5, %v721_v1 }
  0xf8   :  { %v726_v9 = vpop.f32.mrf.mxu0  ;;  %v467_v10 = vpop.f32.mrf.mxu1 }
  0xf9   :  { %592 = vst.msk [vmem:[%s1093_s2] sm:$0xf] %vm591_vm1, %v678_v7  ;;  %v681_v11 = vpack.c.bf16 %v476_v8, %v476_v8  ;;  %v468_v12 = vadd.f32 %v715_v6, %v467_v10  ;;  %v727_v23 = vadd.f32 %v726_v9, %v725_v4 }
  0xfa   :  { %v728_v13 = vpop.f32.mrf.mxu0  ;;  %v778_v14 = vpop.f32.mrf.mxu1 }
  0xfb   :  { %595 = vst.msk [vmem:[%s1093_s2 + $0xc] sm:$0xf] %vm591_vm1, %v681_v11  ;;  %v679_v16 = vpack.c.bf16 %v468_v12, %v468_v12 }
  0xfc   :  { %v729_v17 = vpop.f32.mrf.mxu0  ;;  %v480_v18 = vpop.f32.mrf.mxu1 }
  0xfd   :  { %593 = vst.msk [vmem:[%s1093_s2 + $0x4] sm:$0xf] %vm591_vm1, %v679_v16  ;;  %v730_v19 = vadd.f32 %v729_v17, %v728_v13  ;;  %v481_v20 = vadd.f32 %v724_v15, %v480_v18 }
  0xfe   :  { %v731_v21 = vpop.f32.mrf.mxu0  ;;  %v779_v22 = vpop.f32.mrf.mxu1 }
  0xff   :  { %v489_v24 = vadd.f32 %v778_v14, %v730_v19  ;;  %v682_v25 = vpack.c.bf16 %v481_v20, %v481_v20 }
 0x100   :  { %v732_v26 = vpop.f32.mrf.mxu0  ;;  %v483_v27 = vpop.f32.mrf.mxu1 }
 0x101   :  { %v684_v28 = vpack.c.bf16 %v489_v24, %v489_v24  ;;  %596 = vst.msk [vmem:[%s1093_s2 + $0x10] sm:$0xf] %vm591_vm1, %v682_v25  ;;  %v733_v29 = vadd.f32 %v732_v26, %v731_v21  ;;  %v484_v30 = vadd.f32 %v727_v23, %v483_v27 }
 0x102   :  { %v734_v31 = vpop.f32.mrf.mxu0  ;;  %v782_v32 = vpop.f32.mrf.mxu1 }
 0x103   :  { %598 = vst.msk [vmem:[%s1093_s2 + $0x18] sm:$0xf] %vm591_vm1, %v684_v28  ;;  %v492_v33 = vadd.f32 %v779_v22, %v733_v29  ;;  %v683_v34 = vpack.c.bf16 %v484_v30, %v484_v30 }
 0x104   :  { %v735_v35 = vpop.f32.mrf.mxu0  ;;  %v496_v36 = vpop.f32.mrf.mxu1 }
 0x105   :  { %v685_v37 = vpack.c.bf16 %v492_v33, %v492_v33  ;;  %597 = vst.msk [vmem:[%s1093_s2 + $0x14] sm:$0xf] %vm591_vm1, %v683_v34  ;;  %v736_v38 = vadd.f32 %v735_v35, %v734_v31 }
 0x106   :  { %v737_v39 = vpop.f32.mrf.mxu0  ;;  %v783_v40 = vpop.f32.mrf.mxu1 }
 0x107   :  { %599 = vst.msk [vmem:[%s1093_s2 + $0x1c] sm:$0xf] %vm591_vm1, %v685_v37  ;;  %v497_v41 = vadd.f32 %v736_v38, %v496_v36 }
 0x108   :  { %v738_v42 = vpop.f32.mrf.mxu0  ;;  %v499_v44 = vpop.f32.mrf.mxu1 }
 0x109   :  { %v686_v48 = vpack.c.bf16 %v497_v41, %v497_v41  ;;  %v739_v50 = vadd.f32 %v738_v42, %v737_v39 }
 0x10a   :  { %v740_v52 = vpop.f32.mrf.mxu0  ;;  %v786_v54 = vpop.f32.mrf.mxu1 }
 0x10b   :  { %600 = vst.msk [vmem:[%s1093_s2 + $0x20] sm:$0xf] %vm591_vm1, %v686_v48  ;;  %v500_v58 = vadd.f32 %v739_v50, %v499_v44  ;;  %v521_v59 = vadd.f32 %v786_v54, %v754_v46 }
 0x10c   :  { %v741_v61 = vpop.f32.mrf.mxu0  ;;  %v512_v62 = vpop.f32.mrf.mxu1 }
 0x10d   :  { %v687_v51 = vpack.c.bf16 %v500_v58, %v500_v58  ;;  %v692_v53 = vpack.c.bf16 %v521_v59, %v521_v59  ;;  %v742_v63 = vadd.f32 %v741_v61, %v740_v52  ;;  %v513_v0 = vadd.f32 %v748_v56, %v512_v62 }
 0x10e   :  { %v743_v1 = vpop.f32.mrf.mxu0  ;;  %v787_v2 = vpop.f32.mrf.mxu1 }
 0x10f   :  { %601 = vst.msk [vmem:[%s1093_s2 + $0x24] sm:$0xf] %vm591_vm1, %v687_v51  ;;  %606 = vst.msk [vmem:[%s1093_s2 + $0x38] sm:$0xf] %vm591_vm1, %v692_v53  ;;  %v505_v45 = vadd.f32 %v782_v32, %v742_v63  ;;  %v690_v55 = vpack.c.bf16 %v513_v0, %v513_v0  ;;  %v524_v57 = vadd.f32 %v787_v2, %v757_v60 }
 0x110   :  { %v744_v3 = vpop.f32.mrf.mxu0  ;;  %v515_v4 = vpop.f32.mrf.mxu1 }
 0x111   :  { %v688_v5 = vpack.c.bf16 %v505_v45, %v505_v45  ;;  %604 = vst.msk [vmem:[%s1093_s2 + $0x30] sm:$0xf] %vm591_vm1, %v690_v55  ;;  %v693_v47 = vpack.c.bf16 %v524_v57, %v524_v57  ;;  %v745_v49 = vadd.f32 %v744_v3, %v743_v1  ;;  %v516_v6 = vadd.f32 %v751_v43, %v515_v4 }
 0x113   :  { %602 = vst.msk [vmem:[%s1093_s2 + $0x28] sm:$0xf] %vm591_vm1, %v688_v5  ;;  %607 = vst.msk [vmem:[%s1093_s2 + $0x3c] sm:$0xf] %vm591_vm1, %v693_v47  ;;  %v508_v7 = vadd.f32 %v783_v40, %v745_v49  ;;  %v691_v8 = vpack.c.bf16 %v516_v6, %v516_v6 }
 0x115   :  { %v689_v9 = vpack.c.bf16 %v508_v7, %v508_v7  ;;  %605 = vst.msk [vmem:[%s1093_s2 + $0x34] sm:$0xf] %vm591_vm1, %v691_v8 }
 0x117   :  { %603 = vst.msk [vmem:[%s1093_s2 + $0x2c] sm:$0xf] %vm591_vm1, %v689_v9 }

// kernel: hgfeature_forward.35
= control target key start
LH: loop header
LB: loop body
LE: loop exit
PB: predicated region body
PF: predicated region fallthrough
CT: control target
= control target key end

     0   :  { %v517_v0 = vmov 0   ;;  %vm274_vm0 = vcmask 392192   ;;  %vm395_vm1 = vcmask 519168   ;;  %s667_s1 = inlined_call_operand.vmem [shape: bf16[432,64], index: 1, kind: input, shape index: {}]   ;;  %s668_s0 = inlined_call_operand.vmem [shape: bf16[32,432], index: 0, kind: input, shape index: {}]   ;;  %s669_s2 = inlined_call_operand.vmem [shape: bf16[32,64], index: 2, kind: output, shape index: {}]  }
   0x1   :  { %330 = vmatprep.subr.bf16.mxu1 %v517_v0  ;;  %v478_v1 = vld [vmem:[%s667_s1 + $0xb8] sm:$0xff]   ;;  %v481_v4 = vld [vmem:[%s667_s1 + $0xb0] sm:$0xff]   ;;  %v484_v7 = vld [vmem:[%s667_s1 + $0xa8] sm:$0xff]  }
   0x2   :  { %v479_v2 = vld [vmem:[%s667_s1 + $0x78] sm:$0xff]   ;;  %331 = vmatpush1.bf16.msra.mxu1 %v478_v1  ;;  %v482_v5 = vld [vmem:[%s667_s1 + $0x70] sm:$0xff]   ;;  %v485_v8 = vld [vmem:[%s667_s1 + $0x68] sm:$0xff]  }
   0x3   :  { %v480_v3 = vld [vmem:[%s667_s1 + $0x38] sm:$0xff]   ;;  %449 = vmatprep.subr.bf16.mxu0 %v479_v2  ;;  %332 = vmatprep.subr.bf16.mxu1 %v517_v0  ;;  %v483_v6 = vld [vmem:[%s667_s1 + $0x30] sm:$0xff]   ;;  %v486_v9 = vld [vmem:[%s667_s1 + $0x28] sm:$0xff]  }
   0x4   :  { %450 = vmatpush3.bf16.msra.mxu0 %v480_v3  ;;  %v487_v10 = vld [vmem:[%s667_s1 + $0xa0] sm:$0xff]   ;;  %v491_v13 = vld [vmem:[%s667_s1 + $0x58] sm:$0xff]   ;;  %v494_v16 = vld [vmem:[%s667_s1 + $0x50] sm:$0xff]  }
   0x5   :  { %451 = vmatprep.subr.bf16.mxu0 %v482_v5  ;;  %v488_v11 = vld [vmem:[%s667_s1 + $0x60] sm:$0xff]   ;;  %v490_v14 = vld [vmem:[%s667_s1 + $0x98] sm:$0xff]   ;;  %v493_v17 = vld [vmem:[%s667_s1 + $0x90] sm:$0xff]  }
   0x6   :  { %333 = vmatpush1.bf16.msra.mxu1 %v481_v4  ;;  %v489_v12 = vld [vmem:[%s667_s1 + $0x20] sm:$0xff]   ;;  %v492_v15 = vld [vmem:[%s667_s1 + $0x18] sm:$0xff]   ;;  %v495_v18 = vld [vmem:[%s667_s1 + $0x10] sm:$0xff]  }
   0x7   :  { %334 = vmatprep.subr.bf16.mxu1 %v517_v0  ;;  %v497_v19 = vld [vmem:[%s667_s1 + $0x48] sm:$0xff]   ;;  %v500_v22 = vld [vmem:[%s667_s1 + $0x40] sm:$0xff]   ;;  %v505_v26 = vld [vmem:[%s667_s1 + $0xd0] sm:$0xff]  }
   0x8   :  { %452 = vmatpush3.bf16.msra.mxu0 %v483_v6  ;;  %v496_v20 = vld [vmem:[%s667_s1 + $0x88] sm:$0xff]   ;;  %v504_v23 = vld [vmem:[%s668_s0 + $0x4] ss:$16 sps:$4 sm:$0xff]   ;;  %v502_v28 = vld [vmem:[%s668_s0] ss:$16 sps:$4 sm:$0xff]  }
   0x9   :  { %453 = vmatprep.subr.bf16.mxu0 %v485_v8  ;;  %v498_v21 = vld [vmem:[%s667_s1 + $0x8] sm:$0xff]   ;;  %v499_v24 = vld [vmem:[%s667_s1 + $0x80] sm:$0xff]   ;;  %313 = vmatprep.mubr.bf16.mxu0 %v504_v23 }
   0xa   :  { %335 = vmatpush1.bf16.msra.mxu1 %v484_v7  ;;  %v501_v25 = vld [vmem:[%s667_s1] sm:$0xff]   ;;  %v513_v27 = vld [vmem:[%s668_s0 + $0xc] ss:$16 sps:$4 sm:$0xff]   ;;  %v511_v33 = vld [vmem:[%s668_s0 + $0x8] ss:$16 sps:$4 sm:$0xff]  }
   0xb   :  { %336 = vmatprep.subr.bf16.mxu1 %v517_v0  ;;  %v507_v29 = vld [vmem:[%s668_s0 + $0x24] ss:$16 sps:$4 sm:$0xff]   ;;  %439 = vmatprep.mubr.msk.bf16.mxu1 %vm274_vm0, %v513_v27  ;;  %v506_v30 = vld [vmem:[%s667_s1 + $0xc8] sm:$0xff]   ;;  %v510_v32 = vld [vmem:[%s668_s0 + $0x20] ss:$16 sps:$4 sm:$0xff]  }
   0xc   :  { %454 = vmatpush3.bf16.msra.mxu0 %v486_v9  ;;  %v509_v31 = vld [vmem:[%s667_s1 + $0xc0] sm:$0xff]   ;;  %v514_v34 = vld [vmem:[%s668_s0 + $0x2c] ss:$16 sps:$4 sm:$0xff]   ;;  %v516_v35 = vld [vmem:[%s668_s0 + $0x28] ss:$16 sps:$4 sm:$0xff]  }
   0xd   :  { %455 = vmatprep.subr.bf16.mxu0 %v488_v11 }
   0xe   :  { %337 = vmatpush1.bf16.msra.mxu1 %v487_v10 }
   0xf   :  { %338 = vmatprep.subr.bf16.mxu1 %v517_v0 }
  0x10   :  { %456 = vmatpush3.bf16.msra.mxu0 %v489_v12 }
  0x11   :  { %457 = vmatprep.subr.bf16.mxu0 %v491_v13 }
  0x12   :  { %339 = vmatpush1.bf16.msra.mxu1 %v490_v14 }
  0x13   :  { %340 = vmatprep.subr.bf16.mxu1 %v517_v0 }
  0x14   :  { %458 = vmatpush3.bf16.msra.mxu0 %v492_v15 }
  0x15   :  { %459 = vmatprep.subr.bf16.mxu0 %v494_v16 }
  0x16   :  { %341 = vmatpush1.bf16.msra.mxu1 %v493_v17 }
  0x17   :  { %342 = vmatprep.subr.bf16.mxu1 %v517_v0 }
  0x18   :  { %460 = vmatpush3.bf16.msra.mxu0 %v495_v18 }
  0x19   :  { %461 = vmatprep.subr.bf16.mxu0 %v497_v19 }
  0x1a   :  { %343 = vmatpush1.bf16.msra.mxu1 %v496_v20 }
  0x1b   :  { %344 = vmatprep.subr.bf16.mxu1 %v517_v0 }
  0x1c   :  { %462 = vmatpush3.bf16.msra.mxu0 %v498_v21 }
  0x1d   :  { %463 = vmatprep.subr.bf16.mxu0 %v500_v22 }
  0x1e   :  { %345 = vmatpush1.bf16.msra.mxu1 %v499_v24 }
  0x1f   :  { %356 = vmatprep.subr.bf16.mxu1 %v517_v0 }
  0x20   :  { %464 = vmatpush3.bf16.msra.mxu0 %v501_v25 }
  0x22   :  { %357 = vmatpush2.bf16.msra.mxu1 %v505_v26 }
  0x23   :  { %314 = vmatmul.mubr.bf16.vlgmr.msra.gmra.mxu0 %v502_v28  ;;  %358 = vmatprep.subr.bf16.mxu1 %v517_v0 }
  0x24   :  { %321 = vmatprep.mubr.bf16.mxu0 %v507_v29 }
  0x26   :  { %359 = vmatpush2.bf16.msra.mxu1 %v506_v30 }
  0x27   :  { %360 = vmatprep.subr.bf16.mxu1 %v517_v0 }
  0x2a   :  { %361 = vmatpush2.bf16.msra.mxu1 %v509_v31 }
  0x2b   :  { %322 = vmatmul.mubr.bf16.gmra.mxu0 %v510_v32 }
  0x2d   :  { %363 = vmatmul.mubr.bf16.vlgmr.msra.gmra.mxu1 %v511_v33 }
  0x2e   :  { %440 = vmatprep.mubr.msk.bf16.mxu1 %vm274_vm0, %v514_v34 }
  0x35   :  { %371 = vmatmul.mubr.bf16.gmra.mxu1 %v516_v35 }
  0xe3   :  { %v465_v36 = vpop.f32.mrf.mxu0 }
  0xe5   :  { %v466_v37 = vpop.f32.mrf.mxu0 }
  0xe6   :  { %v467_v41 = vadd.f32 %v466_v37, %v465_v36 }
  0xe7   :  { %v468_v38 = vpop.f32.mrf.mxu0 }
  0xe9   :  { %v469_v39 = vpop.f32.mrf.mxu0 }
  0xea   :  { %v470_v46 = vadd.f32 %v469_v39, %v468_v38 }
  0xeb   :  { %v471_v40 = vpop.f32.mrf.mxu0 }
  0xed   :  { %v472_v42 = vpop.f32.mrf.mxu0  ;;  %v364_v43 = vpop.f32.mrf.mxu1 }
  0xee   :  { %v365_v44 = vadd.f32 %v467_v41, %v364_v43  ;;  %v473_v52 = vadd.f32 %v472_v42, %v471_v40 }
  0xef   :  { %v366_v45 = vpop.f32.mrf.mxu1  ;;  %v474_v48 = vpop.f32.mrf.mxu0 }
  0xf0   :  { %v445_v47 = vpack.c.bf16 %v365_v44, %v365_v44 }
  0xf1   :  { %v367_v49 = vpop.f32.mrf.mxu1  ;;  %v475_v54 = vpop.f32.mrf.mxu0 }
  0xf2   :  { %396 = vst.msk [vmem:[%s669_s2] sm:$0xf] %vm395_vm1, %v445_v47  ;;  %v368_v50 = vadd.f32 %v470_v46, %v367_v49  ;;  %v476_v58 = vadd.f32 %v475_v54, %v474_v48 }
  0xf3   :  { %v369_v51 = vpop.f32.mrf.mxu1 }
  0xf4   :  { %v446_v53 = vpack.c.bf16 %v368_v50, %v368_v50 }
  0xf5   :  { %v372_v55 = vpop.f32.mrf.mxu1 }
  0xf6   :  { %397 = vst.msk [vmem:[%s669_s2 + $0x4] sm:$0xf] %vm395_vm1, %v446_v53  ;;  %v373_v56 = vadd.f32 %v473_v52, %v372_v55 }
  0xf7   :  { %v374_v57 = vpop.f32.mrf.mxu1 }
  0xf8   :  { %v447_v59 = vpack.c.bf16 %v373_v56, %v373_v56 }
  0xf9   :  { %v375_v60 = vpop.f32.mrf.mxu1 }
  0xfa   :  { %398 = vst.msk [vmem:[%s669_s2 + $0x8] sm:$0xf] %vm395_vm1, %v447_v59  ;;  %v376_v61 = vadd.f32 %v476_v58, %v375_v60 }
  0xfb   :  { %v377_v62 = vpop.f32.mrf.mxu1 }
  0xfc   :  { %v448_v63 = vpack.c.bf16 %v376_v61, %v376_v61 }
  0xfe   :  { %399 = vst.msk [vmem:[%s669_s2 + $0xc] sm:$0xf] %vm395_vm1, %v448_v63 }

// kernel: hgfeature_forward.36
= control target key start
LH: loop header
LB: loop body
LE: loop exit
PB: predicated region body
PF: predicated region fallthrough
CT: control target
= control target key end

     0   :  { %v625_v34 = vmov 0.0   ;;  %vm626_vm0 = vmmov 0   ;;  %vm331_vm1 = vcmask 523264   ;;  %vm466_vm2 = vcmask 781312   ;;  %s771_s1 = inlined_call_operand.vmem [shape: bf16[576,96], index: 1, kind: input, shape index: {}]   ;;  %s772_s0 = inlined_call_operand.vmem [shape: bf16[16,576], index: 0, kind: input, shape index: {}]   ;;  %s773_s2 = inlined_call_operand.vmem [shape: bf16[16,96], index: 2, kind: output, shape index: {}]  }
   0x1   :  { %v582_v0 = vld [vmem:[%s771_s1 + $0x78] sm:$0xff]   ;;  %v586_v4 = vld [vmem:[%s771_s1 + $0x70] sm:$0xff]   ;;  %v590_v8 = vld [vmem:[%s771_s1 + $0x68] sm:$0xff]  }
   0x2   :  { %v583_v1 = vld [vmem:[%s771_s1 + $0xf8] sm:$0xff]   ;;  %519 = vmatprep.subr.bf16.mxu0 %v582_v0  ;;  %v587_v5 = vld [vmem:[%s771_s1 + $0xf0] sm:$0xff]   ;;  %v591_v9 = vld [vmem:[%s771_s1 + $0xe8] sm:$0xff]  }
   0x3   :  { %v584_v2 = vld [vmem:[%s771_s1 + $0x38] sm:$0xff]   ;;  %541 = vmatprep.subr.bf16.mxu1 %v583_v1  ;;  %v588_v6 = vld [vmem:[%s771_s1 + $0x30] sm:$0xff]   ;;  %v592_v10 = vld [vmem:[%s771_s1 + $0x28] sm:$0xff]  }
   0x4   :  { %v585_v3 = vld [vmem:[%s771_s1 + $0xb8] sm:$0xff]   ;;  %520 = vmatpush3.bf16.msra.mxu0 %v584_v2  ;;  %v589_v7 = vld [vmem:[%s771_s1 + $0xb0] sm:$0xff]   ;;  %v593_v11 = vld [vmem:[%s771_s1 + $0xa8] sm:$0xff]  }
   0x5   :  { %542 = vmatpush3.bf16.msra.mxu1 %v585_v3  ;;  %521 = vmatprep.subr.bf16.mxu0 %v586_v4  ;;  %v594_v12 = vld [vmem:[%s771_s1 + $0x60] sm:$0xff]   ;;  %v598_v16 = vld [vmem:[%s771_s1 + $0x58] sm:$0xff]   ;;  %v602_v20 = vld [vmem:[%s771_s1 + $0x50] sm:$0xff]  }
   0x6   :  { %543 = vmatprep.subr.bf16.mxu1 %v587_v5  ;;  %v595_v13 = vld [vmem:[%s771_s1 + $0xe0] sm:$0xff]   ;;  %v599_v17 = vld [vmem:[%s771_s1 + $0xd8] sm:$0xff]   ;;  %v603_v21 = vld [vmem:[%s771_s1 + $0xd0] sm:$0xff]  }
   0x7   :  { %v596_v14 = vld [vmem:[%s771_s1 + $0x20] sm:$0xff]   ;;  %v600_v18 = vld [vmem:[%s771_s1 + $0x18] sm:$0xff]   ;;  %v604_v22 = vld [vmem:[%s771_s1 + $0x10] sm:$0xff]  }
   0x8   :  { %522 = vmatpush3.bf16.msra.mxu0 %v588_v6  ;;  %v597_v15 = vld [vmem:[%s771_s1 + $0xa0] sm:$0xff]   ;;  %v601_v19 = vld [vmem:[%s771_s1 + $0x98] sm:$0xff]   ;;  %v605_v23 = vld [vmem:[%s771_s1 + $0x90] sm:$0xff]  }
   0x9   :  { %544 = vmatpush3.bf16.msra.mxu1 %v589_v7  ;;  %523 = vmatprep.subr.bf16.mxu0 %v590_v8  ;;  %v606_v24 = vld [vmem:[%s771_s1 + $0x48] sm:$0xff]   ;;  %v610_v28 = vld [vmem:[%s771_s1 + $0x40] sm:$0xff]   ;;  %v620_v37 = vld [vmem:[%s771_s1 + $0x118] sm:$0xff]  }
   0xa   :  { %545 = vmatprep.subr.bf16.mxu1 %v591_v9  ;;  %v607_v25 = vld [vmem:[%s771_s1 + $0xc8] sm:$0xff]   ;;  %v611_v29 = vld [vmem:[%s771_s1 + $0xc0] sm:$0xff]   ;;  %v621_v38 = vld [vmem:[%s771_s1 + $0x110] sm:$0xff]  }
   0xb   :  { %v608_v26 = vld [vmem:[%s771_s1 + $0x8] sm:$0xff]   ;;  %v612_v30 = vld [vmem:[%s771_s1] sm:$0xff]  }
   0xc   :  { %524 = vmatpush3.bf16.msra.mxu0 %v592_v10  ;;  %v609_v27 = vld [vmem:[%s771_s1 + $0x88] sm:$0xff]   ;;  %v613_v31 = vld [vmem:[%s771_s1 + $0x80] sm:$0xff]  }
   0xd   :  { %546 = vmatpush3.bf16.msra.mxu1 %v593_v11  ;;  %525 = vmatprep.subr.bf16.mxu0 %v594_v12  ;;  %v614_v32 = vld [vmem:[%s772_s0] ss:$20 sps:$4 sm:$0xff]   ;;  %v616_v33 = vld [vmem:[%s772_s0 + $0x4] ss:$20 sps:$4 sm:$0xff]   ;;  %v617_v35 = vld [vmem:[%s772_s0 + $0x8] ss:$20 sps:$4 sm:$0xff]  }
   0xe   :  { %547 = vmatprep.subr.bf16.mxu1 %v595_v13  ;;  %v619_v36 = vld [vmem:[%s772_s0 + $0xc] ss:$20 sps:$4 sm:$0xff]   ;;  %367 = vmatprep.mubr.bf16.mxu0 %v616_v33  ;;  %v624_v41 = vld [vmem:[%s772_s0 + $0x10] ss:$20 sps:$4 sm:$0xff]  }
   0xf   :  { %408 = vmatprep.mubr.bf16.mxu1 %v619_v36  ;;  %v622_v39 = vld [vmem:[%s771_s1 + $0x108] sm:$0xff]   ;;  %v623_v40 = vld [vmem:[%s771_s1 + $0x100] sm:$0xff]  }
  0x10   :  { %526 = vmatpush3.bf16.msra.mxu0 %v596_v14 }
  0x11   :  { %548 = vmatpush3.bf16.msra.mxu1 %v597_v15  ;;  %527 = vmatprep.subr.bf16.mxu0 %v598_v16 }
  0x12   :  { %549 = vmatprep.subr.bf16.mxu1 %v599_v17 }
  0x14   :  { %528 = vmatpush3.bf16.msra.mxu0 %v600_v18 }
  0x15   :  { %550 = vmatpush3.bf16.msra.mxu1 %v601_v19  ;;  %529 = vmatprep.subr.bf16.mxu0 %v602_v20 }
  0x16   :  { %551 = vmatprep.subr.bf16.mxu1 %v603_v21 }
  0x18   :  { %530 = vmatpush3.bf16.msra.mxu0 %v604_v22 }
  0x19   :  { %552 = vmatpush3.bf16.msra.mxu1 %v605_v23  ;;  %531 = vmatprep.subr.bf16.mxu0 %v606_v24 }
  0x1a   :  { %553 = vmatprep.subr.bf16.mxu1 %v607_v25 }
  0x1c   :  { %532 = vmatpush3.bf16.msra.mxu0 %v608_v26 }
  0x1d   :  { %554 = vmatpush3.bf16.msra.mxu1 %v609_v27  ;;  %533 = vmatprep.subr.bf16.mxu0 %v610_v28 }
  0x1e   :  { %555 = vmatprep.subr.bf16.mxu1 %v611_v29 }
  0x20   :  { %534 = vmatpush3.bf16.msra.mxu0 %v612_v30 }
  0x21   :  { %556 = vmatpush3.bf16.msra.mxu1 %v613_v31  ;;  %568 = vmatprep.subr.bf16.mxu0 %v625_v34 }
  0x23   :  { %368 = vmatmul.mubr.bf16.vlgmr.msra.gmra.mxu0 %v614_v32 }
  0x24   :  { %409 = vmatmul.mubr.bf16.vlgmr.msra.gmra.mxu1 %v617_v35  ;;  %569 = vmatpush3.bf16.msra.mxu0 %v620_v37 }
  0x25   :  { %570 = vmatprep.subr.bf16.mxu0 %v625_v34  ;;  %576 = vmatprep.mubr.msk.bf16.mxu0 %vm626_vm0, %v625_v34 }
  0x28   :  { %571 = vmatpush3.bf16.msra.mxu0 %v621_v38 }
  0x29   :  { %572 = vmatprep.subr.bf16.mxu0 %v625_v34 }
  0x2c   :  { %573 = vmatpush3.bf16.msra.mxu0 %v622_v39 }
  0x2d   :  { %574 = vmatprep.subr.bf16.mxu0 %v625_v34 }
  0x30   :  { %575 = vmatpush3.bf16.msra.mxu0 %v623_v40 }
  0x33   :  { %577 = vmatmul.mubr.msk.bf16.vlgmr.msra.gmra.mxu0 %vm331_vm1, %v624_v41 }
  0xe3   :  { %v535_v42 = vpop.f32.mrf.mxu0 }
  0xe4   :  { %v557_v43 = vpop.f32.mrf.mxu1 }
  0xe5   :  { %v536_v44 = vpop.f32.mrf.mxu0 }
  0xe6   :  { %v558_v45 = vpop.f32.mrf.mxu1  ;;  %v537_v48 = vadd.f32 %v536_v44, %v535_v42 }
  0xe7   :  { %v538_v46 = vpop.f32.mrf.mxu0  ;;  %v559_v49 = vadd.f32 %v558_v45, %v557_v43 }
  0xe8   :  { %v560_v47 = vpop.f32.mrf.mxu1 }
  0xe9   :  { %v539_v50 = vpop.f32.mrf.mxu0  ;;  %v411_v54 = vadd.f32 %v559_v49, %v537_v48 }
  0xea   :  { %v561_v51 = vpop.f32.mrf.mxu1  ;;  %v540_v52 = vadd.f32 %v539_v50, %v538_v46 }
  0xeb   :  { %v562_v53 = vadd.f32 %v561_v51, %v560_v47 }
  0xed   :  { %v414_v59 = vadd.f32 %v562_v53, %v540_v52 }
  0xf3   :  { %v451_v55 = vpop.f32.mrf.mxu0 }
  0xf4   :  { %v452_v56 = vadd.f32 %v451_v55, %v411_v54 }
  0xf5   :  { %v578_v57 = vpop.f32.mrf.mxu0 }
  0xf6   :  { %v517_v58 = vpack.c.bf16 %v452_v56, %v452_v56 }
  0xf7   :  { %v454_v60 = vpop.f32.mrf.mxu0 }
  0xf8   :  { %467 = vst.msk [vmem:[%s773_s2] sm:$0xf] %vm466_vm2, %v517_v58  ;;  %v455_v61 = vadd.f32 %v454_v60, %v414_v59 }
  0xf9   :  { %v579_v62 = vpop.f32.mrf.mxu0 }
  0xfa   :  { %v518_v63 = vpack.c.bf16 %v455_v61, %v455_v61 }
  0xfc   :  { %468 = vst.msk [vmem:[%s773_s2 + $0x4] sm:$0xf] %vm466_vm2, %v518_v63 }

// kernel: hgfeature_forward.38
= control target key start
LH: loop header
LB: loop body
LE: loop exit
PB: predicated region body
PF: predicated region fallthrough
CT: control target
= control target key end

     0   :  { %s1493_s1 = inlined_call_operand.vmem [shape: bf16[512,384], index: 1, kind: input, shape index: {}]   ;;  %s1494_s0 = inlined_call_operand.vmem [shape: bf16[16,512], index: 0, kind: input, shape index: {}]   ;;  %s1495_s2 = inlined_call_operand.vmem [shape: bf16[16,384], index: 2, kind: output, shape index: {}]  }
   0x1   :  { %v1024_v0 = vld [vmem:[%s1493_s1 + $0xac] ss:$12 sps:$4 sm:$0xff]   ;;  %v1028_v2 = vld [vmem:[%s1493_s1 + $0xa8] ss:$12 sps:$4 sm:$0xff]   ;;  %v1034_v6 = vld [vmem:[%s1493_s1 + $0x90] ss:$12 sps:$4 sm:$0xff]  }
   0x2   :  { %v1026_v1 = vld [vmem:[%s1493_s1 + $0x22c] ss:$12 sps:$4 sm:$0xff]   ;;  %676 = vmatprep.subr.bf16.mxu0 %v1024_v0  ;;  %v1029_v3 = vld [vmem:[%s1493_s1 + $0x228] ss:$12 sps:$4 sm:$0xff]   ;;  %v1035_v7 = vld [vmem:[%s1493_s1 + $0x210] ss:$12 sps:$4 sm:$0xff]  }
   0x3   :  { %719 = vmatprep.subr.bf16.mxu1 %v1026_v1  ;;  %v1030_v4 = vld [vmem:[%s1493_s1 + $0x94] ss:$12 sps:$4 sm:$0xff]   ;;  %677 = vmatpush1.bf16.msra.mxu0 %v1028_v2  ;;  %v1036_v8 = vld [vmem:[%s1493_s1 + $0x7c] ss:$12 sps:$4 sm:$0xff]   ;;  %v1040_v10 = vld [vmem:[%s1493_s1 + $0x78] ss:$12 sps:$4 sm:$0xff]  }
   0x4   :  { %720 = vmatpush1.bf16.msra.mxu1 %v1029_v3  ;;  %v1032_v5 = vld [vmem:[%s1493_s1 + $0x214] ss:$12 sps:$4 sm:$0xff]   ;;  %678 = vmatprep.subr.bf16.mxu0 %v1030_v4  ;;  %v1038_v9 = vld [vmem:[%s1493_s1 + $0x1fc] ss:$12 sps:$4 sm:$0xff]   ;;  %v1041_v11 = vld [vmem:[%s1493_s1 + $0x1f8] ss:$12 sps:$4 sm:$0xff]  }
   0x5   :  { %721 = vmatprep.subr.bf16.mxu1 %v1032_v5  ;;  %v1042_v12 = vld [vmem:[%s1493_s1 + $0x64] ss:$12 sps:$4 sm:$0xff]   ;;  %v1046_v14 = vld [vmem:[%s1493_s1 + $0x60] ss:$12 sps:$4 sm:$0xff]   ;;  %v1052_v18 = vld [vmem:[%s1493_s1 + $0x48] ss:$12 sps:$4 sm:$0xff]  }
   0x6   :  { %v1044_v13 = vld [vmem:[%s1493_s1 + $0x1e4] ss:$12 sps:$4 sm:$0xff]   ;;  %v1047_v15 = vld [vmem:[%s1493_s1 + $0x1e0] ss:$12 sps:$4 sm:$0xff]   ;;  %v1053_v19 = vld [vmem:[%s1493_s1 + $0x1c8] ss:$12 sps:$4 sm:$0xff]  }
   0x7   :  { %679 = vmatpush1.bf16.msra.mxu0 %v1034_v6  ;;  %v1048_v16 = vld [vmem:[%s1493_s1 + $0x4c] ss:$12 sps:$4 sm:$0xff]   ;;  %v1054_v20 = vld [vmem:[%s1493_s1 + $0x34] ss:$12 sps:$4 sm:$0xff]   ;;  %v1058_v22 = vld [vmem:[%s1493_s1 + $0x30] ss:$12 sps:$4 sm:$0xff]  }
   0x8   :  { %722 = vmatpush1.bf16.msra.mxu1 %v1035_v7  ;;  %680 = vmatprep.subr.bf16.mxu0 %v1036_v8  ;;  %v1050_v17 = vld [vmem:[%s1493_s1 + $0x1cc] ss:$12 sps:$4 sm:$0xff]   ;;  %v1056_v21 = vld [vmem:[%s1493_s1 + $0x1b4] ss:$12 sps:$4 sm:$0xff]   ;;  %v1059_v23 = vld [vmem:[%s1493_s1 + $0x1b0] ss:$12 sps:$4 sm:$0xff]  }
   0x9   :  { %723 = vmatprep.subr.bf16.mxu1 %v1038_v9  ;;  %v1060_v24 = vld [vmem:[%s1493_s1 + $0x1c] ss:$12 sps:$4 sm:$0xff]   ;;  %v1064_v26 = vld [vmem:[%s1493_s1 + $0x18] ss:$12 sps:$4 sm:$0xff]   ;;  %v1070_v30 = vld [vmem:[%s1493_s1] ss:$12 sps:$4 sm:$0xff]  }
   0xa   :  { %v1062_v25 = vld [vmem:[%s1493_s1 + $0x19c] ss:$12 sps:$4 sm:$0xff]   ;;  %v1065_v27 = vld [vmem:[%s1493_s1 + $0x198] ss:$12 sps:$4 sm:$0xff]   ;;  %v1071_v31 = vld [vmem:[%s1493_s1 + $0x180] ss:$12 sps:$4 sm:$0xff]  }
   0xb   :  { %681 = vmatpush1.bf16.msra.mxu0 %v1040_v10  ;;  %v1066_v28 = vld [vmem:[%s1493_s1 + $0x4] ss:$12 sps:$4 sm:$0xff]   ;;  %v1072_v32 = vld [vmem:[%s1493_s1 + $0x16c] ss:$12 sps:$4 sm:$0xff]   ;;  %v1076_v34 = vld [vmem:[%s1493_s1 + $0x168] ss:$12 sps:$4 sm:$0xff]  }
   0xc   :  { %724 = vmatpush1.bf16.msra.mxu1 %v1041_v11  ;;  %682 = vmatprep.subr.bf16.mxu0 %v1042_v12  ;;  %v1068_v29 = vld [vmem:[%s1493_s1 + $0x184] ss:$12 sps:$4 sm:$0xff]   ;;  %v1074_v33 = vld [vmem:[%s1493_s1 + $0x2ec] ss:$12 sps:$4 sm:$0xff]   ;;  %v1077_v35 = vld [vmem:[%s1493_s1 + $0x2e8] ss:$12 sps:$4 sm:$0xff]  }
   0xd   :  { %725 = vmatprep.subr.bf16.mxu1 %v1044_v13  ;;  %v1078_v36 = vld [vmem:[%s1493_s1 + $0x154] ss:$12 sps:$4 sm:$0xff]   ;;  %v1082_v38 = vld [vmem:[%s1493_s1 + $0x150] ss:$12 sps:$4 sm:$0xff]   ;;  %v1088_v42 = vld [vmem:[%s1493_s1 + $0x138] ss:$12 sps:$4 sm:$0xff]  }
   0xe   :  { %v1080_v37 = vld [vmem:[%s1493_s1 + $0x2d4] ss:$12 sps:$4 sm:$0xff]   ;;  %v1083_v39 = vld [vmem:[%s1493_s1 + $0x2d0] ss:$12 sps:$4 sm:$0xff]   ;;  %v1089_v43 = vld [vmem:[%s1493_s1 + $0x2b8] ss:$12 sps:$4 sm:$0xff]  }
   0xf   :  { %683 = vmatpush1.bf16.msra.mxu0 %v1046_v14  ;;  %v1084_v40 = vld [vmem:[%s1493_s1 + $0x13c] ss:$12 sps:$4 sm:$0xff]   ;;  %v1090_v44 = vld [vmem:[%s1493_s1 + $0x124] ss:$12 sps:$4 sm:$0xff]   ;;  %v1094_v46 = vld [vmem:[%s1493_s1 + $0x120] ss:$12 sps:$4 sm:$0xff]  }
  0x10   :  { %726 = vmatpush1.bf16.msra.mxu1 %v1047_v15  ;;  %684 = vmatprep.subr.bf16.mxu0 %v1048_v16  ;;  %v1086_v41 = vld [vmem:[%s1493_s1 + $0x2bc] ss:$12 sps:$4 sm:$0xff]   ;;  %v1092_v45 = vld [vmem:[%s1493_s1 + $0x2a4] ss:$12 sps:$4 sm:$0xff]   ;;  %v1095_v47 = vld [vmem:[%s1493_s1 + $0x2a0] ss:$12 sps:$4 sm:$0xff]  }
  0x11   :  { %727 = vmatprep.subr.bf16.mxu1 %v1050_v17  ;;  %v1096_v48 = vld [vmem:[%s1493_s1 + $0x10c] ss:$12 sps:$4 sm:$0xff]   ;;  %v1122_v49 = vld [vmem:[%s1494_s0 + $0x4] ss:$16 sps:$4 sm:$0xff]   ;;  %v1106_v56 = vld [vmem:[%s1493_s1 + $0xf0] ss:$12 sps:$4 sm:$0xff]  }
  0x12   :  { %v1098_v50 = vld [vmem:[%s1493_s1 + $0x28c] ss:$12 sps:$4 sm:$0xff]   ;;  %v1100_v52 = vld [vmem:[%s1493_s1 + $0x108] ss:$12 sps:$4 sm:$0xff]   ;;  %708 = vmatprep.mubr.bf16.mxu0 %v1122_v49  ;;  %v1107_v57 = vld [vmem:[%s1493_s1 + $0x270] ss:$12 sps:$4 sm:$0xff]  }
  0x13   :  { %685 = vmatpush1.bf16.msra.mxu0 %v1052_v18  ;;  %v1125_v51 = vld [vmem:[%s1494_s0 + $0xc] ss:$16 sps:$4 sm:$0xff]   ;;  %v1101_v53 = vld [vmem:[%s1493_s1 + $0x288] ss:$12 sps:$4 sm:$0xff]   ;;  %v1112_v60 = vld [vmem:[%s1493_s1 + $0xd8] ss:$12 sps:$4 sm:$0xff]  }
  0x14   :  { %728 = vmatpush1.bf16.msra.mxu1 %v1053_v19  ;;  %686 = vmatprep.subr.bf16.mxu0 %v1054_v20  ;;  %v1102_v54 = vld [vmem:[%s1493_s1 + $0xf4] ss:$12 sps:$4 sm:$0xff]   ;;  %v1108_v58 = vld [vmem:[%s1493_s1 + $0xdc] ss:$12 sps:$4 sm:$0xff]   ;;  %v1113_v61 = vld [vmem:[%s1493_s1 + $0x258] ss:$12 sps:$4 sm:$0xff]  }
  0x15   :  { %729 = vmatprep.subr.bf16.mxu1 %v1056_v21  ;;  %751 = vmatprep.mubr.bf16.mxu1 %v1125_v51  ;;  %v1104_v55 = vld [vmem:[%s1493_s1 + $0x274] ss:$12 sps:$4 sm:$0xff]   ;;  %v1110_v59 = vld [vmem:[%s1493_s1 + $0x25c] ss:$12 sps:$4 sm:$0xff]   ;;  %v1114_v62 = vld [vmem:[%s1493_s1 + $0xc4] ss:$12 sps:$4 sm:$0xff]  }
  0x16   :  { %v1116_v63 = vld [vmem:[%s1493_s1 + $0x244] ss:$12 sps:$4 sm:$0xff]   ;;  %v1118_v0 = vld [vmem:[%s1493_s1 + $0xc0] ss:$12 sps:$4 sm:$0xff]   ;;  %v1382_v4 = vld [vmem:[%s1494_s0 + $0x8] ss:$16 sps:$4 sm:$0xff]  }
  0x17   :  { %687 = vmatpush1.bf16.msra.mxu0 %v1058_v22  ;;  %v1119_v1 = vld [vmem:[%s1493_s1 + $0x240] ss:$12 sps:$4 sm:$0xff]   ;;  %v1126_v2 = vld [vmem:[%s1493_s1 + $0x170] ss:$12 sps:$4 sm:$0xff]   ;;  %v1130_v8 = vld [vmem:[%s1493_s1 + $0x158] ss:$12 sps:$4 sm:$0xff]  }
  0x18   :  { %730 = vmatpush1.bf16.msra.mxu1 %v1059_v23  ;;  %688 = vmatprep.subr.bf16.mxu0 %v1060_v24  ;;  %v1377_v3 = vld [vmem:[%s1494_s0] ss:$16 sps:$4 sm:$0xff]   ;;  %v1131_v9 = vld [vmem:[%s1493_s1 + $0x2d8] ss:$12 sps:$4 sm:$0xff]   ;;  %v1138_v16 = vld [vmem:[%s1493_s1 + $0x128] ss:$12 sps:$4 sm:$0xff]  }
  0x19   :  { %731 = vmatprep.subr.bf16.mxu1 %v1062_v25  ;;  %v1127_v5 = vld [vmem:[%s1493_s1 + $0x2f0] ss:$12 sps:$4 sm:$0xff]   ;;  %v1132_v10 = vld [vmem:[%s1493_s1 + $0x98] ss:$12 sps:$4 sm:$0xff]   ;;  %v1134_v12 = vld [vmem:[%s1493_s1 + $0x140] ss:$12 sps:$4 sm:$0xff]  }
  0x1a   :  { %v1128_v6 = vld [vmem:[%s1493_s1 + $0xb0] ss:$12 sps:$4 sm:$0xff]   ;;  %v1133_v11 = vld [vmem:[%s1493_s1 + $0x218] ss:$12 sps:$4 sm:$0xff]   ;;  %v1135_v13 = vld [vmem:[%s1493_s1 + $0x2c0] ss:$12 sps:$4 sm:$0xff]  }
  0x1b   :  { %689 = vmatpush1.bf16.msra.mxu0 %v1064_v26  ;;  %v1129_v7 = vld [vmem:[%s1493_s1 + $0x230] ss:$12 sps:$4 sm:$0xff]   ;;  %v1136_v14 = vld [vmem:[%s1493_s1 + $0x80] ss:$12 sps:$4 sm:$0xff]   ;;  %v1139_v17 = vld [vmem:[%s1493_s1 + $0x2a8] ss:$12 sps:$4 sm:$0xff]  }
  0x1c   :  { %732 = vmatpush1.bf16.msra.mxu1 %v1065_v27  ;;  %690 = vmatprep.subr.bf16.mxu0 %v1066_v28  ;;  %v1137_v15 = vld [vmem:[%s1493_s1 + $0x200] ss:$12 sps:$4 sm:$0xff]   ;;  %v1140_v18 = vld [vmem:[%s1493_s1 + $0x68] ss:$12 sps:$4 sm:$0xff]   ;;  %v1142_v20 = vld [vmem:[%s1493_s1 + $0x110] ss:$12 sps:$4 sm:$0xff]  }
  0x1d   :  { %733 = vmatprep.subr.bf16.mxu1 %v1068_v29  ;;  %v1141_v19 = vld [vmem:[%s1493_s1 + $0x1e8] ss:$12 sps:$4 sm:$0xff]   ;;  %v1143_v21 = vld [vmem:[%s1493_s1 + $0x290] ss:$12 sps:$4 sm:$0xff]   ;;  %v1146_v24 = vld [vmem:[%s1493_s1 + $0xf8] ss:$12 sps:$4 sm:$0xff]  }
  0x1e   :  { %v1144_v22 = vld [vmem:[%s1493_s1 + $0x50] ss:$12 sps:$4 sm:$0xff]   ;;  %v1147_v25 = vld [vmem:[%s1493_s1 + $0x278] ss:$12 sps:$4 sm:$0xff]   ;;  %v1150_v28 = vld [vmem:[%s1493_s1 + $0xe0] ss:$12 sps:$4 sm:$0xff]  }
  0x1f   :  { %691 = vmatpush1.bf16.msra.mxu0 %v1070_v30  ;;  %v1145_v23 = vld [vmem:[%s1493_s1 + $0x1d0] ss:$12 sps:$4 sm:$0xff]   ;;  %v1148_v26 = vld [vmem:[%s1493_s1 + $0x38] ss:$12 sps:$4 sm:$0xff]   ;;  %v1151_v29 = vld [vmem:[%s1493_s1 + $0x260] ss:$12 sps:$4 sm:$0xff]  }
  0x20   :  { %734 = vmatpush1.bf16.msra.mxu1 %v1071_v31  ;;  %692 = vmatprep.subr.bf16.mxu0 %v1072_v32  ;;  %v1149_v27 = vld [vmem:[%s1493_s1 + $0x1b8] ss:$12 sps:$4 sm:$0xff]   ;;  %v1152_v30 = vld [vmem:[%s1493_s1 + $0x20] ss:$12 sps:$4 sm:$0xff]   ;;  %v1154_v32 = vld [vmem:[%s1493_s1 + $0xc8] ss:$12 sps:$4 sm:$0xff]  }
  0x21   :  { %735 = vmatprep.subr.bf16.mxu1 %v1074_v33  ;;  %v1153_v31 = vld [vmem:[%s1493_s1 + $0x1a0] ss:$12 sps:$4 sm:$0xff]   ;;  %v1155_v33 = vld [vmem:[%s1493_s1 + $0x248] ss:$12 sps:$4 sm:$0xff]  }
  0x23   :  { %693 = vmatpush2.bf16.msra.mxu0 %v1076_v34  ;;  %v1156_v34 = vld [vmem:[%s1493_s1 + $0x8] ss:$12 sps:$4 sm:$0xff]  }
  0x24   :  { %736 = vmatpush2.bf16.msra.mxu1 %v1077_v35  ;;  %694 = vmatprep.subr.bf16.mxu0 %v1078_v36  ;;  %v1157_v35 = vld [vmem:[%s1493_s1 + $0x188] ss:$12 sps:$4 sm:$0xff]  }
  0x25   :  { %737 = vmatprep.subr.bf16.mxu1 %v1080_v37 }
  0x27   :  { %695 = vmatpush2.bf16.msra.mxu0 %v1082_v38 }
  0x28   :  { %738 = vmatpush2.bf16.msra.mxu1 %v1083_v39  ;;  %696 = vmatprep.subr.bf16.mxu0 %v1084_v40 }
  0x29   :  { %739 = vmatprep.subr.bf16.mxu1 %v1086_v41 }
  0x2b   :  { %697 = vmatpush2.bf16.msra.mxu0 %v1088_v42 }
  0x2c   :  { %740 = vmatpush2.bf16.msra.mxu1 %v1089_v43  ;;  %698 = vmatprep.subr.bf16.mxu0 %v1090_v44 }
  0x2d   :  { %741 = vmatprep.subr.bf16.mxu1 %v1092_v45 }
  0x2f   :  { %699 = vmatpush2.bf16.msra.mxu0 %v1094_v46 }
  0x30   :  { %742 = vmatpush2.bf16.msra.mxu1 %v1095_v47  ;;  %700 = vmatprep.subr.bf16.mxu0 %v1096_v48 }
  0x31   :  { %743 = vmatprep.subr.bf16.mxu1 %v1098_v50 }
  0x33   :  { %701 = vmatpush2.bf16.msra.mxu0 %v1100_v52 }
  0x34   :  { %744 = vmatpush2.bf16.msra.mxu1 %v1101_v53  ;;  %702 = vmatprep.subr.bf16.mxu0 %v1102_v54 }
  0x35   :  { %745 = vmatprep.subr.bf16.mxu1 %v1104_v55 }
  0x37   :  { %703 = vmatpush2.bf16.msra.mxu0 %v1106_v56 }
  0x38   :  { %746 = vmatpush2.bf16.msra.mxu1 %v1107_v57  ;;  %704 = vmatprep.subr.bf16.mxu0 %v1108_v58 }
  0x39   :  { %747 = vmatprep.subr.bf16.mxu1 %v1110_v59 }
  0x3b   :  { %705 = vmatpush2.bf16.msra.mxu0 %v1112_v60 }
  0x3c   :  { %748 = vmatpush2.bf16.msra.mxu1 %v1113_v61  ;;  %706 = vmatprep.subr.bf16.mxu0 %v1114_v62 }
  0x3d   :  { %749 = vmatprep.subr.bf16.mxu1 %v1116_v63 }
  0x3f   :  { %707 = vmatpush2.bf16.msra.mxu0 %v1118_v0 }
  0x40   :  { %750 = vmatpush2.bf16.msra.mxu1 %v1119_v1  ;;  %980 = vmatprep.subr.bf16.mxu0 %v1126_v2 }
  0x41   :  { %1002 = vmatprep.subr.bf16.mxu1 %v1127_v5 }
  0x42   :  { %709 = vmatmul.mubr.bf16.vlgmr.msra.gmra.mxu0 %v1377_v3 }
  0x43   :  { %752 = vmatmul.mubr.bf16.vlgmr.msra.gmra.mxu1 %v1382_v4  ;;  %981 = vmatpush3.bf16.msra.mxu0 %v1128_v6 }
  0x44   :  { %1003 = vmatpush3.bf16.msra.mxu1 %v1129_v7  ;;  %982 = vmatprep.subr.bf16.mxu0 %v1130_v8 }
  0x45   :  { %1004 = vmatprep.subr.bf16.mxu1 %v1131_v9  ;;  %794 = vmatprep.mubr.bf16.mxu0 %v1122_v49 }
  0x46   :  { %835 = vmatprep.mubr.bf16.mxu1 %v1125_v51 }
  0x47   :  { %983 = vmatpush3.bf16.msra.mxu0 %v1132_v10 }
  0x48   :  { %1005 = vmatpush3.bf16.msra.mxu1 %v1133_v11  ;;  %984 = vmatprep.subr.bf16.mxu0 %v1134_v12 }
  0x49   :  { %1006 = vmatprep.subr.bf16.mxu1 %v1135_v13 }
  0x4b   :  { %985 = vmatpush3.bf16.msra.mxu0 %v1136_v14 }
  0x4c   :  { %1007 = vmatpush3.bf16.msra.mxu1 %v1137_v15  ;;  %986 = vmatprep.subr.bf16.mxu0 %v1138_v16 }
  0x4d   :  { %1008 = vmatprep.subr.bf16.mxu1 %v1139_v17 }
  0x4f   :  { %987 = vmatpush3.bf16.msra.mxu0 %v1140_v18 }
  0x50   :  { %1009 = vmatpush3.bf16.msra.mxu1 %v1141_v19  ;;  %988 = vmatprep.subr.bf16.mxu0 %v1142_v20 }
  0x51   :  { %1010 = vmatprep.subr.bf16.mxu1 %v1143_v21 }
  0x53   :  { %989 = vmatpush3.bf16.msra.mxu0 %v1144_v22 }
  0x54   :  { %1011 = vmatpush3.bf16.msra.mxu1 %v1145_v23  ;;  %990 = vmatprep.subr.bf16.mxu0 %v1146_v24 }
  0x55   :  { %1012 = vmatprep.subr.bf16.mxu1 %v1147_v25 }
  0x57   :  { %991 = vmatpush3.bf16.msra.mxu0 %v1148_v26 }
  0x58   :  { %1013 = vmatpush3.bf16.msra.mxu1 %v1149_v27  ;;  %992 = vmatprep.subr.bf16.mxu0 %v1150_v28 }
  0x59   :  { %1014 = vmatprep.subr.bf16.mxu1 %v1151_v29 }
  0x5b   :  { %993 = vmatpush3.bf16.msra.mxu0 %v1152_v30 }
  0x5c   :  { %1015 = vmatpush3.bf16.msra.mxu1 %v1153_v31  ;;  %994 = vmatprep.subr.bf16.mxu0 %v1154_v32 }
  0x5d   :  { %1016 = vmatprep.subr.bf16.mxu1 %v1155_v33 }
  0x5f   :  { %995 = vmatpush3.bf16.msra.mxu0 %v1156_v34 }
  0x60   :  { %1017 = vmatpush3.bf16.msra.mxu1 %v1157_v35 }
  0x62   :  { %795 = vmatmul.mubr.bf16.vlgmr.msra.gmra.mxu0 %v1377_v3 }
  0x63   :  { %836 = vmatmul.mubr.bf16.vlgmr.msra.gmra.mxu1 %v1382_v4 }
 0x102   :  { %v710_v36 = vpop.f32.mrf.mxu0 }
 0x103   :  { %v753_v37 = vpop.f32.mrf.mxu1 }
 0x104   :  { %v754_v38 = vadd.f32 %v753_v37, %v710_v36  ;;  %v712_v39 = vpop.f32.mrf.mxu0 }
 0x105   :  { %v755_v40 = vpop.f32.mrf.mxu1 }
 0x106   :  { %v756_v41 = vadd.f32 %v755_v40, %v712_v39  ;;  %v714_v42 = vpop.f32.mrf.mxu0 }
 0x107   :  { %v757_v43 = vpop.f32.mrf.mxu1 }
 0x108   :  { %v976_v44 = vpack.c.bf16 %v756_v41, %v754_v38  ;;  %v716_v45 = vpop.f32.mrf.mxu0  ;;  %v758_v47 = vadd.f32 %v757_v43, %v714_v42 }
 0x109   :  { %v759_v46 = vpop.f32.mrf.mxu1 }
 0x10a   :  { %864 = vst [vmem:[%s1495_s2] sm:$0xff] %v976_v44  ;;  %v760_v48 = vadd.f32 %v759_v46, %v716_v45 }
 0x10c   :  { %v978_v49 = vpack.c.bf16 %v760_v48, %v758_v47 }
 0x10e   :  { %866 = vst [vmem:[%s1495_s2 + $0xc] sm:$0xff] %v978_v49 }
 0x122   :  { %v996_v50 = vpop.f32.mrf.mxu0 }
 0x123   :  { %v1018_v51 = vpop.f32.mrf.mxu1 }
 0x124   :  { %v997_v52 = vpop.f32.mrf.mxu0 }
 0x125   :  { %v1019_v53 = vpop.f32.mrf.mxu1  ;;  %v998_v54 = vadd.f32 %v997_v52, %v996_v50 }
 0x126   :  { %v1020_v55 = vadd.f32 %v1019_v53, %v1018_v51  ;;  %v999_v56 = vpop.f32.mrf.mxu0 }
 0x127   :  { %v1021_v57 = vpop.f32.mrf.mxu1 }
 0x128   :  { %v838_v58 = vadd.f32 %v1020_v55, %v998_v54  ;;  %v1000_v59 = vpop.f32.mrf.mxu0 }
 0x129   :  { %v1022_v60 = vpop.f32.mrf.mxu1  ;;  %v1001_v62 = vadd.f32 %v1000_v59, %v999_v56 }
 0x12a   :  { %v977_v61 = vpack.c.bf16 %v838_v58, %v838_v58  ;;  %v1023_v63 = vadd.f32 %v1022_v60, %v1021_v57 }
 0x12c   :  { %865 = vst [vmem:[%s1495_s2 + $0x8] sm:$0xf] %v977_v61  ;;  %v841_v0 = vadd.f32 %v1023_v63, %v1001_v62 }
 0x12e   :  { %v979_v1 = vpack.c.bf16 %v841_v0, %v841_v0 }
 0x130   :  { %867 = vst [vmem:[%s1495_s2 + $0x14] sm:$0xf] %v979_v1 }

// kernel: hgfeature_forward.37
= control target key start
LH: loop header
LB: loop body
LE: loop exit
PB: predicated region body
PF: predicated region fallthrough
CT: control target
= control target key end

     0   :  { %v895_v36 = vmov 0.0   ;;  %vm896_vm0 = vmmov 0   ;;  %vm487_vm1 = vcmask 785408   ;;  %s1098_s1 = inlined_call_operand.vmem [shape: bf16[864,128], index: 1, kind: input, shape index: {}]   ;;  %s1099_s0 = inlined_call_operand.vmem [shape: bf16[16,864], index: 0, kind: input, shape index: {}]   ;;  %s1100_s2 = inlined_call_operand.vmem [shape: bf16[16,128], index: 2, kind: output, shape index: {}]  }
   0x1   :  { %v831_v0 = vld [vmem:[%s1098_s1 + $0x78] sm:$0xff]   ;;  %v835_v4 = vld [vmem:[%s1098_s1 + $0x70] sm:$0xff]   ;;  %v839_v8 = vld [vmem:[%s1098_s1 + $0x68] sm:$0xff]  }
   0x2   :  { %v832_v1 = vld [vmem:[%s1098_s1 + $0xf8] sm:$0xff]   ;;  %740 = vmatprep.subr.bf16.mxu0 %v831_v0  ;;  %v836_v5 = vld [vmem:[%s1098_s1 + $0xf0] sm:$0xff]   ;;  %v840_v9 = vld [vmem:[%s1098_s1 + $0xe8] sm:$0xff]  }
   0x3   :  { %v833_v2 = vld [vmem:[%s1098_s1 + $0x38] sm:$0xff]   ;;  %762 = vmatprep.subr.bf16.mxu1 %v832_v1  ;;  %v837_v6 = vld [vmem:[%s1098_s1 + $0x30] sm:$0xff]   ;;  %v841_v10 = vld [vmem:[%s1098_s1 + $0x28] sm:$0xff]  }
   0x4   :  { %v834_v3 = vld [vmem:[%s1098_s1 + $0xb8] sm:$0xff]   ;;  %741 = vmatpush3.bf16.msra.mxu0 %v833_v2  ;;  %v838_v7 = vld [vmem:[%s1098_s1 + $0xb0] sm:$0xff]   ;;  %v842_v11 = vld [vmem:[%s1098_s1 + $0xa8] sm:$0xff]  }
   0x5   :  { %763 = vmatpush3.bf16.msra.mxu1 %v834_v3  ;;  %742 = vmatprep.subr.bf16.mxu0 %v835_v4  ;;  %v843_v12 = vld [vmem:[%s1098_s1 + $0x60] sm:$0xff]   ;;  %v847_v16 = vld [vmem:[%s1098_s1 + $0x58] sm:$0xff]   ;;  %v851_v20 = vld [vmem:[%s1098_s1 + $0x50] sm:$0xff]  }
   0x6   :  { %764 = vmatprep.subr.bf16.mxu1 %v836_v5  ;;  %v844_v13 = vld [vmem:[%s1098_s1 + $0xe0] sm:$0xff]   ;;  %v848_v17 = vld [vmem:[%s1098_s1 + $0xd8] sm:$0xff]   ;;  %v852_v21 = vld [vmem:[%s1098_s1 + $0xd0] sm:$0xff]  }
   0x7   :  { %v845_v14 = vld [vmem:[%s1098_s1 + $0x20] sm:$0xff]   ;;  %v849_v18 = vld [vmem:[%s1098_s1 + $0x18] sm:$0xff]   ;;  %v853_v22 = vld [vmem:[%s1098_s1 + $0x10] sm:$0xff]  }
   0x8   :  { %743 = vmatpush3.bf16.msra.mxu0 %v837_v6  ;;  %v846_v15 = vld [vmem:[%s1098_s1 + $0xa0] sm:$0xff]   ;;  %v850_v19 = vld [vmem:[%s1098_s1 + $0x98] sm:$0xff]   ;;  %v854_v23 = vld [vmem:[%s1098_s1 + $0x90] sm:$0xff]  }
   0x9   :  { %765 = vmatpush3.bf16.msra.mxu1 %v838_v7  ;;  %744 = vmatprep.subr.bf16.mxu0 %v839_v8  ;;  %v855_v24 = vld [vmem:[%s1098_s1 + $0x48] sm:$0xff]   ;;  %v859_v28 = vld [vmem:[%s1098_s1 + $0x40] sm:$0xff]   ;;  %v869_v37 = vld [vmem:[%s1098_s1 + $0x178] sm:$0xff]  }
   0xa   :  { %766 = vmatprep.subr.bf16.mxu1 %v840_v9  ;;  %v856_v25 = vld [vmem:[%s1098_s1 + $0xc8] sm:$0xff]   ;;  %v860_v29 = vld [vmem:[%s1098_s1 + $0xc0] sm:$0xff]   ;;  %v870_v38 = vld [vmem:[%s1098_s1 + $0x138] sm:$0xff]  }
   0xb   :  { %v857_v26 = vld [vmem:[%s1098_s1 + $0x8] sm:$0xff]   ;;  %v861_v30 = vld [vmem:[%s1098_s1] sm:$0xff]   ;;  %v871_v39 = vld [vmem:[%s1098_s1 + $0x170] sm:$0xff]  }
   0xc   :  { %745 = vmatpush3.bf16.msra.mxu0 %v841_v10  ;;  %v858_v27 = vld [vmem:[%s1098_s1 + $0x88] sm:$0xff]   ;;  %v862_v31 = vld [vmem:[%s1098_s1 + $0x80] sm:$0xff]   ;;  %v872_v40 = vld [vmem:[%s1098_s1 + $0x130] sm:$0xff]  }
   0xd   :  { %767 = vmatpush3.bf16.msra.mxu1 %v842_v11  ;;  %746 = vmatprep.subr.bf16.mxu0 %v843_v12  ;;  %v863_v32 = vld [vmem:[%s1099_s0] ss:$28 sps:$4 sm:$0xff]   ;;  %v866_v34 = vld [vmem:[%s1099_s0 + $0x8] ss:$28 sps:$4 sm:$0xff]   ;;  %v882_v50 = vld [vmem:[%s1098_s1 + $0x150] sm:$0xff]  }
   0xe   :  { %768 = vmatprep.subr.bf16.mxu1 %v844_v13  ;;  %v865_v33 = vld [vmem:[%s1099_s0 + $0x4] ss:$28 sps:$4 sm:$0xff]   ;;  %v868_v35 = vld [vmem:[%s1099_s0 + $0xc] ss:$28 sps:$4 sm:$0xff]   ;;  %v879_v47 = vld [vmem:[%s1098_s1 + $0x158] sm:$0xff]  }
   0xf   :  { %523 = vmatprep.mubr.bf16.mxu0 %v865_v33  ;;  %564 = vmatprep.mubr.bf16.mxu1 %v868_v35  ;;  %v873_v41 = vld [vmem:[%s1098_s1 + $0x168] sm:$0xff]   ;;  %v876_v44 = vld [vmem:[%s1098_s1 + $0x160] sm:$0xff]   ;;  %v881_v48 = vld [vmem:[%s1098_s1 + $0x198] sm:$0xff]  }
  0x10   :  { %747 = vmatpush3.bf16.msra.mxu0 %v845_v14  ;;  %v875_v42 = vld [vmem:[%s1098_s1 + $0x1a8] sm:$0xff]   ;;  %v878_v45 = vld [vmem:[%s1098_s1 + $0x1a0] sm:$0xff]   ;;  %v880_v49 = vld [vmem:[%s1098_s1 + $0x118] sm:$0xff]  }
  0x11   :  { %769 = vmatpush3.bf16.msra.mxu1 %v846_v15  ;;  %748 = vmatprep.subr.bf16.mxu0 %v847_v16  ;;  %v874_v43 = vld [vmem:[%s1098_s1 + $0x128] sm:$0xff]   ;;  %v877_v46 = vld [vmem:[%s1098_s1 + $0x120] sm:$0xff]   ;;  %v884_v51 = vld [vmem:[%s1098_s1 + $0x190] sm:$0xff]  }
  0x12   :  { %770 = vmatprep.subr.bf16.mxu1 %v848_v17  ;;  %v883_v52 = vld [vmem:[%s1098_s1 + $0x110] sm:$0xff]   ;;  %v885_v53 = vld [vmem:[%s1098_s1 + $0x148] sm:$0xff]   ;;  %v888_v57 = vld [vmem:[%s1098_s1 + $0x140] sm:$0xff]  }
  0x13   :  { %v887_v54 = vld [vmem:[%s1098_s1 + $0x188] sm:$0xff]   ;;  %v893_v55 = vld [vmem:[%s1099_s0 + $0x14] ss:$28 sps:$4 sm:$0xff]   ;;  %v890_v58 = vld [vmem:[%s1098_s1 + $0x180] sm:$0xff]  }
  0x14   :  { %749 = vmatpush3.bf16.msra.mxu0 %v849_v18  ;;  %v886_v56 = vld [vmem:[%s1098_s1 + $0x108] sm:$0xff]   ;;  %v889_v59 = vld [vmem:[%s1098_s1 + $0x100] sm:$0xff]   ;;  %v894_v60 = vld [vmem:[%s1099_s0 + $0x18] ss:$28 sps:$4 sm:$0xff]  }
  0x15   :  { %771 = vmatpush3.bf16.msra.mxu1 %v850_v19  ;;  %750 = vmatprep.subr.bf16.mxu0 %v851_v20  ;;  %v891_v61 = vld [vmem:[%s1099_s0 + $0x10] ss:$28 sps:$4 sm:$0xff]  }
  0x16   :  { %772 = vmatprep.subr.bf16.mxu1 %v852_v21 }
  0x18   :  { %751 = vmatpush3.bf16.msra.mxu0 %v853_v22 }
  0x19   :  { %773 = vmatpush3.bf16.msra.mxu1 %v854_v23  ;;  %752 = vmatprep.subr.bf16.mxu0 %v855_v24 }
  0x1a   :  { %774 = vmatprep.subr.bf16.mxu1 %v856_v25 }
  0x1c   :  { %753 = vmatpush3.bf16.msra.mxu0 %v857_v26 }
  0x1d   :  { %775 = vmatpush3.bf16.msra.mxu1 %v858_v27  ;;  %754 = vmatprep.subr.bf16.mxu0 %v859_v28 }
  0x1e   :  { %776 = vmatprep.subr.bf16.mxu1 %v860_v29 }
  0x20   :  { %755 = vmatpush3.bf16.msra.mxu0 %v861_v30 }
  0x21   :  { %777 = vmatpush3.bf16.msra.mxu1 %v862_v31  ;;  %784 = vmatprep.subr.bf16.mxu0 %v869_v37 }
  0x22   :  { %813 = vmatprep.subr.bf16.mxu1 %v895_v36 }
  0x23   :  { %524 = vmatmul.mubr.bf16.vlgmr.msra.gmra.mxu0 %v863_v32 }
  0x24   :  { %565 = vmatmul.mubr.bf16.vlgmr.msra.gmra.mxu1 %v866_v34  ;;  %785 = vmatpush3.bf16.msra.mxu0 %v870_v38 }
  0x25   :  { %825 = vmatprep.mubr.msk.bf16.mxu1 %vm896_vm0, %v895_v36  ;;  %786 = vmatprep.subr.bf16.mxu0 %v871_v39 }
  0x26   :  { %814 = vmatpush3.bf16.msra.mxu1 %v875_v42  ;;  %605 = vmatprep.mubr.bf16.mxu0 %v893_v55 }
  0x27   :  { %815 = vmatprep.subr.bf16.mxu1 %v895_v36 }
  0x28   :  { %787 = vmatpush3.bf16.msra.mxu0 %v872_v40 }
  0x29   :  { %788 = vmatprep.subr.bf16.mxu0 %v873_v41 }
  0x2a   :  { %816 = vmatpush3.bf16.msra.mxu1 %v878_v45 }
  0x2b   :  { %817 = vmatprep.subr.bf16.mxu1 %v895_v36 }
  0x2c   :  { %789 = vmatpush3.bf16.msra.mxu0 %v874_v43 }
  0x2d   :  { %790 = vmatprep.subr.bf16.mxu0 %v876_v44 }
  0x2e   :  { %818 = vmatpush3.bf16.msra.mxu1 %v881_v48 }
  0x2f   :  { %819 = vmatprep.subr.bf16.mxu1 %v895_v36 }
  0x30   :  { %791 = vmatpush3.bf16.msra.mxu0 %v877_v46 }
  0x31   :  { %792 = vmatprep.subr.bf16.mxu0 %v879_v47 }
  0x32   :  { %820 = vmatpush3.bf16.msra.mxu1 %v884_v51 }
  0x33   :  { %821 = vmatprep.subr.bf16.mxu1 %v895_v36 }
  0x34   :  { %793 = vmatpush3.bf16.msra.mxu0 %v880_v49 }
  0x35   :  { %794 = vmatprep.subr.bf16.mxu0 %v882_v50 }
  0x36   :  { %822 = vmatpush3.bf16.msra.mxu1 %v887_v54 }
  0x37   :  { %823 = vmatprep.subr.bf16.mxu1 %v895_v36 }
  0x38   :  { %795 = vmatpush3.bf16.msra.mxu0 %v883_v52 }
  0x39   :  { %796 = vmatprep.subr.bf16.mxu0 %v885_v53 }
  0x3a   :  { %824 = vmatpush3.bf16.msra.mxu1 %v890_v58 }
  0x3c   :  { %797 = vmatpush3.bf16.msra.mxu0 %v886_v56 }
  0x3d   :  { %798 = vmatprep.subr.bf16.mxu0 %v888_v57  ;;  %826 = vmatmul.mubr.msk.bf16.vlgmr.msra.gmra.mxu1 %vm487_vm1, %v894_v60 }
  0x40   :  { %799 = vmatpush3.bf16.msra.mxu0 %v889_v59 }
  0x43   :  { %606 = vmatmul.mubr.bf16.vlgmr.msra.gmra.mxu0 %v891_v61 }
  0xe3   :  { %v756_v63 = vpop.f32.mrf.mxu0 }
  0xe4   :  { %v778_v62 = vpop.f32.mrf.mxu1 }
  0xe5   :  { %v757_v1 = vpop.f32.mrf.mxu0 }
  0xe6   :  { %v779_v0 = vpop.f32.mrf.mxu1  ;;  %v758_v9 = vadd.f32 %v757_v1, %v756_v63 }
  0xe7   :  { %v759_v3 = vpop.f32.mrf.mxu0  ;;  %v780_v10 = vadd.f32 %v779_v0, %v778_v62 }
  0xe8   :  { %v781_v2 = vpop.f32.mrf.mxu1 }
  0xe9   :  { %v760_v6 = vpop.f32.mrf.mxu0  ;;  %v567_v18 = vadd.f32 %v780_v10, %v758_v9 }
  0xea   :  { %v782_v4 = vpop.f32.mrf.mxu1  ;;  %v761_v13 = vadd.f32 %v760_v6, %v759_v3 }
  0xeb   :  { %v783_v14 = vadd.f32 %v782_v4, %v781_v2 }
  0xed   :  { %v570_v20 = vadd.f32 %v783_v14, %v761_v13 }
  0xfd   :  { %v648_v5 = vpop.f32.mrf.mxu1 }
  0xff   :  { %v827_v7 = vpop.f32.mrf.mxu1 }
 0x101   :  { %v651_v11 = vpop.f32.mrf.mxu1 }
 0x103   :  { %v800_v8 = vpop.f32.mrf.mxu0  ;;  %v828_v16 = vpop.f32.mrf.mxu1 }
 0x105   :  { %v801_v12 = vpop.f32.mrf.mxu0 }
 0x106   :  { %v802_v15 = vadd.f32 %v801_v12, %v800_v8 }
 0x107   :  { %v803_v17 = vpop.f32.mrf.mxu0 }
 0x108   :  { %v608_v21 = vadd.f32 %v802_v15, %v567_v18 }
 0x109   :  { %v804_v19 = vpop.f32.mrf.mxu0 }
 0x10a   :  { %v805_v22 = vadd.f32 %v804_v19, %v803_v17  ;;  %v649_v24 = vadd.f32 %v648_v5, %v608_v21 }
 0x10c   :  { %v611_v23 = vadd.f32 %v805_v22, %v570_v20 }
 0x10e   :  { %v652_v25 = vadd.f32 %v651_v11, %v611_v23 }
 0x110   :  { %v738_v26 = vpack.c.bf16 %v652_v25, %v649_v24 }
 0x112   :  { %739 = vst [vmem:[%s1100_s2] sm:$0xff] %v738_v26  }

// kernel: hgfeature_forward.40
= control target key start
LH: loop header
LB: loop body
LE: loop exit
PB: predicated region body
PF: predicated region fallthrough
CT: control target
= control target key end

     0   :  { %v556_v1 = vmov 0   ;;  %s731_s1 = inlined_call_operand.vmem [shape: bf16[384,256], index: 1, kind: input, shape index: {}]   ;;  %s732_s0 = inlined_call_operand.vmem [shape: bf16[16,384], index: 0, kind: input, shape index: {}]   ;;  %s733_s2 = inlined_call_operand.vmem [shape: bf16[16,256], index: 2, kind: output, shape index: {}]  }
   0x1   :  { %v480_v0 = vld [vmem:[%s731_s1 + $0x74] ss:$8 sps:$4 sm:$0xff]   ;;  %395 = vmatprep.mubr.bf16.mxu1 %v556_v1  ;;  %v482_v2 = vld [vmem:[%s731_s1 + $0x70] ss:$8 sps:$4 sm:$0xff]   ;;  %v483_v3 = vld [vmem:[%s731_s1 + $0x64] ss:$8 sps:$4 sm:$0xff]  }
   0x2   :  { %320 = vmatprep.subr.bf16.mxu0 %v480_v0  ;;  %v485_v4 = vld [vmem:[%s731_s1 + $0x60] ss:$8 sps:$4 sm:$0xff]   ;;  %v486_v5 = vld [vmem:[%s731_s1 + $0x54] ss:$8 sps:$4 sm:$0xff]   ;;  %v488_v6 = vld [vmem:[%s731_s1 + $0x50] ss:$8 sps:$4 sm:$0xff]  }
   0x3   :  { %321 = vmatpush1.bf16.msra.mxu0 %v482_v2  ;;  %v489_v7 = vld [vmem:[%s731_s1 + $0x44] ss:$8 sps:$4 sm:$0xff]   ;;  %v501_v8 = vld [vmem:[%s731_s1 + $0x174] ss:$8 sps:$4 sm:$0xff]   ;;  %v503_v9 = vld [vmem:[%s731_s1 + $0x170] ss:$8 sps:$4 sm:$0xff]  }
   0x4   :  { %322 = vmatprep.subr.bf16.mxu0 %v483_v3  ;;  %v491_v10 = vld [vmem:[%s731_s1 + $0x40] ss:$8 sps:$4 sm:$0xff]   ;;  %v492_v11 = vld [vmem:[%s731_s1 + $0x34] ss:$8 sps:$4 sm:$0xff]   ;;  %363 = vmatprep.subr.bf16.mxu1 %v501_v8  ;;  %v507_v12 = vld [vmem:[%s731_s1 + $0x164] ss:$8 sps:$4 sm:$0xff]  }
   0x5   :  { %364 = vmatpush1.bf16.msra.mxu1 %v503_v9  ;;  %v509_v13 = vld [vmem:[%s731_s1 + $0x160] ss:$8 sps:$4 sm:$0xff]   ;;  %v494_v14 = vld [vmem:[%s731_s1 + $0x30] ss:$8 sps:$4 sm:$0xff]   ;;  %v513_v15 = vld [vmem:[%s731_s1 + $0x154] ss:$8 sps:$4 sm:$0xff]  }
   0x6   :  { %365 = vmatprep.subr.bf16.mxu1 %v507_v12  ;;  %v495_v16 = vld [vmem:[%s731_s1 + $0x24] ss:$8 sps:$4 sm:$0xff]   ;;  %v515_v17 = vld [vmem:[%s731_s1 + $0x150] ss:$8 sps:$4 sm:$0xff]   ;;  %v497_v19 = vld [vmem:[%s731_s1 + $0x20] ss:$8 sps:$4 sm:$0xff]  }
   0x7   :  { %323 = vmatpush1.bf16.msra.mxu0 %v485_v4  ;;  %v519_v18 = vld [vmem:[%s731_s1 + $0x144] ss:$8 sps:$4 sm:$0xff]   ;;  %v498_v20 = vld [vmem:[%s731_s1 + $0x14] ss:$8 sps:$4 sm:$0xff]   ;;  %v521_v21 = vld [vmem:[%s731_s1 + $0x140] ss:$8 sps:$4 sm:$0xff]  }
   0x8   :  { %324 = vmatprep.subr.bf16.mxu0 %v486_v5  ;;  %v525_v22 = vld [vmem:[%s731_s1 + $0x134] ss:$8 sps:$4 sm:$0xff]   ;;  %v500_v23 = vld [vmem:[%s731_s1 + $0x10] ss:$8 sps:$4 sm:$0xff]   ;;  %v504_v24 = vld [vmem:[%s731_s1 + $0x4] ss:$8 sps:$4 sm:$0xff]  }
   0x9   :  { %366 = vmatpush1.bf16.msra.mxu1 %v509_v13  ;;  %v527_v25 = vld [vmem:[%s731_s1 + $0x130] ss:$8 sps:$4 sm:$0xff]   ;;  %v531_v26 = vld [vmem:[%s731_s1 + $0x124] ss:$8 sps:$4 sm:$0xff]   ;;  %v506_v27 = vld [vmem:[%s731_s1] ss:$8 sps:$4 sm:$0xff]  }
   0xa   :  { %367 = vmatprep.subr.bf16.mxu1 %v513_v15  ;;  %v510_v28 = vld [vmem:[%s731_s1 + $0xf4] ss:$8 sps:$4 sm:$0xff]   ;;  %v533_v29 = vld [vmem:[%s731_s1 + $0x120] ss:$8 sps:$4 sm:$0xff]   ;;  %v512_v31 = vld [vmem:[%s731_s1 + $0xf0] ss:$8 sps:$4 sm:$0xff]  }
   0xb   :  { %325 = vmatpush1.bf16.msra.mxu0 %v488_v6  ;;  %v537_v30 = vld [vmem:[%s731_s1 + $0x114] ss:$8 sps:$4 sm:$0xff]   ;;  %v516_v32 = vld [vmem:[%s731_s1 + $0xe4] ss:$8 sps:$4 sm:$0xff]   ;;  %v539_v33 = vld [vmem:[%s731_s1 + $0x110] ss:$8 sps:$4 sm:$0xff]  }
   0xc   :  { %326 = vmatprep.subr.bf16.mxu0 %v489_v7  ;;  %v543_v34 = vld [vmem:[%s731_s1 + $0x104] ss:$8 sps:$4 sm:$0xff]   ;;  %v518_v36 = vld [vmem:[%s731_s1 + $0xe0] ss:$8 sps:$4 sm:$0xff]   ;;  %v522_v37 = vld [vmem:[%s731_s1 + $0xd4] ss:$8 sps:$4 sm:$0xff]  }
   0xd   :  { %368 = vmatpush1.bf16.msra.mxu1 %v515_v17  ;;  %v555_v35 = vld [vmem:[%s732_s0 + $0x4] ss:$12 sps:$4 sm:$0xff]   ;;  %v545_v38 = vld [vmem:[%s731_s1 + $0x100] ss:$8 sps:$4 sm:$0xff]   ;;  %v534_v43 = vld [vmem:[%s731_s1 + $0xb4] ss:$8 sps:$4 sm:$0xff]  }
   0xe   :  { %369 = vmatprep.subr.bf16.mxu1 %v519_v18  ;;  %352 = vmatprep.mubr.bf16.mxu0 %v555_v35  ;;  %v524_v39 = vld [vmem:[%s731_s1 + $0xd0] ss:$8 sps:$4 sm:$0xff]   ;;  %v528_v40 = vld [vmem:[%s731_s1 + $0xc4] ss:$8 sps:$4 sm:$0xff]   ;;  %v549_v41 = vld [vmem:[%s732_s0 + $0x8] ss:$12 sps:$4 sm:$0xff]  }
   0xf   :  { %327 = vmatpush1.bf16.msra.mxu0 %v491_v10  ;;  %v530_v42 = vld [vmem:[%s731_s1 + $0xc0] ss:$8 sps:$4 sm:$0xff]   ;;  %v536_v44 = vld [vmem:[%s731_s1 + $0xb0] ss:$8 sps:$4 sm:$0xff]   ;;  %v540_v45 = vld [vmem:[%s731_s1 + $0xa4] ss:$8 sps:$4 sm:$0xff]  }
  0x10   :  { %328 = vmatprep.subr.bf16.mxu0 %v492_v11  ;;  %v542_v46 = vld [vmem:[%s731_s1 + $0xa0] ss:$8 sps:$4 sm:$0xff]   ;;  %v546_v47 = vld [vmem:[%s731_s1 + $0x94] ss:$8 sps:$4 sm:$0xff]   ;;  %v548_v48 = vld [vmem:[%s731_s1 + $0x90] ss:$8 sps:$4 sm:$0xff]  }
  0x11   :  { %370 = vmatpush1.bf16.msra.mxu1 %v521_v21  ;;  %v550_v49 = vld [vmem:[%s731_s1 + $0x84] ss:$8 sps:$4 sm:$0xff]   ;;  %v552_v50 = vld [vmem:[%s731_s1 + $0x80] ss:$8 sps:$4 sm:$0xff]  }
  0x12   :  { %371 = vmatprep.subr.bf16.mxu1 %v525_v22  ;;  %v553_v51 = vld [vmem:[%s732_s0] ss:$12 sps:$4 sm:$0xff]  }
  0x13   :  { %329 = vmatpush1.bf16.msra.mxu0 %v494_v14 }
  0x14   :  { %330 = vmatprep.subr.bf16.mxu0 %v495_v16 }
  0x15   :  { %372 = vmatpush1.bf16.msra.mxu1 %v527_v25 }
  0x16   :  { %373 = vmatprep.subr.bf16.mxu1 %v531_v26 }
  0x17   :  { %331 = vmatpush1.bf16.msra.mxu0 %v497_v19 }
  0x18   :  { %332 = vmatprep.subr.bf16.mxu0 %v498_v20 }
  0x19   :  { %374 = vmatpush1.bf16.msra.mxu1 %v533_v29 }
  0x1a   :  { %375 = vmatprep.subr.bf16.mxu1 %v537_v30 }
  0x1b   :  { %333 = vmatpush1.bf16.msra.mxu0 %v500_v23 }
  0x1c   :  { %334 = vmatprep.subr.bf16.mxu0 %v504_v24 }
  0x1d   :  { %376 = vmatpush1.bf16.msra.mxu1 %v539_v33 }
  0x1e   :  { %377 = vmatprep.subr.bf16.mxu1 %v543_v34 }
  0x1f   :  { %335 = vmatpush1.bf16.msra.mxu0 %v506_v27 }
  0x20   :  { %336 = vmatprep.subr.bf16.mxu0 %v510_v28 }
  0x21   :  { %378 = vmatpush1.bf16.msra.mxu1 %v545_v38 }
  0x23   :  { %337 = vmatpush2.bf16.msra.mxu0 %v512_v31 }
  0x24   :  { %338 = vmatprep.subr.bf16.mxu0 %v516_v32  ;;  %396 = vmatmul.mubr.bf16.vlgmr.msra.gmra.mxu1 %v549_v41 }
  0x27   :  { %339 = vmatpush2.bf16.msra.mxu0 %v518_v36 }
  0x28   :  { %340 = vmatprep.subr.bf16.mxu0 %v522_v37 }
  0x2b   :  { %341 = vmatpush2.bf16.msra.mxu0 %v524_v39 }
  0x2c   :  { %342 = vmatprep.subr.bf16.mxu0 %v528_v40 }
  0x2f   :  { %343 = vmatpush2.bf16.msra.mxu0 %v530_v42 }
  0x30   :  { %344 = vmatprep.subr.bf16.mxu0 %v534_v43 }
  0x33   :  { %345 = vmatpush2.bf16.msra.mxu0 %v536_v44 }
  0x34   :  { %346 = vmatprep.subr.bf16.mxu0 %v540_v45 }
  0x37   :  { %347 = vmatpush2.bf16.msra.mxu0 %v542_v46 }
  0x38   :  { %348 = vmatprep.subr.bf16.mxu0 %v546_v47 }
  0x3b   :  { %349 = vmatpush2.bf16.msra.mxu0 %v548_v48 }
  0x3c   :  { %350 = vmatprep.subr.bf16.mxu0 %v550_v49 }
  0x3f   :  { %351 = vmatpush2.bf16.msra.mxu0 %v552_v50 }
  0x42   :  { %353 = vmatmul.mubr.bf16.vlgmr.msra.gmra.mxu0 %v553_v51 }
  0xe4   :  { %v397_v52 = vpop.f32.mrf.mxu1 }
  0xe6   :  { %v399_v53 = vpop.f32.mrf.mxu1 }
  0xe8   :  { %v401_v55 = vpop.f32.mrf.mxu1 }
  0xea   :  { %v403_v61 = vpop.f32.mrf.mxu1 }
 0x102   :  { %v354_v54 = vpop.f32.mrf.mxu0 }
 0x103   :  { %v398_v57 = vadd.f32 %v397_v52, %v354_v54 }
 0x104   :  { %v356_v56 = vpop.f32.mrf.mxu0 }
 0x105   :  { %v400_v58 = vadd.f32 %v399_v53, %v356_v56 }
 0x106   :  { %v358_v59 = vpop.f32.mrf.mxu0 }
 0x107   :  { %v477_v60 = vpack.c.bf16 %v400_v58, %v398_v57  ;;  %v402_v63 = vadd.f32 %v401_v55, %v358_v59 }
 0x108   :  { %v360_v62 = vpop.f32.mrf.mxu0 }
 0x109   :  { %418 = vst [vmem:[%s733_s2] sm:$0xff] %v477_v60  ;;  %v404_v0 = vadd.f32 %v403_v61, %v360_v62 }
 0x10b   :  { %v478_v1 = vpack.c.bf16 %v404_v0, %v402_v63 }
 0x10d   :  { %419 = vst [vmem:[%s733_s2 + $0x8] sm:$0xff] %v478_v1 }

// kernel: hgfeature_forward.39
= control target key start
LH: loop header
LB: loop body
LE: loop exit
PB: predicated region body
PF: predicated region fallthrough
CT: control target
= control target key end

     0   :  { %v1754_v36 = vmov 0.0   ;;  %vm1755_vm0 = vmmov 0   ;;  %vm609_vm1 = vcmask 785408   ;;  %vm1311_vm2 = vcmask 781312   ;;  %s2171_s3 = inlined_call_operand.vmem [shape: bf16[864,96], index: 3, kind: input, shape index: {}]   ;;  %s2172_s1 = inlined_call_operand.vmem [shape: bf16[16,864], index: 1, kind: input, shape index: {}]   ;;  %s2173_s2 = inlined_call_operand.vmem [shape: bf16[864,96], index: 2, kind: input, shape index: {}]   ;;  %s2174_s0 = inlined_call_operand.vmem [shape: bf16[16,864], index: 0, kind: input, shape index: {}]   ;;  %s2175_s4 = inlined_call_operand.vmem [shape: bf16[16,96], index: 4, kind: output, shape index: {}]  }
   0x1   :  { %v1626_v0 = vld [vmem:[%s2171_s3 + $0x78] sm:$0xff]   ;;  %v1630_v4 = vld [vmem:[%s2171_s3 + $0x70] sm:$0xff]   ;;  %v1634_v8 = vld [vmem:[%s2171_s3 + $0x68] sm:$0xff]  }
   0x2   :  { %v1627_v1 = vld [vmem:[%s2171_s3 + $0xf8] sm:$0xff]   ;;  %1446 = vmatprep.subr.bf16.mxu0 %v1626_v0  ;;  %v1631_v5 = vld [vmem:[%s2171_s3 + $0xf0] sm:$0xff]   ;;  %v1635_v9 = vld [vmem:[%s2171_s3 + $0xe8] sm:$0xff]  }
   0x3   :  { %v1628_v2 = vld [vmem:[%s2171_s3 + $0x38] sm:$0xff]   ;;  %1468 = vmatprep.subr.bf16.mxu1 %v1627_v1  ;;  %v1632_v6 = vld [vmem:[%s2171_s3 + $0x30] sm:$0xff]   ;;  %v1636_v10 = vld [vmem:[%s2171_s3 + $0x28] sm:$0xff]  }
   0x4   :  { %v1629_v3 = vld [vmem:[%s2171_s3 + $0xb8] sm:$0xff]   ;;  %1447 = vmatpush3.bf16.msra.mxu0 %v1628_v2  ;;  %v1633_v7 = vld [vmem:[%s2171_s3 + $0xb0] sm:$0xff]   ;;  %v1637_v11 = vld [vmem:[%s2171_s3 + $0xa8] sm:$0xff]  }
   0x5   :  { %1469 = vmatpush3.bf16.msra.mxu1 %v1629_v3  ;;  %1448 = vmatprep.subr.bf16.mxu0 %v1630_v4  ;;  %v1638_v12 = vld [vmem:[%s2171_s3 + $0x60] sm:$0xff]   ;;  %v1642_v16 = vld [vmem:[%s2171_s3 + $0x58] sm:$0xff]   ;;  %v1646_v20 = vld [vmem:[%s2171_s3 + $0x50] sm:$0xff]  }
   0x6   :  { %1470 = vmatprep.subr.bf16.mxu1 %v1631_v5  ;;  %v1639_v13 = vld [vmem:[%s2171_s3 + $0xe0] sm:$0xff]   ;;  %v1643_v17 = vld [vmem:[%s2171_s3 + $0xd8] sm:$0xff]   ;;  %v1647_v21 = vld [vmem:[%s2171_s3 + $0xd0] sm:$0xff]  }
   0x7   :  { %v1640_v14 = vld [vmem:[%s2171_s3 + $0x20] sm:$0xff]   ;;  %v1644_v18 = vld [vmem:[%s2171_s3 + $0x18] sm:$0xff]   ;;  %v1648_v22 = vld [vmem:[%s2171_s3 + $0x10] sm:$0xff]  }
   0x8   :  { %1449 = vmatpush3.bf16.msra.mxu0 %v1632_v6  ;;  %v1641_v15 = vld [vmem:[%s2171_s3 + $0xa0] sm:$0xff]   ;;  %v1645_v19 = vld [vmem:[%s2171_s3 + $0x98] sm:$0xff]   ;;  %v1649_v23 = vld [vmem:[%s2171_s3 + $0x90] sm:$0xff]  }
   0x9   :  { %1471 = vmatpush3.bf16.msra.mxu1 %v1633_v7  ;;  %1450 = vmatprep.subr.bf16.mxu0 %v1634_v8  ;;  %v1650_v24 = vld [vmem:[%s2171_s3 + $0x48] sm:$0xff]   ;;  %v1654_v28 = vld [vmem:[%s2171_s3 + $0x40] sm:$0xff]   ;;  %v1664_v37 = vld [vmem:[%s2171_s3 + $0x178] sm:$0xff]  }
   0xa   :  { %1472 = vmatprep.subr.bf16.mxu1 %v1635_v9  ;;  %v1651_v25 = vld [vmem:[%s2171_s3 + $0xc8] sm:$0xff]   ;;  %v1655_v29 = vld [vmem:[%s2171_s3 + $0xc0] sm:$0xff]   ;;  %v1665_v38 = vld [vmem:[%s2171_s3 + $0x138] sm:$0xff]  }
   0xb   :  { %v1652_v26 = vld [vmem:[%s2171_s3 + $0x8] sm:$0xff]   ;;  %v1656_v30 = vld [vmem:[%s2171_s3] sm:$0xff]   ;;  %v1667_v40 = vld [vmem:[%s2171_s3 + $0x170] sm:$0xff]  }
   0xc   :  { %1451 = vmatpush3.bf16.msra.mxu0 %v1636_v10  ;;  %v1653_v27 = vld [vmem:[%s2171_s3 + $0x88] sm:$0xff]   ;;  %v1657_v31 = vld [vmem:[%s2171_s3 + $0x80] sm:$0xff]   ;;  %v1668_v41 = vld [vmem:[%s2171_s3 + $0x130] sm:$0xff]  }
   0xd   :  { %1473 = vmatpush3.bf16.msra.mxu1 %v1637_v11  ;;  %1452 = vmatprep.subr.bf16.mxu0 %v1638_v12  ;;  %v1658_v32 = vld [vmem:[%s2172_s1] ss:$28 sps:$4 sm:$0xff]   ;;  %v1661_v34 = vld [vmem:[%s2172_s1 + $0x8] ss:$28 sps:$4 sm:$0xff]   ;;  %v1675_v48 = vld [vmem:[%s2171_s3 + $0x190] sm:$0xff]  }
   0xe   :  { %1474 = vmatprep.subr.bf16.mxu1 %v1639_v13  ;;  %v1660_v33 = vld [vmem:[%s2172_s1 + $0x4] ss:$28 sps:$4 sm:$0xff]   ;;  %v1663_v35 = vld [vmem:[%s2172_s1 + $0xc] ss:$28 sps:$4 sm:$0xff]   ;;  %v1672_v45 = vld [vmem:[%s2171_s3 + $0x198] sm:$0xff]  }
   0xf   :  { %645 = vmatprep.mubr.bf16.mxu0 %v1660_v33  ;;  %686 = vmatprep.mubr.bf16.mxu1 %v1663_v35  ;;  %v1666_v39 = vld [vmem:[%s2171_s3 + $0x1a8] sm:$0xff]   ;;  %v1669_v42 = vld [vmem:[%s2171_s3 + $0x1a0] sm:$0xff]   ;;  %v1676_v49 = vld [vmem:[%s2171_s3 + $0x158] sm:$0xff]  }
  0x10   :  { %1453 = vmatpush3.bf16.msra.mxu0 %v1640_v14  ;;  %v1670_v43 = vld [vmem:[%s2171_s3 + $0x168] sm:$0xff]   ;;  %v1673_v46 = vld [vmem:[%s2171_s3 + $0x160] sm:$0xff]   ;;  %v1677_v50 = vld [vmem:[%s2171_s3 + $0x118] sm:$0xff]  }
  0x11   :  { %1475 = vmatpush3.bf16.msra.mxu1 %v1641_v15  ;;  %1454 = vmatprep.subr.bf16.mxu0 %v1642_v16  ;;  %v1671_v44 = vld [vmem:[%s2171_s3 + $0x128] sm:$0xff]   ;;  %v1674_v47 = vld [vmem:[%s2171_s3 + $0x120] sm:$0xff]   ;;  %v1679_v52 = vld [vmem:[%s2171_s3 + $0x150] sm:$0xff]  }
  0x12   :  { %1476 = vmatprep.subr.bf16.mxu1 %v1643_v17  ;;  %v1678_v51 = vld [vmem:[%s2171_s3 + $0x188] sm:$0xff]   ;;  %v1680_v53 = vld [vmem:[%s2171_s3 + $0x110] sm:$0xff]   ;;  %v1681_v54 = vld [vmem:[%s2171_s3 + $0x180] sm:$0xff]  }
  0x13   :  { %v1682_v55 = vld [vmem:[%s2171_s3 + $0x148] sm:$0xff]   ;;  %v1683_v56 = vld [vmem:[%s2172_s1 + $0x18] ss:$28 sps:$4 sm:$0xff]   ;;  %v1687_v60 = vld [vmem:[%s2171_s3 + $0x140] sm:$0xff]  }
  0x14   :  { %1455 = vmatpush3.bf16.msra.mxu0 %v1644_v18  ;;  %v1684_v57 = vld [vmem:[%s2173_s2 + $0x78] sm:$0xff]   ;;  %v1685_v58 = vld [vmem:[%s2171_s3 + $0x108] sm:$0xff]   ;;  %v1688_v61 = vld [vmem:[%s2173_s2 + $0x70] sm:$0xff]  }
  0x15   :  { %1477 = vmatpush3.bf16.msra.mxu1 %v1645_v19  ;;  %1456 = vmatprep.subr.bf16.mxu0 %v1646_v20  ;;  %v1686_v59 = vld [vmem:[%s2173_s2 + $0x38] sm:$0xff]   ;;  %v1689_v62 = vld [vmem:[%s2171_s3 + $0x100] sm:$0xff]   ;;  %v1690_v63 = vld [vmem:[%s2173_s2 + $0x30] sm:$0xff]  }
  0x16   :  { %1478 = vmatprep.subr.bf16.mxu1 %v1647_v21  ;;  %v1693_v0 = vld [vmem:[%s2172_s1 + $0x14] ss:$28 sps:$4 sm:$0xff]   ;;  %v1694_v2 = vld [vmem:[%s2173_s2 + $0x68] sm:$0xff]   ;;  %v1695_v3 = vld [vmem:[%s2173_s2 + $0xf8] sm:$0xff]  }
  0x17   :  { %v1691_v1 = vld [vmem:[%s2172_s1 + $0x10] ss:$28 sps:$4 sm:$0xff]   ;;  %v1697_v5 = vld [vmem:[%s2173_s2 + $0xb8] sm:$0xff]   ;;  %v1698_v6 = vld [vmem:[%s2173_s2 + $0x60] sm:$0xff]  }
  0x18   :  { %1457 = vmatpush3.bf16.msra.mxu0 %v1648_v22  ;;  %v1696_v4 = vld [vmem:[%s2173_s2 + $0x28] sm:$0xff]   ;;  %v1699_v7 = vld [vmem:[%s2173_s2 + $0xf0] sm:$0xff]   ;;  %v1700_v8 = vld [vmem:[%s2173_s2 + $0x20] sm:$0xff]  }
  0x19   :  { %1479 = vmatpush3.bf16.msra.mxu1 %v1649_v23  ;;  %1458 = vmatprep.subr.bf16.mxu0 %v1650_v24  ;;  %v1701_v9 = vld [vmem:[%s2173_s2 + $0xb0] sm:$0xff]   ;;  %v1702_v10 = vld [vmem:[%s2173_s2 + $0x58] sm:$0xff]   ;;  %v1703_v11 = vld [vmem:[%s2173_s2 + $0xe8] sm:$0xff]  }
  0x1a   :  { %1480 = vmatprep.subr.bf16.mxu1 %v1651_v25  ;;  %v1704_v12 = vld [vmem:[%s2173_s2 + $0x18] sm:$0xff]   ;;  %v1705_v13 = vld [vmem:[%s2173_s2 + $0xa8] sm:$0xff]   ;;  %v1706_v14 = vld [vmem:[%s2173_s2 + $0x50] sm:$0xff]  }
  0x1b   :  { %v1707_v15 = vld [vmem:[%s2173_s2 + $0xe0] sm:$0xff]   ;;  %v1708_v16 = vld [vmem:[%s2173_s2 + $0x10] sm:$0xff]   ;;  %v1710_v18 = vld [vmem:[%s2173_s2 + $0x48] sm:$0xff]  }
  0x1c   :  { %1459 = vmatpush3.bf16.msra.mxu0 %v1652_v26  ;;  %v1709_v17 = vld [vmem:[%s2173_s2 + $0xa0] sm:$0xff]   ;;  %v1711_v19 = vld [vmem:[%s2173_s2 + $0xd8] sm:$0xff]   ;;  %v1712_v20 = vld [vmem:[%s2173_s2 + $0x8] sm:$0xff]  }
  0x1d   :  { %1481 = vmatpush3.bf16.msra.mxu1 %v1653_v27  ;;  %1460 = vmatprep.subr.bf16.mxu0 %v1654_v28  ;;  %v1713_v21 = vld [vmem:[%s2173_s2 + $0x98] sm:$0xff]   ;;  %v1714_v22 = vld [vmem:[%s2173_s2 + $0x40] sm:$0xff]   ;;  %v1715_v23 = vld [vmem:[%s2173_s2 + $0xd0] sm:$0xff]  }
  0x1e   :  { %1482 = vmatprep.subr.bf16.mxu1 %v1655_v29  ;;  %v1717_v24 = vld [vmem:[%s2173_s2 + $0x90] sm:$0xff]   ;;  %v1716_v25 = vld [vmem:[%s2173_s2] sm:$0xff]   ;;  %v1721_v28 = vld [vmem:[%s2173_s2 + $0xc8] sm:$0xff]  }
  0x1f   :  { %v1718_v26 = vld [vmem:[%s2174_s0] ss:$28 sps:$4 sm:$0xff]   ;;  %v1726_v33 = vld [vmem:[%s2173_s2 + $0x170] sm:$0xff]  }
  0x20   :  { %1461 = vmatpush3.bf16.msra.mxu0 %v1656_v30  ;;  %v1720_v27 = vld [vmem:[%s2174_s0 + $0x4] ss:$28 sps:$4 sm:$0xff]   ;;  %v1722_v29 = vld [vmem:[%s2173_s2 + $0x178] sm:$0xff]   ;;  %v1723_v30 = vld [vmem:[%s2173_s2 + $0x88] sm:$0xff]  }
  0x21   :  { %1483 = vmatpush3.bf16.msra.mxu1 %v1657_v31  ;;  %1490 = vmatprep.subr.bf16.mxu0 %v1664_v37  ;;  %v1724_v31 = vld [vmem:[%s2173_s2 + $0x138] sm:$0xff]   ;;  %v1728_v35 = vld [vmem:[%s2173_s2 + $0x130] sm:$0xff]   ;;  %v1729_v37 = vld [vmem:[%s2174_s0 + $0x8] ss:$28 sps:$4 sm:$0xff]  }
  0x22   :  { %1592 = vmatprep.subr.bf16.mxu1 %v1754_v36 }
  0x23   :  { %646 = vmatmul.mubr.bf16.vlgmr.msra.gmra.mxu0 %v1658_v32  ;;  %v1725_v32 = vld [vmem:[%s2173_s2 + $0xc0] sm:$0xff]  }
  0x24   :  { %687 = vmatmul.mubr.bf16.vlgmr.msra.gmra.mxu1 %v1661_v34  ;;  %1491 = vmatpush3.bf16.msra.mxu0 %v1665_v38  ;;  %v1727_v34 = vld [vmem:[%s2173_s2 + $0x80] sm:$0xff]   ;;  %v1731_v38 = vld [vmem:[%s2174_s0 + $0xc] ss:$28 sps:$4 sm:$0xff]  }
  0x25   :  { %1604 = vmatprep.mubr.msk.bf16.mxu1 %vm1755_vm0, %v1754_v36  ;;  %1593 = vmatpush3.bf16.msra.mxu1 %v1666_v39  ;;  %v1732_v39 = vld [vmem:[%s2173_s2 + $0x168] sm:$0xff]  }
  0x26   :  { %1492 = vmatprep.subr.bf16.mxu0 %v1667_v40  ;;  %1594 = vmatprep.subr.bf16.mxu1 %v1754_v36  ;;  %v1733_v40 = vld [vmem:[%s2173_s2 + $0x128] sm:$0xff]  }
  0x27   :  { %727 = vmatprep.mubr.bf16.mxu0 %v1693_v0 }
  0x28   :  { %1493 = vmatpush3.bf16.msra.mxu0 %v1668_v41  ;;  %v1734_v41 = vld [vmem:[%s2173_s2 + $0x1a8] sm:$0xff]  }
  0x29   :  { %1595 = vmatpush3.bf16.msra.mxu1 %v1669_v42  ;;  %1494 = vmatprep.subr.bf16.mxu0 %v1670_v43  ;;  %v1735_v42 = vld [vmem:[%s2173_s2 + $0x160] sm:$0xff]  }
  0x2a   :  { %1596 = vmatprep.subr.bf16.mxu1 %v1754_v36  ;;  %v1736_v43 = vld [vmem:[%s2173_s2 + $0x120] sm:$0xff]  }
  0x2c   :  { %1495 = vmatpush3.bf16.msra.mxu0 %v1671_v44  ;;  %v1737_v44 = vld [vmem:[%s2173_s2 + $0x1a0] sm:$0xff]  }
  0x2d   :  { %1597 = vmatpush3.bf16.msra.mxu1 %v1672_v45  ;;  %1496 = vmatprep.subr.bf16.mxu0 %v1673_v46  ;;  %v1738_v45 = vld [vmem:[%s2173_s2 + $0x158] sm:$0xff]  }
  0x2e   :  { %1598 = vmatprep.subr.bf16.mxu1 %v1754_v36  ;;  %v1740_v46 = vld [vmem:[%s2173_s2 + $0x198] sm:$0xff]  }
  0x30   :  { %1497 = vmatpush3.bf16.msra.mxu0 %v1674_v47  ;;  %v1739_v47 = vld [vmem:[%s2173_s2 + $0x118] sm:$0xff]  }
  0x31   :  { %1599 = vmatpush3.bf16.msra.mxu1 %v1675_v48  ;;  %1498 = vmatprep.subr.bf16.mxu0 %v1676_v49  ;;  %v1741_v48 = vld [vmem:[%s2173_s2 + $0x150] sm:$0xff]  }
  0x32   :  { %1600 = vmatprep.subr.bf16.mxu1 %v1754_v36  ;;  %v1743_v49 = vld [vmem:[%s2173_s2 + $0x190] sm:$0xff]  }
  0x34   :  { %1499 = vmatpush3.bf16.msra.mxu0 %v1677_v50  ;;  %v1742_v50 = vld [vmem:[%s2173_s2 + $0x110] sm:$0xff]  }
  0x35   :  { %1601 = vmatpush3.bf16.msra.mxu1 %v1678_v51  ;;  %1500 = vmatprep.subr.bf16.mxu0 %v1679_v52  ;;  %v1744_v51 = vld [vmem:[%s2173_s2 + $0x148] sm:$0xff]  }
  0x36   :  { %1602 = vmatprep.subr.bf16.mxu1 %v1754_v36  ;;  %v1746_v52 = vld [vmem:[%s2173_s2 + $0x188] sm:$0xff]  }
  0x38   :  { %1501 = vmatpush3.bf16.msra.mxu0 %v1680_v53  ;;  %v1745_v53 = vld [vmem:[%s2173_s2 + $0x108] sm:$0xff]  }
  0x39   :  { %1603 = vmatpush3.bf16.msra.mxu1 %v1681_v54  ;;  %1502 = vmatprep.subr.bf16.mxu0 %v1682_v55  ;;  %v1747_v54 = vld [vmem:[%s2173_s2 + $0x140] sm:$0xff]   ;;  %v1752_v55 = vld [vmem:[%s2174_s0 + $0x14] ss:$28 sps:$4 sm:$0xff]  }
  0x3a   :  { %1519 = vmatprep.subr.bf16.mxu1 %v1684_v57  ;;  %v1748_v57 = vld [vmem:[%s2173_s2 + $0x100] sm:$0xff]  }
  0x3c   :  { %1605 = vmatmul.mubr.msk.bf16.vlgmr.msra.gmra.mxu1 %vm609_vm1, %v1683_v56  ;;  %1503 = vmatpush3.bf16.msra.mxu0 %v1685_v58  ;;  %v1749_v56 = vld [vmem:[%s2173_s2 + $0x180] sm:$0xff]   ;;  %v1753_v58 = vld [vmem:[%s2174_s0 + $0x18] ss:$28 sps:$4 sm:$0xff]  }
  0x3d   :  { %1520 = vmatpush3.bf16.msra.mxu1 %v1686_v59  ;;  %1504 = vmatprep.subr.bf16.mxu0 %v1687_v60  ;;  %v1750_v59 = vld [vmem:[%s2174_s0 + $0x10] ss:$28 sps:$4 sm:$0xff]  }
  0x3e   :  { %1521 = vmatprep.subr.bf16.mxu1 %v1688_v61  ;;  %1171 = vmatprep.mubr.bf16.mxu1 %v1720_v27 }
  0x40   :  { %1505 = vmatpush3.bf16.msra.mxu0 %v1689_v62 }
  0x41   :  { %1522 = vmatpush3.bf16.msra.mxu1 %v1690_v63  ;;  %1541 = vmatprep.subr.bf16.mxu0 %v1695_v3 }
  0x42   :  { %1523 = vmatprep.subr.bf16.mxu1 %v1694_v2 }
  0x43   :  { %728 = vmatmul.mubr.bf16.vlgmr.msra.gmra.mxu0 %v1691_v1 }
  0x44   :  { %1542 = vmatpush3.bf16.msra.mxu0 %v1697_v5  ;;  %1212 = vmatprep.mubr.bf16.mxu0 %v1731_v38 }
  0x45   :  { %1524 = vmatpush3.bf16.msra.mxu1 %v1696_v4  ;;  %1543 = vmatprep.subr.bf16.mxu0 %v1699_v7 }
  0x46   :  { %1525 = vmatprep.subr.bf16.mxu1 %v1698_v6 }
  0x48   :  { %1544 = vmatpush3.bf16.msra.mxu0 %v1701_v9 }
  0x49   :  { %1526 = vmatpush3.bf16.msra.mxu1 %v1700_v8  ;;  %1545 = vmatprep.subr.bf16.mxu0 %v1703_v11 }
  0x4a   :  { %1527 = vmatprep.subr.bf16.mxu1 %v1702_v10 }
  0x4c   :  { %1546 = vmatpush3.bf16.msra.mxu0 %v1705_v13 }
  0x4d   :  { %1528 = vmatpush3.bf16.msra.mxu1 %v1704_v12  ;;  %1547 = vmatprep.subr.bf16.mxu0 %v1707_v15 }
  0x4e   :  { %1529 = vmatprep.subr.bf16.mxu1 %v1706_v14 }
  0x50   :  { %1548 = vmatpush3.bf16.msra.mxu0 %v1709_v17 }
  0x51   :  { %1530 = vmatpush3.bf16.msra.mxu1 %v1708_v16  ;;  %1549 = vmatprep.subr.bf16.mxu0 %v1711_v19 }
  0x52   :  { %1531 = vmatprep.subr.bf16.mxu1 %v1710_v18 }
  0x54   :  { %1550 = vmatpush3.bf16.msra.mxu0 %v1713_v21 }
  0x55   :  { %1532 = vmatpush3.bf16.msra.mxu1 %v1712_v20  ;;  %1551 = vmatprep.subr.bf16.mxu0 %v1715_v23 }
  0x56   :  { %1533 = vmatprep.subr.bf16.mxu1 %v1714_v22 }
  0x58   :  { %1552 = vmatpush3.bf16.msra.mxu0 %v1717_v24 }
  0x59   :  { %1534 = vmatpush3.bf16.msra.mxu1 %v1716_v25  ;;  %1553 = vmatprep.subr.bf16.mxu0 %v1721_v28 }
  0x5a   :  { %1563 = vmatprep.subr.bf16.mxu1 %v1722_v29 }
  0x5c   :  { %1172 = vmatmul.mubr.bf16.vlgmr.msra.gmra.mxu1 %v1718_v26  ;;  %1554 = vmatpush3.bf16.msra.mxu0 %v1723_v30 }
  0x5d   :  { %1564 = vmatpush3.bf16.msra.mxu1 %v1724_v31  ;;  %1555 = vmatprep.subr.bf16.mxu0 %v1725_v32 }
  0x5e   :  { %1565 = vmatprep.subr.bf16.mxu1 %v1726_v33  ;;  %1253 = vmatprep.mubr.bf16.mxu1 %v1752_v55 }
  0x60   :  { %1556 = vmatpush3.bf16.msra.mxu0 %v1727_v34 }
  0x61   :  { %1566 = vmatpush3.bf16.msra.mxu1 %v1728_v35  ;;  %1608 = vmatprep.subr.bf16.mxu0 %v1754_v36 }
  0x62   :  { %1567 = vmatprep.subr.bf16.mxu1 %v1732_v39 }
  0x63   :  { %1213 = vmatmul.mubr.bf16.vlgmr.msra.gmra.mxu0 %v1729_v37 }
  0x64   :  { %1609 = vmatpush3.bf16.msra.mxu0 %v1734_v41  ;;  %1620 = vmatprep.mubr.msk.bf16.mxu0 %vm1755_vm0, %v1754_v36 }
  0x65   :  { %1568 = vmatpush3.bf16.msra.mxu1 %v1733_v40  ;;  %1610 = vmatprep.subr.bf16.mxu0 %v1754_v36 }
  0x66   :  { %1569 = vmatprep.subr.bf16.mxu1 %v1735_v42 }
  0x68   :  { %1611 = vmatpush3.bf16.msra.mxu0 %v1737_v44 }
  0x69   :  { %1570 = vmatpush3.bf16.msra.mxu1 %v1736_v43  ;;  %1612 = vmatprep.subr.bf16.mxu0 %v1754_v36 }
  0x6a   :  { %1571 = vmatprep.subr.bf16.mxu1 %v1738_v45 }
  0x6c   :  { %1613 = vmatpush3.bf16.msra.mxu0 %v1740_v46 }
  0x6d   :  { %1572 = vmatpush3.bf16.msra.mxu1 %v1739_v47  ;;  %1614 = vmatprep.subr.bf16.mxu0 %v1754_v36 }
  0x6e   :  { %1573 = vmatprep.subr.bf16.mxu1 %v1741_v48 }
  0x70   :  { %1615 = vmatpush3.bf16.msra.mxu0 %v1743_v49 }
  0x71   :  { %1574 = vmatpush3.bf16.msra.mxu1 %v1742_v50  ;;  %1616 = vmatprep.subr.bf16.mxu0 %v1754_v36 }
  0x72   :  { %1575 = vmatprep.subr.bf16.mxu1 %v1744_v51 }
  0x74   :  { %1617 = vmatpush3.bf16.msra.mxu0 %v1746_v52 }
  0x75   :  { %1576 = vmatpush3.bf16.msra.mxu1 %v1745_v53  ;;  %1618 = vmatprep.subr.bf16.mxu0 %v1754_v36 }
  0x76   :  { %1577 = vmatprep.subr.bf16.mxu1 %v1747_v54 }
  0x78   :  { %1619 = vmatpush3.bf16.msra.mxu0 %v1749_v56 }
  0x79   :  { %1578 = vmatpush3.bf16.msra.mxu1 %v1748_v57 }
  0x7b   :  { %1621 = vmatmul.mubr.msk.bf16.vlgmr.msra.gmra.mxu0 %vm609_vm1, %v1753_v58 }
  0x7c   :  { %1254 = vmatmul.mubr.bf16.vlgmr.msra.gmra.mxu1 %v1750_v59 }
  0xe3   :  { %v1462_v3 = vpop.f32.mrf.mxu0 }
  0xe4   :  { %v1484_v60 = vpop.f32.mrf.mxu1 }
  0xe5   :  { %v1463_v4 = vpop.f32.mrf.mxu0 }
  0xe6   :  { %v1485_v36 = vpop.f32.mrf.mxu1  ;;  %v1464_v13 = vadd.f32 %v1463_v4, %v1462_v3 }
  0xe7   :  { %v1465_v5 = vpop.f32.mrf.mxu0  ;;  %v1486_v14 = vadd.f32 %v1485_v36, %v1484_v60 }
  0xe8   :  { %v1487_v61 = vpop.f32.mrf.mxu1 }
  0xe9   :  { %v1466_v6 = vpop.f32.mrf.mxu0  ;;  %v689_v18 = vadd.f32 %v1486_v14, %v1464_v13 }
  0xea   :  { %v1488_v62 = vpop.f32.mrf.mxu1  ;;  %v1467_v19 = vadd.f32 %v1466_v6, %v1465_v5 }
  0xeb   :  { %v1489_v20 = vadd.f32 %v1488_v62, %v1487_v61 }
  0xed   :  { %v692_v25 = vadd.f32 %v1489_v20, %v1467_v19 }
  0xfc   :  { %v770_v63 = vpop.f32.mrf.mxu1 }
  0xfe   :  { %v1606_v0 = vpop.f32.mrf.mxu1 }
 0x100   :  { %v773_v1 = vpop.f32.mrf.mxu1 }
 0x102   :  { %v1607_v2 = vpop.f32.mrf.mxu1 }
 0x103   :  { %v1506_v7 = vpop.f32.mrf.mxu0 }
 0x105   :  { %v1507_v8 = vpop.f32.mrf.mxu0 }
 0x106   :  { %v1508_v17 = vadd.f32 %v1507_v8, %v1506_v7 }
 0x107   :  { %v1509_v9 = vpop.f32.mrf.mxu0 }
 0x108   :  { %v730_v23 = vadd.f32 %v1508_v17, %v689_v18 }
 0x109   :  { %v1510_v10 = vpop.f32.mrf.mxu0 }
 0x10a   :  { %v1511_v24 = vadd.f32 %v1510_v10, %v1509_v9  ;;  %v771_v30 = vadd.f32 %v770_v63, %v730_v23 }
 0x10c   :  { %v733_v29 = vadd.f32 %v1511_v24, %v692_v25 }
 0x10e   :  { %v774_v39 = vadd.f32 %v773_v1, %v733_v29 }
 0x11c   :  { %v1535_v12 = vpop.f32.mrf.mxu1 }
 0x11e   :  { %v1536_v16 = vpop.f32.mrf.mxu1 }
 0x11f   :  { %v1537_v26 = vadd.f32 %v1536_v16, %v1535_v12 }
 0x120   :  { %v1538_v22 = vpop.f32.mrf.mxu1 }
 0x121   :  { %v1174_v34 = vadd.f32 %v1537_v26, %v771_v30 }
 0x122   :  { %v1539_v28 = vpop.f32.mrf.mxu1 }
 0x123   :  { %v1557_v11 = vpop.f32.mrf.mxu0  ;;  %v1540_v35 = vadd.f32 %v1539_v28, %v1538_v22 }
 0x125   :  { %v1558_v15 = vpop.f32.mrf.mxu0  ;;  %v1177_v45 = vadd.f32 %v1540_v35, %v774_v39 }
 0x126   :  { %v1559_v31 = vadd.f32 %v1558_v15, %v1557_v11 }
 0x127   :  { %v1560_v21 = vpop.f32.mrf.mxu0 }
 0x128   :  { %v1215_v40 = vadd.f32 %v1559_v31, %v1174_v34 }
 0x129   :  { %v1561_v27 = vpop.f32.mrf.mxu0 }
 0x12a   :  { %v1562_v41 = vadd.f32 %v1561_v27, %v1560_v21 }
 0x12c   :  { %v1218_v49 = vadd.f32 %v1562_v41, %v1177_v45 }
 0x13b   :  { %v1296_v32 = vpop.f32.mrf.mxu0 }
 0x13c   :  { %v1579_v33 = vpop.f32.mrf.mxu1 }
 0x13d   :  { %v1622_v37 = vpop.f32.mrf.mxu0 }
 0x13e   :  { %v1580_v38 = vpop.f32.mrf.mxu1 }
 0x13f   :  { %v1581_v42 = vadd.f32 %v1580_v38, %v1579_v33  ;;  %v1299_v43 = vpop.f32.mrf.mxu0 }
 0x140   :  { %v1582_v44 = vpop.f32.mrf.mxu1 }
 0x141   :  { %v1256_v46 = vadd.f32 %v1581_v42, %v1215_v40  ;;  %v1623_v47 = vpop.f32.mrf.mxu0 }
 0x142   :  { %v1583_v48 = vpop.f32.mrf.mxu1 }
 0x143   :  { %v1297_v50 = vadd.f32 %v1296_v32, %v1256_v46  ;;  %v1584_v51 = vadd.f32 %v1583_v48, %v1582_v44 }
 0x145   :  { %v1444_v52 = vpack.c.bf16 %v1297_v50, %v1297_v50  ;;  %v1259_v53 = vadd.f32 %v1584_v51, %v1218_v49 }
 0x147   :  { %1312 = vst.msk [vmem:[%s2175_s4] sm:$0xf] %vm1311_vm2, %v1444_v52  ;;  %v1300_v54 = vadd.f32 %v1299_v43, %v1259_v53 }
 0x149   :  { %v1445_v55 = vpack.c.bf16 %v1300_v54, %v1300_v54 }
 0x14b   :  { %1313 = vst.msk [vmem:[%s2175_s4 + $0x4] sm:$0xf] %vm1311_vm2, %v1445_v55 }

// kernel: hgfeature_forward.42
= control target key start
LH: loop header
LB: loop body
LE: loop exit
PB: predicated region body
PF: predicated region fallthrough
CT: control target
= control target key end

     0   :  { %vm304_vm0 = vcmask 1043456   ;;  %vm305_vm1 = vcmask 523268   ;;  %s580_s1 = inlined_call_operand.vmem [shape: bf16[256,192], index: 1, kind: input, shape index: {}]   ;;  %s581_s0 = inlined_call_operand.vmem [shape: bf16[32,256], index: 0, kind: input, shape index: {}]   ;;  %s582_s2 = inlined_call_operand.vmem [shape: bf16[32,192], index: 2, kind: output, shape index: {}]  }
   0x1   :  { %v391_v0 = vld [vmem:[%s580_s1 + $0x74] ss:$8 sps:$4 sm:$0xff]   ;;  %v393_v1 = vld [vmem:[%s580_s1 + $0x70] ss:$8 sps:$4 sm:$0xff]   ;;  %v394_v2 = vld [vmem:[%s580_s1 + $0x64] ss:$8 sps:$4 sm:$0xff]  }
   0x2   :  { %227 = vmatprep.subr.bf16.mxu0 %v391_v0  ;;  %359 = vmatprep.subr.bf16.mxu1 %v391_v0  ;;  %v396_v3 = vld [vmem:[%s580_s1 + $0x60] ss:$8 sps:$4 sm:$0xff]   ;;  %v397_v4 = vld [vmem:[%s580_s1 + $0x54] ss:$8 sps:$4 sm:$0xff]   ;;  %v399_v5 = vld [vmem:[%s580_s1 + $0x50] ss:$8 sps:$4 sm:$0xff]  }
   0x3   :  { %228 = vmatpush1.bf16.msra.mxu0 %v393_v1  ;;  %375 = vmatpush1.bf16.msra.mxu1 %v393_v1  ;;  %v400_v6 = vld [vmem:[%s580_s1 + $0x44] ss:$8 sps:$4 sm:$0xff]   ;;  %v402_v7 = vld [vmem:[%s580_s1 + $0x40] ss:$8 sps:$4 sm:$0xff]   ;;  %v403_v8 = vld [vmem:[%s580_s1 + $0x34] ss:$8 sps:$4 sm:$0xff]  }
   0x4   :  { %229 = vmatprep.subr.bf16.mxu0 %v394_v2  ;;  %360 = vmatprep.subr.bf16.mxu1 %v394_v2  ;;  %v405_v9 = vld [vmem:[%s580_s1 + $0x30] ss:$8 sps:$4 sm:$0xff]   ;;  %v406_v10 = vld [vmem:[%s580_s1 + $0x24] ss:$8 sps:$4 sm:$0xff]   ;;  %v408_v11 = vld [vmem:[%s580_s1 + $0x20] ss:$8 sps:$4 sm:$0xff]  }
   0x5   :  { %v409_v12 = vld [vmem:[%s580_s1 + $0x14] ss:$8 sps:$4 sm:$0xff]   ;;  %v441_v13 = vld [vmem:[%s581_s0 + $0x4] ss:$8 sps:$4 sm:$0xff]   ;;  %v411_v14 = vld [vmem:[%s580_s1 + $0x10] ss:$8 sps:$4 sm:$0xff]  }
   0x6   :  { %v444_v15 = vld [vmem:[%s581_s0 + $0x14] ss:$8 sps:$4 sm:$0xff]   ;;  %v412_v16 = vld [vmem:[%s580_s1 + $0x4] ss:$8 sps:$4 sm:$0xff]   ;;  %259 = vmatprep.mubr.bf16.mxu0 %v441_v13  ;;  %v414_v17 = vld [vmem:[%s580_s1] ss:$8 sps:$4 sm:$0xff]  }
   0x7   :  { %230 = vmatpush1.bf16.msra.mxu0 %v396_v3  ;;  %376 = vmatpush1.bf16.msra.mxu1 %v396_v3  ;;  %v415_v18 = vld [vmem:[%s580_s1 + $0xf4] ss:$8 sps:$4 sm:$0xff]   ;;  %v417_v19 = vld [vmem:[%s580_s1 + $0xf0] ss:$8 sps:$4 sm:$0xff]   ;;  %v418_v20 = vld [vmem:[%s580_s1 + $0xe4] ss:$8 sps:$4 sm:$0xff]  }
   0x8   :  { %231 = vmatprep.subr.bf16.mxu0 %v397_v4  ;;  %361 = vmatprep.subr.bf16.mxu1 %v397_v4  ;;  %v420_v21 = vld [vmem:[%s580_s1 + $0xe0] ss:$8 sps:$4 sm:$0xff]   ;;  %v421_v22 = vld [vmem:[%s580_s1 + $0xd4] ss:$8 sps:$4 sm:$0xff]   ;;  %v423_v23 = vld [vmem:[%s580_s1 + $0xd0] ss:$8 sps:$4 sm:$0xff]  }
   0x9   :  { %269 = vmatprep.mubr.bf16.mxu1 %v444_v15  ;;  %v424_v24 = vld [vmem:[%s580_s1 + $0xc4] ss:$8 sps:$4 sm:$0xff]   ;;  %v426_v25 = vld [vmem:[%s580_s1 + $0xc0] ss:$8 sps:$4 sm:$0xff]   ;;  %v427_v26 = vld [vmem:[%s580_s1 + $0xb4] ss:$8 sps:$4 sm:$0xff]  }
   0xa   :  { %v429_v27 = vld [vmem:[%s580_s1 + $0xb0] ss:$8 sps:$4 sm:$0xff]   ;;  %v430_v28 = vld [vmem:[%s580_s1 + $0xa4] ss:$8 sps:$4 sm:$0xff]   ;;  %v432_v29 = vld [vmem:[%s580_s1 + $0xa0] ss:$8 sps:$4 sm:$0xff]  }
   0xb   :  { %232 = vmatpush1.bf16.msra.mxu0 %v399_v5  ;;  %377 = vmatpush1.bf16.msra.mxu1 %v399_v5  ;;  %v433_v30 = vld [vmem:[%s580_s1 + $0x94] ss:$8 sps:$4 sm:$0xff]   ;;  %v435_v31 = vld [vmem:[%s580_s1 + $0x90] ss:$8 sps:$4 sm:$0xff]   ;;  %v436_v32 = vld [vmem:[%s580_s1 + $0x84] ss:$8 sps:$4 sm:$0xff]  }
   0xc   :  { %233 = vmatprep.subr.bf16.mxu0 %v400_v6  ;;  %362 = vmatprep.subr.bf16.mxu1 %v400_v6  ;;  %v438_v33 = vld [vmem:[%s580_s1 + $0x80] ss:$8 sps:$4 sm:$0xff]   ;;  %v442_v35 = vld [vmem:[%s581_s0 + $0x10] ss:$8 sps:$4 sm:$0xff]   ;;  %vm306_vm2 = vmor %vm305_vm1, %vm304_vm0 }
   0xd   :  { %v439_v34 = vld [vmem:[%s581_s0] ss:$8 sps:$4 sm:$0xff]  }
   0xf   :  { %234 = vmatpush1.bf16.msra.mxu0 %v402_v7  ;;  %378 = vmatpush1.bf16.msra.mxu1 %v402_v7 }
  0x10   :  { %235 = vmatprep.subr.bf16.mxu0 %v403_v8  ;;  %363 = vmatprep.subr.bf16.mxu1 %v403_v8 }
  0x13   :  { %236 = vmatpush1.bf16.msra.mxu0 %v405_v9  ;;  %379 = vmatpush1.bf16.msra.mxu1 %v405_v9 }
  0x14   :  { %237 = vmatprep.subr.bf16.mxu0 %v406_v10  ;;  %364 = vmatprep.subr.bf16.mxu1 %v406_v10 }
  0x17   :  { %238 = vmatpush1.bf16.msra.mxu0 %v408_v11  ;;  %380 = vmatpush1.bf16.msra.mxu1 %v408_v11 }
  0x18   :  { %239 = vmatprep.subr.bf16.mxu0 %v409_v12  ;;  %365 = vmatprep.subr.bf16.mxu1 %v409_v12 }
  0x1b   :  { %240 = vmatpush1.bf16.msra.mxu0 %v411_v14  ;;  %381 = vmatpush1.bf16.msra.mxu1 %v411_v14 }
  0x1c   :  { %241 = vmatprep.subr.bf16.mxu0 %v412_v16  ;;  %366 = vmatprep.subr.bf16.mxu1 %v412_v16 }
  0x1f   :  { %242 = vmatpush1.bf16.msra.mxu0 %v414_v17  ;;  %382 = vmatpush1.bf16.msra.mxu1 %v414_v17 }
  0x20   :  { %243 = vmatprep.subr.bf16.mxu0 %v415_v18  ;;  %367 = vmatprep.subr.bf16.mxu1 %v415_v18 }
  0x23   :  { %244 = vmatpush2.bf16.msra.mxu0 %v417_v19  ;;  %383 = vmatpush2.bf16.msra.mxu1 %v417_v19 }
  0x24   :  { %245 = vmatprep.subr.bf16.mxu0 %v418_v20  ;;  %368 = vmatprep.subr.bf16.mxu1 %v418_v20 }
  0x27   :  { %246 = vmatpush2.bf16.msra.mxu0 %v420_v21  ;;  %384 = vmatpush2.bf16.msra.mxu1 %v420_v21 }
  0x28   :  { %247 = vmatprep.subr.bf16.mxu0 %v421_v22  ;;  %369 = vmatprep.subr.bf16.mxu1 %v421_v22 }
  0x2b   :  { %248 = vmatpush2.bf16.msra.mxu0 %v423_v23  ;;  %385 = vmatpush2.bf16.msra.mxu1 %v423_v23 }
  0x2c   :  { %249 = vmatprep.subr.bf16.mxu0 %v424_v24  ;;  %370 = vmatprep.subr.bf16.mxu1 %v424_v24 }
  0x2f   :  { %250 = vmatpush2.bf16.msra.mxu0 %v426_v25  ;;  %386 = vmatpush2.bf16.msra.mxu1 %v426_v25 }
  0x30   :  { %251 = vmatprep.subr.bf16.mxu0 %v427_v26  ;;  %371 = vmatprep.subr.bf16.mxu1 %v427_v26 }
  0x33   :  { %252 = vmatpush2.bf16.msra.mxu0 %v429_v27  ;;  %387 = vmatpush2.bf16.msra.mxu1 %v429_v27 }
  0x34   :  { %253 = vmatprep.subr.bf16.mxu0 %v430_v28  ;;  %372 = vmatprep.subr.bf16.mxu1 %v430_v28 }
  0x37   :  { %254 = vmatpush2.bf16.msra.mxu0 %v432_v29  ;;  %388 = vmatpush2.bf16.msra.mxu1 %v432_v29 }
  0x38   :  { %255 = vmatprep.subr.bf16.mxu0 %v433_v30  ;;  %373 = vmatprep.subr.bf16.mxu1 %v433_v30 }
  0x3b   :  { %256 = vmatpush2.bf16.msra.mxu0 %v435_v31  ;;  %389 = vmatpush2.bf16.msra.mxu1 %v435_v31 }
  0x3c   :  { %257 = vmatprep.subr.bf16.mxu0 %v436_v32  ;;  %374 = vmatprep.subr.bf16.mxu1 %v436_v32 }
  0x3f   :  { %258 = vmatpush2.bf16.msra.mxu0 %v438_v33  ;;  %390 = vmatpush2.bf16.msra.mxu1 %v438_v33 }
  0x42   :  { %260 = vmatmul.mubr.bf16.vlgmr.msra.gmra.mxu0 %v439_v34  ;;  %270 = vmatmul.mubr.bf16.vlgmr.msra.gmra.mxu1 %v442_v35 }
 0x102   :  { %v261_v36 = vpop.f32.mrf.mxu0  ;;  %v271_v37 = vpop.f32.mrf.mxu1 }
 0x104   :  { %v263_v38 = vpop.f32.mrf.mxu0  ;;  %v273_v39 = vpop.f32.mrf.mxu1 }
 0x105   :  { %v355_v40 = vpack.c.bf16 %v263_v38, %v261_v36  ;;  %v357_v41 = vpack.c.bf16 %v273_v39, %v271_v37 }
 0x106   :  { %v265_v42 = vpop.f32.mrf.mxu0  ;;  %v275_v43 = vpop.f32.mrf.mxu1 }
 0x107   :  { %307 = vst.msk [vmem:[%s582_s2] sm:$0xff] %vm306_vm2, %v355_v40  ;;  %309 = vst.msk [vmem:[%s582_s2 + $0x10] sm:$0xff] %vm306_vm2, %v357_v41 }
 0x108   :  { %v267_v44 = vpop.f32.mrf.mxu0  ;;  %v277_v45 = vpop.f32.mrf.mxu1 }
 0x109   :  { %v356_v46 = vpack.c.bf16 %v267_v44, %v265_v42  ;;  %v358_v47 = vpack.c.bf16 %v277_v45, %v275_v43 }
 0x10b   :  { %308 = vst.msk [vmem:[%s582_s2 + $0x8] sm:$0xff] %vm306_vm2, %v356_v46  ;;  %310 = vst.msk [vmem:[%s582_s2 + $0x18] sm:$0xff] %vm306_vm2, %v358_v47 }

// kernel: hgfeature_forward.41
= control target key start
LH: loop header
LB: loop body
LE: loop exit
PB: predicated region body
PF: predicated region fallthrough
CT: control target
= control target key end

     0   :  { %vm452_vm0 = vcmask 523264   ;;  %vm1041_vm1 = vcmask 519168   ;;  %s1723_s3 = inlined_call_operand.vmem [shape: bf16[576,64], index: 3, kind: input, shape index: {}]   ;;  %s1724_s1 = inlined_call_operand.vmem [shape: bf16[32,576], index: 1, kind: input, shape index: {}]   ;;  %s1725_s2 = inlined_call_operand.vmem [shape: bf16[576,64], index: 2, kind: input, shape index: {}]   ;;  %s1726_s0 = inlined_call_operand.vmem [shape: bf16[32,576], index: 0, kind: input, shape index: {}]   ;;  %s1727_s4 = inlined_call_operand.vmem [shape: bf16[32,64], index: 4, kind: output, shape index: {}]  }
   0x1   :  { %v1302_v0 = vld [vmem:[%s1723_s3 + $0x78] sm:$0xff]   ;;  %v1306_v4 = vld [vmem:[%s1723_s3 + $0x70] sm:$0xff]   ;;  %v1310_v8 = vld [vmem:[%s1723_s3 + $0x68] sm:$0xff]  }
   0x2   :  { %v1303_v1 = vld [vmem:[%s1723_s3 + $0xf8] sm:$0xff]   ;;  %1154 = vmatprep.subr.bf16.mxu0 %v1302_v0  ;;  %v1307_v5 = vld [vmem:[%s1723_s3 + $0xf0] sm:$0xff]   ;;  %v1311_v9 = vld [vmem:[%s1723_s3 + $0xe8] sm:$0xff]  }
   0x3   :  { %v1304_v2 = vld [vmem:[%s1723_s3 + $0x38] sm:$0xff]   ;;  %1182 = vmatprep.subr.bf16.mxu1 %v1303_v1  ;;  %v1308_v6 = vld [vmem:[%s1723_s3 + $0x30] sm:$0xff]   ;;  %v1312_v10 = vld [vmem:[%s1723_s3 + $0x28] sm:$0xff]  }
   0x4   :  { %v1305_v3 = vld [vmem:[%s1723_s3 + $0xb8] sm:$0xff]   ;;  %1155 = vmatpush3.bf16.msra.mxu0 %v1304_v2  ;;  %v1309_v7 = vld [vmem:[%s1723_s3 + $0xb0] sm:$0xff]   ;;  %v1313_v11 = vld [vmem:[%s1723_s3 + $0xa8] sm:$0xff]  }
   0x5   :  { %1183 = vmatpush3.bf16.msra.mxu1 %v1305_v3  ;;  %1156 = vmatprep.subr.bf16.mxu0 %v1306_v4  ;;  %v1314_v12 = vld [vmem:[%s1723_s3 + $0x60] sm:$0xff]   ;;  %v1318_v16 = vld [vmem:[%s1723_s3 + $0x58] sm:$0xff]   ;;  %v1322_v20 = vld [vmem:[%s1723_s3 + $0x50] sm:$0xff]  }
   0x6   :  { %1184 = vmatprep.subr.bf16.mxu1 %v1307_v5  ;;  %v1315_v13 = vld [vmem:[%s1723_s3 + $0xe0] sm:$0xff]   ;;  %v1319_v17 = vld [vmem:[%s1723_s3 + $0xd8] sm:$0xff]   ;;  %v1323_v21 = vld [vmem:[%s1723_s3 + $0xd0] sm:$0xff]  }
   0x7   :  { %v1316_v14 = vld [vmem:[%s1723_s3 + $0x20] sm:$0xff]   ;;  %v1320_v18 = vld [vmem:[%s1723_s3 + $0x18] sm:$0xff]   ;;  %v1324_v22 = vld [vmem:[%s1723_s3 + $0x10] sm:$0xff]  }
   0x8   :  { %1157 = vmatpush3.bf16.msra.mxu0 %v1308_v6  ;;  %v1317_v15 = vld [vmem:[%s1723_s3 + $0xa0] sm:$0xff]   ;;  %v1321_v19 = vld [vmem:[%s1723_s3 + $0x98] sm:$0xff]   ;;  %v1325_v23 = vld [vmem:[%s1723_s3 + $0x90] sm:$0xff]  }
   0x9   :  { %1185 = vmatpush3.bf16.msra.mxu1 %v1309_v7  ;;  %1158 = vmatprep.subr.bf16.mxu0 %v1310_v8  ;;  %v1326_v24 = vld [vmem:[%s1723_s3 + $0x48] sm:$0xff]   ;;  %v1330_v28 = vld [vmem:[%s1723_s3 + $0x40] sm:$0xff]   ;;  %v1340_v36 = vld [vmem:[%s1723_s3 + $0x118] sm:$0xff]  }
   0xa   :  { %1186 = vmatprep.subr.bf16.mxu1 %v1311_v9  ;;  %v1327_v25 = vld [vmem:[%s1723_s3 + $0xc8] sm:$0xff]   ;;  %v1331_v29 = vld [vmem:[%s1723_s3 + $0xc0] sm:$0xff]   ;;  %v1341_v37 = vld [vmem:[%s1725_s2 + $0x78] sm:$0xff]  }
   0xb   :  { %v1328_v26 = vld [vmem:[%s1723_s3 + $0x8] sm:$0xff]   ;;  %v1332_v30 = vld [vmem:[%s1723_s3] sm:$0xff]   ;;  %v1342_v38 = vld [vmem:[%s1725_s2 + $0x38] sm:$0xff]  }
   0xc   :  { %1159 = vmatpush3.bf16.msra.mxu0 %v1312_v10  ;;  %v1329_v27 = vld [vmem:[%s1723_s3 + $0x88] sm:$0xff]   ;;  %v1333_v31 = vld [vmem:[%s1723_s3 + $0x80] sm:$0xff]   ;;  %v1343_v39 = vld [vmem:[%s1723_s3 + $0x110] sm:$0xff]  }
   0xd   :  { %1187 = vmatpush3.bf16.msra.mxu1 %v1313_v11  ;;  %1160 = vmatprep.subr.bf16.mxu0 %v1314_v12  ;;  %v1334_v32 = vld [vmem:[%s1724_s1] ss:$20 sps:$4 sm:$0xff]   ;;  %v1336_v33 = vld [vmem:[%s1724_s1 + $0x4] ss:$20 sps:$4 sm:$0xff]   ;;  %v1337_v34 = vld [vmem:[%s1724_s1 + $0x8] ss:$20 sps:$4 sm:$0xff]  }
   0xe   :  { %1188 = vmatprep.subr.bf16.mxu1 %v1315_v13  ;;  %v1339_v35 = vld [vmem:[%s1724_s1 + $0xc] ss:$20 sps:$4 sm:$0xff]   ;;  %491 = vmatprep.mubr.bf16.mxu0 %v1336_v33  ;;  %v1344_v40 = vld [vmem:[%s1725_s2 + $0x70] sm:$0xff]   ;;  %v1350_v44 = vld [vmem:[%s1724_s1 + $0x28] ss:$20 sps:$4 sm:$0xff]  }
   0xf   :  { %540 = vmatprep.mubr.bf16.mxu1 %v1339_v35  ;;  %v1345_v41 = vld [vmem:[%s1725_s2 + $0x30] sm:$0xff]   ;;  %v1346_v42 = vld [vmem:[%s1724_s1 + $0x2c] ss:$20 sps:$4 sm:$0xff]   ;;  %v1360_v54 = vld [vmem:[%s1725_s2 + $0x58] sm:$0xff]  }
  0x10   :  { %1161 = vmatpush3.bf16.msra.mxu0 %v1316_v14  ;;  %v1348_v43 = vld [vmem:[%s1724_s1 + $0x34] ss:$20 sps:$4 sm:$0xff]   ;;  %v1351_v45 = vld [vmem:[%s1724_s1 + $0x30] ss:$20 sps:$4 sm:$0xff]   ;;  %v1359_v53 = vld [vmem:[%s1724_s1 + $0x38] ss:$20 sps:$4 sm:$0xff]  }
  0x11   :  { %1189 = vmatpush3.bf16.msra.mxu1 %v1317_v15  ;;  %1162 = vmatprep.subr.bf16.mxu0 %v1318_v16  ;;  %v1352_v46 = vld [vmem:[%s1723_s3 + $0x108] sm:$0xff]   ;;  %v1355_v49 = vld [vmem:[%s1723_s3 + $0x100] sm:$0xff]   ;;  %v1361_v55 = vld [vmem:[%s1725_s2 + $0xf8] sm:$0xff]  }
  0x12   :  { %1190 = vmatprep.subr.bf16.mxu1 %v1319_v17  ;;  %v1353_v47 = vld [vmem:[%s1725_s2 + $0x68] sm:$0xff]   ;;  %v1356_v50 = vld [vmem:[%s1725_s2 + $0x60] sm:$0xff]   ;;  %v1362_v56 = vld [vmem:[%s1725_s2 + $0x18] sm:$0xff]  }
  0x13   :  { %v1354_v48 = vld [vmem:[%s1725_s2 + $0x28] sm:$0xff]   ;;  %v1357_v51 = vld [vmem:[%s1725_s2 + $0x20] sm:$0xff]   ;;  %v1363_v57 = vld [vmem:[%s1725_s2 + $0xb8] sm:$0xff]  }
  0x14   :  { %1163 = vmatpush3.bf16.msra.mxu0 %v1320_v18  ;;  %v1358_v52 = vld [vmem:[%s1724_s1 + $0x10] ss:$20 sps:$4 sm:$0xff]   ;;  %v1368_v62 = vld [vmem:[%s1725_s2 + $0x48] sm:$0xff]   ;;  %v1376_v6 = vld [vmem:[%s1726_s0] ss:$20 sps:$4 sm:$0xff]  }
  0x15   :  { %1191 = vmatpush3.bf16.msra.mxu1 %v1321_v19  ;;  %1164 = vmatprep.subr.bf16.mxu0 %v1322_v20  ;;  %v1364_v58 = vld [vmem:[%s1725_s2 + $0x50] sm:$0xff]   ;;  %v1369_v63 = vld [vmem:[%s1725_s2 + $0xe8] sm:$0xff]   ;;  %v1372_v2 = vld [vmem:[%s1725_s2 + $0x40] sm:$0xff]  }
  0x16   :  { %1192 = vmatprep.subr.bf16.mxu1 %v1323_v21  ;;  %v1365_v59 = vld [vmem:[%s1725_s2 + $0xf0] sm:$0xff]   ;;  %v1370_v0 = vld [vmem:[%s1725_s2 + $0x8] sm:$0xff]   ;;  %v1373_v3 = vld [vmem:[%s1725_s2 + $0xe0] sm:$0xff]  }
  0x17   :  { %v1366_v60 = vld [vmem:[%s1725_s2 + $0x10] sm:$0xff]   ;;  %v1371_v1 = vld [vmem:[%s1725_s2 + $0xa8] sm:$0xff]   ;;  %v1374_v4 = vld [vmem:[%s1725_s2] sm:$0xff]  }
  0x18   :  { %1165 = vmatpush3.bf16.msra.mxu0 %v1324_v22  ;;  %v1367_v61 = vld [vmem:[%s1725_s2 + $0xb0] sm:$0xff]   ;;  %v1375_v5 = vld [vmem:[%s1725_s2 + $0xa0] sm:$0xff]   ;;  %v1379_v8 = vld [vmem:[%s1725_s2 + $0xd8] sm:$0xff]  }
  0x19   :  { %1193 = vmatpush3.bf16.msra.mxu1 %v1325_v23  ;;  %1166 = vmatprep.subr.bf16.mxu0 %v1326_v24  ;;  %v1378_v7 = vld [vmem:[%s1726_s0 + $0x4] ss:$20 sps:$4 sm:$0xff]   ;;  %v1381_v10 = vld [vmem:[%s1725_s2 + $0xd0] sm:$0xff]   ;;  %v1384_v13 = vld [vmem:[%s1726_s0 + $0x2c] ss:$20 sps:$4 sm:$0xff]  }
  0x1a   :  { %1194 = vmatprep.subr.bf16.mxu1 %v1327_v25  ;;  %v1380_v9 = vld [vmem:[%s1725_s2 + $0x98] sm:$0xff]   ;;  %v1383_v12 = vld [vmem:[%s1725_s2 + $0x90] sm:$0xff]   ;;  %v1387_v15 = vld [vmem:[%s1725_s2 + $0xc8] sm:$0xff]  }
  0x1b   :  { %v1382_v11 = vld [vmem:[%s1725_s2 + $0x118] sm:$0xff]   ;;  %v1388_v16 = vld [vmem:[%s1725_s2 + $0x110] sm:$0xff]   ;;  %v1389_v17 = vld [vmem:[%s1725_s2 + $0x88] sm:$0xff]  }
  0x1c   :  { %1167 = vmatpush3.bf16.msra.mxu0 %v1328_v26  ;;  %v1386_v14 = vld [vmem:[%s1726_s0 + $0x28] ss:$20 sps:$4 sm:$0xff]   ;;  %v1390_v18 = vld [vmem:[%s1725_s2 + $0xc0] sm:$0xff]   ;;  %v1398_v26 = vld [vmem:[%s1726_s0 + $0x38] ss:$20 sps:$4 sm:$0xff]  }
  0x1d   :  { %1195 = vmatpush3.bf16.msra.mxu1 %v1329_v27  ;;  %1168 = vmatprep.subr.bf16.mxu0 %v1330_v28  ;;  %v1391_v19 = vld [vmem:[%s1725_s2 + $0x108] sm:$0xff]   ;;  %v1392_v20 = vld [vmem:[%s1725_s2 + $0x80] sm:$0xff]  }
  0x1e   :  { %1196 = vmatprep.subr.bf16.mxu1 %v1331_v29  ;;  %v1393_v21 = vld [vmem:[%s1726_s0 + $0x8] ss:$20 sps:$4 sm:$0xff]   ;;  %v1395_v22 = vld [vmem:[%s1726_s0 + $0xc] ss:$20 sps:$4 sm:$0xff]   ;;  %v1397_v24 = vld [vmem:[%s1726_s0 + $0x10] ss:$20 sps:$4 sm:$0xff]  }
  0x1f   :  { %v1396_v23 = vld [vmem:[%s1725_s2 + $0x100] sm:$0xff]   ;;  %v1399_v25 = vld [vmem:[%s1726_s0 + $0x34] ss:$20 sps:$4 sm:$0xff]  }
  0x20   :  { %1169 = vmatpush3.bf16.msra.mxu0 %v1332_v30  ;;  %v1401_v27 = vld [vmem:[%s1726_s0 + $0x30] ss:$20 sps:$4 sm:$0xff]  }
  0x21   :  { %1197 = vmatpush3.bf16.msra.mxu1 %v1333_v31  ;;  %1278 = vmatprep.subr.bf16.mxu0 %v1340_v36 }
  0x22   :  { %1216 = vmatprep.subr.bf16.mxu1 %v1341_v37 }
  0x23   :  { %492 = vmatmul.mubr.bf16.vlgmr.msra.gmra.mxu0 %v1334_v32 }
  0x24   :  { %541 = vmatmul.mubr.bf16.vlgmr.msra.gmra.mxu1 %v1337_v34  ;;  %1279 = vmatpush3.bf16.msra.mxu0 %v1340_v36 }
  0x25   :  { %1217 = vmatpush3.bf16.msra.mxu1 %v1342_v38  ;;  %1280 = vmatprep.subr.bf16.mxu0 %v1343_v39 }
  0x26   :  { %1218 = vmatprep.subr.bf16.mxu1 %v1344_v40  ;;  %499 = vmatprep.mubr.bf16.mxu0 %v1346_v42 }
  0x27   :  { %548 = vmatprep.mubr.bf16.mxu1 %v1348_v43 }
  0x28   :  { %1281 = vmatpush3.bf16.msra.mxu0 %v1343_v39 }
  0x29   :  { %1219 = vmatpush3.bf16.msra.mxu1 %v1345_v41  ;;  %1282 = vmatprep.subr.bf16.mxu0 %v1352_v46 }
  0x2a   :  { %1220 = vmatprep.subr.bf16.mxu1 %v1353_v47 }
  0x2b   :  { %500 = vmatmul.mubr.bf16.gmra.mxu0 %v1350_v44 }
  0x2c   :  { %549 = vmatmul.mubr.bf16.gmra.mxu1 %v1351_v45  ;;  %1283 = vmatpush3.bf16.msra.mxu0 %v1352_v46 }
  0x2d   :  { %1221 = vmatpush3.bf16.msra.mxu1 %v1354_v48  ;;  %1284 = vmatprep.subr.bf16.mxu0 %v1355_v49 }
  0x2e   :  { %1222 = vmatprep.subr.bf16.mxu1 %v1356_v50  ;;  %1286 = vmatprep.mubr.msk.bf16.mxu0 %vm452_vm0, %v1358_v52 }
  0x2f   :  { %910 = vmatprep.mubr.bf16.mxu1 %v1378_v7 }
  0x30   :  { %1285 = vmatpush3.bf16.msra.mxu0 %v1355_v49 }
  0x31   :  { %1223 = vmatpush3.bf16.msra.mxu1 %v1357_v51  ;;  %1244 = vmatprep.subr.bf16.mxu0 %v1361_v55 }
  0x32   :  { %1224 = vmatprep.subr.bf16.mxu1 %v1360_v54 }
  0x33   :  { %1287 = vmatmul.mubr.msk.bf16.vlgmr.msra.gmra.mxu0 %vm452_vm0, %v1359_v53 }
  0x34   :  { %1245 = vmatpush3.bf16.msra.mxu0 %v1363_v57  ;;  %959 = vmatprep.mubr.bf16.mxu0 %v1395_v22 }
  0x35   :  { %1225 = vmatpush3.bf16.msra.mxu1 %v1362_v56  ;;  %1246 = vmatprep.subr.bf16.mxu0 %v1365_v59 }
  0x36   :  { %1226 = vmatprep.subr.bf16.mxu1 %v1364_v58 }
  0x38   :  { %1247 = vmatpush3.bf16.msra.mxu0 %v1367_v61 }
  0x39   :  { %1227 = vmatpush3.bf16.msra.mxu1 %v1366_v60  ;;  %1248 = vmatprep.subr.bf16.mxu0 %v1369_v63 }
  0x3a   :  { %1228 = vmatprep.subr.bf16.mxu1 %v1368_v62 }
  0x3c   :  { %1249 = vmatpush3.bf16.msra.mxu0 %v1371_v1 }
  0x3d   :  { %1229 = vmatpush3.bf16.msra.mxu1 %v1370_v0  ;;  %1250 = vmatprep.subr.bf16.mxu0 %v1373_v3 }
  0x3e   :  { %1230 = vmatprep.subr.bf16.mxu1 %v1372_v2 }
  0x40   :  { %1251 = vmatpush3.bf16.msra.mxu0 %v1375_v5 }
  0x41   :  { %1231 = vmatpush3.bf16.msra.mxu1 %v1374_v4  ;;  %1252 = vmatprep.subr.bf16.mxu0 %v1379_v8 }
  0x42   :  { %1290 = vmatprep.subr.bf16.mxu1 %v1382_v11 }
  0x44   :  { %911 = vmatmul.mubr.bf16.vlgmr.msra.gmra.mxu1 %v1376_v6  ;;  %1253 = vmatpush3.bf16.msra.mxu0 %v1380_v9 }
  0x45   :  { %1254 = vmatprep.subr.bf16.mxu0 %v1381_v10  ;;  %1291 = vmatpush3.bf16.msra.mxu1 %v1382_v11 }
  0x46   :  { %918 = vmatprep.mubr.bf16.mxu1 %v1384_v13  ;;  %1292 = vmatprep.subr.bf16.mxu1 %v1388_v16 }
  0x48   :  { %1255 = vmatpush3.bf16.msra.mxu0 %v1383_v12 }
  0x49   :  { %1256 = vmatprep.subr.bf16.mxu0 %v1387_v15  ;;  %1293 = vmatpush3.bf16.msra.mxu1 %v1388_v16 }
  0x4a   :  { %1294 = vmatprep.subr.bf16.mxu1 %v1391_v19 }
  0x4c   :  { %919 = vmatmul.mubr.bf16.gmra.mxu1 %v1386_v14  ;;  %1257 = vmatpush3.bf16.msra.mxu0 %v1389_v17 }
  0x4d   :  { %1258 = vmatprep.subr.bf16.mxu0 %v1390_v18  ;;  %1295 = vmatpush3.bf16.msra.mxu1 %v1391_v19 }
  0x4e   :  { %1296 = vmatprep.subr.bf16.mxu1 %v1396_v23  ;;  %1298 = vmatprep.mubr.msk.bf16.mxu1 %vm452_vm0, %v1397_v24 }
  0x50   :  { %1259 = vmatpush3.bf16.msra.mxu0 %v1392_v20 }
  0x51   :  { %1297 = vmatpush3.bf16.msra.mxu1 %v1396_v23 }
  0x53   :  { %960 = vmatmul.mubr.bf16.vlgmr.msra.gmra.mxu0 %v1393_v21 }
  0x54   :  { %967 = vmatprep.mubr.bf16.mxu0 %v1399_v25  ;;  %1299 = vmatmul.mubr.msk.bf16.vlgmr.msra.gmra.mxu1 %vm452_vm0, %v1398_v26 }
  0x5b   :  { %968 = vmatmul.mubr.bf16.gmra.mxu0 %v1401_v27 }
  0xe3   :  { %v1170_v29 = vpop.f32.mrf.mxu0 }
  0xe4   :  { %v1198_v28 = vpop.f32.mrf.mxu1 }
  0xe5   :  { %v1171_v31 = vpop.f32.mrf.mxu0 }
  0xe6   :  { %v1199_v30 = vpop.f32.mrf.mxu1  ;;  %v1172_v53 = vadd.f32 %v1171_v31, %v1170_v29 }
  0xe7   :  { %v1173_v33 = vpop.f32.mrf.mxu0  ;;  %v1200_v54 = vadd.f32 %v1199_v30, %v1198_v28 }
  0xe8   :  { %v1201_v32 = vpop.f32.mrf.mxu1 }
  0xe9   :  { %v1174_v35 = vpop.f32.mrf.mxu0  ;;  %v543_v59 = vadd.f32 %v1200_v54, %v1172_v53 }
  0xea   :  { %v1202_v34 = vpop.f32.mrf.mxu1  ;;  %v1175_v57 = vadd.f32 %v1174_v35, %v1173_v33 }
  0xeb   :  { %v1176_v37 = vpop.f32.mrf.mxu0  ;;  %v1203_v58 = vadd.f32 %v1202_v34, %v1201_v32 }
  0xec   :  { %v1204_v36 = vpop.f32.mrf.mxu1 }
  0xed   :  { %v1177_v39 = vpop.f32.mrf.mxu0  ;;  %v546_v3 = vadd.f32 %v1203_v58, %v1175_v57 }
  0xee   :  { %v1205_v38 = vpop.f32.mrf.mxu1  ;;  %v1178_v0 = vadd.f32 %v1177_v39, %v1176_v37 }
  0xef   :  { %v1179_v41 = vpop.f32.mrf.mxu0  ;;  %v1206_v1 = vadd.f32 %v1205_v38, %v1204_v36 }
  0xf0   :  { %v1207_v40 = vpop.f32.mrf.mxu1 }
  0xf1   :  { %v1180_v43 = vpop.f32.mrf.mxu0  ;;  %v551_v14 = vadd.f32 %v1206_v1, %v1178_v0 }
  0xf2   :  { %v1208_v42 = vpop.f32.mrf.mxu1  ;;  %v1181_v12 = vadd.f32 %v1180_v43, %v1179_v41 }
  0xf3   :  { %v1288_v46 = vpop.f32.mrf.mxu0  ;;  %v1209_v13 = vadd.f32 %v1208_v42, %v1207_v40 }
  0xf4   :  { %v600_v22 = vadd.f32 %v1288_v46, %v551_v14 }
  0xf5   :  { %v591_v49 = vpop.f32.mrf.mxu0  ;;  %v554_v26 = vadd.f32 %v1209_v13, %v1181_v12 }
  0xf6   :  { %v592_v62 = vadd.f32 %v591_v49, %v543_v59 }
  0xf7   :  { %v1289_v52 = vpop.f32.mrf.mxu0 }
  0xf8   :  { %v603_v33 = vadd.f32 %v1289_v52, %v554_v26 }
  0xf9   :  { %v594_v56 = vpop.f32.mrf.mxu0 }
  0xfa   :  { %v595_v9 = vadd.f32 %v594_v56, %v546_v3 }
 0x104   :  { %v1232_v44 = vpop.f32.mrf.mxu1 }
 0x106   :  { %v1233_v45 = vpop.f32.mrf.mxu1 }
 0x107   :  { %v1234_v60 = vadd.f32 %v1233_v45, %v1232_v44 }
 0x108   :  { %v1235_v47 = vpop.f32.mrf.mxu1 }
 0x109   :  { %v913_v4 = vadd.f32 %v1234_v60, %v592_v62 }
 0x10a   :  { %v1236_v48 = vpop.f32.mrf.mxu1 }
 0x10b   :  { %v1237_v5 = vadd.f32 %v1236_v48, %v1235_v47 }
 0x10c   :  { %v1238_v50 = vpop.f32.mrf.mxu1 }
 0x10d   :  { %v916_v16 = vadd.f32 %v1237_v5, %v595_v9 }
 0x10e   :  { %v1239_v51 = vpop.f32.mrf.mxu1 }
 0x10f   :  { %v1240_v17 = vadd.f32 %v1239_v51, %v1238_v50 }
 0x110   :  { %v1241_v55 = vpop.f32.mrf.mxu1 }
 0x111   :  { %v921_v28 = vadd.f32 %v1240_v17, %v600_v22 }
 0x112   :  { %v1242_v63 = vpop.f32.mrf.mxu1 }
 0x113   :  { %v1260_v61 = vpop.f32.mrf.mxu0  ;;  %v1243_v29 = vadd.f32 %v1242_v63, %v1241_v55 }
 0x114   :  { %v1300_v7 = vpop.f32.mrf.mxu1 }
 0x115   :  { %v1261_v2 = vpop.f32.mrf.mxu0  ;;  %v924_v37 = vadd.f32 %v1243_v29, %v603_v33 }
 0x116   :  { %v1262_v6 = vadd.f32 %v1261_v2, %v1260_v61  ;;  %v1010_v11 = vpop.f32.mrf.mxu1 }
 0x117   :  { %v1263_v8 = vpop.f32.mrf.mxu0 }
 0x118   :  { %v962_v10 = vadd.f32 %v1262_v6, %v913_v4  ;;  %v1301_v20 = vpop.f32.mrf.mxu1 }
 0x119   :  { %v1264_v15 = vpop.f32.mrf.mxu0 }
 0x11a   :  { %v1265_v18 = vadd.f32 %v1264_v15, %v1263_v8  ;;  %v1011_v19 = vadd.f32 %v1010_v11, %v962_v10  ;;  %v1013_v25 = vpop.f32.mrf.mxu1 }
 0x11b   :  { %v1266_v21 = vpop.f32.mrf.mxu0 }
 0x11c   :  { %v1150_v23 = vpack.c.bf16 %v1011_v19, %v1011_v19  ;;  %v965_v24 = vadd.f32 %v1265_v18, %v916_v16 }
 0x11d   :  { %v1267_v27 = vpop.f32.mrf.mxu0 }
 0x11e   :  { %1042 = vst.msk [vmem:[%s1727_s4] sm:$0xf] %vm1041_vm1, %v1150_v23  ;;  %v1268_v30 = vadd.f32 %v1267_v27, %v1266_v21  ;;  %v1014_v31 = vadd.f32 %v1013_v25, %v965_v24 }
 0x11f   :  { %v1269_v32 = vpop.f32.mrf.mxu0 }
 0x120   :  { %v970_v34 = vadd.f32 %v1268_v30, %v921_v28  ;;  %v1151_v35 = vpack.c.bf16 %v1014_v31, %v1014_v31 }
 0x121   :  { %v1270_v36 = vpop.f32.mrf.mxu0 }
 0x122   :  { %v1019_v38 = vadd.f32 %v1300_v7, %v970_v34  ;;  %1043 = vst.msk [vmem:[%s1727_s4 + $0x4] sm:$0xf] %vm1041_vm1, %v1151_v35  ;;  %v1271_v39 = vadd.f32 %v1270_v36, %v1269_v32 }
 0x124   :  { %v1152_v40 = vpack.c.bf16 %v1019_v38, %v1019_v38  ;;  %v973_v41 = vadd.f32 %v1271_v39, %v924_v37 }
 0x126   :  { %1044 = vst.msk [vmem:[%s1727_s4 + $0x8] sm:$0xf] %vm1041_vm1, %v1152_v40  ;;  %v1022_v42 = vadd.f32 %v1301_v20, %v973_v41 }
 0x128   :  { %v1153_v43 = vpack.c.bf16 %v1022_v42, %v1022_v42 }
 0x12a   :  { %1045 = vst.msk [vmem:[%s1727_s4 + $0xc] sm:$0xf] %vm1041_vm1, %v1153_v43 }

// kernel: hgfeature_forward.44
= control target key start
LH: loop header
LB: loop body
LE: loop exit
PB: predicated region body
PF: predicated region fallthrough
CT: control target
= control target key end

     0   :  { %v578_v0 = vmov 0   ;;  %vm196_vm0 = vcmask 523264   ;;  %s734_s1 = inlined_call_operand.vmem [shape: bf16[192,128], index: 1, kind: input, shape index: {}]   ;;  %s735_s0 = inlined_call_operand.vmem [shape: bf16[128,192], index: 0, kind: input, shape index: {}]   ;;  %s736_s2 = inlined_call_operand.vmem [shape: bf16[128,128], index: 2, kind: output, shape index: {}]  }
   0x1   :  { %221 = vmatprep.subr.bf16.mxu0 %v578_v0  ;;  %517 = vmatprep.subr.bf16.mxu1 %v578_v0  ;;  %v542_v1 = vld [vmem:[%s734_s1 + $0x38] sm:$0xff]   ;;  %v543_v2 = vld [vmem:[%s734_s1 + $0x30] sm:$0xff]   ;;  %v544_v3 = vld [vmem:[%s734_s1 + $0x28] sm:$0xff]  }
   0x2   :  { %222 = vmatpush1.bf16.msra.mxu0 %v542_v1  ;;  %529 = vmatpush1.bf16.msra.mxu1 %v542_v1  ;;  %v545_v4 = vld [vmem:[%s734_s1 + $0x20] sm:$0xff]   ;;  %v546_v6 = vld [vmem:[%s734_s1 + $0x18] sm:$0xff]   ;;  %v547_v8 = vld [vmem:[%s734_s1 + $0x10] sm:$0xff]  }
   0x3   :  { %223 = vmatprep.subr.bf16.mxu0 %v578_v0  ;;  %518 = vmatprep.subr.bf16.mxu1 %v578_v0  ;;  %v556_v5 = vld [vmem:[%s735_s0 + $0x4] ss:$8 sps:$4 sm:$0xff]   ;;  %v550_v11 = vld [vmem:[%s734_s1 + $0x58] sm:$0xff]   ;;  %v551_v12 = vld [vmem:[%s734_s1 + $0x50] sm:$0xff]  }
   0x4   :  { %v559_v7 = vld [vmem:[%s735_s0 + $0x44] ss:$8 sps:$4 sm:$0xff]   ;;  %430 = vmatprep.mubr.msk.bf16.mxu0 %vm196_vm0, %v556_v5  ;;  %v554_v15 = vld [vmem:[%s735_s0] ss:$8 sps:$4 sm:$0xff]   ;;  %v560_v17 = vld [vmem:[%s735_s0 + $0x14] ss:$8 sps:$4 sm:$0xff]  }
   0x5   :  { %434 = vmatprep.mubr.msk.bf16.mxu1 %vm196_vm0, %v559_v7  ;;  %v548_v9 = vld [vmem:[%s734_s1 + $0x8] sm:$0xff]   ;;  %v549_v10 = vld [vmem:[%s734_s1] sm:$0xff]   ;;  %v562_v18 = vld [vmem:[%s735_s0 + $0x54] ss:$8 sps:$4 sm:$0xff]  }
   0x6   :  { %224 = vmatpush1.bf16.msra.mxu0 %v543_v2  ;;  %530 = vmatpush1.bf16.msra.mxu1 %v543_v2  ;;  %v552_v13 = vld [vmem:[%s734_s1 + $0x48] sm:$0xff]   ;;  %v553_v14 = vld [vmem:[%s734_s1 + $0x40] sm:$0xff]   ;;  %v564_v19 = vld [vmem:[%s735_s0 + $0x10] ss:$8 sps:$4 sm:$0xff]  }
   0x7   :  { %225 = vmatprep.subr.bf16.mxu0 %v578_v0  ;;  %519 = vmatprep.subr.bf16.mxu1 %v578_v0  ;;  %v557_v16 = vld [vmem:[%s735_s0 + $0x40] ss:$8 sps:$4 sm:$0xff]   ;;  %v565_v20 = vld [vmem:[%s735_s0 + $0x50] ss:$8 sps:$4 sm:$0xff]   ;;  %v566_v21 = vld [vmem:[%s735_s0 + $0x24] ss:$8 sps:$4 sm:$0xff]  }
   0x8   :  { %v568_v22 = vld [vmem:[%s735_s0 + $0x64] ss:$8 sps:$4 sm:$0xff]   ;;  %v570_v23 = vld [vmem:[%s735_s0 + $0x20] ss:$8 sps:$4 sm:$0xff]   ;;  %v572_v25 = vld [vmem:[%s735_s0 + $0x34] ss:$8 sps:$4 sm:$0xff]  }
   0x9   :  { %v571_v24 = vld [vmem:[%s735_s0 + $0x60] ss:$8 sps:$4 sm:$0xff]   ;;  %v574_v26 = vld [vmem:[%s735_s0 + $0x74] ss:$8 sps:$4 sm:$0xff]   ;;  %v576_v27 = vld [vmem:[%s735_s0 + $0x30] ss:$8 sps:$4 sm:$0xff]  }
   0xa   :  { %226 = vmatpush1.bf16.msra.mxu0 %v544_v3  ;;  %531 = vmatpush1.bf16.msra.mxu1 %v544_v3  ;;  %v577_v28 = vld [vmem:[%s735_s0 + $0x70] ss:$8 sps:$4 sm:$0xff]  }
   0xb   :  { %227 = vmatprep.subr.bf16.mxu0 %v578_v0  ;;  %520 = vmatprep.subr.bf16.mxu1 %v578_v0 }
   0xe   :  { %228 = vmatpush1.bf16.msra.mxu0 %v545_v4  ;;  %532 = vmatpush1.bf16.msra.mxu1 %v545_v4 }
   0xf   :  { %229 = vmatprep.subr.bf16.mxu0 %v578_v0  ;;  %521 = vmatprep.subr.bf16.mxu1 %v578_v0 }
  0x12   :  { %230 = vmatpush1.bf16.msra.mxu0 %v546_v6  ;;  %533 = vmatpush1.bf16.msra.mxu1 %v546_v6 }
  0x13   :  { %231 = vmatprep.subr.bf16.mxu0 %v578_v0  ;;  %522 = vmatprep.subr.bf16.mxu1 %v578_v0 }
  0x16   :  { %232 = vmatpush1.bf16.msra.mxu0 %v547_v8  ;;  %534 = vmatpush1.bf16.msra.mxu1 %v547_v8 }
  0x17   :  { %233 = vmatprep.subr.bf16.mxu0 %v578_v0  ;;  %523 = vmatprep.subr.bf16.mxu1 %v578_v0 }
  0x1a   :  { %234 = vmatpush1.bf16.msra.mxu0 %v548_v9  ;;  %535 = vmatpush1.bf16.msra.mxu1 %v548_v9 }
  0x1b   :  { %235 = vmatprep.subr.bf16.mxu0 %v578_v0  ;;  %524 = vmatprep.subr.bf16.mxu1 %v578_v0 }
  0x1e   :  { %236 = vmatpush1.bf16.msra.mxu0 %v549_v10  ;;  %536 = vmatpush1.bf16.msra.mxu1 %v549_v10 }
  0x1f   :  { %245 = vmatprep.subr.bf16.mxu0 %v578_v0  ;;  %525 = vmatprep.subr.bf16.mxu1 %v578_v0 }
  0x22   :  { %246 = vmatpush2.bf16.msra.mxu0 %v550_v11  ;;  %537 = vmatpush2.bf16.msra.mxu1 %v550_v11 }
  0x23   :  { %247 = vmatprep.subr.bf16.mxu0 %v578_v0  ;;  %526 = vmatprep.subr.bf16.mxu1 %v578_v0 }
  0x26   :  { %248 = vmatpush2.bf16.msra.mxu0 %v551_v12  ;;  %538 = vmatpush2.bf16.msra.mxu1 %v551_v12 }
  0x27   :  { %249 = vmatprep.subr.bf16.mxu0 %v578_v0  ;;  %527 = vmatprep.subr.bf16.mxu1 %v578_v0 }
  0x2a   :  { %250 = vmatpush2.bf16.msra.mxu0 %v552_v13  ;;  %539 = vmatpush2.bf16.msra.mxu1 %v552_v13 }
  0x2b   :  { %251 = vmatprep.subr.bf16.mxu0 %v578_v0  ;;  %528 = vmatprep.subr.bf16.mxu1 %v578_v0 }
  0x2e   :  { %252 = vmatpush2.bf16.msra.mxu0 %v553_v14  ;;  %540 = vmatpush2.bf16.msra.mxu1 %v553_v14 }
  0x31   :  { %254 = vmatmul.mubr.bf16.vlgmr.msra.gmra.mxu0 %v554_v15  ;;  %286 = vmatmul.mubr.bf16.vlgmr.msra.gmra.mxu1 %v557_v16 }
  0x32   :  { %431 = vmatprep.mubr.msk.bf16.mxu0 %vm196_vm0, %v560_v17  ;;  %435 = vmatprep.mubr.msk.bf16.mxu1 %vm196_vm0, %v562_v18 }
  0x39   :  { %262 = vmatmul.mubr.bf16.gmra.mxu0 %v564_v19  ;;  %294 = vmatmul.mubr.bf16.gmra.mxu1 %v565_v20 }
  0x3a   :  { %432 = vmatprep.mubr.msk.bf16.mxu0 %vm196_vm0, %v566_v21  ;;  %436 = vmatprep.mubr.msk.bf16.mxu1 %vm196_vm0, %v568_v22 }
  0x41   :  { %270 = vmatmul.mubr.bf16.gmra.mxu0 %v570_v23  ;;  %302 = vmatmul.mubr.bf16.gmra.mxu1 %v571_v24 }
  0x42   :  { %433 = vmatprep.mubr.msk.bf16.mxu0 %vm196_vm0, %v572_v25  ;;  %437 = vmatprep.mubr.msk.bf16.mxu1 %vm196_vm0, %v574_v26 }
  0x49   :  { %278 = vmatmul.mubr.bf16.gmra.mxu0 %v576_v27  ;;  %310 = vmatmul.mubr.bf16.gmra.mxu1 %v577_v28 }
  0xf1   :  { %v255_v29 = vpop.f32.mrf.mxu0  ;;  %v287_v30 = vpop.f32.mrf.mxu1 }
  0xf3   :  { %v257_v31 = vpop.f32.mrf.mxu0  ;;  %v289_v32 = vpop.f32.mrf.mxu1 }
  0xf5   :  { %v258_v33 = vpop.f32.mrf.mxu0  ;;  %v290_v34 = vpop.f32.mrf.mxu1 }
  0xf6   :  { %v473_v35 = vpack.c.bf16 %v258_v33, %v255_v29  ;;  %v493_v36 = vpack.c.bf16 %v290_v34, %v287_v30 }
  0xf7   :  { %v260_v37 = vpop.f32.mrf.mxu0  ;;  %v292_v38 = vpop.f32.mrf.mxu1 }
  0xf8   :  { %474 = vst [vmem:[%s736_s2] sm:$0xff] %v473_v35   ;;  %513 = vst [vmem:[%s736_s2 + $0x20] sm:$0xff] %v493_v36  }
  0xf9   :  { %v263_v39 = vpop.f32.mrf.mxu0  ;;  %v295_v40 = vpop.f32.mrf.mxu1 }
  0xfb   :  { %v265_v41 = vpop.f32.mrf.mxu0  ;;  %v297_v42 = vpop.f32.mrf.mxu1 }
  0xfd   :  { %v266_v43 = vpop.f32.mrf.mxu0  ;;  %v298_v44 = vpop.f32.mrf.mxu1 }
  0xfe   :  { %v478_v45 = vpack.c.bf16 %v266_v43, %v263_v39  ;;  %v498_v46 = vpack.c.bf16 %v298_v44, %v295_v40 }
  0xff   :  { %v268_v47 = vpop.f32.mrf.mxu0  ;;  %v300_v48 = vpop.f32.mrf.mxu1 }
 0x100   :  { %510 = vst [vmem:[%s736_s2 + $0x8] sm:$0xff] %v478_v45   ;;  %514 = vst [vmem:[%s736_s2 + $0x28] sm:$0xff] %v498_v46  }
 0x101   :  { %v271_v49 = vpop.f32.mrf.mxu0  ;;  %v303_v50 = vpop.f32.mrf.mxu1 }
 0x103   :  { %v273_v51 = vpop.f32.mrf.mxu0  ;;  %v305_v52 = vpop.f32.mrf.mxu1 }
 0x105   :  { %v274_v53 = vpop.f32.mrf.mxu0  ;;  %v306_v54 = vpop.f32.mrf.mxu1 }
 0x106   :  { %v483_v55 = vpack.c.bf16 %v274_v53, %v271_v49  ;;  %v503_v56 = vpack.c.bf16 %v306_v54, %v303_v50 }
 0x107   :  { %v276_v57 = vpop.f32.mrf.mxu0  ;;  %v308_v58 = vpop.f32.mrf.mxu1 }
 0x108   :  { %511 = vst [vmem:[%s736_s2 + $0x10] sm:$0xff] %v483_v55   ;;  %515 = vst [vmem:[%s736_s2 + $0x30] sm:$0xff] %v503_v56  }
 0x109   :  { %v279_v59 = vpop.f32.mrf.mxu0  ;;  %v311_v60 = vpop.f32.mrf.mxu1 }
 0x10b   :  { %v281_v61 = vpop.f32.mrf.mxu0  ;;  %v313_v62 = vpop.f32.mrf.mxu1 }
 0x10d   :  { %v282_v63 = vpop.f32.mrf.mxu0  ;;  %v314_v0 = vpop.f32.mrf.mxu1 }
 0x10e   :  { %v488_v1 = vpack.c.bf16 %v282_v63, %v279_v59  ;;  %v508_v2 = vpack.c.bf16 %v314_v0, %v311_v60 }
 0x10f   :  { %v284_v3 = vpop.f32.mrf.mxu0  ;;  %v316_v4 = vpop.f32.mrf.mxu1 }
 0x110   :  { %512 = vst [vmem:[%s736_s2 + $0x18] sm:$0xff] %v488_v1   ;;  %516 = vst [vmem:[%s736_s2 + $0x38] sm:$0xff] %v508_v2  }

// kernel: hgfeature_forward.43
= control target key start
LH: loop header
LB: loop body
LE: loop exit
PB: predicated region body
PF: predicated region fallthrough
CT: control target
= control target key end

     0   :  { %v1785_v0 = vmov 0   ;;  %vm504_vm0 = vcmask 392192   ;;  %vm1319_vm1 = vcmask 388096   ;;  %s2411_s3 = inlined_call_operand.vmem [shape: bf16[432,48], index: 3, kind: input, shape index: {}]   ;;  %s2412_s1 = inlined_call_operand.vmem [shape: bf16[128,432], index: 1, kind: input, shape index: {}]   ;;  %s2413_s2 = inlined_call_operand.vmem [shape: bf16[432,48], index: 2, kind: input, shape index: {}]   ;;  %s2414_s0 = inlined_call_operand.vmem [shape: bf16[128,432], index: 0, kind: input, shape index: {}]   ;;  %s2415_s4 = inlined_call_operand.vmem [shape: bf16[128,48], index: 4, kind: output, shape index: {}]  }
   0x1   :  { %626 = vmatprep.subr.bf16.mxu1 %v1785_v0  ;;  %v1635_v1 = vld [vmem:[%s2411_s3 + $0x78] sm:$0xff]   ;;  %v1638_v4 = vld [vmem:[%s2411_s3 + $0x70] sm:$0xff]   ;;  %v1641_v7 = vld [vmem:[%s2411_s3 + $0x68] sm:$0xff]  }
   0x2   :  { %v1636_v2 = vld [vmem:[%s2411_s3 + $0xb8] sm:$0xff]   ;;  %1506 = vmatprep.subr.bf16.mxu0 %v1635_v1  ;;  %v1639_v5 = vld [vmem:[%s2411_s3 + $0xb0] sm:$0xff]   ;;  %v1642_v8 = vld [vmem:[%s2411_s3 + $0xa8] sm:$0xff]  }
   0x3   :  { %v1637_v3 = vld [vmem:[%s2411_s3 + $0x38] sm:$0xff]   ;;  %627 = vmatpush1.bf16.msra.mxu1 %v1636_v2  ;;  %v1640_v6 = vld [vmem:[%s2411_s3 + $0x30] sm:$0xff]   ;;  %v1643_v9 = vld [vmem:[%s2411_s3 + $0x28] sm:$0xff]  }
   0x4   :  { %1507 = vmatpush3.bf16.msra.mxu0 %v1637_v3  ;;  %628 = vmatprep.subr.bf16.mxu1 %v1785_v0  ;;  %v1644_v10 = vld [vmem:[%s2411_s3 + $0x60] sm:$0xff]   ;;  %v1647_v13 = vld [vmem:[%s2411_s3 + $0x58] sm:$0xff]   ;;  %v1650_v16 = vld [vmem:[%s2411_s3 + $0x50] sm:$0xff]  }
   0x5   :  { %1508 = vmatprep.subr.bf16.mxu0 %v1638_v4  ;;  %v1645_v11 = vld [vmem:[%s2411_s3 + $0xa0] sm:$0xff]   ;;  %v1648_v14 = vld [vmem:[%s2411_s3 + $0x98] sm:$0xff]   ;;  %v1651_v17 = vld [vmem:[%s2411_s3 + $0x90] sm:$0xff]  }
   0x6   :  { %v1646_v12 = vld [vmem:[%s2411_s3 + $0x20] sm:$0xff]   ;;  %v1649_v15 = vld [vmem:[%s2411_s3 + $0x18] sm:$0xff]   ;;  %v1652_v18 = vld [vmem:[%s2411_s3 + $0x10] sm:$0xff]  }
   0x7   :  { %629 = vmatpush1.bf16.msra.mxu1 %v1639_v5  ;;  %v1653_v19 = vld [vmem:[%s2411_s3 + $0x48] sm:$0xff]   ;;  %v1656_v22 = vld [vmem:[%s2411_s3 + $0x40] sm:$0xff]   ;;  %v1664_v26 = vld [vmem:[%s2413_s2 + $0x78] sm:$0xff]  }
   0x8   :  { %1509 = vmatpush3.bf16.msra.mxu0 %v1640_v6  ;;  %630 = vmatprep.subr.bf16.mxu1 %v1785_v0  ;;  %v1654_v20 = vld [vmem:[%s2411_s3 + $0x88] sm:$0xff]   ;;  %v1661_v23 = vld [vmem:[%s2412_s1 + $0x4] ss:$16 sps:$4 sm:$0xff]   ;;  %v1659_v27 = vld [vmem:[%s2412_s1] ss:$16 sps:$4 sm:$0xff]  }
   0x9   :  { %1510 = vmatprep.subr.bf16.mxu0 %v1641_v7  ;;  %v1655_v21 = vld [vmem:[%s2411_s3 + $0x8] sm:$0xff]   ;;  %v1657_v24 = vld [vmem:[%s2411_s3 + $0x80] sm:$0xff]   ;;  %561 = vmatprep.mubr.bf16.mxu0 %v1661_v23  ;;  %v1662_v28 = vld [vmem:[%s2411_s3 + $0xd0] sm:$0xff]  }
   0xa   :  { %v1658_v25 = vld [vmem:[%s2411_s3] sm:$0xff]   ;;  %v1665_v29 = vld [vmem:[%s2413_s2 + $0x38] sm:$0xff]   ;;  %v1674_v32 = vld [vmem:[%s2413_s2 + $0x70] sm:$0xff]  }
   0xb   :  { %631 = vmatpush1.bf16.msra.mxu1 %v1642_v8  ;;  %v1672_v30 = vld [vmem:[%s2412_s1 + $0xc] ss:$16 sps:$4 sm:$0xff]   ;;  %v1666_v31 = vld [vmem:[%s2412_s1 + $0x24] ss:$16 sps:$4 sm:$0xff]   ;;  %v1668_v35 = vld [vmem:[%s2412_s1 + $0x20] ss:$16 sps:$4 sm:$0xff]  }
   0xc   :  { %1511 = vmatpush3.bf16.msra.mxu0 %v1643_v9  ;;  %632 = vmatprep.subr.bf16.mxu1 %v1785_v0  ;;  %v1663_v33 = vld [vmem:[%s2411_s3 + $0xc8] sm:$0xff]   ;;  %v1675_v34 = vld [vmem:[%s2413_s2 + $0x30] sm:$0xff]   ;;  %v1669_v36 = vld [vmem:[%s2411_s3 + $0xc0] sm:$0xff]  }
   0xd   :  { %1512 = vmatprep.subr.bf16.mxu0 %v1644_v10  ;;  %1399 = vmatprep.mubr.msk.bf16.mxu1 %vm504_vm0, %v1672_v30  ;;  %v1676_v37 = vld [vmem:[%s2412_s1 + $0x44] ss:$16 sps:$4 sm:$0xff]   ;;  %v1683_v38 = vld [vmem:[%s2413_s2 + $0x68] sm:$0xff]   ;;  %v1673_v41 = vld [vmem:[%s2413_s2 + $0xb8] sm:$0xff]  }
   0xe   :  { %v1684_v39 = vld [vmem:[%s2413_s2 + $0x28] sm:$0xff]   ;;  %v1678_v43 = vld [vmem:[%s2412_s1 + $0x40] ss:$16 sps:$4 sm:$0xff]   ;;  %v1685_v47 = vld [vmem:[%s2412_s1 + $0x64] ss:$16 sps:$4 sm:$0xff]  }
   0xf   :  { %633 = vmatpush1.bf16.msra.mxu1 %v1645_v11  ;;  %v1670_v40 = vld [vmem:[%s2412_s1 + $0x8] ss:$16 sps:$4 sm:$0xff]   ;;  %v1679_v42 = vld [vmem:[%s2412_s1 + $0x2c] ss:$16 sps:$4 sm:$0xff]   ;;  %v1681_v44 = vld [vmem:[%s2413_s2 + $0xb0] sm:$0xff]  }
  0x10   :  { %1513 = vmatpush3.bf16.msra.mxu0 %v1646_v12  ;;  %634 = vmatprep.subr.bf16.mxu1 %v1785_v0  ;;  %v1692_v45 = vld [vmem:[%s2413_s2 + $0x60] sm:$0xff]   ;;  %v1682_v48 = vld [vmem:[%s2412_s1 + $0x28] ss:$16 sps:$4 sm:$0xff]   ;;  %v1689_v50 = vld [vmem:[%s2412_s1 + $0x4c] ss:$16 sps:$4 sm:$0xff]  }
  0x11   :  { %1514 = vmatprep.subr.bf16.mxu0 %v1647_v13  ;;  %v1693_v46 = vld [vmem:[%s2413_s2 + $0x20] sm:$0xff]   ;;  %v1688_v49 = vld [vmem:[%s2413_s2 + $0xa8] sm:$0xff]   ;;  %v1702_v51 = vld [vmem:[%s2413_s2 + $0x58] sm:$0xff]  }
  0x12   :  { %v1703_v52 = vld [vmem:[%s2413_s2 + $0x18] sm:$0xff]   ;;  %v1687_v53 = vld [vmem:[%s2412_s1 + $0x60] ss:$16 sps:$4 sm:$0xff]   ;;  %v1695_v56 = vld [vmem:[%s2412_s1 + $0x84] ss:$16 sps:$4 sm:$0xff]  }
  0x13   :  { %635 = vmatpush1.bf16.msra.mxu1 %v1648_v14  ;;  %v1694_v54 = vld [vmem:[%s2413_s2 + $0xa0] sm:$0xff]   ;;  %v1691_v55 = vld [vmem:[%s2412_s1 + $0x48] ss:$16 sps:$4 sm:$0xff]   ;;  %v1698_v57 = vld [vmem:[%s2412_s1 + $0x6c] ss:$16 sps:$4 sm:$0xff]  }
  0x14   :  { %1515 = vmatpush3.bf16.msra.mxu0 %v1649_v15  ;;  %636 = vmatprep.subr.bf16.mxu1 %v1785_v0  ;;  %v1701_v58 = vld [vmem:[%s2413_s2 + $0x98] sm:$0xff]   ;;  %v1711_v59 = vld [vmem:[%s2413_s2 + $0x50] sm:$0xff]   ;;  %v1720_v1 = vld [vmem:[%s2413_s2 + $0x48] sm:$0xff]  }
  0x15   :  { %1516 = vmatprep.subr.bf16.mxu0 %v1650_v16  ;;  %v1712_v60 = vld [vmem:[%s2413_s2 + $0x10] sm:$0xff]   ;;  %v1700_v2 = vld [vmem:[%s2412_s1 + $0x68] ss:$16 sps:$4 sm:$0xff]   ;;  %v1707_v4 = vld [vmem:[%s2412_s1 + $0x8c] ss:$16 sps:$4 sm:$0xff]  }
  0x16   :  { %v1697_v61 = vld [vmem:[%s2412_s1 + $0x80] ss:$16 sps:$4 sm:$0xff]   ;;  %v1704_v62 = vld [vmem:[%s2412_s1 + $0xa4] ss:$16 sps:$4 sm:$0xff]   ;;  %v1722_v3 = vld [vmem:[%s2413_s2 + $0x8] sm:$0xff]  }
  0x17   :  { %637 = vmatpush1.bf16.msra.mxu1 %v1651_v17  ;;  %v1709_v63 = vld [vmem:[%s2413_s2 + $0x90] sm:$0xff]   ;;  %v1715_v5 = vld [vmem:[%s2413_s2 + $0x88] sm:$0xff]   ;;  %v1721_v7 = vld [vmem:[%s2413_s2 + $0x80] sm:$0xff]  }
  0x18   :  { %1517 = vmatpush3.bf16.msra.mxu0 %v1652_v18  ;;  %638 = vmatprep.subr.bf16.mxu1 %v1785_v0  ;;  %v1706_v6 = vld [vmem:[%s2412_s1 + $0xa0] ss:$16 sps:$4 sm:$0xff]   ;;  %v1713_v10 = vld [vmem:[%s2412_s1 + $0xc4] ss:$16 sps:$4 sm:$0xff]   ;;  %v1710_v11 = vld [vmem:[%s2412_s1 + $0x88] ss:$16 sps:$4 sm:$0xff]  }
  0x19   :  { %1518 = vmatprep.subr.bf16.mxu0 %v1653_v19  ;;  %v1730_v8 = vld [vmem:[%s2413_s2 + $0x40] sm:$0xff]   ;;  %v1717_v12 = vld [vmem:[%s2412_s1 + $0xac] ss:$16 sps:$4 sm:$0xff]   ;;  %v1729_v13 = vld [vmem:[%s2413_s2 + $0xd0] sm:$0xff]  }
  0x1a   :  { %v1731_v9 = vld [vmem:[%s2413_s2] sm:$0xff]   ;;  %v1735_v15 = vld [vmem:[%s2413_s2 + $0xc8] sm:$0xff]  }
  0x1b   :  { %639 = vmatpush1.bf16.msra.mxu1 %v1654_v20  ;;  %v1716_v14 = vld [vmem:[%s2412_s1 + $0xc0] ss:$16 sps:$4 sm:$0xff]   ;;  %v1723_v16 = vld [vmem:[%s2412_s1 + $0xe4] ss:$16 sps:$4 sm:$0xff]   ;;  %v1719_v17 = vld [vmem:[%s2412_s1 + $0xa8] ss:$16 sps:$4 sm:$0xff]  }
  0x1c   :  { %1519 = vmatpush3.bf16.msra.mxu0 %v1655_v21  ;;  %640 = vmatprep.subr.bf16.mxu1 %v1785_v0  ;;  %v1726_v18 = vld [vmem:[%s2412_s1 + $0xcc] ss:$16 sps:$4 sm:$0xff]   ;;  %v1741_v19 = vld [vmem:[%s2413_s2 + $0xc0] sm:$0xff]  }
  0x1d   :  { %1520 = vmatprep.subr.bf16.mxu0 %v1656_v22  ;;  %v1725_v20 = vld [vmem:[%s2412_s1 + $0xe0] ss:$16 sps:$4 sm:$0xff]   ;;  %v1734_v21 = vld [vmem:[%s2414_s0 + $0x4] ss:$16 sps:$4 sm:$0xff]   ;;  %v1728_v22 = vld [vmem:[%s2412_s1 + $0xc8] ss:$16 sps:$4 sm:$0xff]  }
  0x1e   :  { %v1732_v23 = vld [vmem:[%s2414_s0] ss:$16 sps:$4 sm:$0xff]   ;;  %v1749_v30 = vld [vmem:[%s2414_s0 + $0x2c] ss:$16 sps:$4 sm:$0xff]  }
  0x1f   :  { %641 = vmatpush1.bf16.msra.mxu1 %v1657_v24  ;;  %v1739_v24 = vld [vmem:[%s2414_s0 + $0x24] ss:$16 sps:$4 sm:$0xff]  }
  0x20   :  { %1521 = vmatpush3.bf16.msra.mxu0 %v1658_v25  ;;  %652 = vmatprep.subr.bf16.mxu1 %v1785_v0  ;;  %v1738_v25 = vld [vmem:[%s2412_s1 + $0xe8] ss:$16 sps:$4 sm:$0xff]  }
  0x21   :  { %1570 = vmatprep.subr.bf16.mxu0 %v1664_v26  ;;  %v1745_v26 = vld [vmem:[%s2414_s0 + $0xc] ss:$16 sps:$4 sm:$0xff]  }
  0x23   :  { %562 = vmatmul.mubr.bf16.vlgmr.msra.gmra.mxu0 %v1659_v27  ;;  %653 = vmatpush2.bf16.msra.mxu1 %v1662_v28  ;;  %v1742_v27 = vld [vmem:[%s2414_s0 + $0x20] ss:$16 sps:$4 sm:$0xff]   ;;  %v1746_v28 = vld [vmem:[%s2414_s0 + $0x44] ss:$16 sps:$4 sm:$0xff]  }
  0x24   :  { %654 = vmatprep.subr.bf16.mxu1 %v1785_v0  ;;  %1571 = vmatpush3.bf16.msra.mxu0 %v1665_v29  ;;  %v1743_v29 = vld [vmem:[%s2414_s0 + $0x8] ss:$16 sps:$4 sm:$0xff]  }
  0x25   :  { %569 = vmatprep.mubr.bf16.mxu0 %v1666_v31  ;;  %1572 = vmatprep.subr.bf16.mxu0 %v1674_v32  ;;  %v1748_v31 = vld [vmem:[%s2414_s0 + $0x40] ss:$16 sps:$4 sm:$0xff]   ;;  %v1752_v32 = vld [vmem:[%s2414_s0 + $0x64] ss:$16 sps:$4 sm:$0xff]  }
  0x27   :  { %655 = vmatpush2.bf16.msra.mxu1 %v1663_v33  ;;  %v1751_v33 = vld [vmem:[%s2414_s0 + $0x28] ss:$16 sps:$4 sm:$0xff]  }
  0x28   :  { %656 = vmatprep.subr.bf16.mxu1 %v1785_v0  ;;  %1573 = vmatpush3.bf16.msra.mxu0 %v1675_v34  ;;  %v1755_v34 = vld [vmem:[%s2414_s0 + $0x4c] ss:$16 sps:$4 sm:$0xff]  }
  0x29   :  { %1574 = vmatprep.subr.bf16.mxu0 %v1683_v38  ;;  %v1761_v38 = vld [vmem:[%s2414_s0 + $0x6c] ss:$16 sps:$4 sm:$0xff]  }
  0x2b   :  { %570 = vmatmul.mubr.bf16.gmra.mxu0 %v1668_v35  ;;  %657 = vmatpush2.bf16.msra.mxu1 %v1669_v36  ;;  %v1754_v35 = vld [vmem:[%s2414_s0 + $0x60] ss:$16 sps:$4 sm:$0xff]   ;;  %v1758_v36 = vld [vmem:[%s2414_s0 + $0x84] ss:$16 sps:$4 sm:$0xff]  }
  0x2c   :  { %1158 = vmatprep.subr.bf16.mxu1 %v1785_v0  ;;  %577 = vmatprep.mubr.bf16.mxu0 %v1676_v37  ;;  %v1757_v37 = vld [vmem:[%s2414_s0 + $0x48] ss:$16 sps:$4 sm:$0xff]  }
  0x2d   :  { %1575 = vmatpush3.bf16.msra.mxu0 %v1684_v39  ;;  %v1760_v39 = vld [vmem:[%s2414_s0 + $0x80] ss:$16 sps:$4 sm:$0xff]  }
  0x2e   :  { %659 = vmatmul.mubr.bf16.vlgmr.msra.gmra.mxu1 %v1670_v40  ;;  %1576 = vmatprep.subr.bf16.mxu0 %v1692_v45  ;;  %v1764_v40 = vld [vmem:[%s2414_s0 + $0xa4] ss:$16 sps:$4 sm:$0xff]   ;;  %v1769_v45 = vld [vmem:[%s2414_s0 + $0x88] ss:$16 sps:$4 sm:$0xff]  }
  0x2f   :  { %1159 = vmatpush1.bf16.msra.mxu1 %v1673_v41  ;;  %1400 = vmatprep.mubr.msk.bf16.mxu1 %vm504_vm0, %v1679_v42  ;;  %v1763_v41 = vld [vmem:[%s2414_s0 + $0x68] ss:$16 sps:$4 sm:$0xff]   ;;  %v1767_v42 = vld [vmem:[%s2414_s0 + $0x8c] ss:$16 sps:$4 sm:$0xff]  }
  0x30   :  { %1160 = vmatprep.subr.bf16.mxu1 %v1785_v0 }
  0x31   :  { %1577 = vmatpush3.bf16.msra.mxu0 %v1693_v46  ;;  %v1773_v46 = vld [vmem:[%s2414_s0 + $0xac] ss:$16 sps:$4 sm:$0xff]  }
  0x32   :  { %1578 = vmatprep.subr.bf16.mxu0 %v1702_v51  ;;  %v1778_v51 = vld [vmem:[%s2414_s0 + $0xe0] ss:$16 sps:$4 sm:$0xff]  }
  0x33   :  { %578 = vmatmul.mubr.bf16.gmra.mxu0 %v1678_v43  ;;  %1161 = vmatpush1.bf16.msra.mxu1 %v1681_v44  ;;  %v1766_v43 = vld [vmem:[%s2414_s0 + $0xa0] ss:$16 sps:$4 sm:$0xff]   ;;  %v1770_v44 = vld [vmem:[%s2414_s0 + $0xc4] ss:$16 sps:$4 sm:$0xff]  }
  0x34   :  { %585 = vmatprep.mubr.bf16.mxu0 %v1685_v47  ;;  %1162 = vmatprep.subr.bf16.mxu1 %v1785_v0  ;;  %v1772_v47 = vld [vmem:[%s2414_s0 + $0xc0] ss:$16 sps:$4 sm:$0xff]  }
  0x35   :  { %1579 = vmatpush3.bf16.msra.mxu0 %v1703_v52  ;;  %v1781_v52 = vld [vmem:[%s2414_s0 + $0xc8] ss:$16 sps:$4 sm:$0xff]  }
  0x36   :  { %667 = vmatmul.mubr.bf16.gmra.mxu1 %v1682_v48  ;;  %1580 = vmatprep.subr.bf16.mxu0 %v1711_v59  ;;  %v1776_v48 = vld [vmem:[%s2414_s0 + $0xe4] ss:$16 sps:$4 sm:$0xff]  }
  0x37   :  { %1163 = vmatpush1.bf16.msra.mxu1 %v1688_v49  ;;  %1401 = vmatprep.mubr.msk.bf16.mxu1 %vm504_vm0, %v1689_v50  ;;  %v1775_v49 = vld [vmem:[%s2414_s0 + $0xa8] ss:$16 sps:$4 sm:$0xff]   ;;  %v1779_v50 = vld [vmem:[%s2414_s0 + $0xcc] ss:$16 sps:$4 sm:$0xff]  }
  0x38   :  { %1164 = vmatprep.subr.bf16.mxu1 %v1785_v0 }
  0x39   :  { %1581 = vmatpush3.bf16.msra.mxu0 %v1712_v60 }
  0x3a   :  { %1582 = vmatprep.subr.bf16.mxu0 %v1720_v1 }
  0x3b   :  { %586 = vmatmul.mubr.bf16.gmra.mxu0 %v1687_v53  ;;  %1165 = vmatpush1.bf16.msra.mxu1 %v1694_v54  ;;  %v1782_v53 = vld [vmem:[%s2414_s0 + $0xec] ss:$16 sps:$4 sm:$0xff]   ;;  %v1784_v54 = vld [vmem:[%s2414_s0 + $0xe8] ss:$16 sps:$4 sm:$0xff]  }
  0x3c   :  { %593 = vmatprep.mubr.bf16.mxu0 %v1695_v56  ;;  %1166 = vmatprep.subr.bf16.mxu1 %v1785_v0 }
  0x3d   :  { %1583 = vmatpush3.bf16.msra.mxu0 %v1722_v3 }
  0x3e   :  { %675 = vmatmul.mubr.bf16.gmra.mxu1 %v1691_v55  ;;  %1584 = vmatprep.subr.bf16.mxu0 %v1730_v8 }
  0x3f   :  { %1402 = vmatprep.mubr.msk.bf16.mxu1 %vm504_vm0, %v1698_v57  ;;  %1167 = vmatpush1.bf16.msra.mxu1 %v1701_v58 }
  0x40   :  { %1168 = vmatprep.subr.bf16.mxu1 %v1785_v0 }
  0x41   :  { %1585 = vmatpush3.bf16.msra.mxu0 %v1731_v9 }
  0x43   :  { %594 = vmatmul.mubr.bf16.gmra.mxu0 %v1697_v61  ;;  %1169 = vmatpush1.bf16.msra.mxu1 %v1709_v63 }
  0x44   :  { %601 = vmatprep.mubr.bf16.mxu0 %v1704_v62  ;;  %1170 = vmatprep.subr.bf16.mxu1 %v1785_v0 }
  0x46   :  { %683 = vmatmul.mubr.bf16.gmra.mxu1 %v1700_v2 }
  0x47   :  { %1403 = vmatprep.mubr.msk.bf16.mxu1 %vm504_vm0, %v1707_v4  ;;  %1171 = vmatpush1.bf16.msra.mxu1 %v1715_v5 }
  0x48   :  { %1172 = vmatprep.subr.bf16.mxu1 %v1785_v0 }
  0x4b   :  { %602 = vmatmul.mubr.bf16.gmra.mxu0 %v1706_v6  ;;  %1173 = vmatpush1.bf16.msra.mxu1 %v1721_v7 }
  0x4c   :  { %609 = vmatprep.mubr.bf16.mxu0 %v1713_v10  ;;  %1184 = vmatprep.subr.bf16.mxu1 %v1785_v0 }
  0x4e   :  { %691 = vmatmul.mubr.bf16.gmra.mxu1 %v1710_v11 }
  0x4f   :  { %1404 = vmatprep.mubr.msk.bf16.mxu1 %vm504_vm0, %v1717_v12  ;;  %1185 = vmatpush2.bf16.msra.mxu1 %v1729_v13 }
  0x50   :  { %1186 = vmatprep.subr.bf16.mxu1 %v1785_v0 }
  0x53   :  { %610 = vmatmul.mubr.bf16.gmra.mxu0 %v1716_v14  ;;  %1187 = vmatpush2.bf16.msra.mxu1 %v1735_v15 }
  0x54   :  { %617 = vmatprep.mubr.bf16.mxu0 %v1723_v16  ;;  %1188 = vmatprep.subr.bf16.mxu1 %v1785_v0  ;;  %v1736_v0 = vld [vmem:[%s2412_s1 + $0xec] ss:$16 sps:$4 sm:$0xff]  }
  0x56   :  { %699 = vmatmul.mubr.bf16.gmra.mxu1 %v1719_v17 }
  0x57   :  { %1405 = vmatprep.mubr.msk.bf16.mxu1 %vm504_vm0, %v1726_v18  ;;  %1189 = vmatpush2.bf16.msra.mxu1 %v1741_v19 }
  0x5b   :  { %618 = vmatmul.mubr.bf16.gmra.mxu0 %v1725_v20 }
  0x5c   :  { %1093 = vmatprep.mubr.bf16.mxu0 %v1734_v21 }
  0x5e   :  { %707 = vmatmul.mubr.bf16.gmra.mxu1 %v1728_v22 }
  0x5f   :  { %1406 = vmatprep.mubr.msk.bf16.mxu1 %vm504_vm0, %v1736_v0 }
  0x63   :  { %1094 = vmatmul.mubr.bf16.vlgmr.msra.gmra.mxu0 %v1732_v23 }
  0x64   :  { %1101 = vmatprep.mubr.bf16.mxu0 %v1739_v24 }
  0x66   :  { %715 = vmatmul.mubr.bf16.gmra.mxu1 %v1738_v25 }
  0x67   :  { %1466 = vmatprep.mubr.msk.bf16.mxu1 %vm504_vm0, %v1745_v26 }
  0x6b   :  { %1102 = vmatmul.mubr.bf16.gmra.mxu0 %v1742_v27 }
  0x6c   :  { %1109 = vmatprep.mubr.bf16.mxu0 %v1746_v28 }
  0x6e   :  { %1191 = vmatmul.mubr.bf16.vlgmr.msra.gmra.mxu1 %v1743_v29 }
  0x6f   :  { %1467 = vmatprep.mubr.msk.bf16.mxu1 %vm504_vm0, %v1749_v30 }
  0x73   :  { %1110 = vmatmul.mubr.bf16.gmra.mxu0 %v1748_v31 }
  0x74   :  { %1117 = vmatprep.mubr.bf16.mxu0 %v1752_v32 }
  0x76   :  { %1199 = vmatmul.mubr.bf16.gmra.mxu1 %v1751_v33 }
  0x77   :  { %1468 = vmatprep.mubr.msk.bf16.mxu1 %vm504_vm0, %v1755_v34 }
  0x7b   :  { %1118 = vmatmul.mubr.bf16.gmra.mxu0 %v1754_v35 }
  0x7c   :  { %1125 = vmatprep.mubr.bf16.mxu0 %v1758_v36 }
  0x7e   :  { %1207 = vmatmul.mubr.bf16.gmra.mxu1 %v1757_v37 }
  0x7f   :  { %1469 = vmatprep.mubr.msk.bf16.mxu1 %vm504_vm0, %v1761_v38 }
  0x83   :  { %1126 = vmatmul.mubr.bf16.gmra.mxu0 %v1760_v39 }
  0x84   :  { %1133 = vmatprep.mubr.bf16.mxu0 %v1764_v40 }
  0x86   :  { %1215 = vmatmul.mubr.bf16.gmra.mxu1 %v1763_v41 }
  0x87   :  { %1470 = vmatprep.mubr.msk.bf16.mxu1 %vm504_vm0, %v1767_v42 }
  0x8b   :  { %1134 = vmatmul.mubr.bf16.gmra.mxu0 %v1766_v43 }
  0x8c   :  { %1141 = vmatprep.mubr.bf16.mxu0 %v1770_v44 }
  0x8e   :  { %1223 = vmatmul.mubr.bf16.gmra.mxu1 %v1769_v45 }
  0x8f   :  { %1471 = vmatprep.mubr.msk.bf16.mxu1 %vm504_vm0, %v1773_v46 }
  0x93   :  { %1142 = vmatmul.mubr.bf16.gmra.mxu0 %v1772_v47 }
  0x94   :  { %1149 = vmatprep.mubr.bf16.mxu0 %v1776_v48 }
  0x96   :  { %1231 = vmatmul.mubr.bf16.gmra.mxu1 %v1775_v49 }
  0x97   :  { %1472 = vmatprep.mubr.msk.bf16.mxu1 %vm504_vm0, %v1779_v50 }
  0x9b   :  { %1150 = vmatmul.mubr.bf16.gmra.mxu0 %v1778_v51 }
  0x9e   :  { %1239 = vmatmul.mubr.bf16.gmra.mxu1 %v1781_v52 }
  0x9f   :  { %1473 = vmatprep.mubr.msk.bf16.mxu1 %vm504_vm0, %v1782_v53 }
  0xa6   :  { %1247 = vmatmul.mubr.bf16.gmra.mxu1 %v1784_v54 }
  0xe3   :  { %v2203_v55 = vpop.f32.mrf.mxu0 }
  0xe5   :  { %v2205_v56 = vpop.f32.mrf.mxu0 }
  0xe7   :  { %v2207_v57 = vpop.f32.mrf.mxu0 }
  0xe9   :  { %v2209_v58 = vpop.f32.mrf.mxu0 }
  0xeb   :  { %v2211_v59 = vpop.f32.mrf.mxu0 }
  0xed   :  { %v2213_v60 = vpop.f32.mrf.mxu0 }
  0xee   :  { %v2215_v61 = vpop.f32.mrf.mxu1 }
  0xef   :  { %v2217_v62 = vpop.f32.mrf.mxu0 }
  0xf0   :  { %v662_v63 = vpop.f32.mrf.mxu1 }
  0xf1   :  { %v2219_v1 = vpop.f32.mrf.mxu0 }
  0xf2   :  { %v2221_v2 = vpop.f32.mrf.mxu1 }
  0xf3   :  { %v2223_v3 = vpop.f32.mrf.mxu0 }
  0xf4   :  { %v665_v4 = vpop.f32.mrf.mxu1 }
  0xf5   :  { %v2225_v5 = vpop.f32.mrf.mxu0  ;;  %v1524_v4 = vadd.f32 %v2205_v56, %v2203_v55  ;;  %v1530_v56 = vadd.f32 %v2213_v60, %v2211_v59 }
  0xf6   :  { %v2227_v6 = vpop.f32.mrf.mxu1 }
  0xf7   :  { %v2229_v7 = vpop.f32.mrf.mxu0 }
  0xf8   :  { %v670_v8 = vpop.f32.mrf.mxu1 }
  0xf9   :  { %v2231_v9 = vpop.f32.mrf.mxu0 }
  0xfa   :  { %v2233_v10 = vpop.f32.mrf.mxu1 }
  0xfb   :  { %v2235_v11 = vpop.f32.mrf.mxu0 }
  0xfc   :  { %v673_v12 = vpop.f32.mrf.mxu1 }
  0xfd   :  { %v2237_v13 = vpop.f32.mrf.mxu0 }
  0xfe   :  { %v2239_v14 = vpop.f32.mrf.mxu1 }
  0xff   :  { %v2241_v15 = vpop.f32.mrf.mxu0 }
 0x100   :  { %v678_v16 = vpop.f32.mrf.mxu1 }
 0x101   :  { %v2243_v17 = vpop.f32.mrf.mxu0 }
 0x102   :  { %v2245_v18 = vpop.f32.mrf.mxu1 }
 0x103   :  { %v2247_v19 = vpop.f32.mrf.mxu0 }
 0x104   :  { %v681_v20 = vpop.f32.mrf.mxu1 }
 0x105   :  { %v2249_v21 = vpop.f32.mrf.mxu0  ;;  %v661_v20 = vadd.f32 %v1524_v4, %v2215_v61 }
 0x106   :  { %v2251_v22 = vpop.f32.mrf.mxu1 }
 0x107   :  { %v2253_v0 = vpop.f32.mrf.mxu0 }
 0x108   :  { %v686_v23 = vpop.f32.mrf.mxu1 }
 0x109   :  { %v2255_v24 = vpop.f32.mrf.mxu0 }
 0x10a   :  { %v2257_v25 = vpop.f32.mrf.mxu1 }
 0x10b   :  { %v2259_v26 = vpop.f32.mrf.mxu0 }
 0x10c   :  { %v689_v27 = vpop.f32.mrf.mxu1 }
 0x10d   :  { %v2261_v28 = vpop.f32.mrf.mxu0 }
 0x10e   :  { %v2263_v29 = vpop.f32.mrf.mxu1 }
 0x10f   :  { %v2265_v30 = vpop.f32.mrf.mxu0 }
 0x110   :  { %v694_v31 = vpop.f32.mrf.mxu1 }
 0x111   :  { %v2267_v32 = vpop.f32.mrf.mxu0  ;;  %v1527_v31 = vadd.f32 %v2209_v58, %v2207_v57  ;;  %v669_v57 = vadd.f32 %v1530_v56, %v2227_v6 }
 0x112   :  { %v2269_v33 = vpop.f32.mrf.mxu1 }
 0x113   :  { %v2271_v34 = vpop.f32.mrf.mxu0 }
 0x114   :  { %v697_v35 = vpop.f32.mrf.mxu1 }
 0x115   :  { %v2273_v36 = vpop.f32.mrf.mxu0 }
 0x116   :  { %v2275_v37 = vpop.f32.mrf.mxu1 }
 0x117   :  { %v2277_v38 = vpop.f32.mrf.mxu0 }
 0x118   :  { %v702_v39 = vpop.f32.mrf.mxu1 }
 0x119   :  { %v2279_v40 = vpop.f32.mrf.mxu0 }
 0x11a   :  { %v2281_v41 = vpop.f32.mrf.mxu1 }
 0x11b   :  { %v2283_v42 = vpop.f32.mrf.mxu0 }
 0x11c   :  { %v705_v43 = vpop.f32.mrf.mxu1 }
 0x11d   :  { %v2285_v44 = vpop.f32.mrf.mxu0 }
 0x11e   :  { %v2287_v45 = vpop.f32.mrf.mxu1 }
 0x11f   :  { %v2289_v46 = vpop.f32.mrf.mxu0 }
 0x120   :  { %v710_v47 = vpop.f32.mrf.mxu1 }
 0x121   :  { %v2291_v48 = vpop.f32.mrf.mxu0 }
 0x122   :  { %2416 = vst [vmem:[#allocation2_spill] sm:$0xff] %v2291_v48  ;;  %v2293_v49 = vpop.f32.mrf.mxu1 }
 0x123   :  { %v1586_v50 = vpop.f32.mrf.mxu0 }
 0x124   :  { %v713_v51 = vpop.f32.mrf.mxu1 }
 0x125   :  { %v1587_v52 = vpop.f32.mrf.mxu0  ;;  %v664_v51 = vadd.f32 %v1527_v31, %v2221_v2 }
 0x126   :  { %v2295_v53 = vpop.f32.mrf.mxu1  ;;  %v1588_v8 = vadd.f32 %v1587_v52, %v1586_v50 }
 0x127   :  { %v1589_v54 = vpop.f32.mrf.mxu0 }
 0x128   :  { %v718_v63 = vpop.f32.mrf.mxu1  ;;  %v1096_v43 = vadd.f32 %v1588_v8, %v661_v20  ;;  %v1533_v8 = vadd.f32 %v2219_v1, %v2217_v62 }
 0x129   :  { %v1590_v12 = vpop.f32.mrf.mxu0 }
 0x12a   :  { %v2299_v16 = vpop.f32.mrf.mxu1  ;;  %v1591_v35 = vadd.f32 %v1590_v12, %v1589_v54  ;;  %v672_v31 = vadd.f32 %v1533_v8, %v2233_v10 }
 0x12b   :  { %v1592_v23 = vpop.f32.mrf.mxu0 }
 0x12c   :  { %v721_v27 = vpop.f32.mrf.mxu1  ;;  %v1099_v4 = vadd.f32 %v1591_v35, %v664_v51 }
 0x12d   :  { %v1593_v39 = vpop.f32.mrf.mxu0 }
 0x12e   :  { %v1192_v47 = vpop.f32.mrf.mxu1  ;;  %v1594_v50 = vadd.f32 %v1593_v39, %v1592_v23 }
 0x12f   :  { %v1193_v63 = vadd.f32 %v1192_v47, %v1096_v43  ;;  %v1595_v48 = vpop.f32.mrf.mxu0  ;;  %v1536_v43 = vadd.f32 %v2225_v5, %v2223_v3 }
 0x130   :  { %v1194_v55 = vpop.f32.mrf.mxu1  ;;  %v1104_v20 = vadd.f32 %v1594_v50, %v669_v57  ;;  %v1539_v50 = vadd.f32 %v2231_v9, %v2229_v7 }
 0x131   :  { %v1490_v61 = vpack.c.bf16 %v1193_v63, %v1193_v63  ;;  %v1596_v52 = vpop.f32.mrf.mxu0  ;;  %v677_v63 = vadd.f32 %v1536_v43, %v2239_v14 }
 0x132   :  { %v1195_v27 = vpop.f32.mrf.mxu1  ;;  %v1597_v12 = vadd.f32 %v1596_v52, %v1595_v48 }
 0x133   :  { %1320 = vst.msk [vmem:[%s2415_s4] sm:$0xf] %vm1319_vm1, %v1490_v61  ;;  %v1196_v58 = vadd.f32 %v1195_v27, %v1099_v4  ;;  %v1598_v2 = vpop.f32.mrf.mxu0  ;;  %v680_v27 = vadd.f32 %v1539_v50, %v2245_v18 }
 0x134   :  { %v1197_v54 = vpop.f32.mrf.mxu1  ;;  %v1107_v48 = vadd.f32 %v1597_v12, %v672_v31 }
 0x135   :  { %v1491_v59 = vpack.c.bf16 %v1196_v58, %v1196_v58  ;;  %v1599_v60 = vpop.f32.mrf.mxu0 }
 0x136   :  { %v1200_v23 = vpop.f32.mrf.mxu1  ;;  %v1600_v47 = vadd.f32 %v1599_v60, %v1598_v2  ;;  %v1542_v2 = vadd.f32 %v2237_v13, %v2235_v11 }
 0x137   :  { %1321 = vst.msk [vmem:[%s2415_s4 + $0x4] sm:$0xf] %vm1319_vm1, %v1491_v59  ;;  %v1201_v6 = vadd.f32 %v1200_v23, %v1104_v20  ;;  %v1601_v35 = vpop.f32.mrf.mxu0  ;;  %v1545_v23 = vadd.f32 %v2243_v17, %v2241_v15 }
 0x138   :  { %v1202_v39 = vpop.f32.mrf.mxu1  ;;  %v1112_v52 = vadd.f32 %v1600_v47, %v677_v63  ;;  %v685_v59 = vadd.f32 %v1542_v2, %v2251_v22 }
 0x139   :  { %v1492_v62 = vpack.c.bf16 %v1201_v6, %v1201_v6  ;;  %v1602_v1 = vpop.f32.mrf.mxu0  ;;  %v688_v39 = vadd.f32 %v1545_v23, %v2257_v25  ;;  %v1560_v23 = vadd.f32 %v2273_v36, %v2271_v34 }
 0x13a   :  { %v1203_v51 = vpop.f32.mrf.mxu1  ;;  %v1603_v61 = vadd.f32 %v1602_v1, %v1601_v35 }
 0x13b   :  { %1322 = vst.msk [vmem:[%s2415_s4 + $0x8] sm:$0xf] %vm1319_vm1, %v1492_v62  ;;  %v1204_v10 = vadd.f32 %v1203_v51, %v1107_v48  ;;  %v1604_v55 = vpop.f32.mrf.mxu0  ;;  %v1548_v62 = vadd.f32 %v2249_v21, %v2247_v19 }
 0x13c   :  { %v1205_v56 = vpop.f32.mrf.mxu1  ;;  %v1115_v8 = vadd.f32 %v1603_v61, %v680_v27  ;;  %v1554_v27 = vadd.f32 %v2261_v28, %v2259_v26 }
 0x13d   :  { %v1493_v3 = vpack.c.bf16 %v1204_v10, %v1204_v10  ;;  %v1605_v5 = vpop.f32.mrf.mxu0  ;;  %v693_v63 = vadd.f32 %v1548_v62, %v2263_v29  ;;  %v1551_v56 = vadd.f32 %v2255_v24, %v2253_v0 }
 0x13e   :  { %v1208_v4 = vpop.f32.mrf.mxu1  ;;  %v1606_v54 = vadd.f32 %v1605_v5, %v1604_v55  ;;  %v701_v2 = vadd.f32 %v1554_v27, %v2275_v37 }
 0x13f   :  { %1323 = vst.msk [vmem:[%s2415_s4 + $0xc] sm:$0xf] %vm1319_vm1, %v1493_v3  ;;  %v1209_v14 = vadd.f32 %v1208_v4, %v1112_v52  ;;  %v1607_v57 = vpop.f32.mrf.mxu0  ;;  %v696_v5 = vadd.f32 %v1551_v56, %v2269_v33  ;;  %v2417_v56 = vld [vmem:[#allocation2_spill] sm:$0xff] }
 0x140   :  { %v1210_v58 = vpop.f32.mrf.mxu1  ;;  %v1120_v6 = vadd.f32 %v1606_v54, %v685_v59 }
 0x141   :  { %v1494_v7 = vpack.c.bf16 %v1209_v14, %v1209_v14  ;;  %v1608_v9 = vpop.f32.mrf.mxu0 }
 0x142   :  { %v1211_v12 = vpop.f32.mrf.mxu1  ;;  %v1609_v31 = vadd.f32 %v1608_v9, %v1607_v57  ;;  %v1557_v9 = vadd.f32 %v2267_v32, %v2265_v30 }
 0x143   :  { %1324 = vst.msk [vmem:[%s2415_s4 + $0x10] sm:$0xf] %vm1319_vm1, %v1494_v7  ;;  %v1212_v18 = vadd.f32 %v1211_v12, %v1115_v8  ;;  %v1610_v60 = vpop.f32.mrf.mxu0 }
 0x144   :  { %v1213_v20 = vpop.f32.mrf.mxu1  ;;  %v1123_v48 = vadd.f32 %v1609_v31, %v688_v39 }
 0x145   :  { %v1495_v11 = vpack.c.bf16 %v1212_v18, %v1212_v18  ;;  %v1611_v13 = vpop.f32.mrf.mxu0  ;;  %v704_v18 = vadd.f32 %v1557_v9, %v2281_v41 }
 0x146   :  { %v1216_v35 = vpop.f32.mrf.mxu1  ;;  %v1612_v1 = vadd.f32 %v1611_v13, %v1610_v60 }
 0x147   :  { %1325 = vst.msk [vmem:[%s2415_s4 + $0x14] sm:$0xf] %vm1319_vm1, %v1495_v11  ;;  %v1217_v22 = vadd.f32 %v1216_v35, %v1120_v6  ;;  %v1613_v43 = vpop.f32.mrf.mxu0  ;;  %v709_v6 = vadd.f32 %v1560_v23, %v2287_v45 }
 0x148   :  { %v1218_v47 = vpop.f32.mrf.mxu1  ;;  %v1128_v61 = vadd.f32 %v1612_v1, %v693_v63 }
 0x149   :  { %v1496_v15 = vpack.c.bf16 %v1217_v22, %v1217_v22  ;;  %v1614_v17 = vpop.f32.mrf.mxu0  ;;  %v1563_v22 = vadd.f32 %v2279_v40, %v2277_v38 }
 0x14a   :  { %v1219_v51 = vpop.f32.mrf.mxu1  ;;  %v1615_v50 = vadd.f32 %v1614_v17, %v1613_v43 }
 0x14b   :  { %1326 = vst.msk [vmem:[%s2415_s4 + $0x18] sm:$0xf] %vm1319_vm1, %v1496_v15  ;;  %v1220_v25 = vadd.f32 %v1219_v51, %v1123_v48  ;;  %v1616_v10 = vpop.f32.mrf.mxu0  ;;  %v712_v1 = vadd.f32 %v1563_v22, %v2293_v49  ;;  %v1566_v48 = vadd.f32 %v2285_v44, %v2283_v42 }
 0x14c   :  { %v1221_v55 = vpop.f32.mrf.mxu1  ;;  %v1131_v57 = vadd.f32 %v1615_v50, %v696_v5  ;;  %v1569_v50 = vadd.f32 %v2417_v56, %v2289_v46 }
 0x14d   :  { %v1497_v19 = vpack.c.bf16 %v1220_v25, %v1220_v25  ;;  %v1617_v21 = vpop.f32.mrf.mxu0 }
 0x14e   :  { %v1224_v3 = vpop.f32.mrf.mxu1  ;;  %v1618_v14 = vadd.f32 %v1617_v21, %v1616_v10  ;;  %v717_v10 = vadd.f32 %v1566_v48, %v2295_v53 }
 0x14f   :  { %1327 = vst.msk [vmem:[%s2415_s4 + $0x1c] sm:$0xf] %vm1319_vm1, %v1497_v19  ;;  %v1225_v29 = vadd.f32 %v1224_v3, %v1128_v61  ;;  %v1619_v52 = vpop.f32.mrf.mxu0  ;;  %v720_v61 = vadd.f32 %v1569_v50, %v2299_v16 }
 0x150   :  { %v1226_v4 = vpop.f32.mrf.mxu1  ;;  %v1136_v12 = vadd.f32 %v1618_v14, %v701_v2 }
 0x151   :  { %v1498_v0 = vpack.c.bf16 %v1225_v29, %v1225_v29  ;;  %v1620_v24 = vpop.f32.mrf.mxu0 }
 0x152   :  { %v1227_v58 = vpop.f32.mrf.mxu1  ;;  %v1621_v8 = vadd.f32 %v1620_v24, %v1619_v52 }
 0x153   :  { %1328 = vst.msk [vmem:[%s2415_s4 + $0x20] sm:$0xf] %vm1319_vm1, %v1498_v0  ;;  %v1228_v33 = vadd.f32 %v1227_v58, %v1131_v57  ;;  %v1622_v54 = vpop.f32.mrf.mxu0 }
 0x154   :  { %v1229_v7 = vpop.f32.mrf.mxu1  ;;  %v1139_v11 = vadd.f32 %v1621_v8, %v704_v18 }
 0x155   :  { %v1499_v26 = vpack.c.bf16 %v1228_v33, %v1228_v33  ;;  %v1623_v28 = vpop.f32.mrf.mxu0 }
 0x156   :  { %v1232_v59 = vpop.f32.mrf.mxu1  ;;  %v1624_v31 = vadd.f32 %v1623_v28, %v1622_v54 }
 0x157   :  { %1329 = vst.msk [vmem:[%s2415_s4 + $0x24] sm:$0xf] %vm1319_vm1, %v1499_v26  ;;  %v1233_v37 = vadd.f32 %v1232_v59, %v1136_v12  ;;  %v1625_v60 = vpop.f32.mrf.mxu0 }
 0x158   :  { %v1234_v20 = vpop.f32.mrf.mxu1  ;;  %v1144_v47 = vadd.f32 %v1624_v31, %v709_v6 }
 0x159   :  { %v1500_v30 = vpack.c.bf16 %v1233_v37, %v1233_v37  ;;  %v1626_v32 = vpop.f32.mrf.mxu0 }
 0x15a   :  { %v1235_v13 = vpop.f32.mrf.mxu1  ;;  %v1627_v43 = vadd.f32 %v1626_v32, %v1625_v60 }
 0x15b   :  { %1330 = vst.msk [vmem:[%s2415_s4 + $0x28] sm:$0xf] %vm1319_vm1, %v1500_v30  ;;  %v1236_v41 = vadd.f32 %v1235_v13, %v1139_v11  ;;  %v1628_v35 = vpop.f32.mrf.mxu0 }
 0x15c   :  { %v1237_v39 = vpop.f32.mrf.mxu1  ;;  %v1147_v40 = vadd.f32 %v1627_v43, %v712_v1 }
 0x15d   :  { %v1501_v34 = vpack.c.bf16 %v1236_v41, %v1236_v41  ;;  %v1629_v36 = vpop.f32.mrf.mxu0 }
 0x15e   :  { %v1240_v62 = vpop.f32.mrf.mxu1  ;;  %v1630_v51 = vadd.f32 %v1629_v36, %v1628_v35 }
 0x15f   :  { %1331 = vst.msk [vmem:[%s2415_s4 + $0x2c] sm:$0xf] %vm1319_vm1, %v1501_v34  ;;  %v1241_v45 = vadd.f32 %v1240_v62, %v1144_v47  ;;  %v1631_v15 = vpop.f32.mrf.mxu0 }
 0x160   :  { %v1242_v17 = vpop.f32.mrf.mxu1  ;;  %v1152_v42 = vadd.f32 %v1630_v51, %v717_v10 }
 0x161   :  { %v1502_v38 = vpack.c.bf16 %v1241_v45, %v1241_v45  ;;  %v1632_v63 = vpop.f32.mrf.mxu0 }
 0x162   :  { %v1243_v25 = vpop.f32.mrf.mxu1  ;;  %v1633_v19 = vadd.f32 %v1632_v63, %v1631_v15 }
 0x163   :  { %1332 = vst.msk [vmem:[%s2415_s4 + $0x30] sm:$0xf] %vm1319_vm1, %v1502_v38  ;;  %v1244_v49 = vadd.f32 %v1243_v25, %v1147_v40 }
 0x164   :  { %v1245_v55 = vpop.f32.mrf.mxu1  ;;  %v1155_v29 = vadd.f32 %v1633_v19, %v720_v61 }
 0x165   :  { %v1503_v21 = vpack.c.bf16 %v1244_v49, %v1244_v49 }
 0x166   :  { %v1248_v44 = vpop.f32.mrf.mxu1 }
 0x167   :  { %1333 = vst.msk [vmem:[%s2415_s4 + $0x34] sm:$0xf] %vm1319_vm1, %v1503_v21  ;;  %v1249_v53 = vadd.f32 %v1248_v44, %v1152_v42 }
 0x168   :  { %v1250_v3 = vpop.f32.mrf.mxu1 }
 0x169   :  { %v1504_v5 = vpack.c.bf16 %v1249_v53, %v1249_v53 }
 0x16a   :  { %v1251_v52 = vpop.f32.mrf.mxu1 }
 0x16b   :  { %1334 = vst.msk [vmem:[%s2415_s4 + $0x38] sm:$0xf] %vm1319_vm1, %v1504_v5  ;;  %v1252_v46 = vadd.f32 %v1251_v52, %v1155_v29 }
 0x16c   :  { %v1253_v4 = vpop.f32.mrf.mxu1 }
 0x16d   :  { %v1505_v27 = vpack.c.bf16 %v1252_v46, %v1252_v46 }
 0x16f   :  { %1335 = vst.msk [vmem:[%s2415_s4 + $0x3c] sm:$0xf] %vm1319_vm1, %v1505_v27 }

// kernel: hgfeature_forward.45
= control target key start
LH: loop header
LB: loop body
LE: loop exit
PB: predicated region body
PF: predicated region fallthrough
CT: control target
= control target key end

     0   :  { %s2879_s15 = smov 0   ;;  %s3531_s0 = inlined_call_operand.vmem [shape: bf16[512,288], index: 0, kind: input, shape index: {}]   ;;  %s3532_s1 = inlined_call_operand.vmem [shape: bf16[512,288], index: 1, kind: input, shape index: {}]   ;;  %s3533_s2 = inlined_call_operand.vmem [shape: bf16[288,32], index: 2, kind: input, shape index: {}]   ;;  %s3534_s3 = inlined_call_operand.vmem [shape: bf16[288,32], index: 3, kind: input, shape index: {}]   ;;  %s3535_s4 = inlined_call_operand.vmem [shape: bf16[512,32], index: 4, kind: output, shape index: {}]  }
   0x1 LB: > { %s2096_s16 = sadd.s32 4294967295, %s2852_s15   ;;  %p2100_p0 = scmp.ge.s32.totalorder %s2852_s15, 1  ;;  %s2852_s15 = sphi %s2879_s15, %s14_s15  }
   0x2   : > { %p176_p1 = scmp.lt.s32.totalorder %s2852_s15, 3 }
   0x4   : > { %p177_p2 = pnand %p2100_p0, %p176_p1 }
   0x6   : > { %180 = sbr.rel (%p177_p2) target bundleno = 424 (0x1a8), region = 36 }
   0xb   : > { %v2682_v0 = vld [vmem:[%s3534_s3 + $0x78] sm:$0xff]   ;;  %s2101_s19 = sshll.u32 %s2096_s16, 5  ;;  %v2684_v2 = vld [vmem:[%s3534_s3 + $0x88] sm:$0xff]   ;;  %v2685_v3 = vld [vmem:[%s3534_s3 + $0x70] sm:$0xff]   ;;  %vm778_vm0 = vcmask 261120   ;;  %vm1995_vm1 = vcmask 257024  }
   0xc   : > { %v2683_v1 = vld [vmem:[%s3534_s3 + $0x38] sm:$0xff]   ;;  %p210_p3 = scmp.lt.s32.totalorder %s2101_s19, 63  ;;  %2337 = vmatprep.subr.bf16.mxu0 %v2682_v0  ;;  %2597 = vmatprep.subr.bf16.mxu1 %v2684_v2  ;;  %v2686_v4 = vld [vmem:[%s3534_s3 + $0x30] sm:$0xff]   ;;  %v2687_v5 = vld [vmem:[%s3534_s3 + $0x80] sm:$0xff]  }
   0xd   : > { %2338 = vmatpush3.bf16.msra.mxu0 %v2683_v1  ;;  %2598 = vmatpush3.bf16.msra.mxu1 %v2684_v2  ;;  %v2688_v6 = vld [vmem:[%s3534_s3 + $0x68] sm:$0xff]   ;;  %v2692_v10 = vld [vmem:[%s3534_s3 + $0x60] sm:$0xff]   ;;  %v2694_v12 = vld [vmem:[%s3534_s3 + $0x58] sm:$0xff]  }
   0xe   : > { %s3577_s19 = smov (!%p210_p3, %s2101_s19), 63  ;;  %2339 = vmatprep.subr.bf16.mxu0 %v2685_v3  ;;  %2599 = vmatprep.subr.bf16.mxu1 %v2687_v5  ;;  %v2690_v7 = vld [vmem:[%s3534_s3 + $0x28] sm:$0xff]   ;;  %v2693_v11 = vld [vmem:[%s3534_s3 + $0x20] sm:$0xff]   ;;  %v2696_v14 = vld [vmem:[%s3533_s2 + $0x78] sm:$0xff]  }
   0xf   : > { %s2673_s30 = smul.u32 12, %s3577_s19  ;;  %v2697_v15 = vld [vmem:[%s3534_s3 + $0x18] sm:$0xff]   ;;  %v2700_v18 = vld [vmem:[%s3534_s3 + $0x50] sm:$0xff]   ;;  %v2702_v20 = vld [vmem:[%s3534_s3 + $0x48] sm:$0xff]  }
  0x10   : > { %v2699_v17 = vld [vmem:[%s3533_s2 + $0x38] sm:$0xff]   ;;  %v2701_v19 = vld [vmem:[%s3534_s3 + $0x10] sm:$0xff]   ;;  %v2705_v23 = vld [vmem:[%s3534_s3 + $0x8] sm:$0xff]  }
  0x11   : > { %2340 = vmatpush3.bf16.msra.mxu0 %v2686_v4  ;;  %s2916_s9 = scalar_lea.vmem %s3532_s1, %s2673_s30  ;;  %2600 = vmatpush3.bf16.msra.mxu1 %v2687_v5  ;;  %v2704_v22 = vld [vmem:[%s3533_s2 + $0x70] sm:$0xff]   ;;  %v2708_v26 = vld [vmem:[%s3534_s3 + $0x40] sm:$0xff]   ;;  %v2714_v31 = vld [vmem:[%s3533_s2 + $0x68] sm:$0xff]   ;;  %s3048_s26 = scalar_lea.vmem %s3531_s0, %s2673_s30 }
  0x12   : > { %2341 = vmatprep.subr.bf16.mxu0 %v2688_v6  ;;  %v2689_v8 = vld [vmem:[%s2916_s9 + $0x8] ss:$12 sps:$4 sm:$0xff]   ;;  %v2691_v9 = vld [vmem:[%s2916_s9 + $0x20] ss:$12 sps:$4 sm:$0xff]   ;;  %v2695_v13 = vld [vmem:[%s2916_s9 + $0x38] ss:$12 sps:$4 sm:$0xff]   ;;  %2467 = vmatprep.subr.bf16.mxu1 %v2696_v14 }
  0x13   : > { %2601 = vmatprep.mubr.msk.bf16.mxu1 %vm778_vm0, %v2689_v8  ;;  %v2698_v16 = vld [vmem:[%s2916_s9 + $0x50] ss:$12 sps:$4 sm:$0xff]   ;;  %v2703_v21 = vld [vmem:[%s2916_s9 + $0x68] ss:$12 sps:$4 sm:$0xff]   ;;  %v2706_v24 = vld [vmem:[%s2916_s9 + $0x80] ss:$12 sps:$4 sm:$0xff]  }
  0x14   : > { %2602 = vmatmul.mubr.msk.bf16.vlgmr.msra.gmra.mxu1 %vm778_vm0, %v2691_v9  ;;  %v2707_v25 = vld [vmem:[%s3533_s2 + $0x30] sm:$0xff]   ;;  %v2709_v27 = vld [vmem:[%s3534_s3] sm:$0xff]   ;;  %v2985_v32 = vld [vmem:[%s3533_s2 + $0x88] sm:$0xff]  }
  0x15   : > { %2342 = vmatpush3.bf16.msra.mxu0 %v2690_v7  ;;  %2605 = vmatprep.mubr.msk.bf16.mxu1 %vm778_vm0, %v2695_v13  ;;  %v2710_v28 = vld [vmem:[%s2916_s9] ss:$12 sps:$4 sm:$0xff]   ;;  %v2712_v29 = vld [vmem:[%s2916_s9 + $0x4] ss:$12 sps:$4 sm:$0xff]   ;;  %v2718_v35 = vld [vmem:[%s2916_s9 + $0x1c] ss:$12 sps:$4 sm:$0xff]  }
  0x16   : > { %2343 = vmatprep.subr.bf16.mxu0 %v2692_v10  ;;  %2468 = vmatpush3.bf16.msra.mxu1 %v2699_v17  ;;  %v2713_v30 = vld [vmem:[%s2916_s9 + $0x98] ss:$12 sps:$4 sm:$0xff]   ;;  %v2716_v33 = vld [vmem:[%s2916_s9 + $0xb0] ss:$12 sps:$4 sm:$0xff]   ;;  %v2717_v34 = vld [vmem:[%s3533_s2 + $0x28] sm:$0xff]  }
  0x17   : > { %2469 = vmatprep.subr.bf16.mxu1 %v2704_v22  ;;  %859 = vmatprep.mubr.bf16.mxu0 %v2712_v29  ;;  %v2721_v36 = vld [vmem:[%s2916_s9 + $0xc8] ss:$12 sps:$4 sm:$0xff]   ;;  %v2722_v37 = vld [vmem:[%s3533_s2 + $0x60] sm:$0xff]   ;;  %v2729_v43 = vld [vmem:[%s3533_s2 + $0x58] sm:$0xff]  }
  0x18   : > { %v2720_v38 = vld [vmem:[%s2916_s9 + $0x18] ss:$12 sps:$4 sm:$0xff]   ;;  %v2723_v40 = vld [vmem:[%s2916_s9 + $0xe0] ss:$12 sps:$4 sm:$0xff]   ;;  %v2727_v45 = vld [vmem:[%s2916_s9 + $0x30] ss:$12 sps:$4 sm:$0xff]  }
  0x19   : > { %2344 = vmatpush3.bf16.msra.mxu0 %v2693_v11  ;;  %v2724_v39 = vld [vmem:[%s3533_s2 + $0x20] sm:$0xff]   ;;  %v2731_v44 = vld [vmem:[%s3533_s2 + $0x18] sm:$0xff]   ;;  %v2736_v48 = vld [vmem:[%s3533_s2 + $0x50] sm:$0xff]  }
  0x1a   : > { %2345 = vmatprep.subr.bf16.mxu0 %v2694_v12  ;;  %2470 = vmatpush3.bf16.msra.mxu1 %v2707_v25  ;;  %v2725_v41 = vld [vmem:[%s2916_s9 + $0x34] ss:$12 sps:$4 sm:$0xff]   ;;  %v2728_v42 = vld [vmem:[%s2916_s9 + $0xf8] ss:$12 sps:$4 sm:$0xff]   ;;  %v2730_v46 = vld [vmem:[%s2916_s9 + $0x110] ss:$12 sps:$4 sm:$0xff]  }
  0x1b   : > { %2471 = vmatprep.subr.bf16.mxu1 %v2714_v31  ;;  %v2732_v47 = vld [vmem:[%s2916_s9 + $0x4c] ss:$12 sps:$4 sm:$0xff]   ;;  %v2735_v49 = vld [vmem:[%s2916_s9 + $0x128] ss:$12 sps:$4 sm:$0xff]   ;;  %v2739_v54 = vld [vmem:[%s2916_s9 + $0x64] ss:$12 sps:$4 sm:$0xff]  }
  0x1c   : > { %2606 = vmatmul.mubr.msk.bf16.gmra.mxu1 %vm778_vm0, %v2698_v16  ;;  %v2738_v50 = vld [vmem:[%s3533_s2 + $0x10] sm:$0xff]   ;;  %v2743_v52 = vld [vmem:[%s3533_s2 + $0x48] sm:$0xff]   ;;  %v2742_v55 = vld [vmem:[%s2916_s9 + $0x158] ss:$12 sps:$4 sm:$0xff]  }
  0x1d   : > { %2346 = vmatpush3.bf16.msra.mxu0 %v2697_v15  ;;  %2609 = vmatprep.mubr.msk.bf16.mxu1 %vm778_vm0, %v2703_v21  ;;  %v2734_v51 = vld [vmem:[%s2916_s9 + $0x48] ss:$12 sps:$4 sm:$0xff]   ;;  %v2737_v53 = vld [vmem:[%s2916_s9 + $0x140] ss:$12 sps:$4 sm:$0xff]   ;;  %v2744_v61 = vld [vmem:[%s2916_s9 + $0x170] ss:$12 sps:$4 sm:$0xff]  }
  0x1e   : > { %2347 = vmatprep.subr.bf16.mxu0 %v2700_v18  ;;  %2472 = vmatpush3.bf16.msra.mxu1 %v2717_v34  ;;  %v2745_v56 = vld [vmem:[%s3533_s2 + $0x8] sm:$0xff]   ;;  %v2746_v57 = vld [vmem:[%s3533_s2 + $0x40] sm:$0xff]   ;;  %v2756_v4 = vld [vmem:[%s2916_s9 + $0x90] ss:$12 sps:$4 sm:$0xff]  }
  0x1f   : > { %2473 = vmatprep.subr.bf16.mxu1 %v2722_v37  ;;  %v2747_v58 = vld [vmem:[%s3533_s2] sm:$0xff]   ;;  %v2748_v60 = vld [vmem:[%s2916_s9 + $0x7c] ss:$12 sps:$4 sm:$0xff]   ;;  %v2760_v5 = vld [vmem:[%s2916_s9 + $0xac] ss:$12 sps:$4 sm:$0xff]  }
  0x20   : > { %v2741_v59 = vld [vmem:[%s2916_s9 + $0x60] ss:$12 sps:$4 sm:$0xff]   ;;  %v2753_v62 = vld [vmem:[%s3048_s26 + $0x4] ss:$12 sps:$4 sm:$0xff]   ;;  %v2757_v3 = vld [vmem:[%s3048_s26 + $0x1c] ss:$12 sps:$4 sm:$0xff]  }
  0x21   : > { %2348 = vmatpush3.bf16.msra.mxu0 %v2701_v19  ;;  %v2771_v63 = vld [vmem:[%s3533_s2 + $0x80] sm:$0xff]   ;;  %v2762_v8 = vld [vmem:[%s2916_s9 + $0xa8] ss:$12 sps:$4 sm:$0xff]   ;;  %v2765_v10 = vld [vmem:[%s3048_s26 + $0x30] ss:$12 sps:$4 sm:$0xff]  }
  0x22   : > { %2349 = vmatprep.subr.bf16.mxu0 %v2702_v20  ;;  %2474 = vmatpush3.bf16.msra.mxu1 %v2724_v39  ;;  %v2750_v0 = vld [vmem:[%s2916_s9 + $0x78] ss:$12 sps:$4 sm:$0xff]   ;;  %v2754_v1 = vld [vmem:[%s2916_s9 + $0x94] ss:$12 sps:$4 sm:$0xff]   ;;  %v2773_v13 = vld [vmem:[%s2916_s9 + $0xdc] ss:$12 sps:$4 sm:$0xff]  }
  0x23   : > { %2475 = vmatprep.subr.bf16.mxu1 %v2729_v43  ;;  %v2751_v2 = vld [vmem:[%s3048_s26] ss:$12 sps:$4 sm:$0xff]   ;;  %v2759_v6 = vld [vmem:[%s3048_s26 + $0x18] ss:$12 sps:$4 sm:$0xff]   ;;  %v2772_v14 = vld [vmem:[%s3048_s26 + $0x48] ss:$12 sps:$4 sm:$0xff]  }
  0x24   : > { %2610 = vmatmul.mubr.msk.bf16.gmra.mxu1 %vm778_vm0, %v2706_v24  ;;  %v2763_v7 = vld [vmem:[%s3048_s26 + $0x34] ss:$12 sps:$4 sm:$0xff]   ;;  %v2766_v9 = vld [vmem:[%s2916_s9 + $0xc4] ss:$12 sps:$4 sm:$0xff]   ;;  %v2769_v11 = vld [vmem:[%s3048_s26 + $0x4c] ss:$12 sps:$4 sm:$0xff]  }
  0x25   : > { %2350 = vmatpush3.bf16.msra.mxu0 %v2705_v23  ;;  %2613 = vmatprep.mubr.msk.bf16.mxu1 %vm778_vm0, %v2713_v30  ;;  %v2768_v12 = vld [vmem:[%s2916_s9 + $0xc0] ss:$12 sps:$4 sm:$0xff]   ;;  %v2776_v15 = vld [vmem:[%s3048_s26 + $0x64] ss:$12 sps:$4 sm:$0xff]   ;;  %v2782_v19 = vld [vmem:[%s3048_s26 + $0x7c] ss:$12 sps:$4 sm:$0xff]  }
  0x26   : > { %2351 = vmatprep.subr.bf16.mxu0 %v2708_v26  ;;  %2476 = vmatpush3.bf16.msra.mxu1 %v2731_v44  ;;  %v2775_v16 = vld [vmem:[%s2916_s9 + $0xd8] ss:$12 sps:$4 sm:$0xff]   ;;  %v2779_v17 = vld [vmem:[%s2916_s9 + $0xf4] ss:$12 sps:$4 sm:$0xff]   ;;  %v2781_v20 = vld [vmem:[%s2916_s9 + $0xf0] ss:$12 sps:$4 sm:$0xff]  }
  0x27   : > { %2477 = vmatprep.subr.bf16.mxu1 %v2736_v48  ;;  %v2778_v18 = vld [vmem:[%s3048_s26 + $0x60] ss:$12 sps:$4 sm:$0xff]   ;;  %v2784_v22 = vld [vmem:[%s3048_s26 + $0x78] ss:$12 sps:$4 sm:$0xff]   ;;  %v2787_v24 = vld [vmem:[%s2916_s9 + $0x108] ss:$12 sps:$4 sm:$0xff]  }
  0x28   : > { %v2785_v21 = vld [vmem:[%s2916_s9 + $0x10c] ss:$12 sps:$4 sm:$0xff]   ;;  %v2788_v23 = vld [vmem:[%s3048_s26 + $0x94] ss:$12 sps:$4 sm:$0xff]   ;;  %v2791_v25 = vld [vmem:[%s2916_s9 + $0x124] ss:$12 sps:$4 sm:$0xff]  }
  0x29   : > { %2352 = vmatpush3.bf16.msra.mxu0 %v2709_v27  ;;  %v2790_v26 = vld [vmem:[%s3048_s26 + $0x90] ss:$12 sps:$4 sm:$0xff]   ;;  %v2794_v27 = vld [vmem:[%s3048_s26 + $0xac] ss:$12 sps:$4 sm:$0xff]   ;;  %v2796_v30 = vld [vmem:[%s3048_s26 + $0xa8] ss:$12 sps:$4 sm:$0xff]  }
  0x2a   : > { %2633 = vmatprep.subr.bf16.mxu0 %v2985_v32  ;;  %2478 = vmatpush3.bf16.msra.mxu1 %v2738_v50  ;;  %v2797_v29 = vld [vmem:[%s2916_s9 + $0x13c] ss:$12 sps:$4 sm:$0xff]   ;;  %v2800_v31 = vld [vmem:[%s3048_s26 + $0xc4] ss:$12 sps:$4 sm:$0xff]   ;;  %v2802_v34 = vld [vmem:[%s3048_s26 + $0xc0] ss:$12 sps:$4 sm:$0xff]  }
  0x2b   : > { %2479 = vmatprep.subr.bf16.mxu1 %v2743_v52  ;;  %v2809_v37 = vld [vmem:[%s2916_s9 + $0x16c] ss:$12 sps:$4 sm:$0xff]   ;;  %v2812_v39 = vld [vmem:[%s3048_s26 + $0xf4] ss:$12 sps:$4 sm:$0xff]   ;;  %v2823_v48 = vld [vmem:[%s3048_s26 + $0x50] ss:$12 sps:$4 sm:$0xff]  }
  0x2c   : > { %860 = vmatmul.mubr.bf16.vlgmr.msra.gmra.mxu0 %v2710_v28  ;;  %2614 = vmatmul.mubr.msk.bf16.gmra.mxu1 %vm778_vm0, %v2716_v33  ;;  %v2793_v28 = vld [vmem:[%s2916_s9 + $0x120] ss:$12 sps:$4 sm:$0xff]  }
  0x2d   : > { %2634 = vmatpush3.bf16.msra.mxu0 %v2985_v32  ;;  %867 = vmatprep.mubr.bf16.mxu0 %v2718_v35  ;;  %v2803_v33 = vld [vmem:[%s2916_s9 + $0x154] ss:$12 sps:$4 sm:$0xff]   ;;  %v2806_v35 = vld [vmem:[%s3048_s26 + $0xdc] ss:$12 sps:$4 sm:$0xff]   ;;  %v2816_v43 = vld [vmem:[%s3048_s26 + $0x10c] ss:$12 sps:$4 sm:$0xff]  }
  0x2e   : > { %2617 = vmatprep.mubr.msk.bf16.mxu1 %vm778_vm0, %v2721_v36  ;;  %2480 = vmatpush3.bf16.msra.mxu1 %v2745_v56  ;;  %v2805_v36 = vld [vmem:[%s2916_s9 + $0x150] ss:$12 sps:$4 sm:$0xff]   ;;  %v2818_v44 = vld [vmem:[%s3048_s26 + $0x20] ss:$12 sps:$4 sm:$0xff]  }
  0x2f   : > { %2481 = vmatprep.subr.bf16.mxu1 %v2746_v57  ;;  %2635 = vmatprep.subr.bf16.mxu0 %v2771_v63  ;;  %v2824_v50 = vld [vmem:[%s3048_s26 + $0x120] ss:$12 sps:$4 sm:$0xff]   ;;  %v2833_v56 = vld [vmem:[%s3048_s26 + $0xb0] ss:$12 sps:$4 sm:$0xff]   ;;  %v2835_v57 = vld [vmem:[%s3048_s26 + $0xc8] ss:$12 sps:$4 sm:$0xff]  }
  0x30   : > { %v2828_v52 = vld [vmem:[%s3048_s26 + $0x80] ss:$12 sps:$4 sm:$0xff]  }
  0x31   : > { %2636 = vmatpush3.bf16.msra.mxu0 %v2771_v63 }
  0x32   : > { %2482 = vmatpush3.bf16.msra.mxu1 %v2747_v58  ;;  %v2834_v58 = vld [vmem:[%s3048_s26 + $0x150] ss:$12 sps:$4 sm:$0xff]  }
  0x33   : > { %2669 = vmatprep.subr.bf16.mxu1 %v2985_v32 }
  0x34   : > { %868 = vmatmul.mubr.bf16.gmra.mxu0 %v2720_v38  ;;  %2618 = vmatmul.mubr.msk.bf16.gmra.mxu1 %vm778_vm0, %v2723_v40  ;;  %v2808_v38 = vld [vmem:[%s3048_s26 + $0xd8] ss:$12 sps:$4 sm:$0xff]   ;;  %v2811_v40 = vld [vmem:[%s2916_s9 + $0x168] ss:$12 sps:$4 sm:$0xff]  }
  0x35   : > { %875 = vmatprep.mubr.bf16.mxu0 %v2725_v41  ;;  %2621 = vmatprep.mubr.msk.bf16.mxu1 %vm778_vm0, %v2728_v42  ;;  %v2815_v41 = vld [vmem:[%s3048_s26 + $0x8] ss:$12 sps:$4 sm:$0xff]   ;;  %v2814_v42 = vld [vmem:[%s3048_s26 + $0xf0] ss:$12 sps:$4 sm:$0xff]  }
  0x3c   : > { %876 = vmatmul.mubr.bf16.gmra.mxu0 %v2727_v45  ;;  %2622 = vmatmul.mubr.msk.bf16.gmra.mxu1 %vm778_vm0, %v2730_v46  ;;  %v2820_v45 = vld [vmem:[%s3048_s26 + $0x38] ss:$12 sps:$4 sm:$0xff]   ;;  %v2819_v46 = vld [vmem:[%s3048_s26 + $0x108] ss:$12 sps:$4 sm:$0xff]  }
  0x3d   : > { %883 = vmatprep.mubr.bf16.mxu0 %v2732_v47  ;;  %2625 = vmatprep.mubr.msk.bf16.mxu1 %vm778_vm0, %v2735_v49  ;;  %v2821_v47 = vld [vmem:[%s3048_s26 + $0x124] ss:$12 sps:$4 sm:$0xff]   ;;  %v2825_v49 = vld [vmem:[%s3048_s26 + $0x68] ss:$12 sps:$4 sm:$0xff]  }
  0x44   : > { %884 = vmatmul.mubr.bf16.gmra.mxu0 %v2734_v51  ;;  %2626 = vmatmul.mubr.msk.bf16.gmra.mxu1 %vm778_vm0, %v2737_v53  ;;  %v2826_v51 = vld [vmem:[%s3048_s26 + $0x13c] ss:$12 sps:$4 sm:$0xff]   ;;  %v2830_v53 = vld [vmem:[%s3048_s26 + $0x98] ss:$12 sps:$4 sm:$0xff]  }
  0x45   : > { %891 = vmatprep.mubr.bf16.mxu0 %v2739_v54  ;;  %2629 = vmatprep.mubr.msk.bf16.mxu1 %vm778_vm0, %v2742_v55  ;;  %v2829_v54 = vld [vmem:[%s3048_s26 + $0x138] ss:$12 sps:$4 sm:$0xff]   ;;  %v2831_v55 = vld [vmem:[%s3048_s26 + $0x154] ss:$12 sps:$4 sm:$0xff]  }
  0x4c   : > { %892 = vmatmul.mubr.bf16.gmra.mxu0 %v2741_v59  ;;  %2630 = vmatmul.mubr.msk.bf16.gmra.mxu1 %vm778_vm0, %v2744_v61  ;;  %v2836_v59 = vld [vmem:[%s3048_s26 + $0x16c] ss:$12 sps:$4 sm:$0xff]  }
  0x4d   : > { %899 = vmatprep.mubr.bf16.mxu0 %v2748_v60  ;;  %1577 = vmatprep.mubr.bf16.mxu1 %v2753_v62  ;;  %v2838_v60 = vld [vmem:[%s3048_s26 + $0xe0] ss:$12 sps:$4 sm:$0xff]   ;;  %v2840_v61 = vld [vmem:[%s3048_s26 + $0xf8] ss:$12 sps:$4 sm:$0xff]   ;;  %v2839_v62 = vld [vmem:[%s3048_s26 + $0x168] ss:$12 sps:$4 sm:$0xff]  }
  0x54   : > { %900 = vmatmul.mubr.bf16.gmra.mxu0 %v2750_v0  ;;  %1578 = vmatmul.mubr.bf16.vlgmr.msra.gmra.mxu1 %v2751_v2  ;;  %v2841_v0 = vld [vmem:[%s3048_s26 + $0x110] ss:$12 sps:$4 sm:$0xff]  }
  0x55   : > { %907 = vmatprep.mubr.bf16.mxu0 %v2754_v1  ;;  %1585 = vmatprep.mubr.bf16.mxu1 %v2757_v3  ;;  %v2844_v1 = vld [vmem:[%s3048_s26 + $0x128] ss:$12 sps:$4 sm:$0xff]   ;;  %v2843_v2 = vld [vmem:[%s3048_s26 + $0x170] ss:$12 sps:$4 sm:$0xff]  }
  0x56   : > { %2671 = vmatpush3.bf16.msra.mxu1 %v2985_v32  ;;  %v2799_v32 = vld [vmem:[%s2916_s9 + $0x138] ss:$12 sps:$4 sm:$0xff]   ;;  %s2106_s9 = sshll.u32 %s3577_s19, 2 }
  0x57   : > { %2670 = vmatprep.subr.bf16.mxu1 %v2771_v63  ;;  %s3355_s5 = scalar_lea.vmem %s3535_s4, %s2106_s9 }
  0x5a   : > { %2672 = vmatpush3.bf16.msra.mxu1 %v2771_v63  ;;  %v2842_v63 = vld [vmem:[%s3048_s26 + $0x158] ss:$12 sps:$4 sm:$0xff]  }
  0x5c   : > { %908 = vmatmul.mubr.bf16.gmra.mxu0 %v2756_v4  ;;  %1586 = vmatmul.mubr.bf16.gmra.mxu1 %v2759_v6 }
  0x5d   : > { %915 = vmatprep.mubr.bf16.mxu0 %v2760_v5  ;;  %1593 = vmatprep.mubr.bf16.mxu1 %v2763_v7  ;;  %v2845_v5 = vld [vmem:[%s3048_s26 + $0x140] ss:$12 sps:$4 sm:$0xff]  }
  0x64   : > { %916 = vmatmul.mubr.bf16.gmra.mxu0 %v2762_v8  ;;  %1594 = vmatmul.mubr.bf16.gmra.mxu1 %v2765_v10 }
  0x65   : > { %923 = vmatprep.mubr.bf16.mxu0 %v2766_v9  ;;  %1601 = vmatprep.mubr.bf16.mxu1 %v2769_v11 }
  0x6c   : > { %924 = vmatmul.mubr.bf16.gmra.mxu0 %v2768_v12  ;;  %1602 = vmatmul.mubr.bf16.gmra.mxu1 %v2772_v14 }
  0x6d   : > { %931 = vmatprep.mubr.bf16.mxu0 %v2773_v13  ;;  %1609 = vmatprep.mubr.bf16.mxu1 %v2776_v15 }
  0x74   : > { %932 = vmatmul.mubr.bf16.gmra.mxu0 %v2775_v16  ;;  %1610 = vmatmul.mubr.bf16.gmra.mxu1 %v2778_v18 }
  0x75   : > { %939 = vmatprep.mubr.bf16.mxu0 %v2779_v17  ;;  %1617 = vmatprep.mubr.bf16.mxu1 %v2782_v19 }
  0x7c   : > { %940 = vmatmul.mubr.bf16.gmra.mxu0 %v2781_v20  ;;  %1618 = vmatmul.mubr.bf16.gmra.mxu1 %v2784_v22 }
  0x7d   : > { %947 = vmatprep.mubr.bf16.mxu0 %v2785_v21  ;;  %1625 = vmatprep.mubr.bf16.mxu1 %v2788_v23 }
  0x84   : > { %948 = vmatmul.mubr.bf16.gmra.mxu0 %v2787_v24  ;;  %1626 = vmatmul.mubr.bf16.gmra.mxu1 %v2790_v26 }
  0x85   : > { %955 = vmatprep.mubr.bf16.mxu0 %v2791_v25  ;;  %1633 = vmatprep.mubr.bf16.mxu1 %v2794_v27 }
  0x8c   : > { %956 = vmatmul.mubr.bf16.gmra.mxu0 %v2793_v28  ;;  %1634 = vmatmul.mubr.bf16.gmra.mxu1 %v2796_v30 }
  0x8d   : > { %963 = vmatprep.mubr.bf16.mxu0 %v2797_v29  ;;  %1641 = vmatprep.mubr.bf16.mxu1 %v2800_v31 }
  0x94   : > { %964 = vmatmul.mubr.bf16.gmra.mxu0 %v2799_v32  ;;  %1642 = vmatmul.mubr.bf16.gmra.mxu1 %v2802_v34 }
  0x95   : > { %971 = vmatprep.mubr.bf16.mxu0 %v2803_v33  ;;  %1649 = vmatprep.mubr.bf16.mxu1 %v2806_v35 }
  0x9c   : > { %972 = vmatmul.mubr.bf16.gmra.mxu0 %v2805_v36  ;;  %1650 = vmatmul.mubr.bf16.gmra.mxu1 %v2808_v38 }
  0x9d   : > { %979 = vmatprep.mubr.bf16.mxu0 %v2809_v37  ;;  %1657 = vmatprep.mubr.bf16.mxu1 %v2812_v39 }
  0xa4   : > { %980 = vmatmul.mubr.bf16.gmra.mxu0 %v2811_v40  ;;  %1658 = vmatmul.mubr.bf16.gmra.mxu1 %v2814_v42 }
  0xa5   : > { %2637 = vmatprep.mubr.msk.bf16.mxu0 %vm778_vm0, %v2815_v41  ;;  %1665 = vmatprep.mubr.bf16.mxu1 %v2816_v43 }
  0xac   : > { %2638 = vmatmul.mubr.msk.bf16.vlgmr.msra.gmra.mxu0 %vm778_vm0, %v2818_v44  ;;  %1666 = vmatmul.mubr.bf16.gmra.mxu1 %v2819_v46 }
  0xad   : > { %2641 = vmatprep.mubr.msk.bf16.mxu0 %vm778_vm0, %v2820_v45  ;;  %1673 = vmatprep.mubr.bf16.mxu1 %v2821_v47 }
  0xb4   : > { %2642 = vmatmul.mubr.msk.bf16.gmra.mxu0 %vm778_vm0, %v2823_v48  ;;  %1674 = vmatmul.mubr.bf16.gmra.mxu1 %v2824_v50 }
  0xb5   : > { %2645 = vmatprep.mubr.msk.bf16.mxu0 %vm778_vm0, %v2825_v49  ;;  %1681 = vmatprep.mubr.bf16.mxu1 %v2826_v51 }
  0xbc   : > { %2646 = vmatmul.mubr.msk.bf16.gmra.mxu0 %vm778_vm0, %v2828_v52  ;;  %1682 = vmatmul.mubr.bf16.gmra.mxu1 %v2829_v54 }
  0xbd   : > { %2649 = vmatprep.mubr.msk.bf16.mxu0 %vm778_vm0, %v2830_v53  ;;  %1689 = vmatprep.mubr.bf16.mxu1 %v2831_v55 }
  0xc4   : > { %2650 = vmatmul.mubr.msk.bf16.gmra.mxu0 %vm778_vm0, %v2833_v56  ;;  %1690 = vmatmul.mubr.bf16.gmra.mxu1 %v2834_v58 }
  0xc5   : > { %2653 = vmatprep.mubr.msk.bf16.mxu0 %vm778_vm0, %v2835_v57  ;;  %1697 = vmatprep.mubr.bf16.mxu1 %v2836_v59 }
  0xcc   : > { %2654 = vmatmul.mubr.msk.bf16.gmra.mxu0 %vm778_vm0, %v2838_v60  ;;  %1698 = vmatmul.mubr.bf16.gmra.mxu1 %v2839_v62 }
  0xcd   : > { %2657 = vmatprep.mubr.msk.bf16.mxu0 %vm778_vm0, %v2840_v61  ;;  %2665 = vmatprep.mubr.msk.bf16.mxu1 %vm778_vm0, %v2842_v63 }
  0xd4   : > { %2658 = vmatmul.mubr.msk.bf16.gmra.mxu0 %vm778_vm0, %v2841_v0  ;;  %v2603_v3 = vpop.f32.mrf.mxu1  ;;  %2666 = vmatmul.mubr.msk.bf16.vlgmr.msra.gmra.mxu1 %vm778_vm0, %v2843_v2 }
  0xd5   : > { %2661 = vmatprep.mubr.msk.bf16.mxu0 %vm778_vm0, %v2844_v1 }
  0xd6   : > { %v1022_v4 = vpop.f32.mrf.mxu1 }
  0xd8   : > { %v2604_v6 = vpop.f32.mrf.mxu1 }
  0xda   : > { %v1025_v7 = vpop.f32.mrf.mxu1 }
  0xdc   : > { %2662 = vmatmul.mubr.msk.bf16.gmra.mxu0 %vm778_vm0, %v2845_v5  ;;  %v2607_v8 = vpop.f32.mrf.mxu1 }
  0xde   : > { %v1038_v9 = vpop.f32.mrf.mxu1 }
  0xe0   : > { %v2608_v10 = vpop.f32.mrf.mxu1 }
  0xe2   : > { %v1041_v11 = vpop.f32.mrf.mxu1 }
  0xe4   : > { %v3146_v12 = vpop.f32.mrf.mxu1 }
  0xe6   : > { %v1054_v13 = vpop.f32.mrf.mxu1 }
  0xe8   : > { %v3148_v14 = vpop.f32.mrf.mxu1 }
  0xea   : > { %v1057_v15 = vpop.f32.mrf.mxu1 }
  0xec   : > { %v2353_v16 = vpop.f32.mrf.mxu0  ;;  %v3150_v17 = vpop.f32.mrf.mxu1 }
  0xee   : > { %v2354_v18 = vpop.f32.mrf.mxu0  ;;  %v3152_v20 = vpop.f32.mrf.mxu1 }
  0xef   : > { %v2355_v19 = vadd.f32 %v2354_v18, %v2353_v16 }
  0xf0   : > { %v2356_v21 = vpop.f32.mrf.mxu0  ;;  %v3156_v23 = vpop.f32.mrf.mxu1 }
  0xf1   : > { %v3154_v22 = vadd.f32 %v2355_v19, %v1022_v4 }
  0xf2   : > { %v2357_v24 = vpop.f32.mrf.mxu0  ;;  %v3158_v26 = vpop.f32.mrf.mxu1 }
  0xf3   : > { %v2358_v25 = vadd.f32 %v2357_v24, %v2356_v21 }
  0xf4   : > { %v2359_v27 = vpop.f32.mrf.mxu0  ;;  %v3162_v29 = vpop.f32.mrf.mxu1 }
  0xf5   : > { %v3160_v28 = vadd.f32 %v2358_v25, %v1025_v7 }
  0xf6   : > { %v2360_v30 = vpop.f32.mrf.mxu0  ;;  %v3164_v32 = vpop.f32.mrf.mxu1 }
  0xf7   : > { %v2361_v31 = vadd.f32 %v2360_v30, %v2359_v27 }
  0xf8   : > { %v2362_v33 = vpop.f32.mrf.mxu0  ;;  %v3168_v35 = vpop.f32.mrf.mxu1 }
  0xf9   : > { %v3166_v34 = vadd.f32 %v2603_v3, %v2361_v31 }
  0xfa   : > { %v2363_v36 = vpop.f32.mrf.mxu0  ;;  %v3170_v38 = vpop.f32.mrf.mxu1 }
  0xfb   : > { %v2364_v37 = vadd.f32 %v2363_v36, %v2362_v33 }
  0xfc   : > { %v2365_v39 = vpop.f32.mrf.mxu0  ;;  %v3174_v41 = vpop.f32.mrf.mxu1 }
  0xfd   : > { %v3172_v40 = vadd.f32 %v2604_v6, %v2364_v37 }
  0xfe   : > { %v2366_v42 = vpop.f32.mrf.mxu0  ;;  %v3176_v44 = vpop.f32.mrf.mxu1 }
  0xff   : > { %v2367_v43 = vadd.f32 %v2366_v42, %v2365_v39 }
 0x100   : > { %v2368_v45 = vpop.f32.mrf.mxu0  ;;  %v3180_v47 = vpop.f32.mrf.mxu1 }
 0x101   : > { %v3178_v46 = vadd.f32 %v2367_v43, %v1038_v9 }
 0x102   : > { %v2369_v48 = vpop.f32.mrf.mxu0  ;;  %v3182_v50 = vpop.f32.mrf.mxu1 }
 0x103   : > { %v2370_v49 = vadd.f32 %v2369_v48, %v2368_v45 }
 0x104   : > { %v2371_v51 = vpop.f32.mrf.mxu0  ;;  %v3186_v53 = vpop.f32.mrf.mxu1 }
 0x105   : > { %v3184_v52 = vadd.f32 %v2370_v49, %v1041_v11  ;;  %3536 = vst [vmem:[#allocation2_spill] sm:$0xff] %v3186_v53 }
 0x106   : > { %v2372_v54 = vpop.f32.mrf.mxu0  ;;  %v3188_v56 = vpop.f32.mrf.mxu1 }
 0x107   : > { %v2373_v55 = vadd.f32 %v2372_v54, %v2371_v51  ;;  %3537 = vst [vmem:[#allocation3_spill] sm:$0xff] %v3188_v56 }
 0x108   : > { %v2374_v57 = vpop.f32.mrf.mxu0  ;;  %v3192_v59 = vpop.f32.mrf.mxu1 }
 0x109   : > { %v3190_v58 = vadd.f32 %v2607_v8, %v2373_v55  ;;  %3538 = vst [vmem:[#allocation4_spill] sm:$0xff] %v3192_v59 }
 0x10a   : > { %v2375_v60 = vpop.f32.mrf.mxu0  ;;  %v3194_v62 = vpop.f32.mrf.mxu1 }
 0x10b   : > { %v2376_v61 = vadd.f32 %v2375_v60, %v2374_v57  ;;  %3539 = vst [vmem:[#allocation5_spill] sm:$0xff] %v3194_v62 }
 0x10c   : > { %v2377_v63 = vpop.f32.mrf.mxu0  ;;  %v3198_v1 = vpop.f32.mrf.mxu1 }
 0x10d   : > { %v3196_v0 = vadd.f32 %v2608_v10, %v2376_v61  ;;  %3540 = vst [vmem:[#allocation6_spill] sm:$0xff] %v3198_v1 }
 0x10e   : > { %v2378_v2 = vpop.f32.mrf.mxu0  ;;  %v3200_v4 = vpop.f32.mrf.mxu1 }
 0x10f   : > { %v2379_v3 = vadd.f32 %v2378_v2, %v2377_v63  ;;  %3541 = vst [vmem:[#allocation7_spill] sm:$0xff] %v3200_v4 }
 0x110   : > { %v2380_v5 = vpop.f32.mrf.mxu0  ;;  %v3204_v7 = vpop.f32.mrf.mxu1 }
 0x111   : > { %v3202_v6 = vadd.f32 %v2379_v3, %v1054_v13  ;;  %3542 = vst [vmem:[#allocation8_spill] sm:$0xff] %v3204_v7 }
 0x112   : > { %v2381_v8 = vpop.f32.mrf.mxu0  ;;  %v3206_v11 = vpop.f32.mrf.mxu1 }
 0x113   : > { %v2382_v9 = vadd.f32 %v2381_v8, %v2380_v5  ;;  %3543 = vst [vmem:[#allocation9_spill] sm:$0xff] %v3206_v11 }
 0x114   : > { %v2383_v16 = vpop.f32.mrf.mxu0  ;;  %v2483_v10 = vpop.f32.mrf.mxu1 }
 0x115   : > { %v3208_v18 = vadd.f32 %v2382_v9, %v1057_v15 }
 0x116   : > { %v2384_v19 = vpop.f32.mrf.mxu0  ;;  %v2484_v24 = vpop.f32.mrf.mxu1 }
 0x117   : > { %v2385_v21 = vadd.f32 %v2384_v19, %v2383_v16  ;;  %v2485_v30 = vadd.f32 %v2484_v24, %v2483_v10 }
 0x118   : > { %v2386_v25 = vpop.f32.mrf.mxu0  ;;  %v2486_v13 = vpop.f32.mrf.mxu1 }
 0x119   : > { %v3211_v27 = vadd.f32 %v3146_v12, %v2385_v21  ;;  %v3214_v36 = vadd.f32 %v2485_v30, %v3154_v22 }
 0x11a   : > { %v2387_v31 = vpop.f32.mrf.mxu0  ;;  %v2487_v37 = vpop.f32.mrf.mxu1 }
 0x11b   : > { %v2388_v33 = vadd.f32 %v2387_v31, %v2386_v25  ;;  %v2488_v42 = vadd.f32 %v2487_v37, %v2486_v13 }
 0x11c   : > { %v2389_v39 = vpop.f32.mrf.mxu0  ;;  %v2489_v43 = vpop.f32.mrf.mxu1 }
 0x11d   : > { %v3217_v15 = vadd.f32 %v3148_v14, %v2388_v33  ;;  %v3220_v49 = vadd.f32 %v2488_v42, %v3160_v28 }
 0x11e   : > { %v2390_v45 = vpop.f32.mrf.mxu0  ;;  %v2490_v12 = vpop.f32.mrf.mxu1 }
 0x11f   : > { %v2391_v48 = vadd.f32 %v2390_v45, %v2389_v39  ;;  %v2491_v55 = vadd.f32 %v2490_v12, %v2489_v43 }
 0x120   : > { %v2392_v51 = vpop.f32.mrf.mxu0  ;;  %v2492_v22 = vpop.f32.mrf.mxu1 }
 0x121   : > { %v3223_v54 = vadd.f32 %v2391_v48, %v3152_v20  ;;  %v3226_v61 = vadd.f32 %v2491_v55, %v3166_v34 }
 0x122   : > { %v2393_v57 = vpop.f32.mrf.mxu0  ;;  %v2493_v14 = vpop.f32.mrf.mxu1 }
 0x123   : > { %v2394_v60 = vadd.f32 %v2393_v57, %v2392_v51  ;;  %v2494_v3 = vadd.f32 %v2493_v14, %v2492_v22 }
 0x124   : > { %v2395_v63 = vpop.f32.mrf.mxu0  ;;  %v2495_v28 = vpop.f32.mrf.mxu1 }
 0x125   : > { %v3229_v2 = vadd.f32 %v2394_v60, %v3158_v26  ;;  %v3232_v9 = vadd.f32 %v2494_v3, %v3172_v40 }
 0x126   : > { %v2396_v5 = vpop.f32.mrf.mxu0  ;;  %v2496_v20 = vpop.f32.mrf.mxu1 }
 0x127   : > { %v2397_v8 = vadd.f32 %v2396_v5, %v2395_v63  ;;  %v2497_v19 = vadd.f32 %v2496_v20, %v2495_v28 }
 0x128   : > { %v2398_v16 = vpop.f32.mrf.mxu0  ;;  %v2498_v34 = vpop.f32.mrf.mxu1 }
 0x129   : > { %v3235_v10 = vadd.f32 %v3150_v17, %v2397_v8  ;;  %v3238_v25 = vadd.f32 %v2497_v19, %v3178_v46 }
 0x12a   : > { %v2399_v21 = vpop.f32.mrf.mxu0  ;;  %v2499_v26 = vpop.f32.mrf.mxu1 }
 0x12b   : > { %v2400_v24 = vadd.f32 %v2399_v21, %v2398_v16  ;;  %v2500_v31 = vadd.f32 %v2499_v26, %v2498_v34 }
 0x12c   : > { %v2401_v30 = vpop.f32.mrf.mxu0  ;;  %v2501_v40 = vpop.f32.mrf.mxu1 }
 0x12d   : > { %v3241_v13 = vadd.f32 %v3156_v23, %v2400_v24  ;;  %v3244_v39 = vadd.f32 %v2500_v31, %v3184_v52 }
 0x12e   : > { %v2402_v33 = vpop.f32.mrf.mxu0  ;;  %v2502_v17 = vpop.f32.mrf.mxu1 }
 0x12f   : > { %v2403_v37 = vadd.f32 %v2402_v33, %v2401_v30  ;;  %v2503_v45 = vadd.f32 %v2502_v17, %v2501_v40 }
 0x130   : > { %v2404_v42 = vpop.f32.mrf.mxu0  ;;  %v2504_v46 = vpop.f32.mrf.mxu1 }
 0x131   : > { %v3247_v43 = vadd.f32 %v2403_v37, %v3164_v32  ;;  %v3250_v51 = vadd.f32 %v2503_v45, %v3190_v58 }
 0x132   : > { %v2405_v48 = vpop.f32.mrf.mxu0  ;;  %v2505_v23 = vpop.f32.mrf.mxu1 }
 0x133   : > { %v2406_v12 = vadd.f32 %v2405_v48, %v2404_v42  ;;  %v2506_v57 = vadd.f32 %v2505_v23, %v2504_v46 }
 0x134   : > { %v2407_v55 = vpop.f32.mrf.mxu0  ;;  %v2507_v52 = vpop.f32.mrf.mxu1 }
 0x135   : > { %v3253_v22 = vadd.f32 %v2406_v12, %v3170_v38  ;;  %v3258_v32 = vadd.f32 %v2506_v57, %v3196_v0 }
 0x136   : > { %v2408_v60 = vpop.f32.mrf.mxu0  ;;  %v2508_v63 = vpop.f32.mrf.mxu1 }
 0x137   : > { %v3255_v14 = vadd.f32 %v2408_v60, %v2407_v55  ;;  %v2509_v28 = vadd.f32 %v2508_v63, %v2507_v52 }
 0x138   : > { %v2410_v3 = vpop.f32.mrf.mxu0  ;;  %v2510_v5 = vpop.f32.mrf.mxu1 }
 0x139   : > { %v3263_v20 = vadd.f32 %v2509_v28, %v3202_v6 }
 0x13a   : > { %v2411_v8 = vpop.f32.mrf.mxu0  ;;  %v2511_v38 = vpop.f32.mrf.mxu1 }
 0x13b   : > { %v3260_v58 = vadd.f32 %v2411_v8, %v2410_v3  ;;  %v2512_v19 = vadd.f32 %v2511_v38, %v2510_v5 }
 0x13c   : > { %v2413_v16 = vpop.f32.mrf.mxu0  ;;  %v3265_v34 = vpop.f32.mrf.mxu1 }
 0x13d   : > { %v3268_v0 = vadd.f32 %v2512_v19, %v3208_v18 }
 0x13e   : > { %v2414_v21 = vpop.f32.mrf.mxu0  ;;  %v3270_v26 = vpop.f32.mrf.mxu1 }
 0x13f   : > { %v2415_v24 = vadd.f32 %v2414_v21, %v2413_v16 }
 0x140   : > { %v2416_v30 = vpop.f32.mrf.mxu0  ;;  %v3275_v40 = vpop.f32.mrf.mxu1 }
 0x141   : > { %v3273_v31 = vadd.f32 %v2415_v24, %v3176_v44 }
 0x142   : > { %v2417_v6 = vpop.f32.mrf.mxu0  ;;  %v3277_v37 = vpop.f32.mrf.mxu1 }
 0x143   : > { %3544 = vst [vmem:[#allocation10_spill] sm:$0xff] %v3273_v31  ;;  %v2418_v33 = vadd.f32 %v2417_v6, %v2416_v30 }
 0x144   : > { %v2419_v17 = vpop.f32.mrf.mxu0  ;;  %v3282_v45 = vpop.f32.mrf.mxu1 }
 0x145   : > { %v3280_v42 = vadd.f32 %v2418_v33, %v3182_v50 }
 0x146   : > { %v2420_v18 = vpop.f32.mrf.mxu0  ;;  %v3286_v48 = vpop.f32.mrf.mxu1 }
 0x147   : > { %3545 = vst [vmem:[#allocation11_spill] sm:$0xff] %v3280_v42  ;;  %v3284_v46 = vadd.f32 %v2420_v18, %v2419_v17 }
 0x148   : > { %v2422_v12 = vpop.f32.mrf.mxu0  ;;  %v3288_v44 = vpop.f32.mrf.mxu1 }
 0x14a   : > { %v2423_v23 = vpop.f32.mrf.mxu0  ;;  %v3292_v57 = vpop.f32.mrf.mxu1 }
 0x14b   : > { %v3290_v55 = vadd.f32 %v2423_v23, %v2422_v12 }
 0x14c   : > { %v2425_v52 = vpop.f32.mrf.mxu0  ;;  %v3294_v60 = vpop.f32.mrf.mxu1 }
 0x14e   : > { %v2426_v50 = vpop.f32.mrf.mxu0  ;;  %v3298_v3 = vpop.f32.mrf.mxu1 }
 0x14f   : > { %v3296_v63 = vadd.f32 %v2426_v50, %v2425_v52 }
 0x150   : > { %v2428_v28 = vpop.f32.mrf.mxu0  ;;  %v3300_v5 = vpop.f32.mrf.mxu1 }
 0x151   : > { %3546 = vst [vmem:[#allocation12_spill] sm:$0xff] %v3296_v63 }
 0x152   : > { %v2429_v8 = vpop.f32.mrf.mxu0  ;;  %v3304_v16 = vpop.f32.mrf.mxu1 }
 0x153   : > { %v3302_v38 = vadd.f32 %v2429_v8, %v2428_v28 }
 0x154   : > { %v2431_v19 = vpop.f32.mrf.mxu0  ;;  %v3306_v21 = vpop.f32.mrf.mxu1 }
 0x155   : > { %3547 = vst [vmem:[#allocation13_spill] sm:$0xff] %v3302_v38 }
 0x156   : > { %v2432_v24 = vpop.f32.mrf.mxu0  ;;  %v3310_v6 = vpop.f32.mrf.mxu1 }
 0x157   : > { %v3308_v30 = vadd.f32 %v2432_v24, %v2431_v19 }
 0x158   : > { %v2434_v33 = vpop.f32.mrf.mxu0  ;;  %v3312_v17 = vpop.f32.mrf.mxu1 }
 0x159   : > { %3548 = vst [vmem:[#allocation14_spill] sm:$0xff] %v3308_v30 }
 0x15a   : > { %v2435_v18 = vpop.f32.mrf.mxu0  ;;  %v3316_v23 = vpop.f32.mrf.mxu1 }
 0x15b   : > { %v3314_v12 = vadd.f32 %v2435_v18, %v2434_v33 }
 0x15c   : > { %v3318_v52 = vpop.f32.mrf.mxu0  ;;  %v3320_v50 = vpop.f32.mrf.mxu1 }
 0x15d   : > { %3549 = vst [vmem:[#allocation15_spill] sm:$0xff] %v3314_v12 }
 0x15e   : > { %v3322_v28 = vpop.f32.mrf.mxu0  ;;  %v3324_v8 = vpop.f32.mrf.mxu1 }
 0x160   : > { %v3326_v19 = vpop.f32.mrf.mxu0  ;;  %v3328_v24 = vpop.f32.mrf.mxu1 }
 0x161   : > { %3550 = vst [vmem:[#allocation16_spill] sm:$0xff] %v3326_v19 }
 0x162   : > { %v3330_v38 = vpop.f32.mrf.mxu0  ;;  %v3332_v62 = vpop.f32.mrf.mxu1 }
 0x163   : > { %3551 = vst [vmem:[#allocation17_spill] sm:$0xff] %v3330_v38 }
 0x164   : > { %v3334_v33 = vpop.f32.mrf.mxu0  ;;  %v3336_v18 = vpop.f32.mrf.mxu1 }
 0x166   : > { %v3338_v59 = vpop.f32.mrf.mxu0  ;;  %v3340_v12 = vpop.f32.mrf.mxu1 }
 0x168   : > { %v3342_v63 = vpop.f32.mrf.mxu0  ;;  %v3344_v56 = vpop.f32.mrf.mxu1 }
 0x169   : > { %3552 = vst [vmem:[#allocation18_spill] sm:$0xff] %v3342_v63  ;;  %3553 = vst [vmem:[#allocation19_spill] sm:$0xff] %v3344_v56 }
 0x16a   : > { %v3346_v42 = vpop.f32.mrf.mxu0  ;;  %v3349_v11 = vpop.f32.mrf.mxu1 }
 0x16b   : > { %3554 = vst [vmem:[#allocation20_spill] sm:$0xff] %v3346_v42  ;;  %3555 = vst [vmem:[#allocation21_spill] sm:$0xff] %v3349_v11 }
 0x16c   : > { %v2639_v7 = vpop.f32.mrf.mxu0  ;;  %v3357_v38 = vpop.f32.mrf.mxu1 }
 0x16d   : > { %v1749_v31 = vadd.f32 %v2639_v7, %v3226_v61 }
 0x16e   : > { %v1740_v56 = vpop.f32.mrf.mxu0  ;;  %v3360_v42 = vpop.f32.mrf.mxu1 }
 0x16f   : > { %v2307_v19 = vpack.c.bf16 %v1749_v31, %v1749_v31  ;;  %v1741_v4 = vadd.f32 %v1740_v56, %v3214_v36 }
 0x170   : > { %v2640_v11 = vpop.f32.mrf.mxu0  ;;  %v3365_v63 = vpop.f32.mrf.mxu1 }
 0x171   : > { %1998 = vst.msk [vmem:[%s3355_s5 + $0x8] sm:$0xf] %vm1995_vm1, %v2307_v19  ;;  %v2305_v7 = vpack.c.bf16 %v1741_v4, %v1741_v4  ;;  %v1752_v61 = vadd.f32 %v2640_v11, %v3232_v9  ;;  %v2515_v9 = vadd.f32 %v3270_v26, %v3265_v34  ;;  %v2518_v34 = vadd.f32 %v3277_v37, %v3275_v40 }
 0x172   : > { %v1743_v1 = vpop.f32.mrf.mxu0  ;;  %v3370_v30 = vpop.f32.mrf.mxu1  ;;  %v2527_v40 = vadd.f32 %v3298_v3, %v3294_v60 }
 0x173   : > { %1996 = vst.msk [vmem:[%s3355_s5] sm:$0xf] %vm1995_vm1, %v2305_v7  ;;  %v2308_v53 = vpack.c.bf16 %v1752_v61, %v1752_v61  ;;  %v1744_v31 = vadd.f32 %v1743_v1, %v3220_v49  ;;  %v1623_v37 = vadd.f32 %v2518_v34, %v3217_v15 }
 0x174   : > { %v2643_v56 = vpop.f32.mrf.mxu0  ;;  %v3375_v19 = vpop.f32.mrf.mxu1  ;;  %v1636_v34 = vadd.f32 %v2527_v40, %v3235_v10 }
 0x175   : > { %1999 = vst.msk [vmem:[%s3355_s5 + $0xc] sm:$0xf] %vm1995_vm1, %v2308_v53  ;;  %v2306_v36 = vpack.c.bf16 %v1744_v31, %v1744_v31  ;;  %v1765_v4 = vadd.f32 %v2643_v56, %v3250_v51 }
 0x176   : > { %v1756_v11 = vpop.f32.mrf.mxu0  ;;  %v3382_v49 = vpop.f32.mrf.mxu1 }
 0x177   : > { %1997 = vst.msk [vmem:[%s3355_s5 + $0x4] sm:$0xf] %vm1995_vm1, %v2306_v36  ;;  %v2311_v7 = vpack.c.bf16 %v1765_v4, %v1765_v4  ;;  %v1757_v1 = vadd.f32 %v1756_v11, %v3238_v25  ;;  %v1620_v36 = vadd.f32 %v2515_v9, %v3211_v27 }
 0x178   : > { %v2644_v61 = vpop.f32.mrf.mxu0  ;;  %v3387_v31 = vpop.f32.mrf.mxu1 }
 0x179   : > { %2002 = vst.msk [vmem:[%s3355_s5 + $0x18] sm:$0xf] %vm1995_vm1, %v2311_v7  ;;  %v2309_v53 = vpack.c.bf16 %v1757_v1, %v1757_v1  ;;  %v1768_v51 = vadd.f32 %v2644_v61, %v3258_v32 }
 0x17a   : > { %v1759_v56 = vpop.f32.mrf.mxu0  ;;  %v3395_v4 = vpop.f32.mrf.mxu1 }
 0x17b   : > { %2000 = vst.msk [vmem:[%s3355_s5 + $0x10] sm:$0xf] %vm1995_vm1, %v2309_v53  ;;  %v2312_v26 = vpack.c.bf16 %v1768_v51, %v1768_v51  ;;  %v1760_v25 = vadd.f32 %v1759_v56, %v3244_v39  ;;  %v2521_v51 = vadd.f32 %v3286_v48, %v3282_v45  ;;  %v2524_v48 = vadd.f32 %v3292_v57, %v3288_v44 }
 0x17c   : > { %v2647_v11 = vpop.f32.mrf.mxu0  ;;  %v3399_v1 = vpop.f32.mrf.mxu1  ;;  %v1095_v44 = vadd.f32 %v3162_v29, %v3255_v14 }
 0x17d   : > { %2003 = vst.msk [vmem:[%s3355_s5 + $0x1c] sm:$0xf] %vm1995_vm1, %v2312_v26  ;;  %v2310_v32 = vpack.c.bf16 %v1760_v25, %v1760_v25  ;;  %v1781_v7 = vadd.f32 %v2647_v11, %v1620_v36 }
 0x17e   : > { %v1772_v61 = vpop.f32.mrf.mxu0  ;;  %v3407_v9 = vpop.f32.mrf.mxu1 }
 0x17f   : > { %2001 = vst.msk [vmem:[%s3355_s5 + $0x14] sm:$0xf] %vm1995_vm1, %v2310_v32  ;;  %v2315_v39 = vpack.c.bf16 %v1781_v7, %v1781_v7  ;;  %v1773_v27 = vadd.f32 %v1772_v61, %v3263_v20  ;;  %v2530_v20 = vadd.f32 %v3304_v16, %v3300_v5  ;;  %v1628_v5 = vadd.f32 %v2521_v51, %v3223_v54 }
 0x180   : > { %v2648_v53 = vpop.f32.mrf.mxu0  ;;  %v3413_v25 = vpop.f32.mrf.mxu1  ;;  %v2533_v54 = vadd.f32 %v3310_v6, %v3306_v21  ;;  %v1098_v21 = vadd.f32 %v3168_v35, %v3260_v58  ;;  %v2551_v35 = vadd.f32 %v3360_v42, %v3357_v38 }
 0x181   : > { %2006 = vst.msk [vmem:[%s3355_s5 + $0x28] sm:$0xf] %vm1995_vm1, %v2315_v39  ;;  %v2313_v56 = vpack.c.bf16 %v1773_v27, %v1773_v27  ;;  %v1784_v26 = vadd.f32 %v2648_v53, %v1623_v37  ;;  %v1639_v40 = vadd.f32 %v2530_v20, %v3241_v13  ;;  %v2542_v13 = vadd.f32 %v3332_v62, %v3328_v24 }
 0x182   : > { %v1775_v60 = vpop.f32.mrf.mxu0  ;;  %v3421_v36 = vpop.f32.mrf.mxu1  ;;  %v1644_v62 = vadd.f32 %v2533_v54, %v3247_v43  ;;  %v2445_v24 = vadd.f32 %v3338_v59, %v3334_v33  ;;  %v2439_v43 = vadd.f32 %v3322_v28, %v3318_v52  ;;  %v2545_v59 = vadd.f32 %v3340_v12, %v3336_v18  ;;  %v3560_v52 = vld [vmem:[#allocation20_spill] sm:$0xff]  ;;  %v3563_v54 = vld [vmem:[#allocation17_spill] sm:$0xff] }
 0x183   : > { %2004 = vst.msk [vmem:[%s3355_s5 + $0x20] sm:$0xf] %vm1995_vm1, %v2313_v56  ;;  %v2316_v15 = vpack.c.bf16 %v1784_v26, %v1784_v26  ;;  %v1776_v3 = vadd.f32 %v1775_v60, %v3268_v0  ;;  %v2539_v0 = vadd.f32 %v3324_v8, %v3320_v50  ;;  %v1631_v8 = vadd.f32 %v2524_v48, %v3229_v2 }
 0x184   : > { %v2651_v45 = vpop.f32.mrf.mxu0  ;;  %v2567_v16 = vpop.f32.mrf.mxu1  ;;  %v2536_v26 = vadd.f32 %v3316_v23, %v3312_v17  ;;  %v1655_v17 = vadd.f32 %v2542_v13, %v1098_v21  ;;  %v1111_v23 = vadd.f32 %v3174_v41, %v3284_v46  ;;  %v3556_v41 = vld [vmem:[#allocation14_spill] sm:$0xff]  ;;  %v2554_v12 = vadd.f32 %v3370_v30, %v3365_v63  ;;  %v3567_v21 = vld [vmem:[#allocation8_spill] sm:$0xff] }
 0x185   : > { %2007 = vst.msk [vmem:[%s3355_s5 + $0x2c] sm:$0xf] %vm1995_vm1, %v2316_v15  ;;  %v2314_v11 = vpack.c.bf16 %v1776_v3, %v1776_v3  ;;  %v1797_v32 = vadd.f32 %v2651_v45, %v1636_v34  ;;  %v1652_v51 = vadd.f32 %v2539_v0, %v1095_v44  ;;  %v1114_v34 = vadd.f32 %v3180_v47, %v3290_v55  ;;  %v3557_v46 = vld [vmem:[#allocation2_spill] sm:$0xff] }
 0x186   : > { %v1788_v7 = vpop.f32.mrf.mxu0  ;;  %v2568_v57 = vpop.f32.mrf.mxu1  ;;  %v3558_v47 = vld [vmem:[#allocation6_spill] sm:$0xff] }
 0x187   : > { %2005 = vst.msk [vmem:[%s3355_s5 + $0x24] sm:$0xf] %vm1995_vm1, %v2314_v11  ;;  %v2319_v10 = vpack.c.bf16 %v1797_v32, %v1797_v32  ;;  %v1789_v61 = vadd.f32 %v1788_v7, %v1628_v5  ;;  %v1647_v11 = vadd.f32 %v2536_v26, %v3253_v22  ;;  %v1127_v32 = vadd.f32 %v3557_v46, %v3556_v41  ;;  %v3559_v5 = vld [vmem:[#allocation18_spill] sm:$0xff] }
 0x188   : > { %v2652_v39 = vpop.f32.mrf.mxu0  ;;  %v2570_v37 = vpop.f32.mrf.mxu1  ;;  %v1143_v55 = vadd.f32 %v3558_v47, %v2445_v24  ;;  %v2448_v28 = vadd.f32 %v3560_v52, %v3559_v5  ;;  %v2569_v0 = vadd.f32 %v2568_v57, %v2567_v16  ;;  %v1668_v22 = vadd.f32 %v2551_v35, %v1111_v23  ;;  %v3566_v63 = vld [vmem:[#allocation10_spill] sm:$0xff] }
 0x189   : > { %2010 = vst.msk [vmem:[%s3355_s5 + $0x38] sm:$0xf] %vm1995_vm1, %v2319_v10  ;;  %v2317_v27 = vpack.c.bf16 %v1789_v61, %v1789_v61  ;;  %v1800_v50 = vadd.f32 %v2652_v39, %v1639_v40  ;;  %v3561_v40 = vld [vmem:[#allocation7_spill] sm:$0xff]  ;;  %v3562_v39 = vld [vmem:[#allocation16_spill] sm:$0xff]  ;;  %v1660_v30 = vadd.f32 %v2545_v59, %v3566_v63  ;;  %v2563_v26 = vadd.f32 %v3407_v9, %v3399_v1 }
 0x18a   : > { %v1791_v53 = vpop.f32.mrf.mxu0  ;;  %v2571_v6 = vpop.f32.mrf.mxu1  ;;  %v1135_v44 = vadd.f32 %v2439_v43, %v3561_v40  ;;  %v1671_v24 = vadd.f32 %v2554_v12, %v1114_v34  ;;  %v2557_v23 = vadd.f32 %v3382_v49, %v3375_v19  ;;  %v3573_v12 = vld [vmem:[#allocation4_spill] sm:$0xff]  ;;  %v3574_v40 = vld [vmem:[#allocation5_spill] sm:$0xff] }
 0x18b   : > { %2008 = vst.msk [vmem:[%s3355_s5 + $0x30] sm:$0xf] %vm1995_vm1, %v2317_v27  ;;  %v2320_v29 = vpack.c.bf16 %v1800_v50, %v1800_v50  ;;  %v1792_v14 = vadd.f32 %v1791_v53, %v1631_v8  ;;  %v2442_v27 = vadd.f32 %v3563_v54, %v3562_v39  ;;  %v3564_v50 = vld [vmem:[#allocation19_spill] sm:$0xff]  ;;  %v3565_v8 = vld [vmem:[#allocation21_spill] sm:$0xff]  ;;  %v1684_v46 = vadd.f32 %v2563_v26, %v1127_v32 }
 0x18c   : > { %v2655_v56 = vpop.f32.mrf.mxu0  ;;  %v2573_v20 = vpop.f32.mrf.mxu1  ;;  %v2548_v53 = vadd.f32 %v3565_v8, %v3564_v50 }
 0x18d   : > { %2011 = vst.msk [vmem:[%s3355_s5 + $0x3c] sm:$0xf] %vm1995_vm1, %v2320_v29  ;;  %v2318_v2 = vpack.c.bf16 %v1792_v14, %v1792_v14  ;;  %v1813_v60 = vadd.f32 %v2655_v56, %v1652_v51  ;;  %v1146_v56 = vadd.f32 %v3567_v21, %v2448_v28  ;;  %v3572_v28 = vld [vmem:[#allocation15_spill] sm:$0xff] }
 0x18e   : > { %v1804_v15 = vpop.f32.mrf.mxu0  ;;  %v2574_v33 = vpop.f32.mrf.mxu1 }
 0x18f   : > { %2009 = vst.msk [vmem:[%s3355_s5 + $0x34] sm:$0xf] %vm1995_vm1, %v2318_v2  ;;  %v2323_v58 = vpack.c.bf16 %v1813_v60, %v1813_v60  ;;  %v1805_v3 = vadd.f32 %v1804_v15, %v1644_v62  ;;  %v2575_v45 = vadd.f32 %v2574_v33, %v2573_v20  ;;  %v2572_v2 = vadd.f32 %v2571_v6, %v2570_v37  ;;  %v3569_v37 = vld [vmem:[#allocation11_spill] sm:$0xff] }
 0x190   : > { %v2656_v42 = vpop.f32.mrf.mxu0  ;;  %v2576_v18 = vpop.f32.mrf.mxu1  ;;  %v1663_v6 = vadd.f32 %v2548_v53, %v3569_v37 }
 0x191   : > { %2014 = vst.msk [vmem:[%s3355_s5 + $0x48] sm:$0xf] %vm1995_vm1, %v2323_v58  ;;  %v2321_v38 = vpack.c.bf16 %v1805_v3, %v1805_v3  ;;  %v1816_v48 = vadd.f32 %v2656_v42, %v1655_v17  ;;  %v1700_v51 = vadd.f32 %v2575_v45, %v1143_v55  ;;  %v1692_v58 = vadd.f32 %v2569_v0, %v1135_v44  ;;  %v3568_v3 = vld [vmem:[#allocation9_spill] sm:$0xff]  ;;  %v3571_v45 = vld [vmem:[#allocation12_spill] sm:$0xff] }
 0x192   : > { %v1807_v7 = vpop.f32.mrf.mxu0  ;;  %v2577_v13 = vpop.f32.mrf.mxu1  ;;  %v1138_v17 = vadd.f32 %v2442_v27, %v3568_v3  ;;  %v3575_v44 = vld [vmem:[#allocation13_spill] sm:$0xff] }
 0x193   : > { %2012 = vst.msk [vmem:[%s3355_s5 + $0x40] sm:$0xf] %vm1995_vm1, %v2321_v38  ;;  %v2324_v10 = vpack.c.bf16 %v1816_v48, %v1816_v48  ;;  %v1808_v61 = vadd.f32 %v1807_v7, %v1647_v11  ;;  %v2578_v57 = vadd.f32 %v2577_v13, %v2576_v18  ;;  %v3570_v38 = vld [vmem:[#allocation3_spill] sm:$0xff]  ;;  %v2566_v11 = vadd.f32 %v3421_v36, %v3413_v25 }
 0x194   : > { %v2659_v29 = vpop.f32.mrf.mxu0  ;;  %v2667_v60 = vpop.f32.mrf.mxu1  ;;  %v1119_v48 = vadd.f32 %v3571_v45, %v3570_v38  ;;  %v1695_v41 = vadd.f32 %v2572_v2, %v1138_v17  ;;  %v1130_v18 = vadd.f32 %v3573_v12, %v3572_v28  ;;  %v2560_v25 = vadd.f32 %v3395_v4, %v3387_v31 }
 0x195   : > { %2015 = vst.msk [vmem:[%s3355_s5 + $0x4c] sm:$0xf] %vm1995_vm1, %v2324_v10  ;;  %v2322_v16 = vpack.c.bf16 %v1808_v61, %v1808_v61  ;;  %v1829_v14 = vadd.f32 %v2659_v29, %v1668_v22  ;;  %v1861_v15 = vadd.f32 %v2667_v60, %v1700_v51  ;;  %v1703_v9 = vadd.f32 %v2578_v57, %v1146_v56 }
 0x196   : > { %v1820_v62 = vpop.f32.mrf.mxu0  ;;  %v1852_v43 = vpop.f32.mrf.mxu1  ;;  %v1676_v0 = vadd.f32 %v2557_v23, %v1119_v48  ;;  %v1122_v39 = vadd.f32 %v3575_v44, %v3574_v40  ;;  %v1687_v50 = vadd.f32 %v2566_v11, %v1130_v18 }
 0x197   : > { %2013 = vst.msk [vmem:[%s3355_s5 + $0x44] sm:$0xf] %vm1995_vm1, %v2322_v16  ;;  %v2327_v20 = vpack.c.bf16 %v1829_v14, %v1829_v14  ;;  %v1821_v35 = vadd.f32 %v1820_v62, %v1660_v30  ;;  %v2335_v34 = vpack.c.bf16 %v1861_v15, %v1861_v15  ;;  %v1853_v33 = vadd.f32 %v1852_v43, %v1692_v58 }
 0x198   : > { %v2660_v1 = vpop.f32.mrf.mxu0  ;;  %v2668_v19 = vpop.f32.mrf.mxu1  ;;  %v1679_v29 = vadd.f32 %v2560_v25, %v1122_v39 }
 0x199   : > { %2018 = vst.msk [vmem:[%s3355_s5 + $0x58] sm:$0xf] %vm1995_vm1, %v2327_v20  ;;  %v2325_v59 = vpack.c.bf16 %v1821_v35, %v1821_v35  ;;  %v1832_v42 = vadd.f32 %v2660_v1, %v1671_v24  ;;  %2026 = vst.msk [vmem:[%s3355_s5 + $0x78] sm:$0xf] %vm1995_vm1, %v2335_v34  ;;  %v2333_v47 = vpack.c.bf16 %v1853_v33, %v1853_v33 }
 0x19a   : > { %v1823_v49 = vpop.f32.mrf.mxu0  ;;  %v1864_v5 = vadd.f32 %v2668_v19, %v1703_v9  ;;  %v1855_v36 = vpop.f32.mrf.mxu1 }
 0x19b   : > { %2016 = vst.msk [vmem:[%s3355_s5 + $0x50] sm:$0xf] %vm1995_vm1, %v2325_v59  ;;  %v2328_v55 = vpack.c.bf16 %v1832_v42, %v1832_v42  ;;  %v1824_v52 = vadd.f32 %v1823_v49, %v1663_v6  ;;  %2024 = vst.msk [vmem:[%s3355_s5 + $0x70] sm:$0xf] %vm1995_vm1, %v2333_v47  ;;  %v1856_v61 = vadd.f32 %v1855_v36, %v1695_v41 }
 0x19c   : > { %v2663_v7 = vpop.f32.mrf.mxu0  ;;  %v2336_v32 = vpack.c.bf16 %v1864_v5, %v1864_v5 }
 0x19d   : > { %2019 = vst.msk [vmem:[%s3355_s5 + $0x5c] sm:$0xf] %vm1995_vm1, %v2328_v55  ;;  %v2326_v10 = vpack.c.bf16 %v1824_v52, %v1824_v52  ;;  %v1845_v22 = vadd.f32 %v2663_v7, %v1684_v46  ;;  %v2334_v31 = vpack.c.bf16 %v1856_v61, %v1856_v61 }
 0x19e   : > { %v1836_v54 = vpop.f32.mrf.mxu0  ;;  %2027 = vst.msk [vmem:[%s3355_s5 + $0x7c] sm:$0xf] %vm1995_vm1, %v2336_v32 }
 0x19f   : > { %2017 = vst.msk [vmem:[%s3355_s5 + $0x54] sm:$0xf] %vm1995_vm1, %v2326_v10  ;;  %v2331_v4 = vpack.c.bf16 %v1845_v22, %v1845_v22  ;;  %v1837_v27 = vadd.f32 %v1836_v54, %v1676_v0  ;;  %2025 = vst.msk [vmem:[%s3355_s5 + $0x74] sm:$0xf] %vm1995_vm1, %v2334_v31 }
 0x1a0   : > { %v2664_v8 = vpop.f32.mrf.mxu0 }
 0x1a1   : > { %2022 = vst.msk [vmem:[%s3355_s5 + $0x68] sm:$0xf] %vm1995_vm1, %v2331_v4  ;;  %v2329_v53 = vpack.c.bf16 %v1837_v27, %v1837_v27  ;;  %v1848_v13 = vadd.f32 %v2664_v8, %v1687_v50 }
 0x1a2   : > { %v1839_v63 = vpop.f32.mrf.mxu0 }
 0x1a3   : > { %2020 = vst.msk [vmem:[%s3355_s5 + $0x60] sm:$0xf] %vm1995_vm1, %v2329_v53  ;;  %v2332_v30 = vpack.c.bf16 %v1848_v13, %v1848_v13  ;;  %v1840_v16 = vadd.f32 %v1839_v63, %v1679_v29 }
 0x1a5   : > { %2023 = vst.msk [vmem:[%s3355_s5 + $0x6c] sm:$0xf] %vm1995_vm1, %v2332_v30  ;;  %v2330_v57 = vpack.c.bf16 %v1840_v16, %v1840_v16 }
 0x1a7   : > { %2021 = vst.msk [vmem:[%s3355_s5 + $0x64] sm:$0xf] %vm1995_vm1, %v2330_v57 }
 0x1a8 PF: > { %s14_s15 = sadd.s32 1, %s2852_s15  }
 0x1a9   : > { %p11_p4 = scmp.ge.s32.totalorder %s14_s15, 4  }
 0x1ab   :  { %13 = sbr.rel (!%p11_p4) target bundleno = 1 (0x1), region = 69 }

// kernel: hgfeature_forward.53
= control target key start
LH: loop header
LB: loop body
LE: loop exit
PB: predicated region body
PF: predicated region fallthrough
CT: control target
= control target key end

     0   :  { %vm2284_vm0 = vmmov 0   ;;  %s2819_s3 = inlined_call_operand.vmem [shape: bf16[1152,128], index: 3, kind: input, shape index: {}]   ;;  %s2820_s1 = inlined_call_operand.vmem [shape: bf16[16,1152], index: 1, kind: input, shape index: {}]   ;;  %s2821_s2 = inlined_call_operand.vmem [shape: bf16[1152,128], index: 2, kind: input, shape index: {}]   ;;  %s2822_s0 = inlined_call_operand.vmem [shape: bf16[16,1152], index: 0, kind: input, shape index: {}]   ;;  %s2823_s4 = inlined_call_operand.vmem [shape: bf16[16,128], index: 4, kind: output, shape index: {}]  }
   0x1   :  { %v2113_v0 = vld [vmem:[%s2819_s3 + $0x78] sm:$0xff]   ;;  %v2117_v4 = vld [vmem:[%s2819_s3 + $0x70] sm:$0xff]   ;;  %v2121_v8 = vld [vmem:[%s2819_s3 + $0x68] sm:$0xff]  }
   0x2   :  { %v2114_v1 = vld [vmem:[%s2819_s3 + $0xf8] sm:$0xff]   ;;  %1877 = vmatprep.subr.bf16.mxu0 %v2113_v0  ;;  %v2118_v5 = vld [vmem:[%s2819_s3 + $0xf0] sm:$0xff]   ;;  %v2122_v9 = vld [vmem:[%s2819_s3 + $0xe8] sm:$0xff]  }
   0x3   :  { %v2115_v2 = vld [vmem:[%s2819_s3 + $0x38] sm:$0xff]   ;;  %1899 = vmatprep.subr.bf16.mxu1 %v2114_v1  ;;  %v2119_v6 = vld [vmem:[%s2819_s3 + $0x30] sm:$0xff]   ;;  %v2123_v10 = vld [vmem:[%s2819_s3 + $0x28] sm:$0xff]  }
   0x4   :  { %v2116_v3 = vld [vmem:[%s2819_s3 + $0xb8] sm:$0xff]   ;;  %1878 = vmatpush3.bf16.msra.mxu0 %v2115_v2  ;;  %v2120_v7 = vld [vmem:[%s2819_s3 + $0xb0] sm:$0xff]   ;;  %v2124_v11 = vld [vmem:[%s2819_s3 + $0xa8] sm:$0xff]  }
   0x5   :  { %1900 = vmatpush3.bf16.msra.mxu1 %v2116_v3  ;;  %1879 = vmatprep.subr.bf16.mxu0 %v2117_v4  ;;  %v2125_v12 = vld [vmem:[%s2819_s3 + $0x60] sm:$0xff]   ;;  %v2129_v16 = vld [vmem:[%s2819_s3 + $0x58] sm:$0xff]   ;;  %v2133_v20 = vld [vmem:[%s2819_s3 + $0x50] sm:$0xff]  }
   0x6   :  { %1901 = vmatprep.subr.bf16.mxu1 %v2118_v5  ;;  %v2126_v13 = vld [vmem:[%s2819_s3 + $0xe0] sm:$0xff]   ;;  %v2130_v17 = vld [vmem:[%s2819_s3 + $0xd8] sm:$0xff]   ;;  %v2134_v21 = vld [vmem:[%s2819_s3 + $0xd0] sm:$0xff]  }
   0x7   :  { %v2127_v14 = vld [vmem:[%s2819_s3 + $0x20] sm:$0xff]   ;;  %v2131_v18 = vld [vmem:[%s2819_s3 + $0x18] sm:$0xff]   ;;  %v2135_v22 = vld [vmem:[%s2819_s3 + $0x10] sm:$0xff]  }
   0x8   :  { %1880 = vmatpush3.bf16.msra.mxu0 %v2119_v6  ;;  %v2128_v15 = vld [vmem:[%s2819_s3 + $0xa0] sm:$0xff]   ;;  %v2132_v19 = vld [vmem:[%s2819_s3 + $0x98] sm:$0xff]   ;;  %v2136_v23 = vld [vmem:[%s2819_s3 + $0x90] sm:$0xff]  }
   0x9   :  { %1902 = vmatpush3.bf16.msra.mxu1 %v2120_v7  ;;  %1881 = vmatprep.subr.bf16.mxu0 %v2121_v8  ;;  %v2137_v24 = vld [vmem:[%s2819_s3 + $0x48] sm:$0xff]   ;;  %v2141_v28 = vld [vmem:[%s2819_s3 + $0x40] sm:$0xff]   ;;  %v2151_v36 = vld [vmem:[%s2819_s3 + $0x178] sm:$0xff]   ;;  %v2283_v7 = vmov 0.0  }
   0xa   :  { %1903 = vmatprep.subr.bf16.mxu1 %v2122_v9  ;;  %v2138_v25 = vld [vmem:[%s2819_s3 + $0xc8] sm:$0xff]   ;;  %v2142_v29 = vld [vmem:[%s2819_s3 + $0xc0] sm:$0xff]   ;;  %v2152_v37 = vld [vmem:[%s2819_s3 + $0x1f8] sm:$0xff]  }
   0xb   :  { %v2139_v26 = vld [vmem:[%s2819_s3 + $0x8] sm:$0xff]   ;;  %v2143_v30 = vld [vmem:[%s2819_s3] sm:$0xff]   ;;  %v2153_v38 = vld [vmem:[%s2819_s3 + $0x138] sm:$0xff]  }
   0xc   :  { %1882 = vmatpush3.bf16.msra.mxu0 %v2123_v10  ;;  %v2140_v27 = vld [vmem:[%s2819_s3 + $0x88] sm:$0xff]   ;;  %v2144_v31 = vld [vmem:[%s2819_s3 + $0x80] sm:$0xff]   ;;  %v2154_v39 = vld [vmem:[%s2819_s3 + $0x1b8] sm:$0xff]  }
   0xd   :  { %1904 = vmatpush3.bf16.msra.mxu1 %v2124_v11  ;;  %1883 = vmatprep.subr.bf16.mxu0 %v2125_v12  ;;  %v2145_v32 = vld [vmem:[%s2820_s1] ss:$36 sps:$4 sm:$0xff]   ;;  %v2148_v34 = vld [vmem:[%s2820_s1 + $0x8] ss:$36 sps:$4 sm:$0xff]   ;;  %v2155_v40 = vld [vmem:[%s2819_s3 + $0x170] sm:$0xff]  }
   0xe   :  { %1905 = vmatprep.subr.bf16.mxu1 %v2126_v13  ;;  %v2147_v33 = vld [vmem:[%s2820_s1 + $0x4] ss:$36 sps:$4 sm:$0xff]   ;;  %v2150_v35 = vld [vmem:[%s2820_s1 + $0xc] ss:$36 sps:$4 sm:$0xff]   ;;  %v2167_v52 = vld [vmem:[%s2819_s3 + $0x158] sm:$0xff]  }
   0xf   :  { %836 = vmatprep.mubr.bf16.mxu0 %v2147_v33  ;;  %877 = vmatprep.mubr.bf16.mxu1 %v2150_v35  ;;  %v2156_v41 = vld [vmem:[%s2819_s3 + $0x1f0] sm:$0xff]   ;;  %v2159_v44 = vld [vmem:[%s2819_s3 + $0x168] sm:$0xff]   ;;  %v2163_v48 = vld [vmem:[%s2819_s3 + $0x160] sm:$0xff]  }
  0x10   :  { %1884 = vmatpush3.bf16.msra.mxu0 %v2127_v14  ;;  %v2157_v42 = vld [vmem:[%s2819_s3 + $0x130] sm:$0xff]   ;;  %v2160_v45 = vld [vmem:[%s2819_s3 + $0x1e8] sm:$0xff]   ;;  %v2164_v49 = vld [vmem:[%s2819_s3 + $0x1e0] sm:$0xff]  }
  0x11   :  { %1906 = vmatpush3.bf16.msra.mxu1 %v2128_v15  ;;  %1885 = vmatprep.subr.bf16.mxu0 %v2129_v16  ;;  %v2158_v43 = vld [vmem:[%s2819_s3 + $0x1b0] sm:$0xff]   ;;  %v2161_v46 = vld [vmem:[%s2819_s3 + $0x128] sm:$0xff]   ;;  %v2165_v50 = vld [vmem:[%s2819_s3 + $0x120] sm:$0xff]  }
  0x12   :  { %1907 = vmatprep.subr.bf16.mxu1 %v2130_v17  ;;  %v2162_v47 = vld [vmem:[%s2819_s3 + $0x1a8] sm:$0xff]   ;;  %v2166_v51 = vld [vmem:[%s2819_s3 + $0x1a0] sm:$0xff]   ;;  %v2168_v53 = vld [vmem:[%s2819_s3 + $0x1d8] sm:$0xff]  }
  0x13   :  { %v2169_v54 = vld [vmem:[%s2819_s3 + $0x118] sm:$0xff]   ;;  %v2171_v56 = vld [vmem:[%s2819_s3 + $0x150] sm:$0xff]   ;;  %v2175_v60 = vld [vmem:[%s2819_s3 + $0x148] sm:$0xff]  }
  0x14   :  { %1886 = vmatpush3.bf16.msra.mxu0 %v2131_v18  ;;  %v2170_v55 = vld [vmem:[%s2819_s3 + $0x198] sm:$0xff]   ;;  %v2172_v57 = vld [vmem:[%s2819_s3 + $0x1d0] sm:$0xff]   ;;  %v2176_v61 = vld [vmem:[%s2819_s3 + $0x1c8] sm:$0xff]  }
  0x15   :  { %1908 = vmatpush3.bf16.msra.mxu1 %v2132_v19  ;;  %1887 = vmatprep.subr.bf16.mxu0 %v2133_v20  ;;  %v2173_v58 = vld [vmem:[%s2819_s3 + $0x110] sm:$0xff]   ;;  %v2177_v62 = vld [vmem:[%s2819_s3 + $0x108] sm:$0xff]   ;;  %v2179_v0 = vld [vmem:[%s2819_s3 + $0x140] sm:$0xff]  }
  0x16   :  { %1909 = vmatprep.subr.bf16.mxu1 %v2134_v21  ;;  %v2174_v59 = vld [vmem:[%s2819_s3 + $0x190] sm:$0xff]   ;;  %v2178_v63 = vld [vmem:[%s2819_s3 + $0x188] sm:$0xff]   ;;  %v2180_v1 = vld [vmem:[%s2819_s3 + $0x1c0] sm:$0xff]  }
  0x17   :  { %v2181_v2 = vld [vmem:[%s2819_s3 + $0x100] sm:$0xff]   ;;  %v2183_v4 = vld [vmem:[%s2820_s1 + $0x10] ss:$36 sps:$4 sm:$0xff]   ;;  %v2186_v6 = vld [vmem:[%s2820_s1 + $0x18] ss:$36 sps:$4 sm:$0xff]  }
  0x18   :  { %1888 = vmatpush3.bf16.msra.mxu0 %v2135_v22  ;;  %v2182_v3 = vld [vmem:[%s2819_s3 + $0x180] sm:$0xff]   ;;  %v2185_v5 = vld [vmem:[%s2820_s1 + $0x14] ss:$36 sps:$4 sm:$0xff]   ;;  %v2195_v15 = vld [vmem:[%s2821_s2 + $0x68] sm:$0xff]  }
  0x19   :  { %1910 = vmatpush3.bf16.msra.mxu1 %v2136_v23  ;;  %1889 = vmatprep.subr.bf16.mxu0 %v2137_v24  ;;  %v2188_v8 = vld [vmem:[%s2820_s1 + $0x1c] ss:$36 sps:$4 sm:$0xff]   ;;  %v2192_v12 = vld [vmem:[%s2821_s2 + $0x70] sm:$0xff]   ;;  %v2196_v16 = vld [vmem:[%s2819_s3 + $0x228] sm:$0xff]  }
  0x1a   :  { %1911 = vmatprep.subr.bf16.mxu1 %v2138_v25  ;;  %v2189_v9 = vld [vmem:[%s2821_s2 + $0x78] sm:$0xff]   ;;  %v2193_v13 = vld [vmem:[%s2819_s3 + $0x230] sm:$0xff]   ;;  %v2197_v17 = vld [vmem:[%s2821_s2 + $0x28] sm:$0xff]  }
  0x1b   :  { %v2190_v10 = vld [vmem:[%s2819_s3 + $0x238] sm:$0xff]   ;;  %v2194_v14 = vld [vmem:[%s2821_s2 + $0x30] sm:$0xff]   ;;  %v2198_v18 = vld [vmem:[%s2821_s2 + $0x60] sm:$0xff]  }
  0x1c   :  { %1890 = vmatpush3.bf16.msra.mxu0 %v2139_v26  ;;  %v2191_v11 = vld [vmem:[%s2821_s2 + $0x38] sm:$0xff]   ;;  %v2199_v19 = vld [vmem:[%s2819_s3 + $0x220] sm:$0xff]   ;;  %v2204_v24 = vld [vmem:[%s2821_s2 + $0x50] sm:$0xff]  }
  0x1d   :  { %1912 = vmatpush3.bf16.msra.mxu1 %v2140_v27  ;;  %1891 = vmatprep.subr.bf16.mxu0 %v2141_v28  ;;  %v2200_v20 = vld [vmem:[%s2821_s2 + $0x20] sm:$0xff]   ;;  %v2201_v21 = vld [vmem:[%s2821_s2 + $0x58] sm:$0xff]   ;;  %v2205_v25 = vld [vmem:[%s2819_s3 + $0x210] sm:$0xff]  }
  0x1e   :  { %1913 = vmatprep.subr.bf16.mxu1 %v2142_v29  ;;  %v2202_v22 = vld [vmem:[%s2819_s3 + $0x218] sm:$0xff]   ;;  %v2206_v26 = vld [vmem:[%s2821_s2 + $0x10] sm:$0xff]   ;;  %v2207_v27 = vld [vmem:[%s2821_s2 + $0x48] sm:$0xff]  }
  0x1f   :  { %v2203_v23 = vld [vmem:[%s2821_s2 + $0x18] sm:$0xff]   ;;  %v2208_v28 = vld [vmem:[%s2819_s3 + $0x208] sm:$0xff]   ;;  %v2212_v33 = vld [vmem:[%s2821_s2] sm:$0xff]  }
  0x20   :  { %1892 = vmatpush3.bf16.msra.mxu0 %v2143_v30  ;;  %v2209_v29 = vld [vmem:[%s2821_s2 + $0x8] sm:$0xff]   ;;  %v2217_v35 = vld [vmem:[%s2821_s2 + $0xf8] sm:$0xff]  }
  0x21   :  { %1914 = vmatpush3.bf16.msra.mxu1 %v2144_v31  ;;  %1921 = vmatprep.subr.bf16.mxu0 %v2151_v36  ;;  %v2215_v30 = vld [vmem:[%s2822_s0 + $0x4] ss:$36 sps:$4 sm:$0xff]  }
  0x22   :  { %1943 = vmatprep.subr.bf16.mxu1 %v2152_v37  ;;  %v2210_v31 = vld [vmem:[%s2821_s2 + $0x40] sm:$0xff]   ;;  %v2218_v37 = vld [vmem:[%s2821_s2 + $0x178] sm:$0xff]  }
  0x23   :  { %837 = vmatmul.mubr.bf16.vlgmr.msra.gmra.mxu0 %v2145_v32  ;;  %v2211_v32 = vld [vmem:[%s2819_s3 + $0x200] sm:$0xff]  }
  0x24   :  { %878 = vmatmul.mubr.bf16.vlgmr.msra.gmra.mxu1 %v2148_v34  ;;  %1922 = vmatpush3.bf16.msra.mxu0 %v2153_v38  ;;  %v2216_v34 = vld [vmem:[%s2820_s1 + $0x20] ss:$36 sps:$4 sm:$0xff]   ;;  %v2219_v38 = vld [vmem:[%s2821_s2 + $0xb8] sm:$0xff]  }
  0x25   :  { %1944 = vmatpush3.bf16.msra.mxu1 %v2154_v39  ;;  %1923 = vmatprep.subr.bf16.mxu0 %v2155_v40  ;;  %v2213_v36 = vld [vmem:[%s2822_s0] ss:$36 sps:$4 sm:$0xff]   ;;  %v2220_v39 = vld [vmem:[%s2821_s2 + $0x138] sm:$0xff]   ;;  %v2221_v40 = vld [vmem:[%s2821_s2 + $0xf0] sm:$0xff]  }
  0x26   :  { %1945 = vmatprep.subr.bf16.mxu1 %v2156_v41  ;;  %918 = vmatprep.mubr.bf16.mxu0 %v2185_v5  ;;  %v2222_v41 = vld [vmem:[%s2821_s2 + $0x170] sm:$0xff]   ;;  %v2249_v5 = vld [vmem:[%s2822_s0 + $0x8] ss:$36 sps:$4 sm:$0xff]  }
  0x27   :  { %959 = vmatprep.mubr.bf16.mxu1 %v2188_v8  ;;  %v2252_v8 = vld [vmem:[%s2822_s0 + $0x10] ss:$36 sps:$4 sm:$0xff]  }
  0x28   :  { %1924 = vmatpush3.bf16.msra.mxu0 %v2157_v42  ;;  %v2223_v42 = vld [vmem:[%s2821_s2 + $0xb0] sm:$0xff]  }
  0x29   :  { %1946 = vmatpush3.bf16.msra.mxu1 %v2158_v43  ;;  %1925 = vmatprep.subr.bf16.mxu0 %v2159_v44  ;;  %v2224_v43 = vld [vmem:[%s2821_s2 + $0x130] sm:$0xff]   ;;  %v2225_v44 = vld [vmem:[%s2821_s2 + $0xe8] sm:$0xff]  }
  0x2a   :  { %1947 = vmatprep.subr.bf16.mxu1 %v2160_v45  ;;  %v2226_v45 = vld [vmem:[%s2821_s2 + $0x168] sm:$0xff]  }
  0x2c   :  { %1926 = vmatpush3.bf16.msra.mxu0 %v2161_v46  ;;  %v2227_v46 = vld [vmem:[%s2821_s2 + $0xa8] sm:$0xff]  }
  0x2d   :  { %1948 = vmatpush3.bf16.msra.mxu1 %v2162_v47  ;;  %1927 = vmatprep.subr.bf16.mxu0 %v2163_v48  ;;  %v2228_v47 = vld [vmem:[%s2821_s2 + $0x128] sm:$0xff]   ;;  %v2229_v48 = vld [vmem:[%s2821_s2 + $0xe0] sm:$0xff]  }
  0x2e   :  { %1949 = vmatprep.subr.bf16.mxu1 %v2164_v49  ;;  %v2230_v49 = vld [vmem:[%s2821_s2 + $0x160] sm:$0xff]  }
  0x30   :  { %1928 = vmatpush3.bf16.msra.mxu0 %v2165_v50  ;;  %v2231_v50 = vld [vmem:[%s2821_s2 + $0xa0] sm:$0xff]  }
  0x31   :  { %1950 = vmatpush3.bf16.msra.mxu1 %v2166_v51  ;;  %1929 = vmatprep.subr.bf16.mxu0 %v2167_v52  ;;  %v2232_v51 = vld [vmem:[%s2821_s2 + $0x120] sm:$0xff]   ;;  %v2233_v52 = vld [vmem:[%s2821_s2 + $0xd8] sm:$0xff]  }
  0x32   :  { %1951 = vmatprep.subr.bf16.mxu1 %v2168_v53  ;;  %v2234_v53 = vld [vmem:[%s2821_s2 + $0x158] sm:$0xff]  }
  0x34   :  { %1930 = vmatpush3.bf16.msra.mxu0 %v2169_v54  ;;  %v2235_v54 = vld [vmem:[%s2821_s2 + $0x98] sm:$0xff]  }
  0x35   :  { %1952 = vmatpush3.bf16.msra.mxu1 %v2170_v55  ;;  %1931 = vmatprep.subr.bf16.mxu0 %v2171_v56  ;;  %v2236_v55 = vld [vmem:[%s2821_s2 + $0x118] sm:$0xff]   ;;  %v2237_v56 = vld [vmem:[%s2821_s2 + $0xd0] sm:$0xff]  }
  0x36   :  { %1953 = vmatprep.subr.bf16.mxu1 %v2172_v57  ;;  %v2238_v57 = vld [vmem:[%s2821_s2 + $0x150] sm:$0xff]  }
  0x38   :  { %1932 = vmatpush3.bf16.msra.mxu0 %v2173_v58  ;;  %v2239_v58 = vld [vmem:[%s2821_s2 + $0x90] sm:$0xff]  }
  0x39   :  { %1954 = vmatpush3.bf16.msra.mxu1 %v2174_v59  ;;  %1933 = vmatprep.subr.bf16.mxu0 %v2175_v60  ;;  %v2240_v59 = vld [vmem:[%s2821_s2 + $0x110] sm:$0xff]   ;;  %v2241_v60 = vld [vmem:[%s2821_s2 + $0xc8] sm:$0xff]  }
  0x3a   :  { %1955 = vmatprep.subr.bf16.mxu1 %v2176_v61  ;;  %v2242_v61 = vld [vmem:[%s2821_s2 + $0x148] sm:$0xff]  }
  0x3c   :  { %1934 = vmatpush3.bf16.msra.mxu0 %v2177_v62  ;;  %v2243_v62 = vld [vmem:[%s2821_s2 + $0x88] sm:$0xff]  }
  0x3d   :  { %1956 = vmatpush3.bf16.msra.mxu1 %v2178_v63  ;;  %1935 = vmatprep.subr.bf16.mxu0 %v2179_v0  ;;  %v2244_v63 = vld [vmem:[%s2821_s2 + $0x108] sm:$0xff]   ;;  %v2245_v0 = vld [vmem:[%s2821_s2 + $0xc0] sm:$0xff]  }
  0x3e   :  { %1957 = vmatprep.subr.bf16.mxu1 %v2180_v1  ;;  %v2246_v1 = vld [vmem:[%s2821_s2 + $0x140] sm:$0xff]  }
  0x40   :  { %1936 = vmatpush3.bf16.msra.mxu0 %v2181_v2  ;;  %v2247_v2 = vld [vmem:[%s2821_s2 + $0x80] sm:$0xff]  }
  0x41   :  { %1958 = vmatpush3.bf16.msra.mxu1 %v2182_v3  ;;  %2071 = vmatprep.subr.bf16.mxu0 %v2283_v7  ;;  %v2251_v3 = vld [vmem:[%s2822_s0 + $0xc] ss:$36 sps:$4 sm:$0xff]  }
  0x42   :  { %1974 = vmatprep.subr.bf16.mxu1 %v2189_v9  ;;  %v2255_v9 = vld [vmem:[%s2821_s2 + $0x1f8] sm:$0xff]  }
  0x43   :  { %919 = vmatmul.mubr.bf16.vlgmr.msra.gmra.mxu0 %v2183_v4  ;;  %v2248_v4 = vld [vmem:[%s2821_s2 + $0x100] sm:$0xff]  }
  0x44   :  { %2087 = vmatprep.mubr.msk.bf16.mxu0 %vm2284_vm0, %v2283_v7  ;;  %960 = vmatmul.mubr.bf16.vlgmr.msra.gmra.mxu1 %v2186_v6  ;;  %v2254_v6 = vld [vmem:[%s2822_s0 + $0x14] ss:$36 sps:$4 sm:$0xff]  }
  0x45   :  { %2072 = vmatpush3.bf16.msra.mxu0 %v2190_v10  ;;  %1975 = vmatpush3.bf16.msra.mxu1 %v2191_v11  ;;  %v2256_v10 = vld [vmem:[%s2821_s2 + $0x1b8] sm:$0xff]  }
  0x46   :  { %2073 = vmatprep.subr.bf16.mxu0 %v2283_v7  ;;  %1976 = vmatprep.subr.bf16.mxu1 %v2192_v12  ;;  %v2257_v11 = vld [vmem:[%s2821_s2 + $0x238] sm:$0xff]   ;;  %v2258_v12 = vld [vmem:[%s2821_s2 + $0x1f0] sm:$0xff]  }
  0x47   :  { %1519 = vmatprep.mubr.bf16.mxu1 %v2215_v30  ;;  %v2275_v30 = vld [vmem:[%s2821_s2 + $0x208] sm:$0xff]  }
  0x49   :  { %2074 = vmatpush3.bf16.msra.mxu0 %v2193_v13  ;;  %1977 = vmatpush3.bf16.msra.mxu1 %v2194_v14  ;;  %v2259_v13 = vld [vmem:[%s2821_s2 + $0x1b0] sm:$0xff]  }
  0x4a   :  { %2075 = vmatprep.subr.bf16.mxu0 %v2283_v7  ;;  %1978 = vmatprep.subr.bf16.mxu1 %v2195_v15  ;;  %v2260_v14 = vld [vmem:[%s2821_s2 + $0x230] sm:$0xff]   ;;  %v2261_v15 = vld [vmem:[%s2821_s2 + $0x1e8] sm:$0xff]  }
  0x4d   :  { %2076 = vmatpush3.bf16.msra.mxu0 %v2196_v16  ;;  %1979 = vmatpush3.bf16.msra.mxu1 %v2197_v17  ;;  %v2262_v16 = vld [vmem:[%s2821_s2 + $0x1a8] sm:$0xff]  }
  0x4e   :  { %2077 = vmatprep.subr.bf16.mxu0 %v2283_v7  ;;  %1980 = vmatprep.subr.bf16.mxu1 %v2198_v18  ;;  %v2263_v17 = vld [vmem:[%s2821_s2 + $0x228] sm:$0xff]   ;;  %v2264_v18 = vld [vmem:[%s2821_s2 + $0x1e0] sm:$0xff]  }
  0x51   :  { %2078 = vmatpush3.bf16.msra.mxu0 %v2199_v19  ;;  %1981 = vmatpush3.bf16.msra.mxu1 %v2200_v20  ;;  %v2265_v19 = vld [vmem:[%s2821_s2 + $0x1a0] sm:$0xff]  }
  0x52   :  { %2079 = vmatprep.subr.bf16.mxu0 %v2283_v7  ;;  %1982 = vmatprep.subr.bf16.mxu1 %v2201_v21  ;;  %v2266_v20 = vld [vmem:[%s2821_s2 + $0x220] sm:$0xff]   ;;  %v2267_v21 = vld [vmem:[%s2821_s2 + $0x1d8] sm:$0xff]  }
  0x55   :  { %2080 = vmatpush3.bf16.msra.mxu0 %v2202_v22  ;;  %1983 = vmatpush3.bf16.msra.mxu1 %v2203_v23  ;;  %v2268_v22 = vld [vmem:[%s2821_s2 + $0x198] sm:$0xff]  }
  0x56   :  { %2081 = vmatprep.subr.bf16.mxu0 %v2283_v7  ;;  %1984 = vmatprep.subr.bf16.mxu1 %v2204_v24  ;;  %v2269_v23 = vld [vmem:[%s2821_s2 + $0x218] sm:$0xff]   ;;  %v2270_v24 = vld [vmem:[%s2821_s2 + $0x1d0] sm:$0xff]  }
  0x59   :  { %2082 = vmatpush3.bf16.msra.mxu0 %v2205_v25  ;;  %1985 = vmatpush3.bf16.msra.mxu1 %v2206_v26  ;;  %v2271_v25 = vld [vmem:[%s2821_s2 + $0x190] sm:$0xff]  }
  0x5a   :  { %2083 = vmatprep.subr.bf16.mxu0 %v2283_v7  ;;  %1986 = vmatprep.subr.bf16.mxu1 %v2207_v27  ;;  %v2272_v26 = vld [vmem:[%s2821_s2 + $0x210] sm:$0xff]   ;;  %v2273_v27 = vld [vmem:[%s2821_s2 + $0x1c8] sm:$0xff]  }
  0x5d   :  { %2084 = vmatpush3.bf16.msra.mxu0 %v2208_v28  ;;  %1987 = vmatpush3.bf16.msra.mxu1 %v2209_v29  ;;  %v2281_v28 = vld [vmem:[%s2822_s0 + $0x1c] ss:$36 sps:$4 sm:$0xff]   ;;  %v2274_v29 = vld [vmem:[%s2821_s2 + $0x188] sm:$0xff]  }
  0x5e   :  { %2085 = vmatprep.subr.bf16.mxu0 %v2283_v7  ;;  %1988 = vmatprep.subr.bf16.mxu1 %v2210_v31  ;;  %v2276_v31 = vld [vmem:[%s2821_s2 + $0x1c0] sm:$0xff]  }
  0x61   :  { %2086 = vmatpush3.bf16.msra.mxu0 %v2211_v32  ;;  %1989 = vmatpush3.bf16.msra.mxu1 %v2212_v33  ;;  %v2277_v32 = vld [vmem:[%s2821_s2 + $0x180] sm:$0xff]  }
  0x62   :  { %1996 = vmatprep.subr.bf16.mxu0 %v2217_v35  ;;  %2018 = vmatprep.subr.bf16.mxu1 %v2218_v37  ;;  %v2278_v33 = vld [vmem:[%s2821_s2 + $0x200] sm:$0xff]  }
  0x63   :  { %v2282_v35 = vld [vmem:[%s2822_s0 + $0x20] ss:$36 sps:$4 sm:$0xff]  }
  0x64   :  { %2088 = vmatmul.mubr.bf16.vlgmr.msra.gmra.mxu0 %v2216_v34  ;;  %1520 = vmatmul.mubr.bf16.vlgmr.msra.gmra.mxu1 %v2213_v36  ;;  %v2279_v34 = vld [vmem:[%s2822_s0 + $0x18] ss:$36 sps:$4 sm:$0xff]  }
  0x65   :  { %1997 = vmatpush3.bf16.msra.mxu0 %v2219_v38  ;;  %2019 = vmatpush3.bf16.msra.mxu1 %v2220_v39 }
  0x66   :  { %1998 = vmatprep.subr.bf16.mxu0 %v2221_v40  ;;  %2020 = vmatprep.subr.bf16.mxu1 %v2222_v41 }
  0x67   :  { %1560 = vmatprep.mubr.bf16.mxu0 %v2251_v3  ;;  %1601 = vmatprep.mubr.bf16.mxu1 %v2254_v6 }
  0x69   :  { %1999 = vmatpush3.bf16.msra.mxu0 %v2223_v42  ;;  %2021 = vmatpush3.bf16.msra.mxu1 %v2224_v43 }
  0x6a   :  { %2000 = vmatprep.subr.bf16.mxu0 %v2225_v44  ;;  %2022 = vmatprep.subr.bf16.mxu1 %v2226_v45 }
  0x6d   :  { %2001 = vmatpush3.bf16.msra.mxu0 %v2227_v46  ;;  %2023 = vmatpush3.bf16.msra.mxu1 %v2228_v47 }
  0x6e   :  { %2002 = vmatprep.subr.bf16.mxu0 %v2229_v48  ;;  %2024 = vmatprep.subr.bf16.mxu1 %v2230_v49 }
  0x71   :  { %2003 = vmatpush3.bf16.msra.mxu0 %v2231_v50  ;;  %2025 = vmatpush3.bf16.msra.mxu1 %v2232_v51 }
  0x72   :  { %2004 = vmatprep.subr.bf16.mxu0 %v2233_v52  ;;  %2026 = vmatprep.subr.bf16.mxu1 %v2234_v53 }
  0x75   :  { %2005 = vmatpush3.bf16.msra.mxu0 %v2235_v54  ;;  %2027 = vmatpush3.bf16.msra.mxu1 %v2236_v55 }
  0x76   :  { %2006 = vmatprep.subr.bf16.mxu0 %v2237_v56  ;;  %2028 = vmatprep.subr.bf16.mxu1 %v2238_v57 }
  0x79   :  { %2007 = vmatpush3.bf16.msra.mxu0 %v2239_v58  ;;  %2029 = vmatpush3.bf16.msra.mxu1 %v2240_v59 }
  0x7a   :  { %2008 = vmatprep.subr.bf16.mxu0 %v2241_v60  ;;  %2030 = vmatprep.subr.bf16.mxu1 %v2242_v61 }
  0x7d   :  { %2009 = vmatpush3.bf16.msra.mxu0 %v2243_v62  ;;  %2031 = vmatpush3.bf16.msra.mxu1 %v2244_v63 }
  0x7e   :  { %2010 = vmatprep.subr.bf16.mxu0 %v2245_v0  ;;  %2032 = vmatprep.subr.bf16.mxu1 %v2246_v1 }
  0x81   :  { %2011 = vmatpush3.bf16.msra.mxu0 %v2247_v2  ;;  %2033 = vmatpush3.bf16.msra.mxu1 %v2248_v4 }
  0x82   :  { %2040 = vmatprep.subr.bf16.mxu0 %v2255_v9  ;;  %2091 = vmatprep.subr.bf16.mxu1 %v2283_v7 }
  0x84   :  { %1561 = vmatmul.mubr.bf16.vlgmr.msra.gmra.mxu0 %v2249_v5  ;;  %1602 = vmatmul.mubr.bf16.vlgmr.msra.gmra.mxu1 %v2252_v8 }
  0x85   :  { %2041 = vmatpush3.bf16.msra.mxu0 %v2256_v10  ;;  %2092 = vmatpush3.bf16.msra.mxu1 %v2257_v11 }
  0x86   :  { %2042 = vmatprep.subr.bf16.mxu0 %v2258_v12  ;;  %2093 = vmatprep.subr.bf16.mxu1 %v2283_v7 }
  0x87   :  { %2107 = vmatprep.mubr.msk.bf16.mxu1 %vm2284_vm0, %v2283_v7  ;;  %1642 = vmatprep.mubr.bf16.mxu0 %v2281_v28 }
  0x89   :  { %2043 = vmatpush3.bf16.msra.mxu0 %v2259_v13  ;;  %2094 = vmatpush3.bf16.msra.mxu1 %v2260_v14 }
  0x8a   :  { %2044 = vmatprep.subr.bf16.mxu0 %v2261_v15  ;;  %2095 = vmatprep.subr.bf16.mxu1 %v2283_v7 }
  0x8d   :  { %2045 = vmatpush3.bf16.msra.mxu0 %v2262_v16  ;;  %2096 = vmatpush3.bf16.msra.mxu1 %v2263_v17 }
  0x8e   :  { %2046 = vmatprep.subr.bf16.mxu0 %v2264_v18  ;;  %2097 = vmatprep.subr.bf16.mxu1 %v2283_v7 }
  0x91   :  { %2047 = vmatpush3.bf16.msra.mxu0 %v2265_v19  ;;  %2098 = vmatpush3.bf16.msra.mxu1 %v2266_v20 }
  0x92   :  { %2048 = vmatprep.subr.bf16.mxu0 %v2267_v21  ;;  %2099 = vmatprep.subr.bf16.mxu1 %v2283_v7 }
  0x95   :  { %2049 = vmatpush3.bf16.msra.mxu0 %v2268_v22  ;;  %2100 = vmatpush3.bf16.msra.mxu1 %v2269_v23 }
  0x96   :  { %2050 = vmatprep.subr.bf16.mxu0 %v2270_v24  ;;  %2101 = vmatprep.subr.bf16.mxu1 %v2283_v7 }
  0x99   :  { %2051 = vmatpush3.bf16.msra.mxu0 %v2271_v25  ;;  %2102 = vmatpush3.bf16.msra.mxu1 %v2272_v26 }
  0x9a   :  { %2052 = vmatprep.subr.bf16.mxu0 %v2273_v27  ;;  %2103 = vmatprep.subr.bf16.mxu1 %v2283_v7 }
  0x9d   :  { %2053 = vmatpush3.bf16.msra.mxu0 %v2274_v29  ;;  %2104 = vmatpush3.bf16.msra.mxu1 %v2275_v30 }
  0x9e   :  { %2054 = vmatprep.subr.bf16.mxu0 %v2276_v31  ;;  %2105 = vmatprep.subr.bf16.mxu1 %v2283_v7 }
  0xa1   :  { %2055 = vmatpush3.bf16.msra.mxu0 %v2277_v32  ;;  %2106 = vmatpush3.bf16.msra.mxu1 %v2278_v33 }
  0xa4   :  { %1643 = vmatmul.mubr.bf16.vlgmr.msra.gmra.mxu0 %v2279_v34  ;;  %2108 = vmatmul.mubr.bf16.vlgmr.msra.gmra.mxu1 %v2282_v35 }
  0xe3   :  { %v1893_v36 = vpop.f32.mrf.mxu0 }
  0xe4   :  { %v1915_v42 = vpop.f32.mrf.mxu1 }
  0xe5   :  { %v1894_v37 = vpop.f32.mrf.mxu0 }
  0xe6   :  { %v1895_v38 = vadd.f32 %v1894_v37, %v1893_v36  ;;  %v1916_v7 = vpop.f32.mrf.mxu1 }
  0xe7   :  { %v1896_v39 = vpop.f32.mrf.mxu0  ;;  %v1917_v43 = vadd.f32 %v1916_v7, %v1915_v42 }
  0xe8   :  { %v1918_v49 = vpop.f32.mrf.mxu1 }
  0xe9   :  { %v1897_v40 = vpop.f32.mrf.mxu0  ;;  %v880_v46 = vadd.f32 %v1917_v43, %v1895_v38 }
  0xea   :  { %v1898_v41 = vadd.f32 %v1897_v40, %v1896_v39  ;;  %v1919_v50 = vpop.f32.mrf.mxu1 }
  0xeb   :  { %v1920_v5 = vadd.f32 %v1919_v50, %v1918_v49 }
  0xed   :  { %v883_v10 = vadd.f32 %v1920_v5, %v1898_v41 }
 0x103   :  { %v1937_v44 = vpop.f32.mrf.mxu0 }
 0x104   :  { %v1959_v51 = vpop.f32.mrf.mxu1 }
 0x105   :  { %v1938_v45 = vpop.f32.mrf.mxu0 }
 0x106   :  { %v1939_v47 = vadd.f32 %v1938_v45, %v1937_v44  ;;  %v1960_v52 = vpop.f32.mrf.mxu1 }
 0x107   :  { %v1940_v53 = vpop.f32.mrf.mxu0  ;;  %v1961_v54 = vadd.f32 %v1960_v52, %v1959_v51 }
 0x108   :  { %v921_v48 = vadd.f32 %v1939_v47, %v880_v46  ;;  %v1962_v62 = vpop.f32.mrf.mxu1 }
 0x109   :  { %v1941_v55 = vpop.f32.mrf.mxu0 }
 0x10a   :  { %v962_v56 = vadd.f32 %v1961_v54, %v921_v48  ;;  %v1963_v63 = vpop.f32.mrf.mxu1  ;;  %v1942_v9 = vadd.f32 %v1941_v55, %v1940_v53 }
 0x10b   :  { %v1964_v14 = vadd.f32 %v1963_v63, %v1962_v62 }
 0x10c   :  { %v924_v13 = vadd.f32 %v1942_v9, %v883_v10 }
 0x10e   :  { %v965_v18 = vadd.f32 %v1964_v14, %v924_v13 }
 0x124   :  { %v1002_v57 = vpop.f32.mrf.mxu0  ;;  %v1990_v0 = vpop.f32.mrf.mxu1 }
 0x125   :  { %v1003_v58 = vadd.f32 %v1002_v57, %v962_v56 }
 0x126   :  { %v2089_v59 = vpop.f32.mrf.mxu0  ;;  %v1991_v1 = vpop.f32.mrf.mxu1 }
 0x127   :  { %v1992_v15 = vadd.f32 %v1991_v1, %v1990_v0 }
 0x128   :  { %v1005_v60 = vpop.f32.mrf.mxu0  ;;  %v1993_v2 = vpop.f32.mrf.mxu1 }
 0x129   :  { %v1522_v21 = vadd.f32 %v1992_v15, %v1003_v58  ;;  %v1006_v22 = vadd.f32 %v1005_v60, %v965_v18 }
 0x12a   :  { %v2090_v61 = vpop.f32.mrf.mxu0  ;;  %v1994_v4 = vpop.f32.mrf.mxu1 }
 0x12b   :  { %v1995_v19 = vadd.f32 %v1994_v4, %v1993_v2 }
 0x12d   :  { %v1525_v26 = vadd.f32 %v1995_v19, %v1006_v22 }
 0x144   :  { %v2012_v3 = vpop.f32.mrf.mxu0  ;;  %v2034_v6 = vpop.f32.mrf.mxu1 }
 0x146   :  { %v2013_v8 = vpop.f32.mrf.mxu0  ;;  %v2035_v11 = vpop.f32.mrf.mxu1 }
 0x147   :  { %v2014_v20 = vadd.f32 %v2013_v8, %v2012_v3  ;;  %v2036_v28 = vadd.f32 %v2035_v11, %v2034_v6 }
 0x148   :  { %v2015_v12 = vpop.f32.mrf.mxu0  ;;  %v2037_v16 = vpop.f32.mrf.mxu1 }
 0x149   :  { %v1563_v27 = vadd.f32 %v2014_v20, %v1522_v21 }
 0x14a   :  { %v2016_v17 = vpop.f32.mrf.mxu0  ;;  %v2038_v24 = vpop.f32.mrf.mxu1 }
 0x14b   :  { %v2017_v23 = vadd.f32 %v2016_v17, %v2015_v12  ;;  %v2039_v32 = vadd.f32 %v2038_v24, %v2037_v16  ;;  %v1604_v36 = vadd.f32 %v2036_v28, %v1563_v27 }
 0x14d   :  { %v1566_v31 = vadd.f32 %v2017_v23, %v1525_v26 }
 0x14f   :  { %v1607_v39 = vadd.f32 %v2039_v32, %v1566_v31 }
 0x164   :  { %v2056_v25 = vpop.f32.mrf.mxu0  ;;  %v1685_v29 = vpop.f32.mrf.mxu1 }
 0x166   :  { %v2057_v30 = vpop.f32.mrf.mxu0  ;;  %v2109_v34 = vpop.f32.mrf.mxu1 }
 0x167   :  { %v2058_v33 = vadd.f32 %v2057_v30, %v2056_v25 }
 0x168   :  { %v2059_v35 = vpop.f32.mrf.mxu0  ;;  %v1688_v37 = vpop.f32.mrf.mxu1 }
 0x169   :  { %v1645_v40 = vadd.f32 %v2058_v33, %v1604_v36 }
 0x16a   :  { %v2060_v38 = vpop.f32.mrf.mxu0  ;;  %v2110_v42 = vpop.f32.mrf.mxu1 }
 0x16b   :  { %v2061_v41 = vadd.f32 %v2060_v38, %v2059_v35  ;;  %v1686_v43 = vadd.f32 %v1685_v29, %v1645_v40 }
 0x16d   :  { %v1648_v7 = vadd.f32 %v2061_v41, %v1607_v39 }
 0x16f   :  { %v1689_v44 = vadd.f32 %v1688_v37, %v1648_v7 }
 0x171   :  { %v1875_v45 = vpack.c.bf16 %v1689_v44, %v1686_v43 }
 0x173   :  { %1876 = vst [vmem:[%s2823_s4] sm:$0xff] %v1875_v45  }

</bundles_post_ra>
